<compile_context>
chip_gen: v5e
topology: v5e:2x2
jax: 0.10.0
libtpu: 0.0.40
codegen_flags: <defaults>
</compile_context>

<pallas_src>
import functools

import jax
import jax.numpy as jnp
from jax.experimental import pallas as pl
from jax.experimental.pallas import tpu as pltpu

NUM_TASK_TOKENS = 21
NUM_HEADS = 8
NUM_CLASSES = 2
KV_PAD = 32          # task tokens padded 21 -> 32 (sublane aligned, bf16-safe)
NEG_INF = -1e30


def _round_up(x, m):
    return (x + m - 1) // m * m


def _mm(x, w):
    """x @ w on the MXU: operands in w's dtype, f32 accumulation."""
    return jnp.dot(x.astype(w.dtype), w, preferred_element_type=jnp.float32)


def _esm_head_kernel(
    seq_ref,                  # (1, Tq, D)   query tokens (compute dtype)
    task_ref,                 # (1, KV, D)   key/value tokens, zero padded
    wq_ref, wk_ref, wv_ref,   # (D, D) each, (in, out) layout; wq pre-scaled
    bq_ref, bk_ref, bv_ref,   # (1, D) f32;  bq pre-scaled by 1/sqrt(hd)
    wo_ref, bo_ref,           # attention out-proj: (D, D), (1, D)
    wd_ref, bd_ref,           # dense:              (D, D), (1, D)
    wp_ref, bp_ref,           # classifier: (2, D) torch layout, (2, 1)
    out_ref,                  # (1, 2, Tq)   lane-dense (transposed) output
    k3_ref, v3_ref,           # (H, KV, hd)  per-batch K/V scratch (compute dtype)
    *, hoist_kv, approx_recip,
):
    cdt = wq_ref.dtype                            # MXU operand / activation dtype
    seq = seq_ref[0]                              # (Tq, D)
    Tq, D = seq.shape
    KV = k3_ref.shape[1]
    hd = D // NUM_HEADS

    # ---- K/V projection (+ head-major relayout), once per batch row --------
    def compute_kv():
        task = task_ref[0]                                        # (KV, D)
        k = _mm(task, wk_ref[...]) + bk_ref[...]                  # (KV, D) f32
        v = _mm(task, wv_ref[...]) + bv_ref[...]                  # (KV, D) f32
        k3_ref[...] = jnp.swapaxes(k.astype(cdt).reshape(KV, NUM_HEADS, hd), 0, 1)
        v3_ref[...] = jnp.swapaxes(v.astype(cdt).reshape(KV, NUM_HEADS, hd), 0, 1)

    if hoist_kv:
        pl.when(pl.program_id(1) == 0)(compute_kv)
    else:
        compute_kv()

    # ---- Q projection (scale already folded into wq/bq) --------------------
    q = _mm(seq, wq_ref[...]) + bq_ref[...]                        # (Tq, D) f32
    q3 = jnp.swapaxes(q.astype(cdt).reshape(Tq, NUM_HEADS, hd), 0, 1)   # (H,Tq,hd)
    k3 = k3_ref[...]
    v3 = v3_ref[...]

    # ---- batched multi-head attention, softmax in f32 ----------------------
    s = jnp.einsum("hqd,hkd->hqk", q3, k3,
                   preferred_element_type=jnp.float32)             # (H,Tq,KV)

    kv_idx = jax.lax.broadcasted_iota(jnp.int32, (1, 1, KV), 2)
    s = s + jnp.where(kv_idx < NUM_TASK_TOKENS, 0.0, NEG_INF).astype(jnp.float32)

    s = s - jnp.max(s, axis=-1, keepdims=True)
    p = jnp.exp(s)
    denom = jnp.sum(p, axis=-1, keepdims=True)
    if approx_recip:
        p = p * pl.reciprocal(denom, approx=True)   # EUP slot, approximate
    else:
        p = p / denom                               # exact (f32 parity path)

    ctx3 = jnp.einsum("hqk,hkd->hqd", p.astype(cdt), v3,
                      preferred_element_type=jnp.float32)          # (H,Tq,hd)
    ctx = jnp.swapaxes(ctx3.astype(cdt), 0, 1).reshape(Tq, D)      # (Tq, D)

    # ---- attention out-proj, dense + tanh, classifier -----------------------
    attn_out = _mm(ctx, wo_ref[...]) + bo_ref[...]                 # (Tq, D) f32
    # dropout(p=0.3) is identity in eval mode.
    pre = _mm(attn_out, wd_ref[...]) + bd_ref[...]                 # (Tq, D) f32
    h1 = jnp.tanh(pre.astype(cdt))                                 # bf16 EUP on v6e/v7x

    # classifier computed transposed -> lane-dense (2, Tq) store
    out_t = jax.lax.dot_general(
        wp_ref[...], h1, (((1,), (1,)), ((), ())),
        preferred_element_type=jnp.float32) + bp_ref[...]          # (2, Tq)
    out_ref[0] = out_t.astype(out_ref.dtype)


def esm_classification_head_mha(features, params, *, tile_sq=None,
                                param_dtype=jnp.bfloat16,
                                approx_softmax=None,
                                interpret=False):
    """features: (B, L, D) with L > 21.  Returns (B, L-21, 2) float32.

    param_dtype selects the MXU operand / activation dtype (default bf16;
    pass jnp.float32 for exact-parity mode).  Biases and all accumulation
    stay float32.  approx_softmax=None -> EUP approx reciprocal only in the
    bf16 path.
    """
    B, L, D = features.shape
    Sq = L - NUM_TASK_TOKENS
    assert Sq > 0 and D % NUM_HEADS == 0
    hd = D // NUM_HEADS

    cdt = jnp.dtype(param_dtype if param_dtype is not None else jnp.float32)
    if approx_softmax is None:
        approx_softmax = (cdt == jnp.dtype(jnp.bfloat16))

    try:
        info = pltpu.get_tpu_info()
        vmem_capacity = int(getattr(info, "vmem_capacity_bytes", 128 << 20))
    except Exception:
        vmem_capacity = 128 << 20

    if tile_sq is None:
        if Sq >= 512 and vmem_capacity >= (96 << 20):
            tile_sq = 512            # v5e / v6e (128 MiB VMEM)
        elif Sq >= 256:
            tile_sq = 256            # v7x (64 MiB VMEM) / medium sequences
        elif Sq >= 128:
            tile_sq = 128
        else:
            tile_sq = _round_up(Sq, 8)
    Sq_pad = _round_up(Sq, tile_sq)
    # lane-dense output store requires tile_sq % 128 == 0 or a single tile
    assert tile_sq % 128 == 0 or tile_sq == Sq_pad

    # --- split + pad tokens in the wrapper (single fused HBM pass in XLA);
    #     the unaligned row-21 slice never reaches the kernel. -----------------
    feats = features.astype(cdt)
    task = feats[:, :NUM_TASK_TOKENS, :]
    seq = feats[:, NUM_TASK_TOKENS:, :]
    task = jnp.pad(task, ((0, 0), (0, KV_PAD - NUM_TASK_TOKENS), (0, 0)))
    if Sq_pad != Sq:
        seq = jnp.pad(seq, ((0, 0), (0, Sq_pad - Sq), (0, 0)))

    # --- weights: pre-transpose to (in, out), fold attention scale, f32 biases --
    scale = 1.0 / float(hd) ** 0.5
    cast_w = lambda a: a.astype(cdt)
    in_w = params["in_proj_weight"]                       # (3D, D), torch (out,in)
    in_b = params["in_proj_bias"].astype(jnp.float32)     # (3D,)
    wq = cast_w(in_w[:D].T * scale)                       # scale folded into Q proj
    wk = cast_w(in_w[D:2 * D].T)
    wv = cast_w(in_w[2 * D:].T)
    bq = (in_b[:D] * scale).reshape(1, D)
    bk = in_b[D:2 * D].reshape(1, D)
    bv = in_b[2 * D:].reshape(1, D)
    wo = cast_w(params["attn_out_weight"].T)              # (D, D)
    bo = params["attn_out_bias"].astype(jnp.float32).reshape(1, D)
    wd = cast_w(params["dense_weight"].T)                 # (D, D)
    bd = params["dense_bias"].astype(jnp.float32).reshape(1, D)
    wp = cast_w(params["out_proj_weight"])                # (2, D), torch layout
    bp = params["out_proj_bias"].astype(jnp.float32).reshape(NUM_CLASSES, 1)
    weights = (wq, wk, wv, bq, bk, bv, wo, bo, wd, bd, wp, bp)

    n_s = Sq_pad // tile_sq
    # Hoist K/V into per-batch scratch unless that would serialize the only
    # megacore-shardable grid axis (B == 1 with multiple seq tiles).
    hoist_kv = not (B == 1 and n_s >= 2)
    grid = (B, n_s)
    dim_sem = ("parallel", "arbitrary") if hoist_kv else ("parallel", "parallel")
    kernel = functools.partial(_esm_head_kernel, hoist_kv=hoist_kv,
                               approx_recip=bool(approx_softmax))

    def _build(single_buffer_weights):
        spec_kwargs = {}
        if single_buffer_weights:
            # Weights are grid-invariant (index_map always (0, 0)); a single
            # buffer avoids ~w_bytes of wasted VMEM (mandatory on v7x at large D).
            spec_kwargs = dict(pipeline_mode=pl.Buffered(1))

        def _w_spec(a):
            return pl.BlockSpec(a.shape, lambda b, s: (0, 0), **spec_kwargs)

        grid_spec = pltpu.PrefetchScalarGridSpec(
            num_scalar_prefetch=0,
            grid=grid,
            in_specs=[
                pl.BlockSpec((1, tile_sq, D), lambda b, s: (b, s, 0)),   # queries
                pl.BlockSpec((1, KV_PAD, D), lambda b, s: (b, 0, 0)),    # task K/V
            ] + [_w_spec(a) for a in weights],
            out_specs=pl.BlockSpec((1, NUM_CLASSES, tile_sq),
                                   lambda b, s: (b, 0, s)),
            scratch_shapes=[pltpu.VMEM((NUM_HEADS, KV_PAD, hd), cdt),
                            pltpu.VMEM((NUM_HEADS, KV_PAD, hd), cdt)],
        )

        # --- scoped-VMEM budget: weights once (or twice w/o Buffered(1)),
        #     double-buffered streaming blocks, f32 body intermediates. --------
        c_item = cdt.itemsize
        w_bytes = sum(int(a.size) * a.dtype.itemsize for a in weights)
        w_bytes *= 1 if single_buffer_weights else 2
        stream_bytes = (2 * (tile_sq + KV_PAD) * D * c_item
                        + 2 * NUM_CLASSES * tile_sq * 4)
        kv_scratch = 2 * KV_PAD * D * c_item
        body_bytes = 8 * tile_sq * D * 4 + 2 * NUM_HEADS * tile_sq * KV_PAD * 4
        est = w_bytes + stream_bytes + kv_scratch + body_bytes + (4 << 20)
        cap = max(int(0.72 * vmem_capacity), 32 << 20)   # ~46 MB on v7x, ~92 MB else
        vmem_limit = int(min(max(est, 32 << 20), cap))

        return pl.pallas_call(
            kernel,
            out_shape=jax.ShapeDtypeStruct((B, NUM_CLASSES, Sq_pad), jnp.float32),
            grid_spec=grid_spec,
            compiler_params=pltpu.CompilerParams(
                dimension_semantics=dim_sem,
                vmem_limit_bytes=vmem_limit),
            interpret=interpret,
        )

    try:
        out_t = _build(True)(seq, task, *weights)
    except Exception:
        # Fallback for jax versions that reject single-buffer pipeline_mode.
        out_t = _build(False)(seq, task, *weights)

    # (B, 2, Sq_pad) -> (B, Sq, 2): cheap XLA transpose + un-pad in the wrapper.
    return jnp.transpose(out_t[:, :, :Sq], (0, 2, 1))


def ref_forward(features, params):
    """Pure-JAX reference of the PyTorch forward (eval mode)."""
    B, L, D = features.shape
    hd = D // NUM_HEADS
    x = features.astype(jnp.float32)
    task = x[:, :NUM_TASK_TOKENS, :]
    seq = x[:, NUM_TASK_TOKENS:, :]

    in_w = params["in_proj_weight"]
    in_b = params["in_proj_bias"]
    wq, wk, wv = in_w[:D], in_w[D:2 * D], in_w[2 * D:]
    bq, bk, bv = in_b[:D], in_b[D:2 * D], in_b[2 * D:]

    q = jnp.einsum("bld,ed->ble", seq, wq) + bq
    k = jnp.einsum("bld,ed->ble", task, wk) + bk
    v = jnp.einsum("bld,ed->ble", task, wv) + bv

    qh = q.reshape(B, -1, NUM_HEADS, hd)
    kh = k.reshape(B, -1, NUM_HEADS, hd)
    vh = v.reshape(B, -1, NUM_HEADS, hd)

    s = jnp.einsum("bqhd,bkhd->bhqk", qh, kh) / jnp.sqrt(jnp.float32(hd))
    p = jax.nn.softmax(s, axis=-1)
    ctx = jnp.einsum("bhqk,bkhd->bqhd", p, vh).reshape(B, -1, D)

    attn = jnp.einsum("bqd,ed->bqe", ctx, params["attn_out_weight"]) + params["attn_out_bias"]
    h1 = jnp.tanh(jnp.einsum("bqd,ed->bqe", attn, params["dense_weight"]) + params["dense_bias"])
    out = jnp.einsum("bqd,ed->bqe", h1, params["out_proj_weight"]) + params["out_proj_bias"]
    return out


def init_params(key, D):
    keys = jax.random.split(key, 8)
    scale = 0.05
    return {
        "in_proj_weight": scale * jax.random.normal(keys[0], (3 * D, D), jnp.float32),
        "in_proj_bias": scale * jax.random.normal(keys[1], (3 * D,), jnp.float32),
        "attn_out_weight": scale * jax.random.normal(keys[2], (D, D), jnp.float32),
        "attn_out_bias": scale * jax.random.normal(keys[3], (D,), jnp.float32),
        "dense_weight": scale * jax.random.normal(keys[4], (D, D), jnp.float32),
        "dense_bias": scale * jax.random.normal(keys[5], (D,), jnp.float32),
        "out_proj_weight": scale * jax.random.normal(keys[6], (NUM_CLASSES, D), jnp.float32),
        "out_proj_bias": scale * jax.random.normal(keys[7], (NUM_CLASSES,), jnp.float32),
    }


if __name__ == "__main__":
    B, D = 2, 32                  # 8 heads -> head_dim = 4
    Sq = 8                        # sequence (query) length after task tokens
    L = NUM_TASK_TOKENS + Sq      # 29 total tokens

    root = jax.random.PRNGKey(0)
    k_feat, k_par = jax.random.split(root)
    features = jax.random.normal(k_feat, (B, L, D), jnp.float32)
    params = init_params(k_par, D)

    ref = ref_forward(features, params)

    # exact-parity float32 path (exact softmax division)
    out_f32 = esm_classification_head_mha(features, params,
                                          param_dtype=jnp.float32)
    out_f32 = jax.block_until_ready(out_f32)
    assert out_f32.shape == (B, Sq, NUM_CLASSES)
    err_f32 = float(jnp.max(jnp.abs(out_f32 - ref)))
    assert jnp.allclose(out_f32, ref, atol=2e-3, rtol=2e-3), f"f32 max diff {err_f32}"

    # default bf16-operand path (production recommendation for all generations)
    out_bf16 = esm_classification_head_mha(features, params)
    out_bf16 = jax.block_until_ready(out_bf16)
    assert out_bf16.shape == (B, Sq, NUM_CLASSES)
    err_bf16 = float(jnp.max(jnp.abs(out_bf16 - ref)))
    assert jnp.allclose(out_bf16, ref, atol=5e-2, rtol=5e-2), f"bf16 max diff {err_bf16}"

    print("KERNEL_OK")
</pallas_src>

<mosaic_0001>
module attributes {stable_mosaic.version = 11 : i64} {
  func.func @_esm_head_kernel(%arg0: i32, %arg1: i32, %arg2: memref<1x8x32xf32, #tpu.memory_space<vmem>>, %arg3: memref<1x32x32xf32, #tpu.memory_space<vmem>>, %arg4: memref<32x32xf32, #tpu.memory_space<vmem>>, %arg5: memref<32x32xf32, #tpu.memory_space<vmem>>, %arg6: memref<32x32xf32, #tpu.memory_space<vmem>>, %arg7: memref<1x32xf32, #tpu.memory_space<vmem>>, %arg8: memref<1x32xf32, #tpu.memory_space<vmem>>, %arg9: memref<1x32xf32, #tpu.memory_space<vmem>>, %arg10: memref<32x32xf32, #tpu.memory_space<vmem>>, %arg11: memref<1x32xf32, #tpu.memory_space<vmem>>, %arg12: memref<32x32xf32, #tpu.memory_space<vmem>>, %arg13: memref<1x32xf32, #tpu.memory_space<vmem>>, %arg14: memref<2x32xf32, #tpu.memory_space<vmem>>, %arg15: memref<2x1xf32, #tpu.memory_space<vmem>>, %arg16: memref<1x2x8xf32, #tpu.memory_space<vmem>>, %arg17: memref<8x32x4xf32, #tpu.memory_space<vmem>>, %arg18: memref<8x32x4xf32, #tpu.memory_space<vmem>>) attributes {dimension_semantics = [#tpu.dimension_semantics<parallel>, #tpu.dimension_semantics<arbitrary>], iteration_bounds = array<i64: 2, 1>, scalar_prefetch = 0 : i64, scratch_operands = 2 : i64, tpu.core_type = #tpu.core_type<tc>, window_params = [{transform_indices = @transform_0, window_bounds = array<i64: 1, 8, 32>}, {transform_indices = @transform_1, window_bounds = array<i64: 1, 32, 32>}, {pipeline_mode = #tpu.pipeline_mode<synchronous>, transform_indices = @transform_2, window_bounds = array<i64: 32, 32>}, {pipeline_mode = #tpu.pipeline_mode<synchronous>, transform_indices = @transform_3, window_bounds = array<i64: 32, 32>}, {pipeline_mode = #tpu.pipeline_mode<synchronous>, transform_indices = @transform_4, window_bounds = array<i64: 32, 32>}, {pipeline_mode = #tpu.pipeline_mode<synchronous>, transform_indices = @transform_5, window_bounds = array<i64: 1, 32>}, {pipeline_mode = #tpu.pipeline_mode<synchronous>, transform_indices = @transform_6, window_bounds = array<i64: 1, 32>}, {pipeline_mode = #tpu.pipeline_mode<synchronous>, transform_indices = @transform_7, window_bounds = array<i64: 1, 32>}, {pipeline_mode = #tpu.pipeline_mode<synchronous>, transform_indices = @transform_8, window_bounds = array<i64: 32, 32>}, {pipeline_mode = #tpu.pipeline_mode<synchronous>, transform_indices = @transform_9, window_bounds = array<i64: 1, 32>}, {pipeline_mode = #tpu.pipeline_mode<synchronous>, transform_indices = @transform_10, window_bounds = array<i64: 32, 32>}, {pipeline_mode = #tpu.pipeline_mode<synchronous>, transform_indices = @transform_11, window_bounds = array<i64: 1, 32>}, {pipeline_mode = #tpu.pipeline_mode<synchronous>, transform_indices = @transform_12, window_bounds = array<i64: 2, 32>}, {pipeline_mode = #tpu.pipeline_mode<synchronous>, transform_indices = @transform_13, window_bounds = array<i64: 2, 1>}, {transform_indices = @transform_14, window_bounds = array<i64: 1, 2, 8>}]} {
    %c0 = arith.constant 0 : index
    %c0_0 = arith.constant 0 : index
    %c0_1 = arith.constant 0 : index
    %0 = vector.load %arg2[%c0, %c0_0, %c0_1] : memref<1x8x32xf32, #tpu.memory_space<vmem>>, vector<1x8x32xf32>
    %1 = vector.shape_cast %0 : vector<1x8x32xf32> to vector<8x32xf32>
    %c0_i32 = arith.constant 0 : i32
    %2 = arith.cmpi eq, %arg1, %c0_i32 : i32
    %3 = arith.extui %2 : i1 to i32
    %c0_i32_2 = arith.constant 0 : i32
    %4 = arith.cmpi ne, %3, %c0_i32_2 : i32
    scf.if %4 {
      %c0_37 = arith.constant 0 : index
      %c0_38 = arith.constant 0 : index
      %c0_39 = arith.constant 0 : index
      %54 = vector.load %arg3[%c0_37, %c0_38, %c0_39] : memref<1x32x32xf32, #tpu.memory_space<vmem>>, vector<1x32x32xf32>
      %55 = vector.shape_cast %54 : vector<1x32x32xf32> to vector<32x32xf32>
      %c0_40 = arith.constant 0 : index
      %c0_41 = arith.constant 0 : index
      %56 = vector.load %arg5[%c0_40, %c0_41] : memref<32x32xf32, #tpu.memory_space<vmem>>, vector<32x32xf32>
      %cst_42 = arith.constant dense<0.000000e+00> : vector<32x32xf32>
      %57 = tpu.matmul %55, %56, %cst_42 {dimension_numbers = #tpu.dot_dimension_numbers<[1], [0], [0], [1], [0, 0, 1, 1], [], []>} : vector<32x32xf32>, vector<32x32xf32>, vector<32x32xf32> -> vector<32x32xf32>
      %c0_43 = arith.constant 0 : index
      %c0_44 = arith.constant 0 : index
      %58 = vector.load %arg8[%c0_43, %c0_44] : memref<1x32xf32, #tpu.memory_space<vmem>>, vector<1x32xf32>
      %59 = vector.broadcast %58 : vector<1x32xf32> to vector<32x32xf32>
      %60 = arith.addf %57, %59 : vector<32x32xf32>
      %c0_45 = arith.constant 0 : index
      %c0_46 = arith.constant 0 : index
      %61 = vector.load %arg6[%c0_45, %c0_46] : memref<32x32xf32, #tpu.memory_space<vmem>>, vector<32x32xf32>
      %cst_47 = arith.constant dense<0.000000e+00> : vector<32x32xf32>
      %62 = tpu.matmul %55, %61, %cst_47 {dimension_numbers = #tpu.dot_dimension_numbers<[1], [0], [0], [1], [0, 0, 1, 1], [], []>} : vector<32x32xf32>, vector<32x32xf32>, vector<32x32xf32> -> vector<32x32xf32>
      %c0_48 = arith.constant 0 : index
      %c0_49 = arith.constant 0 : index
      %63 = vector.load %arg9[%c0_48, %c0_49] : memref<1x32xf32, #tpu.memory_space<vmem>>, vector<1x32xf32>
      %64 = vector.broadcast %63 : vector<1x32xf32> to vector<32x32xf32>
      %65 = arith.addf %62, %64 : vector<32x32xf32>
      %66 = vector.shape_cast %60 : vector<32x32xf32> to vector<32x8x4xf32>
      %67 = tpu.transpose %66, [1, 0, 2] : vector<32x8x4xf32> -> vector<8x32x4xf32>
      %c0_50 = arith.constant 0 : index
      %c0_51 = arith.constant 0 : index
      %c0_52 = arith.constant 0 : index
      %68 = vector.load %arg17[%c0_50, %c0_51, %c0_52] : memref<8x32x4xf32, #tpu.memory_space<vmem>>, vector<8x32x4xf32>
      tpu.vector_store %arg17[%c0_50, %c0_51, %c0_52], %67 {strides = array<i32>} : memref<8x32x4xf32, #tpu.memory_space<vmem>>, vector<8x32x4xf32>,
      %69 = vector.shape_cast %65 : vector<32x32xf32> to vector<32x8x4xf32>
      %70 = tpu.transpose %69, [1, 0, 2] : vector<32x8x4xf32> -> vector<8x32x4xf32>
      %c0_53 = arith.constant 0 : index
      %c0_54 = arith.constant 0 : index
      %c0_55 = arith.constant 0 : index
      %71 = vector.load %arg18[%c0_53, %c0_54, %c0_55] : memref<8x32x4xf32, #tpu.memory_space<vmem>>, vector<8x32x4xf32>
      tpu.vector_store %arg18[%c0_53, %c0_54, %c0_55], %70 {strides = array<i32>} : memref<8x32x4xf32, #tpu.memory_space<vmem>>, vector<8x32x4xf32>,
    } else {
    }
    %c0_3 = arith.constant 0 : index
    %c0_4 = arith.constant 0 : index
    %5 = vector.load %arg4[%c0_3, %c0_4] : memref<32x32xf32, #tpu.memory_space<vmem>>, vector<32x32xf32>
    %cst = arith.constant dense<0.000000e+00> : vector<8x32xf32>
    %6 = tpu.matmul %1, %5, %cst {dimension_numbers = #tpu.dot_dimension_numbers<[1], [0], [0], [1], [0, 0, 1, 1], [], []>} : vector<8x32xf32>, vector<32x32xf32>, vector<8x32xf32> -> vector<8x32xf32>
    %c0_5 = arith.constant 0 : index
    %c0_6 = arith.constant 0 : index
    %7 = vector.load %arg7[%c0_5, %c0_6] : memref<1x32xf32, #tpu.memory_space<vmem>>, vector<1x32xf32>
    %8 = vector.broadcast %7 : vector<1x32xf32> to vector<8x32xf32>
    %9 = arith.addf %6, %8 : vector<8x32xf32>
    %10 = vector.shape_cast %9 : vector<8x32xf32> to vector<8x8x4xf32>
    %11 = tpu.transpose %10, [1, 0, 2] : vector<8x8x4xf32> -> vector<8x8x4xf32>
    %c0_7 = arith.constant 0 : index
    %c0_8 = arith.constant 0 : index
    %c0_9 = arith.constant 0 : index
    %12 = vector.load %arg17[%c0_7, %c0_8, %c0_9] : memref<8x32x4xf32, #tpu.memory_space<vmem>>, vector<8x32x4xf32>
    %c0_10 = arith.constant 0 : index
    %c0_11 = arith.constant 0 : index
    %c0_12 = arith.constant 0 : index
    %13 = vector.load %arg18[%c0_10, %c0_11, %c0_12] : memref<8x32x4xf32, #tpu.memory_space<vmem>>, vector<8x32x4xf32>
    "tpu.trace_start"() <{level = 10 : i32, message = "hqd,hkd->hqk"}> : () -> ()
    %cst_13 = arith.constant dense<0.000000e+00> : vector<8x8x32xf32>
    %14 = tpu.matmul %11, %12, %cst_13 {dimension_numbers = #tpu.dot_dimension_numbers<[2], [2], [1], [1], [0, 0, 0, 1, 1, 1], [0], [0]>} : vector<8x8x4xf32>, vector<8x32x4xf32>, vector<8x8x32xf32> -> vector<8x8x32xf32>
    "tpu.trace_stop"() : () -> ()
    %15 = tpu.iota {dimensions = array<i32: 2>} : vector<1x1x32xi32>
    %c21_i32 = arith.constant 21 : i32
    %16 = vector.broadcast %c21_i32 : i32 to vector<1x1x32xi32>
    %17 = arith.cmpi slt, %15, %16 : vector<1x1x32xi32>
    %cst_14 = arith.constant 0.000000e+00 : f32
    %cst_15 = arith.constant -1.000000e+30 : f32
    %18 = vector.broadcast %cst_14 : f32 to vector<1x1x32xf32>
    %19 = vector.broadcast %cst_15 : f32 to vector<1x1x32xf32>
    %20 = arith.select %17, %18, %19 : vector<1x1x32xi1>, vector<1x1x32xf32>
    %21 = vector.broadcast %20 : vector<1x1x32xf32> to vector<8x8x32xf32>
    %22 = arith.addf %14, %21 : vector<8x8x32xf32>
    %cst_16 = arith.constant dense<0xFF800000> : vector<8x8xf32>
    %23 = vector.multi_reduction <maximumf>, %22, %cst_16 [2] : vector<8x8x32xf32> to vector<8x8xf32>
    %24 = vector.shape_cast %23 : vector<8x8xf32> to vector<8x8x1xf32>
    %25 = vector.broadcast %24 : vector<8x8x1xf32> to vector<8x8x32xf32>
    %26 = arith.subf %22, %25 : vector<8x8x32xf32>
    %27 = math.exp %26 : vector<8x8x32xf32>
    %cst_17 = arith.constant dense<0.000000e+00> : vector<8x8xf32>
    %28 = vector.multi_reduction <add>, %27, %cst_17 [2] : vector<8x8x32xf32> to vector<8x8xf32>
    %29 = vector.shape_cast %28 : vector<8x8xf32> to vector<8x8x1xf32>
    %30 = vector.broadcast %29 : vector<8x8x1xf32> to vector<8x8x32xf32>
    %31 = arith.divf %27, %30 : vector<8x8x32xf32>
    "tpu.trace_start"() <{level = 10 : i32, message = "hqk,hkd->hqd"}> : () -> ()
    %cst_18 = arith.constant dense<0.000000e+00> : vector<8x8x4xf32>
    %32 = tpu.matmul %31, %13, %cst_18 {dimension_numbers = #tpu.dot_dimension_numbers<[2], [1], [1], [2], [0, 0, 0, 1, 1, 2], [0], [0]>} : vector<8x8x32xf32>, vector<8x32x4xf32>, vector<8x8x4xf32> -> vector<8x8x4xf32>
    "tpu.trace_stop"() : () -> ()
    %33 = tpu.transpose %32, [1, 0, 2] : vector<8x8x4xf32> -> vector<8x8x4xf32>
    %34 = vector.shape_cast %33 : vector<8x8x4xf32> to vector<8x32xf32>
    %c0_19 = arith.constant 0 : index
    %c0_20 = arith.constant 0 : index
    %35 = vector.load %arg10[%c0_19, %c0_20] : memref<32x32xf32, #tpu.memory_space<vmem>>, vector<32x32xf32>
    %cst_21 = arith.constant dense<0.000000e+00> : vector<8x32xf32>
    %36 = tpu.matmul %34, %35, %cst_21 {dimension_numbers = #tpu.dot_dimension_numbers<[1], [0], [0], [1], [0, 0, 1, 1], [], []>} : vector<8x32xf32>, vector<32x32xf32>, vector<8x32xf32> -> vector<8x32xf32>
    %c0_22 = arith.constant 0 : index
    %c0_23 = arith.constant 0 : index
    %37 = vector.load %arg11[%c0_22, %c0_23] : memref<1x32xf32, #tpu.memory_space<vmem>>, vector<1x32xf32>
    %38 = vector.broadcast %37 : vector<1x32xf32> to vector<8x32xf32>
    %39 = arith.addf %36, %38 : vector<8x32xf32>
    %c0_24 = arith.constant 0 : index
    %c0_25 = arith.constant 0 : index
    %40 = vector.load %arg12[%c0_24, %c0_25] : memref<32x32xf32, #tpu.memory_space<vmem>>, vector<32x32xf32>
    %cst_26 = arith.constant dense<0.000000e+00> : vector<8x32xf32>
    %41 = tpu.matmul %39, %40, %cst_26 {dimension_numbers = #tpu.dot_dimension_numbers<[1], [0], [0], [1], [0, 0, 1, 1], [], []>} : vector<8x32xf32>, vector<32x32xf32>, vector<8x32xf32> -> vector<8x32xf32>
    %c0_27 = arith.constant 0 : index
    %c0_28 = arith.constant 0 : index
    %42 = vector.load %arg13[%c0_27, %c0_28] : memref<1x32xf32, #tpu.memory_space<vmem>>, vector<1x32xf32>
    %43 = vector.broadcast %42 : vector<1x32xf32> to vector<8x32xf32>
    %44 = arith.addf %41, %43 : vector<8x32xf32>
    %45 = math.tanh %44 : vector<8x32xf32>
    %c0_29 = arith.constant 0 : index
    %c0_30 = arith.constant 0 : index
    %46 = vector.load %arg14[%c0_29, %c0_30] : memref<2x32xf32, #tpu.memory_space<vmem>>, vector<2x32xf32>
    %cst_31 = arith.constant dense<0.000000e+00> : vector<2x8xf32>
    %47 = tpu.matmul %46, %45, %cst_31 {dimension_numbers = #tpu.dot_dimension_numbers<[1], [1], [0], [0], [0, 0, 1, 0], [], []>} : vector<2x32xf32>, vector<8x32xf32>, vector<2x8xf32> -> vector<2x8xf32>
    %c0_32 = arith.constant 0 : index
    %c0_33 = arith.constant 0 : index
    %48 = vector.load %arg15[%c0_32, %c0_33] : memref<2x1xf32, #tpu.memory_space<vmem>>, vector<2x1xf32>
    %49 = vector.broadcast %48 : vector<2x1xf32> to vector<2x8xf32>
    %50 = arith.addf %47, %49 : vector<2x8xf32>
    %c0_34 = arith.constant 0 : index
    %c0_35 = arith.constant 0 : index
    %c0_36 = arith.constant 0 : index
    %51 = vector.load %arg16[%c0_34, %c0_35, %c0_36] : memref<1x2x8xf32, #tpu.memory_space<vmem>>, vector<1x2x8xf32>
    %52 = vector.shape_cast %51 : vector<1x2x8xf32> to vector<2x8xf32>
    %53 = vector.shape_cast %50 : vector<2x8xf32> to vector<1x2x8xf32>
    tpu.vector_store %arg16[%c0_34, %c0_35, %c0_36], %53 {strides = array<i32>} : memref<1x2x8xf32, #tpu.memory_space<vmem>>, vector<1x2x8xf32>,
    return
  }
  func.func @transform_0(%arg0: i32, %arg1: i32) -> (i32, i32, i32) {
    %c0_i32 = arith.constant 0 : i32
    %c0_i32_0 = arith.constant 0 : i32
    return %arg0, %arg1, %c0_i32 : i32, i32, i32
  }
  func.func @transform_1(%arg0: i32, %arg1: i32) -> (i32, i32, i32) {
    %c0_i32 = arith.constant 0 : i32
    %c0_i32_0 = arith.constant 0 : i32
    %c0_i32_1 = arith.constant 0 : i32
    return %arg0, %c0_i32, %c0_i32_0 : i32, i32, i32
  }
  func.func @transform_2(%arg0: i32, %arg1: i32) -> (i32, i32) {
    %c0_i32 = arith.constant 0 : i32
    %c0_i32_0 = arith.constant 0 : i32
    %c0_i32_1 = arith.constant 0 : i32
    return %c0_i32, %c0_i32_0 : i32, i32
  }
  func.func @transform_3(%arg0: i32, %arg1: i32) -> (i32, i32) {
    %c0_i32 = arith.constant 0 : i32
    %c0_i32_0 = arith.constant 0 : i32
    %c0_i32_1 = arith.constant 0 : i32
    return %c0_i32, %c0_i32_0 : i32, i32
  }
  func.func @transform_4(%arg0: i32, %arg1: i32) -> (i32, i32) {
    %c0_i32 = arith.constant 0 : i32
    %c0_i32_0 = arith.constant 0 : i32
    %c0_i32_1 = arith.constant 0 : i32
    return %c0_i32, %c0_i32_0 : i32, i32
  }
  func.func @transform_5(%arg0: i32, %arg1: i32) -> (i32, i32) {
    %c0_i32 = arith.constant 0 : i32
    %c0_i32_0 = arith.constant 0 : i32
    %c0_i32_1 = arith.constant 0 : i32
    return %c0_i32, %c0_i32_0 : i32, i32
  }
  func.func @transform_6(%arg0: i32, %arg1: i32) -> (i32, i32) {
    %c0_i32 = arith.constant 0 : i32
    %c0_i32_0 = arith.constant 0 : i32
    %c0_i32_1 = arith.constant 0 : i32
    return %c0_i32, %c0_i32_0 : i32, i32
  }
  func.func @transform_7(%arg0: i32, %arg1: i32) -> (i32, i32) {
    %c0_i32 = arith.constant 0 : i32
    %c0_i32_0 = arith.constant 0 : i32
    %c0_i32_1 = arith.constant 0 : i32
    return %c0_i32, %c0_i32_0 : i32, i32
  }
  func.func @transform_8(%arg0: i32, %arg1: i32) -> (i32, i32) {
    %c0_i32 = arith.constant 0 : i32
    %c0_i32_0 = arith.constant 0 : i32
    %c0_i32_1 = arith.constant 0 : i32
    return %c0_i32, %c0_i32_0 : i32, i32
  }
  func.func @transform_9(%arg0: i32, %arg1: i32) -> (i32, i32) {
    %c0_i32 = arith.constant 0 : i32
    %c0_i32_0 = arith.constant 0 : i32
    %c0_i32_1 = arith.constant 0 : i32
    return %c0_i32, %c0_i32_0 : i32, i32
  }
  func.func @transform_10(%arg0: i32, %arg1: i32) -> (i32, i32) {
    %c0_i32 = arith.constant 0 : i32
    %c0_i32_0 = arith.constant 0 : i32
    %c0_i32_1 = arith.constant 0 : i32
    return %c0_i32, %c0_i32_0 : i32, i32
  }
  func.func @transform_11(%arg0: i32, %arg1: i32) -> (i32, i32) {
    %c0_i32 = arith.constant 0 : i32
    %c0_i32_0 = arith.constant 0 : i32
    %c0_i32_1 = arith.constant 0 : i32
    return %c0_i32, %c0_i32_0 : i32, i32
  }
  func.func @transform_12(%arg0: i32, %arg1: i32) -> (i32, i32) {
    %c0_i32 = arith.constant 0 : i32
    %c0_i32_0 = arith.constant 0 : i32
    %c0_i32_1 = arith.constant 0 : i32
    return %c0_i32, %c0_i32_0 : i32, i32
  }
  func.func @transform_13(%arg0: i32, %arg1: i32) -> (i32, i32) {
    %c0_i32 = arith.constant 0 : i32
    %c0_i32_0 = arith.constant 0 : i32
    %c0_i32_1 = arith.constant 0 : i32
    return %c0_i32, %c0_i32_0 : i32, i32
  }
  func.func @transform_14(%arg0: i32, %arg1: i32) -> (i32, i32, i32) {
    %c0_i32 = arith.constant 0 : i32
    %c0_i32_0 = arith.constant 0 : i32
    return %arg0, %c0_i32, %arg1 : i32, i32, i32
  }
}

module attributes {stable_mosaic.version = 11 : i64} {
  func.func @_esm_head_kernel(%arg0: i32, %arg1: i32, %arg2: memref<1x8x32xf32, #tpu.memory_space<vmem>>, %arg3: memref<1x32x32xf32, #tpu.memory_space<vmem>>, %arg4: memref<32x32xf32, #tpu.memory_space<vmem>>, %arg5: memref<32x32xf32, #tpu.memory_space<vmem>>, %arg6: memref<32x32xf32, #tpu.memory_space<vmem>>, %arg7: memref<1x32xf32, #tpu.memory_space<vmem>>, %arg8: memref<1x32xf32, #tpu.memory_space<vmem>>, %arg9: memref<1x32xf32, #tpu.memory_space<vmem>>, %arg10: memref<32x32xf32, #tpu.memory_space<vmem>>, %arg11: memref<1x32xf32, #tpu.memory_space<vmem>>, %arg12: memref<32x32xf32, #tpu.memory_space<vmem>>, %arg13: memref<1x32xf32, #tpu.memory_space<vmem>>, %arg14: memref<2x32xf32, #tpu.memory_space<vmem>>, %arg15: memref<2x1xf32, #tpu.memory_space<vmem>>, %arg16: memref<1x2x8xf32, #tpu.memory_space<vmem>>, %arg17: memref<8x32x4xf32, #tpu.memory_space<vmem>>, %arg18: memref<8x32x4xf32, #tpu.memory_space<vmem>>) attributes {dimension_semantics = [#tpu.dimension_semantics<parallel>, #tpu.dimension_semantics<arbitrary>], iteration_bounds = array<i64: 2, 1>, scalar_prefetch = 0 : i64, scratch_operands = 2 : i64, tpu.core_type = #tpu.core_type<tc>, window_params = [{transform_indices = @transform_0, window_bounds = array<i64: 1, 8, 32>}, {transform_indices = @transform_1, window_bounds = array<i64: 1, 32, 32>}, {pipeline_mode = #tpu.pipeline_mode<synchronous>, transform_indices = @transform_2, window_bounds = array<i64: 32, 32>}, {pipeline_mode = #tpu.pipeline_mode<synchronous>, transform_indices = @transform_3, window_bounds = array<i64: 32, 32>}, {pipeline_mode = #tpu.pipeline_mode<synchronous>, transform_indices = @transform_4, window_bounds = array<i64: 32, 32>}, {pipeline_mode = #tpu.pipeline_mode<synchronous>, transform_indices = @transform_5, window_bounds = array<i64: 1, 32>}, {pipeline_mode = #tpu.pipeline_mode<synchronous>, transform_indices = @transform_6, window_bounds = array<i64: 1, 32>}, {pipeline_mode = #tpu.pipeline_mode<synchronous>, transform_indices = @transform_7, window_bounds = array<i64: 1, 32>}, {pipeline_mode = #tpu.pipeline_mode<synchronous>, transform_indices = @transform_8, window_bounds = array<i64: 32, 32>}, {pipeline_mode = #tpu.pipeline_mode<synchronous>, transform_indices = @transform_9, window_bounds = array<i64: 1, 32>}, {pipeline_mode = #tpu.pipeline_mode<synchronous>, transform_indices = @transform_10, window_bounds = array<i64: 32, 32>}, {pipeline_mode = #tpu.pipeline_mode<synchronous>, transform_indices = @transform_11, window_bounds = array<i64: 1, 32>}, {pipeline_mode = #tpu.pipeline_mode<synchronous>, transform_indices = @transform_12, window_bounds = array<i64: 2, 32>}, {pipeline_mode = #tpu.pipeline_mode<synchronous>, transform_indices = @transform_13, window_bounds = array<i64: 2, 1>}, {transform_indices = @transform_14, window_bounds = array<i64: 1, 2, 8>}]} {
    %c0 = arith.constant 0 : index
    %c0_0 = arith.constant 0 : index
    %c0_1 = arith.constant 0 : index
    %0 = vector.load %arg2[%c0, %c0_0, %c0_1] : memref<1x8x32xf32, #tpu.memory_space<vmem>>, vector<1x8x32xf32>
    %1 = vector.shape_cast %0 : vector<1x8x32xf32> to vector<8x32xf32>
    %c0_i32 = arith.constant 0 : i32
    %2 = arith.cmpi eq, %arg1, %c0_i32 : i32
    %3 = arith.extui %2 : i1 to i32
    %c0_i32_2 = arith.constant 0 : i32
    %4 = arith.cmpi ne, %3, %c0_i32_2 : i32
    scf.if %4 {
      %c0_37 = arith.constant 0 : index
      %c0_38 = arith.constant 0 : index
      %c0_39 = arith.constant 0 : index
      %54 = vector.load %arg3[%c0_37, %c0_38, %c0_39] : memref<1x32x32xf32, #tpu.memory_space<vmem>>, vector<1x32x32xf32>
      %55 = vector.shape_cast %54 : vector<1x32x32xf32> to vector<32x32xf32>
      %c0_40 = arith.constant 0 : index
      %c0_41 = arith.constant 0 : index
      %56 = vector.load %arg5[%c0_40, %c0_41] : memref<32x32xf32, #tpu.memory_space<vmem>>, vector<32x32xf32>
      %cst_42 = arith.constant dense<0.000000e+00> : vector<32x32xf32>
      %57 = tpu.matmul %55, %56, %cst_42 {dimension_numbers = #tpu.dot_dimension_numbers<[1], [0], [0], [1], [0, 0, 1, 1], [], []>} : vector<32x32xf32>, vector<32x32xf32>, vector<32x32xf32> -> vector<32x32xf32>
      %c0_43 = arith.constant 0 : index
      %c0_44 = arith.constant 0 : index
      %58 = vector.load %arg8[%c0_43, %c0_44] : memref<1x32xf32, #tpu.memory_space<vmem>>, vector<1x32xf32>
      %59 = vector.broadcast %58 : vector<1x32xf32> to vector<32x32xf32>
      %60 = arith.addf %57, %59 : vector<32x32xf32>
      %c0_45 = arith.constant 0 : index
      %c0_46 = arith.constant 0 : index
      %61 = vector.load %arg6[%c0_45, %c0_46] : memref<32x32xf32, #tpu.memory_space<vmem>>, vector<32x32xf32>
      %cst_47 = arith.constant dense<0.000000e+00> : vector<32x32xf32>
      %62 = tpu.matmul %55, %61, %cst_47 {dimension_numbers = #tpu.dot_dimension_numbers<[1], [0], [0], [1], [0, 0, 1, 1], [], []>} : vector<32x32xf32>, vector<32x32xf32>, vector<32x32xf32> -> vector<32x32xf32>
      %c0_48 = arith.constant 0 : index
      %c0_49 = arith.constant 0 : index
      %63 = vector.load %arg9[%c0_48, %c0_49] : memref<1x32xf32, #tpu.memory_space<vmem>>, vector<1x32xf32>
      %64 = vector.broadcast %63 : vector<1x32xf32> to vector<32x32xf32>
      %65 = arith.addf %62, %64 : vector<32x32xf32>
      %66 = vector.shape_cast %60 : vector<32x32xf32> to vector<32x8x4xf32>
      %67 = tpu.transpose %66, [1, 0, 2] : vector<32x8x4xf32> -> vector<8x32x4xf32>
      %c0_50 = arith.constant 0 : index
      %c0_51 = arith.constant 0 : index
      %c0_52 = arith.constant 0 : index
      %68 = vector.load %arg17[%c0_50, %c0_51, %c0_52] : memref<8x32x4xf32, #tpu.memory_space<vmem>>, vector<8x32x4xf32>
      tpu.vector_store %arg17[%c0_50, %c0_51, %c0_52], %67 {strides = array<i32>} : memref<8x32x4xf32, #tpu.memory_space<vmem>>, vector<8x32x4xf32>,
      %69 = vector.shape_cast %65 : vector<32x32xf32> to vector<32x8x4xf32>
      %70 = tpu.transpose %69, [1, 0, 2] : vector<32x8x4xf32> -> vector<8x32x4xf32>
      %c0_53 = arith.constant 0 : index
      %c0_54 = arith.constant 0 : index
      %c0_55 = arith.constant 0 : index
      %71 = vector.load %arg18[%c0_53, %c0_54, %c0_55] : memref<8x32x4xf32, #tpu.memory_space<vmem>>, vector<8x32x4xf32>
      tpu.vector_store %arg18[%c0_53, %c0_54, %c0_55], %70 {strides = array<i32>} : memref<8x32x4xf32, #tpu.memory_space<vmem>>, vector<8x32x4xf32>,
    } else {
    }
    %c0_3 = arith.constant 0 : index
    %c0_4 = arith.constant 0 : index
    %5 = vector.load %arg4[%c0_3, %c0_4] : memref<32x32xf32, #tpu.memory_space<vmem>>, vector<32x32xf32>
    %cst = arith.constant dense<0.000000e+00> : vector<8x32xf32>
    %6 = tpu.matmul %1, %5, %cst {dimension_numbers = #tpu.dot_dimension_numbers<[1], [0], [0], [1], [0, 0, 1, 1], [], []>} : vector<8x32xf32>, vector<32x32xf32>, vector<8x32xf32> -> vector<8x32xf32>
    %c0_5 = arith.constant 0 : index
    %c0_6 = arith.constant 0 : index
    %7 = vector.load %arg7[%c0_5, %c0_6] : memref<1x32xf32, #tpu.memory_space<vmem>>, vector<1x32xf32>
    %8 = vector.broadcast %7 : vector<1x32xf32> to vector<8x32xf32>
    %9 = arith.addf %6, %8 : vector<8x32xf32>
    %10 = vector.shape_cast %9 : vector<8x32xf32> to vector<8x8x4xf32>
    %11 = tpu.transpose %10, [1, 0, 2] : vector<8x8x4xf32> -> vector<8x8x4xf32>
    %c0_7 = arith.constant 0 : index
    %c0_8 = arith.constant 0 : index
    %c0_9 = arith.constant 0 : index
    %12 = vector.load %arg17[%c0_7, %c0_8, %c0_9] : memref<8x32x4xf32, #tpu.memory_space<vmem>>, vector<8x32x4xf32>
    %c0_10 = arith.constant 0 : index
    %c0_11 = arith.constant 0 : index
    %c0_12 = arith.constant 0 : index
    %13 = vector.load %arg18[%c0_10, %c0_11, %c0_12] : memref<8x32x4xf32, #tpu.memory_space<vmem>>, vector<8x32x4xf32>
    "tpu.trace_start"() <{level = 10 : i32, message = "hqd,hkd->hqk"}> : () -> ()
    %cst_13 = arith.constant dense<0.000000e+00> : vector<8x8x32xf32>
    %14 = tpu.matmul %11, %12, %cst_13 {dimension_numbers = #tpu.dot_dimension_numbers<[2], [2], [1], [1], [0, 0, 0, 1, 1, 1], [0], [0]>} : vector<8x8x4xf32>, vector<8x32x4xf32>, vector<8x8x32xf32> -> vector<8x8x32xf32>
    "tpu.trace_stop"() : () -> ()
    %15 = tpu.iota {dimensions = array<i32: 2>} : vector<1x1x32xi32>
    %c21_i32 = arith.constant 21 : i32
    %16 = vector.broadcast %c21_i32 : i32 to vector<1x1x32xi32>
    %17 = arith.cmpi slt, %15, %16 : vector<1x1x32xi32>
    %cst_14 = arith.constant 0.000000e+00 : f32
    %cst_15 = arith.constant -1.000000e+30 : f32
    %18 = vector.broadcast %cst_14 : f32 to vector<1x1x32xf32>
    %19 = vector.broadcast %cst_15 : f32 to vector<1x1x32xf32>
    %20 = arith.select %17, %18, %19 : vector<1x1x32xi1>, vector<1x1x32xf32>
    %21 = vector.broadcast %20 : vector<1x1x32xf32> to vector<8x8x32xf32>
    %22 = arith.addf %14, %21 : vector<8x8x32xf32>
    %cst_16 = arith.constant dense<0xFF800000> : vector<8x8xf32>
    %23 = vector.multi_reduction <maximumf>, %22, %cst_16 [2] : vector<8x8x32xf32> to vector<8x8xf32>
    %24 = vector.shape_cast %23 : vector<8x8xf32> to vector<8x8x1xf32>
    %25 = vector.broadcast %24 : vector<8x8x1xf32> to vector<8x8x32xf32>
    %26 = arith.subf %22, %25 : vector<8x8x32xf32>
    %27 = math.exp %26 : vector<8x8x32xf32>
    %cst_17 = arith.constant dense<0.000000e+00> : vector<8x8xf32>
    %28 = vector.multi_reduction <add>, %27, %cst_17 [2] : vector<8x8x32xf32> to vector<8x8xf32>
    %29 = vector.shape_cast %28 : vector<8x8xf32> to vector<8x8x1xf32>
    %30 = vector.broadcast %29 : vector<8x8x1xf32> to vector<8x8x32xf32>
    %31 = arith.divf %27, %30 : vector<8x8x32xf32>
    "tpu.trace_start"() <{level = 10 : i32, message = "hqk,hkd->hqd"}> : () -> ()
    %cst_18 = arith.constant dense<0.000000e+00> : vector<8x8x4xf32>
    %32 = tpu.matmul %31, %13, %cst_18 {dimension_numbers = #tpu.dot_dimension_numbers<[2], [1], [1], [2], [0, 0, 0, 1, 1, 2], [0], [0]>} : vector<8x8x32xf32>, vector<8x32x4xf32>, vector<8x8x4xf32> -> vector<8x8x4xf32>
    "tpu.trace_stop"() : () -> ()
    %33 = tpu.transpose %32, [1, 0, 2] : vector<8x8x4xf32> -> vector<8x8x4xf32>
    %34 = vector.shape_cast %33 : vector<8x8x4xf32> to vector<8x32xf32>
    %c0_19 = arith.constant 0 : index
    %c0_20 = arith.constant 0 : index
    %35 = vector.load %arg10[%c0_19, %c0_20] : memref<32x32xf32, #tpu.memory_space<vmem>>, vector<32x32xf32>
    %cst_21 = arith.constant dense<0.000000e+00> : vector<8x32xf32>
    %36 = tpu.matmul %34, %35, %cst_21 {dimension_numbers = #tpu.dot_dimension_numbers<[1], [0], [0], [1], [0, 0, 1, 1], [], []>} : vector<8x32xf32>, vector<32x32xf32>, vector<8x32xf32> -> vector<8x32xf32>
    %c0_22 = arith.constant 0 : index
    %c0_23 = arith.constant 0 : index
    %37 = vector.load %arg11[%c0_22, %c0_23] : memref<1x32xf32, #tpu.memory_space<vmem>>, vector<1x32xf32>
    %38 = vector.broadcast %37 : vector<1x32xf32> to vector<8x32xf32>
    %39 = arith.addf %36, %38 : vector<8x32xf32>
    %c0_24 = arith.constant 0 : index
    %c0_25 = arith.constant 0 : index
    %40 = vector.load %arg12[%c0_24, %c0_25] : memref<32x32xf32, #tpu.memory_space<vmem>>, vector<32x32xf32>
    %cst_26 = arith.constant dense<0.000000e+00> : vector<8x32xf32>
    %41 = tpu.matmul %39, %40, %cst_26 {dimension_numbers = #tpu.dot_dimension_numbers<[1], [0], [0], [1], [0, 0, 1, 1], [], []>} : vector<8x32xf32>, vector<32x32xf32>, vector<8x32xf32> -> vector<8x32xf32>
    %c0_27 = arith.constant 0 : index
    %c0_28 = arith.constant 0 : index
    %42 = vector.load %arg13[%c0_27, %c0_28] : memref<1x32xf32, #tpu.memory_space<vmem>>, vector<1x32xf32>
    %43 = vector.broadcast %42 : vector<1x32xf32> to vector<8x32xf32>
    %44 = arith.addf %41, %43 : vector<8x32xf32>
    %45 = math.tanh %44 : vector<8x32xf32>
    %c0_29 = arith.constant 0 : index
    %c0_30 = arith.constant 0 : index
    %46 = vector.load %arg14[%c0_29, %c0_30] : memref<2x32xf32, #tpu.memory_space<vmem>>, vector<2x32xf32>
    %cst_31 = arith.constant dense<0.000000e+00> : vector<2x8xf32>
    %47 = tpu.matmul %46, %45, %cst_31 {dimension_numbers = #tpu.dot_dimension_numbers<[1], [1], [0], [0], [0, 0, 1, 0], [], []>} : vector<2x32xf32>, vector<8x32xf32>, vector<2x8xf32> -> vector<2x8xf32>
    %c0_32 = arith.constant 0 : index
    %c0_33 = arith.constant 0 : index
    %48 = vector.load %arg15[%c0_32, %c0_33] : memref<2x1xf32, #tpu.memory_space<vmem>>, vector<2x1xf32>
    %49 = vector.broadcast %48 : vector<2x1xf32> to vector<2x8xf32>
    %50 = arith.addf %47, %49 : vector<2x8xf32>
    %c0_34 = arith.constant 0 : index
    %c0_35 = arith.constant 0 : index
    %c0_36 = arith.constant 0 : index
    %51 = vector.load %arg16[%c0_34, %c0_35, %c0_36] : memref<1x2x8xf32, #tpu.memory_space<vmem>>, vector<1x2x8xf32>
    %52 = vector.shape_cast %51 : vector<1x2x8xf32> to vector<2x8xf32>
    %53 = vector.shape_cast %50 : vector<2x8xf32> to vector<1x2x8xf32>
    tpu.vector_store %arg16[%c0_34, %c0_35, %c0_36], %53 {strides = array<i32>} : memref<1x2x8xf32, #tpu.memory_space<vmem>>, vector<1x2x8xf32>,
    return
  }
  func.func @transform_0(%arg0: i32, %arg1: i32) -> (i32, i32, i32) {
    %c0_i32 = arith.constant 0 : i32
    %c0_i32_0 = arith.constant 0 : i32
    return %arg0, %arg1, %c0_i32 : i32, i32, i32
  }
  func.func @transform_1(%arg0: i32, %arg1: i32) -> (i32, i32, i32) {
    %c0_i32 = arith.constant 0 : i32
    %c0_i32_0 = arith.constant 0 : i32
    %c0_i32_1 = arith.constant 0 : i32
    return %arg0, %c0_i32, %c0_i32_0 : i32, i32, i32
  }
  func.func @transform_2(%arg0: i32, %arg1: i32) -> (i32, i32) {
    %c0_i32 = arith.constant 0 : i32
    %c0_i32_0 = arith.constant 0 : i32
    %c0_i32_1 = arith.constant 0 : i32
    return %c0_i32, %c0_i32_0 : i32, i32
  }
  func.func @transform_3(%arg0: i32, %arg1: i32) -> (i32, i32) {
    %c0_i32 = arith.constant 0 : i32
    %c0_i32_0 = arith.constant 0 : i32
    %c0_i32_1 = arith.constant 0 : i32
    return %c0_i32, %c0_i32_0 : i32, i32
  }
  func.func @transform_4(%arg0: i32, %arg1: i32) -> (i32, i32) {
    %c0_i32 = arith.constant 0 : i32
    %c0_i32_0 = arith.constant 0 : i32
    %c0_i32_1 = arith.constant 0 : i32
    return %c0_i32, %c0_i32_0 : i32, i32
  }
  func.func @transform_5(%arg0: i32, %arg1: i32) -> (i32, i32) {
    %c0_i32 = arith.constant 0 : i32
    %c0_i32_0 = arith.constant 0 : i32
    %c0_i32_1 = arith.constant 0 : i32
    return %c0_i32, %c0_i32_0 : i32, i32
  }
  func.func @transform_6(%arg0: i32, %arg1: i32) -> (i32, i32) {
    %c0_i32 = arith.constant 0 : i32
    %c0_i32_0 = arith.constant 0 : i32
    %c0_i32_1 = arith.constant 0 : i32
    return %c0_i32, %c0_i32_0 : i32, i32
  }
  func.func @transform_7(%arg0: i32, %arg1: i32) -> (i32, i32) {
    %c0_i32 = arith.constant 0 : i32
    %c0_i32_0 = arith.constant 0 : i32
    %c0_i32_1 = arith.constant 0 : i32
    return %c0_i32, %c0_i32_0 : i32, i32
  }
  func.func @transform_8(%arg0: i32, %arg1: i32) -> (i32, i32) {
    %c0_i32 = arith.constant 0 : i32
    %c0_i32_0 = arith.constant 0 : i32
    %c0_i32_1 = arith.constant 0 : i32
    return %c0_i32, %c0_i32_0 : i32, i32
  }
  func.func @transform_9(%arg0: i32, %arg1: i32) -> (i32, i32) {
    %c0_i32 = arith.constant 0 : i32
    %c0_i32_0 = arith.constant 0 : i32
    %c0_i32_1 = arith.constant 0 : i32
    return %c0_i32, %c0_i32_0 : i32, i32
  }
  func.func @transform_10(%arg0: i32, %arg1: i32) -> (i32, i32) {
    %c0_i32 = arith.constant 0 : i32
    %c0_i32_0 = arith.constant 0 : i32
    %c0_i32_1 = arith.constant 0 : i32
    return %c0_i32, %c0_i32_0 : i32, i32
  }
  func.func @transform_11(%arg0: i32, %arg1: i32) -> (i32, i32) {
    %c0_i32 = arith.constant 0 : i32
    %c0_i32_0 = arith.constant 0 : i32
    %c0_i32_1 = arith.constant 0 : i32
    return %c0_i32, %c0_i32_0 : i32, i32
  }
  func.func @transform_12(%arg0: i32, %arg1: i32) -> (i32, i32) {
    %c0_i32 = arith.constant 0 : i32
    %c0_i32_0 = arith.constant 0 : i32
    %c0_i32_1 = arith.constant 0 : i32
    return %c0_i32, %c0_i32_0 : i32, i32
  }
  func.func @transform_13(%arg0: i32, %arg1: i32) -> (i32, i32) {
    %c0_i32 = arith.constant 0 : i32
    %c0_i32_0 = arith.constant 0 : i32
    %c0_i32_1 = arith.constant 0 : i32
    return %c0_i32, %c0_i32_0 : i32, i32
  }
  func.func @transform_14(%arg0: i32, %arg1: i32) -> (i32, i32, i32) {
    %c0_i32 = arith.constant 0 : i32
    %c0_i32_0 = arith.constant 0 : i32
    return %arg0, %c0_i32, %arg1 : i32, i32, i32
  }
}

</mosaic_0001>

<bundles_post_ra>
// kernel: tpu_custom_call.1
= control target key start
LH: loop header
LB: loop body
LE: loop exit
PB: predicated region body
PF: predicated region fallthrough
CT: control target
= control target key end

     0   :  { %s6712_s0 = inlined_call_operand.hbm [shape: f32[2,8,32], index: 0, kind: input, shape index: {}]   ;;  %s6713_s1 = inlined_call_operand.hbm [shape: f32[2,32,32], index: 1, kind: input, shape index: {}]   ;;  %s6714_s2 = inlined_call_operand.hbm [shape: f32[32,32], index: 2, kind: input, shape index: {}]   ;;  %s6715_s3 = inlined_call_operand.hbm [shape: f32[32,32], index: 3, kind: input, shape index: {}]   ;;  %s6716_s4 = inlined_call_operand.hbm [shape: f32[32,32], index: 4, kind: input, shape index: {}]   ;;  %s6717_s5 = inlined_call_operand.vmem [shape: f32[1,32], index: 5, kind: input, shape index: {}]   ;;  %s6718_s6 = inlined_call_operand.vmem [shape: f32[1,32], index: 6, kind: input, shape index: {}]   ;;  %s6719_s7 = inlined_call_operand.vmem [shape: f32[1,32], index: 7, kind: input, shape index: {}]   ;;  %s6720_s8 = inlined_call_operand.hbm [shape: f32[32,32], index: 8, kind: input, shape index: {}]   ;;  %s6721_s9 = inlined_call_operand.vmem [shape: f32[1,32], index: 9, kind: input, shape index: {}]   ;;  %s6722_s10 = inlined_call_operand.hbm [shape: f32[32,32], index: 10, kind: input, shape index: {}]   ;;  %s6723_s11 = inlined_call_operand.vmem [shape: f32[1,32], index: 11, kind: input, shape index: {}]   ;;  %s6724_s12 = inlined_call_operand.vmem [shape: f32[2,32], index: 12, kind: input, shape index: {}]   ;;  %s6725_s13 = inlined_call_operand.vmem [shape: f32[2,1], index: 13, kind: input, shape index: {}]   ;;  %s6726_s14 = inlined_call_operand.hbm [shape: f32[2,2,8], index: 14, kind: output, shape index: {}]  }
   0x1   :  { %6736 = sst [smem:[#allocation29_spill]] %s6714_s2 }
   0x2   :  { %6737 = sst [smem:[#allocation30_spill]] %s6715_s3 }
   0x3   :  { %6738 = sst [smem:[#allocation31_spill]] %s6716_s4 }
   0x4   :  { %6739 = sst [smem:[#allocation32_spill]] %s6720_s8 }
   0x5   :  { %6740 = sst [smem:[#allocation33_spill]] %s6722_s10 }
   0x6   :  { %6741 = sst [smem:[#allocation34_spill]] %s6723_s11 }
   0x7   :  { %6742 = sst [smem:[#allocation35_spill]] %s6724_s12 }
   0x8   :  { %6743 = sst [smem:[#allocation36_spill]] %s6725_s13 }
   0x9   :  { %6744 = sst [smem:[#allocation37_spill]] %s6726_s14 }
   0xa   :  { %19 = vsyncpa [#allocation5], 0 }
   0xb   :  { %21 = vsyncpa [#allocation5 + $0x1], 0 }
   0xc   :  { %22 = vsyncpa [#allocation8], 0 }
   0xd   :  { %24 = vsyncpa [#allocation8 + $0x1], 0 }
   0xe   :  { %25 = vsyncpa [#allocation11], 0 }
   0xf   :  { %26 = vsyncpa [#allocation14], 0 }
  0x10   :  { %27 = vsyncpa [#allocation6], 0 }
  0x11   :  { %29 = vsyncpa [#allocation6 + $0x1], 0  ;;  %s4967_s29 = smov 0   ;;  %s4969_s30 = smov 0  }
  0x12   :  { %s4971_s15 = smov 0   ;;  %s4973_s16 = smov 0  }
  0x13   :  { %s4975_s17 = smov 0   ;;  %s4977_s18 = smov 0  }
  0x14 LB: > { %6745 = sst [smem:[#allocation23_spill]] %s4845_s29  ;;  %s4998_s19 = sadd.s32 4294967295, %s4865_s18   ;;  %s4865_s18 = sphi %s4977_s18, %s35_s18   ;;  %s4861_s17 = sphi %s4975_s17, %s6780_s17   ;;  %s4857_s16 = sphi %s4973_s16, %s6779_s16   ;;  %s4853_s15 = sphi %s4971_s15, %s6775_s15   ;;  %s4849_s30 = sphi %s4969_s30, %s6778_s30   ;;  %s4845_s29 = sphi %s4967_s29, %s6777_s29  }
  0x15   : > { %6746 = sst [smem:[#allocation24_spill]] %s4853_s15  ;;  %p4292_p0 = scmp.ge.s32.totalorder %s4865_s18, 1 }
  0x16   : > { %p70_p1 = scmp.eq.s32.totalorder %s4998_s19, 0  ;;  %p386_p2 = scmp.lt.s32.totalorder %s4865_s18, 3 }
  0x17   : > { %s6747_s2 = sld [smem:[#allocation29_spill]]  ;;  %s4867_s24 = smov [#allocation9]  }
  0x18   : > { %p5006_p3 = pnand %p4292_p0, %p386_p2  ;;  %s399_s25 = sshll.u32 %s4867_s24, 4  ;;  %s400_s25 = int_to_ptr.vmem [resolvable:$true] %s399_s25 }
  0x19   : > { %p4298_p6 = scmp.ge.s32.totalorder %s4865_s18, 2  ;;  %s6750_s3 = sld [smem:[#allocation30_spill]] }
  0x1a   : > { %p4405_p4 = pneg %p5006_p3  ;;  %s6728_s21 = smov 128  }
  0x1b   : > { %s4870_s24 = smov [#allocation10]   ;;  %s6751_s8 = sld [smem:[#allocation32_spill]] }
  0x1c   : > { %p5014_p5 = pnand %p4405_p4, %p70_p1  ;;  %s413_s14 = sshll.u32 %s4870_s24, 4  ;;  %s414_s14 = int_to_ptr.vmem [resolvable:$true] %s413_s14 }
  0x1d   : > { %s397_s22 = sshll.u32 %s6747_s2, 4  ;;  %s6729_s2 = smov 8   ;;  %s398_s22 = int_to_ptr.hbm [resolvable:$true] %s397_s22 }
  0x1e   : > { %4408 = dma.hbm_to_vmem [thread:$0]  (!%p5014_p5), %s398_s22, 512, %s400_s25, [#allocation8], %s6728_s21, %s6728_s21, %s6729_s2  }
  0x1f   : > { %s411_s20 = sshll.u32 %s6750_s3, 4  ;;  %s6752_s4 = sld [smem:[#allocation31_spill]]  ;;  %s412_s20 = int_to_ptr.hbm [resolvable:$true] %s411_s20 }
  0x20   : > { %4411 = dma.hbm_to_vmem [thread:$0]  (!%p5014_p5), %s412_s20, 512, %s414_s14, [#allocation11], %s6728_s21, %s6728_s21, %s6729_s2  }
  0x21   : > { %s448_s13 = sshll.u32 %s6751_s8, 4  ;;  %s4871_s22 = smov [#allocation13]   ;;  %s449_s13 = int_to_ptr.hbm [resolvable:$true] %s448_s13 }
  0x22   : > { %s450_s25 = sshll.u32 %s4871_s22, 4  ;;  %s4872_s11 = smov [#allocation12]   ;;  %s451_s25 = int_to_ptr.vmem [resolvable:$true] %s450_s25 }
  0x23   : > { %4417 = dma.hbm_to_vmem [thread:$0]  (!%p5014_p5), %s449_s13, 512, %s451_s25, [#allocation14], %s6728_s21, %s6728_s21, %s6729_s2  }
  0x24   : > { %s427_s12 = sshll.u32 %s4872_s11, 4  ;;  %s6753_s10 = sld [smem:[#allocation33_spill]]  ;;  %s428_s12 = int_to_ptr.vmem [resolvable:$true] %s427_s12 }
  0x25   : > { %s425_s3 = sshll.u32 %s6752_s4, 4  ;;  %s4873_s13 = smov [#allocation15]   ;;  %s426_s3 = int_to_ptr.hbm [resolvable:$true] %s425_s3 }
  0x26   : > { %4414 = dma.hbm_to_vmem [thread:$0]  (!%p5014_p5), %s426_s3, 512, %s428_s12, [#allocation11], %s6728_s21, %s6728_s21, %s6729_s2  }
  0x27   : > { %s467_s27 = sshll.u32 %s4873_s13, 4  ;;  %s4291_s28 = sadd.s32 4294967294, %s4865_s18   ;;  %s468_s27 = int_to_ptr.vmem [resolvable:$true] %s467_s27 }
  0x28   : > { %s47_s22 = sadd.s32 1, %s4861_s17  ;;  %s56_s25 = sadd.s32 1, %s4853_s15 }
  0x29   : > { %p49_p7 = scmp.ge.s32.totalorder %s47_s22, 2  ;;  %p63_p8 = scmp.ne.s32.totalorder %s4853_s15, %s4849_s30 }
  0x2a   : > { %s465_s24 = sshll.u32 %s6753_s10, 4  ;;  %p64_p9 = scmp.eq.s32.totalorder %s4865_s18, 0  ;;  %s466_s24 = int_to_ptr.hbm [resolvable:$true] %s465_s24 }
  0x2b   : > { %4420 = dma.hbm_to_vmem [thread:$0]  (!%p5014_p5), %s466_s24, 512, %s468_s27, [#allocation14], %s6728_s21, %s6728_s21, %s6729_s2  }
  0x2c   : > { %p69_p10 = scmp.ne.s32.totalorder %s4849_s30, %s4845_s29  ;;  %s6782_s22 = smov (%p49_p7, %s47_s22), 0 }
  0x2d   : > { %6754 = sst [smem:[#allocation25_spill]] %s6782_s22  ;;  %p5066_p11 = por %p64_p9, %p63_p8 }
  0x2e   : > { %p5072_p12 = por %p70_p1, %p69_p10  ;;  %s51_s11 = ssub.s32 %s4861_s17, %s6782_s22 }
  0x2f   : > { %p373_p13 = scmp.eq.s32.totalorder %s4998_s19, 1  ;;  %p54_p0 = scmp.eq.s32.totalorder %s51_s11, 0 }
  0x30   : > { %p379_p2 = scmp.eq.s32.totalorder %s4291_s28, 1  ;;  %p4437_p5 = scmp.lt.s32.totalorder %s4865_s18, 2 }
  0x31   : > { %p5079_p4 = por %p373_p13, %p63_p8  ;;  %s490_s24 = sand.u32 1, %s4853_s15  }
  0x32   : > { %s5085_s14 = scalar_select %p54_p0, %s4853_s15, %s56_s25  }
  0x33   : > { %s6757_s12 = scalar_select %p5079_p4, 1, 0 }
  0x34   : > { %6759 = sst [smem:[#allocation27_spill]] %s5085_s14  ;;  %p5087_p7 = por %p379_p2, %p69_p10 }
  0x35   : > { %6758 = sst [smem:[#allocation26_spill]] %s6757_s12  ;;  %s4299_s13 = sshll.u32 %s490_s24, 3 }
  0x36   : > { %s6760_s20 = scalar_select %p5087_p7, 1, 0 }
  0x37   : > { %s4300_s27 = sshll.u32 %s4861_s17, 3  ;;  %s494_s11 = scalar_lea.vmem [#allocation4], %s4299_s13 }
  0x38   : > { %6761 = sst [smem:[#allocation28_spill]] %s6760_s20  ;;  %s499_s28 = scalar_lea.hbm %s6712_s0, %s4300_s27 }
  0x39   : > { %s503_s4 = sshll.u32 %s494_s11, 4  ;;  %s501_s8 = sshll.u32 %s499_s28, 4  ;;  %s504_s4 = int_to_ptr.vmem [resolvable:$true] %s503_s4  ;;  %s502_s8 = int_to_ptr.hbm [resolvable:$true] %s501_s8 }
  0x3a   : > { %p4422_p8 = pnand %p4437_p5, %p5066_p11  ;;  %s4301_s25 = sshll.u32 %s490_s24, 5 }
  0x3b   : > { %s4378_s10 = sshll.u32 %s4861_s17, 5  ;;  %s491_s22 = scalar_lea.sflag [#allocation5], %s490_s24 }
  0x3c   : > { %4424 = dma.hbm_to_vmem [thread:$0]  (!%p4422_p8), %s502_s8, 128, %s504_s4, %s491_s22  }
  0x3d   : > { %s514_s14 = scalar_lea.vmem [#allocation7], %s4301_s25  ;;  %s510_s20 = sand.u32 1, %s4865_s18  }
  0x3e   : > { %s522_s15 = sshll.u32 %s514_s14, 4  ;;  %s519_s2 = scalar_lea.hbm %s6713_s1, %s4378_s10  ;;  %s523_s15 = int_to_ptr.vmem [resolvable:$true] %s522_s15 }
  0x3f   : > { %s520_s21 = sshll.u32 %s519_s2, 4  ;;  %s511_s13 = scalar_lea.sflag [#allocation8], %s510_s20  ;;  %s521_s21 = int_to_ptr.hbm [resolvable:$true] %s520_s21 }
  0x40   : > { %s6762_s27 = smov 8   ;;  %s6763_s28 = smov 128  }
  0x41   : > { %4427 = dma.hbm_to_vmem [thread:$0]  (!%p4422_p8), %s521_s21, 512, %s523_s15, %s511_s13, %s6763_s28, %s6763_s28, %s6762_s27  }
  0x42   : > { %534 = sbr.rel (%p5006_p3) target bundleno = 1639 (0x667), region = 76  ;;  %s5109_s4 = sand.u32 (!%p5006_p3), 1, %s4849_s30  }
  0x43   : > { %s4305_s8 = sshll.u32 (!%p5006_p3), %s5109_s4, 3  ;;  %s537_s22 = scalar_lea.sflag (!%p5006_p3), [#allocation5], %s5109_s4 }
  0x44   : > { %s5113_s29 = scalar_lea.vmem (!%p5006_p3), [#allocation4], %s4305_s8 }
  0x47   : > { %4820 = dma.done.wait (%p5072_p12), %s537_s22, 128  }
  0x48   : > { %4822 = vsyncadd (%p5072_p12), %s537_s22, 4294967168  ;;  %s546_s10 = sand.u32 1, %s4998_s19   ;;  %s4306_s15 = sshll.u32 %s5109_s4, 5 }
  0x49   : > { %s547_s23 = scalar_lea.sflag [#allocation8], %s546_s10  ;;  %s5121_s3 = scalar_lea.vmem [#allocation7], %s4306_s15 }
  0x4a   : > { %4824 = dma.done.wait (%p5072_p12), %s547_s23, 512  }
  0x4b   : > { %4826 = vsyncadd (%p5072_p12), %s547_s23, 4294966784 }
  0x4c   : > { %4828 = dma.done.wait (%p70_p1), [#allocation8], 512  }
  0x4d   : > { %4830 = vsyncadd (%p70_p1), [#allocation8], 4294966784 }
  0x4e   : > { %4832 = dma.done.wait (%p70_p1), [#allocation11], 1024  }
  0x4f   : > { %4834 = vsyncadd (%p70_p1), [#allocation11], 4294966272 }
  0x50   : > { %4836 = dma.done.wait (%p70_p1), [#allocation14], 1024  }
  0x51   : > { %4838 = vsyncadd (%p70_p1), [#allocation14], 4294966272  ;;  %v638_v0 = vld [vmem:[#allocation10 + $0x18] sm:$0xff]  ;;  %v637_v1 = vld [vmem:[#allocation10 + $0x10] sm:$0xff]  ;;  %vm643_vm0 = vcmask 261120   ;;  %s4874_s12 = smov 104  }
  0x52   : > { %668 = vmatpush.msra.mxu0 %v638_v0  ;;  %v636_v2 = vld [vmem:[#allocation10 + $0x8] sm:$0xff]  ;;  %v2759_v3 = vld [vmem:[#allocation9 + $0x18] sm:$0xff]  ;;  %v2758_v4 = vld [vmem:[#allocation9 + $0x10] sm:$0xff]  ;;  %s4875_s14 = smov 120   ;;  %s4876_s20 = smov 116   ;;  %vm811_vm1 = vcmask 1047556  }
  0x53   : > { %2780 = vmatpush.msra.mxu2 %v2759_v3  ;;  %v635_v5 = vld [vmem:[#allocation10] sm:$0xff]  ;;  %v2757_v6 = vld [vmem:[#allocation9 + $0x8] sm:$0xff]  ;;  %v688_v7 = vld [vmem:[#allocation12 + $0x18] sm:$0xff]  ;;  %s4877_s24 = smov 112   ;;  %s4878_s11 = smov 124   ;;  %vm1707_vm2 = vcmask 31744  }
  0x54   : > { %669 = vmatpush.msra.mxu0 %v637_v1  ;;  %v631_v8 = vld [vmem:[%s5121_s3] sm:$0xff]  ;;  %v687_v9 = vld [vmem:[#allocation12 + $0x10] sm:$0xff]  ;;  %705 = vmatpush.msra.mxu1 %v688_v7  ;;  %v686_v12 = vld [vmem:[#allocation12 + $0x8] sm:$0xff]  ;;  %s4879_s25 = smov 108   ;;  %s4880_s2 = smov 100  }
  0x55   : > { %2781 = vmatpush.msra.mxu2 %v2758_v4  ;;  %v2756_v10 = vld [vmem:[#allocation9] sm:$0xff]  ;;  %v626_v11 = vld [vmem:[%s5113_s29] sm:$0xff]  ;;  %v632_v14 = vld [vmem:[%s5121_s3 + $0x8] sm:$0xff]  ;;  %v4881_v42 = vmov 1983009808   ;;  %s4884_s8 = smov 8  }
  0x56   : > { %670 = vmatpush.msra.mxu0 %v636_v2  ;;  %706 = vmatpush.msra.mxu1 %v687_v9  ;;  %v685_v13 = vld [vmem:[#allocation12] sm:$0xff]  ;;  %v633_v15 = vld [vmem:[%s5121_s3 + $0x10] sm:$0xff]  ;;  %v634_v16 = vld [vmem:[%s5121_s3 + $0x18] sm:$0xff]  ;;  %v816_v43 = vunpack.c.l.s4 %v4881_v42  ;;  %v4882_v58 = vmov 1934713408   ;;  %s4885_s22 = smov 4  }
  0x57   : > { %2782 = vmatpush.msra.mxu2 %v2757_v6  ;;  %v4518_v17 = vld [vmem:[%s6718_s6] ss:$0 sm:$0xff]  ;;  %v864_v59 = vunpack.c.l.s4 %v4882_v58  ;;  %s4886_s29 = smov 12   ;;  %s4887_s10 = smov 24  }
  0x58   : > { %671 = vmatpush.msra.mxu0 %v635_v5  ;;  %707 = vmatpush.msra.mxu1 %v686_v12  ;;  %v4519_v27 = vld [vmem:[%s6717_s5] ss:$0 sm:$0xff]  ;;  %v5276_v47 = vunpack.c.0.s8 %v816_v43  ;;  %s4888_s15 = smov 16   ;;  %s4889_s23 = smov 20  }
  0x59   : > { %4313 = vmatmul.msk.f32.vlgmr.msra.gmra.mxu0 %vm643_vm0, %v631_v8  ;;  %2783 = vmatpush.msra.mxu2 %v2756_v10  ;;  %v4520_v32 = vld [vmem:[%s6719_s7] ss:$0 sm:$0xff]  ;;  %v5298_v4 = vunpack.c.0.s8 %v864_v59  ;;  %s4890_s3 = smov 28   ;;  %s6768_s13 = sld [smem:[#allocation35_spill]] }
  0x5a   : > { %4321 = vmatmul.msk.f32.vlgmr.msra.gmra.mxu2 %vm643_vm0, %v626_v11  ;;  %708 = vmatpush.msra.mxu1 %v685_v13  ;;  %s4312_s27 = sshll.u32 %s5109_s4, 1  ;;  %s4375_s28 = sshll.u32 %s4857_s16, 1 }
  0x5b   : > { %4317 = vmatmul.msk.f32.vlgmr.msra.gmra.mxu1 %vm643_vm0, %v631_v8 }
  0x61   : > { %4314 = vmatmul.msk.f32.gmra.mxu0 %vm643_vm0, %v632_v14 }
  0x63   : > { %4318 = vmatmul.msk.f32.gmra.mxu1 %vm643_vm0, %v632_v14 }
  0x69   : > { %4315 = vmatmul.msk.f32.gmra.mxu0 %vm643_vm0, %v633_v15 }
  0x6b   : > { %4319 = vmatmul.msk.f32.gmra.mxu1 %vm643_vm0, %v633_v15 }
  0x71   : > { %4316 = vmatmul.msk.f32.gmra.mxu0 %vm643_vm0, %v634_v16 }
  0x73   : > { %4320 = vmatmul.msk.f32.gmra.mxu1 %vm643_vm0, %v634_v16 }
  0xd6   : > { %v673_v18 = vpop.f32.mrf.mxu0 }
  0xd7   : > { %v5156_v19 = vadd.f32 %v4518_v17, %v673_v18 }
  0xd8   : > { %v710_v26 = vpop.f32.mrf.mxu1 }
  0xd9   : > { %786 = vrot.lane.b32.xlu2 %v5156_v19, %s4874_s12  ;;  %738 = vrot.lane.b32.xlu0 %v5156_v19, %s4875_s14  ;;  %v5260_v38 = vadd.f32 %v4520_v32, %v710_v26  ;;  %v813_v1 = vrot.slane %v5156_v19, 4 }
  0xdd   : > { %v2785_v28 = vpop.f32.mrf.mxu2 }
  0xde   : > { %v676_v20 = vpop.f32.mrf.mxu0  ;;  %v5219_v29 = vadd.f32 %v4519_v27, %v2785_v28 }
  0xdf   : > { %v5162_v21 = vadd.f32 %v4518_v17, %v676_v20 }
  0xe0   : > { %v713_v30 = vpop.f32.mrf.mxu1 }
  0xe1   : > { %788 = vrot.lane.b32.xlu1 %v5162_v21, %s4874_s12  ;;  %740 = vrot.lane.b32.xlu2 %v5162_v21, %s4875_s14  ;;  %v5246_v35 = vadd.f32 %v4520_v32, %v713_v30  ;;  %v925_v48 = vrot.slane %v5162_v21, 4 }
  0xe2   : > { %750 = vrot.lane.b32.xlu0 %v5156_v19, %s4876_s20 }
  0xe6   : > { %v679_v22 = vpop.f32.mrf.mxu0 }
  0xe7   : > { %v5176_v23 = vadd.f32 %v4518_v17, %v679_v22 }
  0xe8   : > { %v716_v31 = vpop.f32.mrf.mxu1 }
  0xe9   : > { %764 = vrot.lane.b32.xlu1 %v5162_v21, %s4877_s24  ;;  %752 = vrot.lane.b32.xlu2 %v5162_v21, %s4876_s20  ;;  %v5236_v33 = vadd.f32 %v4520_v32, %v716_v31  ;;  %v1037_v3 = vrot.slane %v5176_v23, 4 }
  0xea   : > { %726 = vrot.lane.b32.xlu0 %v5156_v19, %s4878_s11 }
  0xee   : > { %v682_v24 = vpop.f32.mrf.mxu0 }
  0xef   : > { %v5196_v25 = vadd.f32 %v4518_v17, %v682_v24 }
  0xf0   : > { %v719_v55 = vpop.f32.mrf.mxu1 }
  0xf1   : > { %776 = vrot.lane.b32.xlu1 %v5162_v21, %s4879_s25  ;;  %728 = vrot.lane.b32.xlu2 %v5162_v21, %s4878_s11  ;;  %v5289_v63 = vadd.f32 %v4520_v32, %v719_v55  ;;  %v1149_v7 = vrot.slane %v5196_v25, 4 }
  0xf2   : > { %790 = vrot.lane.b32.xlu0 %v5176_v23, %s4874_s12 }
  0xf9   : > { %754 = vrot.lane.b32.xlu1 %v5176_v23, %s4876_s20  ;;  %800 = vrot.lane.b32.xlu2 %v5162_v21, %s4880_s2 }
  0xfa   : > { %766 = vrot.lane.b32.xlu0 %v5176_v23, %s4877_s24 }
 0x101   : > { %730 = vrot.lane.b32.xlu1 %v5176_v23, %s4878_s11  ;;  %742 = vrot.lane.b32.xlu2 %v5176_v23, %s4875_s14 }
 0x102   : > { %778 = vrot.lane.b32.xlu0 %v5176_v23, %s4879_s25 }
 0x109   : > { %802 = vrot.lane.b32.xlu1 %v5176_v23, %s4880_s2  ;;  %768 = vrot.lane.b32.xlu2 %v5196_v25, %s4877_s24 }
 0x10a   : > { %744 = vrot.lane.b32.xlu0 %v5196_v25, %s4875_s14 }
 0x111   : > { %792 = vrot.lane.b32.xlu1 %v5196_v25, %s4874_s12  ;;  %780 = vrot.lane.b32.xlu2 %v5196_v25, %s4879_s25 }
 0x112   : > { %756 = vrot.lane.b32.xlu0 %v5196_v25, %s4876_s20 }
 0x119   : > { %732 = vrot.lane.b32.xlu1 %v5196_v25, %s4878_s11  ;;  %798 = vrot.lane.b32.xlu2 %v5156_v19, %s4880_s2 }
 0x11a   : > { %804 = vrot.lane.b32.xlu0 %v5196_v25, %s4880_s2 }
 0x121   : > { %762 = vrot.lane.b32.xlu1 %v5156_v19, %s4877_s24  ;;  %2795 = vrot.lane.b32.xlu2 %v5219_v29, %s4876_s20 }
 0x122   : > { %774 = vrot.lane.b32.xlu0 %v5156_v19, %s4879_s25 }
 0x129   : > { %2792 = vrot.lane.b32.xlu1 %v5219_v29, %s4875_s14  ;;  %2798 = vrot.lane.b32.xlu2 %v5219_v29, %s4877_s24 }
 0x12a   : > { %2804 = vrot.lane.b32.xlu0 %v5219_v29, %s4874_s12 }
 0x131   : > { %2789 = vrot.lane.b32.xlu1 %v5219_v29, %s4878_s11  ;;  %1772 = vrot.lane.b32.xlu2 %v5236_v33, %s4876_s20 }
 0x132   : > { %2807 = vrot.lane.b32.xlu0 %v5219_v29, %s4880_s2 }
 0x133   : > { %v5244_v34 = vpop.permute.xlu2 %786 }
 0x134   : > { %v835_v14 = vrot.slane %v5244_v34, 4 }
 0x139   : > { %2801 = vrot.lane.b32.xlu1 %v5219_v29, %s4879_s25  ;;  %1770 = vrot.lane.b32.xlu2 %v5246_v35, %s4876_s20 }
 0x13a   : > { %1758 = vrot.lane.b32.xlu0 %v5246_v35, %s4875_s14 }
 0x13b   : > { %v741_v36 = vpop.permute.xlu2 %740 }
 0x13c   : > { %v923_v41 = vrot.slane %v741_v36, 4  ;;  %v926_v56 = vsel %vm811_vm1, %v741_v36, %v925_v48 }
 0x13d   : > { %v934_v0 = vperm.slane %v926_v56, %v5276_v47 }
 0x13e   : > { %v924_v45 = vsel %vm811_vm1, %v923_v41, %v5162_v21 }
 0x13f   : > { %v930_v57 = vperm.slane %v924_v45, %v5276_v47  ;;  %v985_v15 = vrot.slane %v934_v0, 4 }
 0x141   : > { %1760 = vrot.lane.b32.xlu1 %v5236_v33, %s4875_s14  ;;  %1806 = vrot.lane.b32.xlu2 %v5246_v35, %s4874_s12  ;;  %v973_v2 = vrot.slane %v930_v57, 4 }
 0x142   : > { %1808 = vrot.lane.b32.xlu0 %v5236_v33, %s4874_s12 }
 0x143   : > { %v753_v37 = vpop.permute.xlu2 %752 }
 0x144   : > { %v935_v46 = vrot.slane %v753_v37, 4 }
 0x149   : > { %1748 = vrot.lane.b32.xlu1 %v5236_v33, %s4878_s11  ;;  %1768 = vrot.lane.b32.xlu2 %v5260_v38, %s4876_s20 }
 0x14a   : > { %1756 = vrot.lane.b32.xlu0 %v5260_v38, %s4875_s14 }
 0x14b   : > { %v729_v39 = vpop.permute.xlu2 %728  ;;  %v739_v40 = vpop.permute.xlu0 %738 }
 0x14c   : > { %v937_v44 = vrot.slane %v729_v39, 4  ;;  %v810_v49 = vrot.slane %v739_v40, 4  ;;  %v936_v52 = vsel %vm811_vm1, %v935_v46, %v729_v39  ;;  %v814_v5 = vsel %vm811_vm1, %v739_v40, %v813_v1 }
 0x14d   : > { %v942_v60 = vperm.slane %v936_v52, %v5276_v47  ;;  %v2813_v1 = vrot.slane %v5219_v29, 4 }
 0x14e   : > { %v938_v53 = vsel %vm811_vm1, %v753_v37, %v937_v44  ;;  %v812_v62 = vsel %vm811_vm1, %v810_v49, %v5156_v19  ;;  %v822_v19 = vperm.slane %v814_v5, %v5276_v47 }
 0x14f   : > { %v946_v61 = vperm.slane %v938_v53, %v5276_v47  ;;  %v818_v6 = vperm.slane %v812_v62, %v5276_v47  ;;  %v971_v8 = vrot.slane %v942_v60, 4  ;;  %v974_v9 = vsel %vm811_vm1, %v942_v60, %v973_v2 }
 0x150   : > { %v5310_v24 = vperm.slane %v974_v9, %v5298_v4  ;;  %v873_v42 = vrot.slane %v822_v19, 4 }
 0x151   : > { %1784 = vrot.lane.b32.xlu1 %v5236_v33, %s4877_s24  ;;  %1804 = vrot.lane.b32.xlu2 %v5260_v38, %s4874_s12  ;;  %v983_v10 = vrot.slane %v946_v61, 4  ;;  %v861_v26 = vrot.slane %v818_v6, 4  ;;  %v972_v30 = vsel %vm811_vm1, %v971_v8, %v930_v57  ;;  %v986_v32 = vsel %vm811_vm1, %v946_v61, %v985_v15 }
 0x152   : > { %1746 = vrot.lane.b32.xlu0 %v5246_v35, %s4878_s11  ;;  %v978_v46 = vperm.slane %v972_v30, %v5298_v4  ;;  %v994_v48 = vperm.slane %v986_v32, %v5298_v4 }
 0x153   : > { %v789_v50 = vpop.permute.xlu1 %788  ;;  %v5279_v51 = vpop.permute.xlu2 %800  ;;  %v984_v31 = vsel %vm811_vm1, %v983_v10, %v934_v0 }
 0x154   : > { %v751_v54 = vpop.permute.xlu0 %750  ;;  %v947_v16 = vrot.slane %v789_v50, 4  ;;  %v959_v49 = vrot.slane %v5279_v51, 4  ;;  %v1021_v2 = vrot.slane %v978_v46, 4  ;;  %v1033_v5 = vrot.slane %v994_v48, 4 }
 0x155   : > { %v823_v11 = vrot.slane %v751_v54, 4 }
 0x159   : > { %1820 = vrot.lane.b32.xlu1 %v5236_v33, %s4880_s2  ;;  %1774 = vrot.lane.b32.xlu2 %v5289_v63, %s4876_s20  ;;  %s6766_s20 = sld [smem:[#allocation36_spill]] }
 0x15a   : > { %1796 = vrot.lane.b32.xlu0 %v5236_v33, %s4879_s25 }
 0x15b   : > { %v765_v12 = vpop.permute.xlu1 %764  ;;  %v743_v13 = vpop.permute.xlu2 %742 }
 0x15c   : > { %v949_v17 = vrot.slane %v765_v12, 4  ;;  %v727_v18 = vpop.permute.xlu0 %726  ;;  %v1035_v20 = vrot.slane %v743_v13, 4  ;;  %v948_v27 = vsel %vm811_vm1, %v947_v16, %v765_v12  ;;  %v1038_v36 = vsel %vm811_vm1, %v743_v13, %v1037_v3 }
 0x15d   : > { %v824_v21 = vsel %vm811_vm1, %v823_v11, %v727_v18  ;;  %v825_v22 = vrot.slane %v727_v18, 4  ;;  %v954_v43 = vperm.slane %v948_v27, %v5276_v47  ;;  %v5344_v57 = vperm.slane %v1038_v36, %v5276_v47 }
 0x15e   : > { %v830_v28 = vperm.slane %v824_v21, %v5276_v47  ;;  %v950_v37 = vsel %vm811_vm1, %v789_v50, %v949_v17  ;;  %v1036_v44 = vsel %vm811_vm1, %v1035_v20, %v5176_v23  ;;  %v990_v23 = vperm.slane %v984_v31, %v5298_v4 }
 0x15f   : > { %v826_v39 = vsel %vm811_vm1, %v751_v54, %v825_v22  ;;  %v958_v52 = vperm.slane %v950_v37, %v5276_v47  ;;  %v5341_v56 = vperm.slane %v1036_v44, %v5276_v47  ;;  %v997_v61 = vrot.slane %v954_v43, 4 }
 0x160   : > { %v859_v40 = vrot.slane %v830_v28, 4  ;;  %v862_v41 = vsel %vm811_vm1, %v830_v28, %v861_v26  ;;  %v834_v45 = vperm.slane %v826_v39, %v5276_v47  ;;  %v1025_v3 = vrot.slane %v5310_v24, 4 }
 0x161   : > { %1782 = vrot.lane.b32.xlu1 %v5246_v35, %s4877_s24  ;;  %1822 = vrot.lane.b32.xlu2 %v5289_v63, %s4880_s2  ;;  %v1009_v8 = vrot.slane %v958_v52, 4  ;;  %v1029_v12 = vrot.slane %v990_v23, 4  ;;  %v1085_v13 = vrot.slane %v5341_v56, 4  ;;  %v1097_v15 = vrot.slane %v5344_v57, 4 }
 0x162   : > { %v860_v50 = vsel %vm811_vm1, %v859_v40, %v818_v6  ;;  %1762 = vrot.lane.b32.xlu0 %v5289_v63, %s4875_s14  ;;  %v871_v53 = vrot.slane %v834_v45, 4  ;;  %v5338_v54 = vsel %vm811_vm1, %v834_v45, %v873_v42  ;;  %v5363_v17 = vperm.slane %v862_v41, %v5298_v4 }
 0x163   : > { %v777_v55 = vpop.permute.xlu1 %776  ;;  %v5377_v27 = vperm.slane %v860_v50, %v5298_v4 }
 0x164   : > { %v960_v58 = vsel %vm811_vm1, %v959_v49, %v777_v55  ;;  %v961_v59 = vrot.slane %v777_v55, 4  ;;  %v5347_v60 = vpop.permute.xlu0 %790  ;;  %v5350_v62 = vsel %vm811_vm1, %v871_v53, %v822_v19 }
 0x165   : > { %v966_v0 = vperm.slane %v960_v58, %v5276_v47  ;;  %v1059_v31 = vrot.slane %v5347_v60, 4 }
 0x166   : > { %v962_v6 = vsel %vm811_vm1, %v5279_v51, %v961_v59 }
 0x167   : > { %v970_v9 = vperm.slane %v962_v6, %v5276_v47  ;;  %v995_v10 = vrot.slane %v966_v0, 4  ;;  %v998_v11 = vsel %vm811_vm1, %v966_v0, %v997_v61 }
 0x168   : > { %v1006_v16 = vperm.slane %v998_v11, %v5298_v4 }
 0x169   : > { %v996_v18 = vsel %vm811_vm1, %v995_v10, %v954_v43  ;;  %v1007_v19 = vrot.slane %v970_v9, 4  ;;  %v1010_v51 = vsel %vm811_vm1, %v970_v9, %v1009_v8  ;;  %1750 = vrot.lane.b32.xlu1 %v5289_v63, %s4878_s11  ;;  %1780 = vrot.lane.b32.xlu2 %v5260_v38, %s4877_s24 }
 0x16a   : > { %v1002_v20 = vperm.slane %v996_v18, %v5298_v4  ;;  %v1018_v21 = vperm.slane %v1010_v51, %v5298_v4  ;;  %v1023_v22 = vrot.slane %v1006_v16, 4  ;;  %v1026_v26 = vsel %vm811_vm1, %v1006_v16, %v1025_v3  ;;  %1810 = vrot.lane.b32.xlu0 %v5289_v63, %s4874_s12  ;;  %s4124_s12 = scalar_lea.sflag [#allocation6], %s5109_s4 }
 0x16b   : > { %v1008_v28 = vsel %vm811_vm1, %v1007_v19, %v958_v52  ;;  %v1383_v30 = vrot.slane %v1026_v26, 4  ;;  %v5381_v32 = vpop.permute.xlu1 %754 }
 0x16c   : > { %v1014_v36 = vperm.slane %v1008_v28, %v5298_v4  ;;  %v1019_v37 = vrot.slane %v1002_v20, 4  ;;  %v1022_v39 = vsel %vm811_vm1, %v1002_v20, %v1021_v2  ;;  %v1024_v40 = vsel %vm811_vm1, %v1023_v22, %v5310_v24  ;;  %v5387_v41 = vpop.permute.xlu0 %766 }
 0x16d   : > { %v1031_v42 = vrot.slane %v1018_v21, 4  ;;  %v1034_v43 = vsel %vm811_vm1, %v1018_v21, %v1033_v5  ;;  %v1371_v44 = vrot.slane %v1024_v40, 4  ;;  %v1384_v45 = vsel %vm811_vm1, %v1383_v30, %v1022_v39 }
 0x16e   : > { %v1020_v49 = vsel %vm811_vm1, %v1019_v37, %v978_v46  ;;  %v1027_v50 = vrot.slane %v1014_v36, 4  ;;  %v1030_v52 = vsel %vm811_vm1, %v1014_v36, %v1029_v12  ;;  %v1385_v53 = vrot.slane %v1022_v39, 4 }
 0x16f   : > { %v1032_v55 = vsel %vm811_vm1, %v1031_v42, %v994_v48  ;;  %v1372_v58 = vsel %vm811_vm1, %v1371_v44, %v1020_v49  ;;  %v1373_v59 = vrot.slane %v1020_v49, 4  ;;  %v1390_v24 = vperm.slane %v1384_v45, %v5276_v47 }
 0x170   : > { %v1028_v61 = vsel %vm811_vm1, %v1027_v50, %v990_v23  ;;  %v1378_v0 = vperm.slane %v1372_v58, %v5276_v47  ;;  %v1386_v2 = vsel %vm811_vm1, %v1026_v26, %v1385_v53  ;;  %v1395_v3 = vrot.slane %v1032_v55, 4 }
 0x171   : > { %v1374_v46 = vsel %vm811_vm1, %v1024_v40, %v1373_v59  ;;  %v1394_v5 = vperm.slane %v1386_v2, %v5276_v47  ;;  %v1397_v6 = vrot.slane %v1028_v61, 4  ;;  %v1407_v8 = vrot.slane %v1034_v43, 4  ;;  %1786 = vrot.lane.b32.xlu1 %v5289_v63, %s4877_s24 }
 0x172   : > { %v1382_v48 = vperm.slane %v1374_v46, %v5276_v47  ;;  %v1396_v9 = vsel %vm811_vm1, %v1395_v3, %v1028_v61  ;;  %v1409_v23 = vrot.slane %v1030_v52, 4  ;;  %v1419_v10 = vrot.slane %v1390_v24, 4  ;;  %1798 = vrot.lane.b32.xlu0 %v5289_v63, %s4879_s25 }
 0x173   : > { %v1398_v11 = vsel %vm811_vm1, %v1032_v55, %v1397_v6  ;;  %v1402_v12 = vperm.slane %v1396_v9, %v5276_v47  ;;  %v1408_v16 = vsel %vm811_vm1, %v1407_v8, %v1030_v52  ;;  %v1421_v18 = vrot.slane %v1378_v0, 4  ;;  %v5414_v22 = vpop.permute.xlu1 %730 }
 0x174   : > { %v1406_v19 = vperm.slane %v1398_v11, %v5276_v47  ;;  %v1410_v51 = vsel %vm811_vm1, %v1034_v43, %v1409_v23  ;;  %v1414_v20 = vperm.slane %v1408_v16, %v5276_v47  ;;  %v1420_v21 = vsel %vm811_vm1, %v1419_v10, %v1378_v0  ;;  %v5416_v26 = vpop.permute.xlu0 %778 }
 0x175   : > { %v1418_v28 = vperm.slane %v1410_v51, %v5276_v47  ;;  %v1422_v30 = vsel %vm811_vm1, %v1390_v24, %v1421_v18  ;;  %v1426_v36 = vperm.slane %v1420_v21, %v5298_v4  ;;  %v1431_v37 = vrot.slane %v1394_v5, 4 }
 0x176   : > { %v1430_v39 = vperm.slane %v1422_v30, %v5298_v4  ;;  %v1433_v40 = vrot.slane %v1382_v48, 4  ;;  %v1443_v42 = vrot.slane %v1414_v20, 4  ;;  %v1445_v43 = vrot.slane %v1402_v12, 4 }
 0x177   : > { %v1432_v44 = vsel %vm811_vm1, %v1431_v37, %v1382_v48  ;;  %v1455_v45 = vrot.slane %v1418_v28, 4  ;;  %v1457_v49 = vrot.slane %v1406_v19, 4  ;;  %v1469_v50 = vrot.slane %v1426_v36, 4 }
 0x178   : > { %v1434_v52 = vsel %vm811_vm1, %v1394_v5, %v1433_v40  ;;  %v1438_v53 = vperm.slane %v1432_v44, %v5298_v4  ;;  %v1444_v55 = vsel %vm811_vm1, %v1443_v42, %v1402_v12  ;;  %v1446_v58 = vsel %vm811_vm1, %v1414_v20, %v1445_v43 }
 0x179   : > { %v1442_v59 = vperm.slane %v1434_v52, %v5298_v4  ;;  %v1450_v24 = vperm.slane %v1444_v55, %v5298_v4  ;;  %v1454_v61 = vperm.slane %v1446_v58, %v5298_v4  ;;  %v1456_v0 = vsel %vm811_vm1, %v1455_v45, %v1406_v19  ;;  %1818 = vrot.lane.b32.xlu1 %v5246_v35, %s4880_s2 }
 0x17a   : > { %v1458_v2 = vsel %vm811_vm1, %v1418_v28, %v1457_v49  ;;  %v1462_v3 = vperm.slane %v1456_v0, %v5298_v4  ;;  %v1473_v46 = vrot.slane %v1430_v39, 4  ;;  %v1477_v5 = vrot.slane %v1438_v53, 4  ;;  %1744 = vrot.lane.b32.xlu0 %v5260_v38, %s4878_s11 }
 0x17b   : > { %v1466_v6 = vperm.slane %v1458_v2, %v5298_v4  ;;  %v1467_v8 = vrot.slane %v1450_v24, 4  ;;  %v1470_v48 = vsel %vm811_vm1, %v1450_v24, %v1469_v50  ;;  %v1471_v9 = vrot.slane %v1454_v61, 4 }
 0x17c   : > { %v913_v23 = vrot.slane %v5363_v17, 4  ;;  %v1474_v10 = vsel %vm811_vm1, %v1454_v61, %v1473_v46  ;;  %v1475_v11 = vrot.slane %v1462_v3, 4  ;;  %v1481_v12 = vrot.slane %v1442_v59, 4  ;;  %1713 = vst.msk [vmem:[#allocation2 + $0x28] sm:$0xff] %vm1707_vm2, %v1470_v48  ;;  %v745_v37 = vpop.permute.xlu0 %744 }
 0x17d   : > { %v1468_v16 = vsel %vm811_vm1, %v1467_v8, %v1426_v36  ;;  %v1472_v18 = vsel %vm811_vm1, %v1471_v9, %v1430_v39  ;;  %v1479_v19 = vrot.slane %v1466_v6, 4  ;;  %1721 = vst.msk [vmem:[#allocation2 + $0x68] sm:$0xff] %vm1707_vm2, %v1474_v10  ;;  %v1047_v51 = vrot.slane %v5381_v32, 4  ;;  %v803_v36 = vpop.permute.xlu1 %802 }
 0x17e   : > { %v5448_v20 = vperm.slane %v5338_v54, %v5298_v4  ;;  %v1476_v21 = vsel %vm811_vm1, %v1475_v11, %v1438_v53  ;;  %v1478_v28 = vsel %vm811_vm1, %v1462_v3, %v1477_v5  ;;  %1709 = vst.msk [vmem:[#allocation2 + $0x8] sm:$0xff] %vm1707_vm2, %v1468_v16  ;;  %v1060_v30 = vsel %vm811_vm1, %v1059_v31, %v5387_v41 }
 0x17f   : > { %v1480_v39 = vsel %vm811_vm1, %v1479_v19, %v1442_v59  ;;  %1717 = vst.msk [vmem:[#allocation2 + $0x48] sm:$0xff] %vm1707_vm2, %v1472_v18  ;;  %v1061_v54 = vrot.slane %v5387_v41, 4  ;;  %v1066_v40 = vperm.slane %v1060_v30, %v5276_v47  ;;  %v1048_v42 = vsel %vm811_vm1, %v1047_v51, %v5414_v22 }
 0x180   : > { %v1482_v43 = vsel %vm811_vm1, %v1466_v6, %v1481_v12  ;;  %1725 = vst.msk [vmem:[#allocation2 + $0x88] sm:$0xff] %vm1707_vm2, %v1476_v21  ;;  %v1049_v44 = vrot.slane %v5414_v22, 4  ;;  %v1054_v31 = vperm.slane %v1048_v42, %v5276_v47  ;;  %v1073_v45 = vrot.slane %v5416_v26, 4 }
 0x181   : > { %1729 = vst.msk [vmem:[#allocation2 + $0xa8] sm:$0xff] %vm1707_vm2, %v1478_v28  ;;  %v1062_v41 = vsel %vm811_vm1, %v5347_v60, %v1061_v54  ;;  %v1109_v49 = vrot.slane %v1066_v40, 4  ;;  %v1071_v50 = vrot.slane %v803_v36, 4  ;;  %v1147_v52 = vrot.slane %v745_v37, 4 }
 0x182   : > { %1733 = vst.msk [vmem:[#allocation2 + $0xc8] sm:$0xff] %vm1707_vm2, %v1480_v39  ;;  %v1070_v53 = vperm.slane %v1062_v41, %v5276_v47  ;;  %v1050_v55 = vsel %vm811_vm1, %v5381_v32, %v1049_v44  ;;  %v1083_v22 = vrot.slane %v1054_v31, 4  ;;  %v1086_v58 = vsel %vm811_vm1, %v1054_v31, %v1085_v13  ;;  %v5488_v13 = vpop.permute.xlu2 %768 }
 0x183   : > { %1737 = vst.msk [vmem:[#allocation2 + $0xe8] sm:$0xff] %vm1707_vm2, %v1482_v43  ;;  %v1058_v59 = vperm.slane %v1050_v55, %v5276_v47  ;;  %v1094_v60 = vperm.slane %v1086_v58, %v5298_v4  ;;  %v1072_v24 = vsel %vm811_vm1, %v1071_v50, %v5416_v26  ;;  %v1074_v61 = vsel %vm811_vm1, %v803_v36, %v1073_v45 }
 0x184   : > { %v1121_v0 = vrot.slane %v1070_v53, 4  ;;  %v1084_v32 = vsel %vm811_vm1, %v1083_v22, %v5341_v56  ;;  %v1078_v2 = vperm.slane %v1072_v24, %v5276_v47  ;;  %v1082_v3 = vperm.slane %v1074_v61, %v5276_v47 }
 0x185   : > { %v1090_v46 = vperm.slane %v1084_v32, %v5298_v4  ;;  %v1095_v5 = vrot.slane %v1058_v59, 4  ;;  %v1098_v6 = vsel %vm811_vm1, %v1058_v59, %v1097_v15  ;;  %v1137_v26 = vrot.slane %v1094_v60, 4 }
 0x186   : > { %v1106_v8 = vperm.slane %v1098_v6, %v5298_v4  ;;  %v1107_v48 = vrot.slane %v1078_v2, 4  ;;  %v1110_v9 = vsel %vm811_vm1, %v1078_v2, %v1109_v49  ;;  %v1119_v56 = vrot.slane %v1082_v3, 4 }
 0x187   : > { %v1096_v10 = vsel %vm811_vm1, %v1095_v5, %v5344_v57  ;;  %v1133_v11 = vrot.slane %v1090_v46, 4  ;;  %v1118_v12 = vperm.slane %v1110_v9, %v5298_v4  ;;  %v1122_v16 = vsel %vm811_vm1, %v1082_v3, %v1121_v0 }
 0x188   : > { %v1102_v18 = vperm.slane %v1096_v10, %v5298_v4  ;;  %v1145_v19 = vrot.slane %v1106_v8, 4  ;;  %v1108_v15 = vsel %vm811_vm1, %v1107_v48, %v1066_v40  ;;  %v1120_v51 = vsel %vm811_vm1, %v1119_v56, %v1070_v53  ;;  %v5520_v53 = vpop.permute.xlu1 %792 }
 0x189   : > { %v1114_v21 = vperm.slane %v1108_v15, %v5298_v4  ;;  %v1126_v28 = vperm.slane %v1120_v51, %v5298_v4  ;;  %v1130_v30 = vperm.slane %v1122_v16, %v5298_v4  ;;  %v1135_v36 = vrot.slane %v1118_v12, 4  ;;  %v5540_v15 = vpop.permute.xlu0 %756 }
 0x18a   : > { %v1141_v57 = vrot.slane %v1102_v18, 4  ;;  %v1138_v39 = vsel %vm811_vm1, %v1118_v12, %v1137_v26  ;;  %v5509_v54 = vsel %vm811_vm1, %v1147_v52, %v5196_v25  ;;  %v5514_v40 = vsel %vm811_vm1, %v745_v37, %v1149_v7 }
 0x18b   : > { %v1131_v42 = vrot.slane %v1114_v21, 4  ;;  %v1134_v43 = vsel %vm811_vm1, %v1114_v21, %v1133_v11  ;;  %v1136_v44 = vsel %vm811_vm1, %v1135_v36, %v1094_v60  ;;  %v1139_v31 = vrot.slane %v1126_v28, 4  ;;  %v5526_v60 = vpop.permute.xlu2 %780 }
 0x18c   : > { %v1142_v45 = vsel %vm811_vm1, %v1126_v28, %v1141_v57  ;;  %v1143_v41 = vrot.slane %v1130_v30, 4  ;;  %v1146_v49 = vsel %vm811_vm1, %v1130_v30, %v1145_v19  ;;  %v1483_v50 = vrot.slane %v1136_v44, 4 }
 0x18d   : > { %v1132_v52 = vsel %vm811_vm1, %v1131_v42, %v1090_v46  ;;  %v1140_v25 = vsel %vm811_vm1, %v1139_v31, %v1102_v18  ;;  %v1495_v7 = vrot.slane %v1138_v39, 4  ;;  %v1497_v37 = vrot.slane %v1134_v43, 4 }
 0x18e   : > { %v1144_v55 = vsel %vm811_vm1, %v1143_v41, %v1106_v8  ;;  %v1484_v22 = vsel %vm811_vm1, %v1483_v50, %v1132_v52  ;;  %v1485_v58 = vrot.slane %v1132_v52, 4  ;;  %v1509_v59 = vrot.slane %v1140_v25, 4 }
 0x18f   : > { %v1490_v24 = vperm.slane %v1484_v22, %v5276_v47  ;;  %v1496_v61 = vsel %vm811_vm1, %v1495_v7, %v1134_v43  ;;  %v1498_v0 = vsel %vm811_vm1, %v1138_v39, %v1497_v37  ;;  %v1507_v32 = vrot.slane %v1144_v55, 4 }
 0x190   : > { %v1486_v2 = vsel %vm811_vm1, %v1136_v44, %v1485_v58  ;;  %v1502_v3 = vperm.slane %v1496_v61, %v5276_v47  ;;  %v1506_v46 = vperm.slane %v1498_v0, %v5276_v47  ;;  %v1510_v5 = vsel %vm811_vm1, %v1144_v55, %v1509_v59  ;;  %v733_v41 = vpop.permute.xlu1 %732 }
 0x191   : > { %v1494_v6 = vperm.slane %v1486_v2, %v5276_v47  ;;  %v1508_v26 = vsel %vm811_vm1, %v1507_v32, %v1140_v25  ;;  %v1518_v8 = vperm.slane %v1510_v5, %v5276_v47  ;;  %v1519_v48 = vrot.slane %v1146_v49, 4 }
 0x192   : > { %v1514_v9 = vperm.slane %v1508_v26, %v5276_v47  ;;  %v1521_v56 = vrot.slane %v1142_v45, 4  ;;  %v1531_v10 = vrot.slane %v1502_v3, 4  ;;  %v1533_v11 = vrot.slane %v1490_v24, 4 }
 0x193   : > { %v1520_v12 = vsel %vm811_vm1, %v1519_v48, %v1142_v45  ;;  %v1543_v16 = vrot.slane %v1506_v46, 4  ;;  %v1545_v18 = vrot.slane %v1494_v6, 4  ;;  %v1569_v19 = vrot.slane %v1518_v8, 4  ;;  %v5557_v58 = vpop.permute.xlu2 %798 }
 0x194   : > { %v1522_v51 = vsel %vm811_vm1, %v1146_v49, %v1521_v56  ;;  %v1526_v21 = vperm.slane %v1520_v12, %v5276_v47  ;;  %v1532_v28 = vsel %vm811_vm1, %v1531_v10, %v1490_v24  ;;  %v1534_v30 = vsel %vm811_vm1, %v1502_v3, %v1533_v11 }
 0x195   : > { %v1530_v36 = vperm.slane %v1522_v51, %v5276_v47  ;;  %v1538_v57 = vperm.slane %v1532_v28, %v5298_v4  ;;  %v1542_v39 = vperm.slane %v1534_v30, %v5298_v4  ;;  %v1544_v42 = vsel %vm811_vm1, %v1543_v16, %v1494_v6 }
 0x196   : > { %v1546_v43 = vsel %vm811_vm1, %v1506_v46, %v1545_v18  ;;  %v1550_v44 = vperm.slane %v1544_v42, %v5298_v4  ;;  %v1555_v31 = vrot.slane %v1526_v21, 4  ;;  %v1557_v45 = vrot.slane %v1514_v9, 4  ;;  %v805_v18 = vpop.permute.xlu0 %804 }
 0x197   : > { %v1554_v49 = vperm.slane %v1546_v43, %v5298_v4  ;;  %v1567_v50 = vrot.slane %v1530_v36, 4  ;;  %v1570_v52 = vsel %vm811_vm1, %v1530_v36, %v1569_v19  ;;  %v1581_v25 = vrot.slane %v1538_v57, 4 }
 0x198   : > { %v1556_v7 = vsel %vm811_vm1, %v1555_v31, %v1514_v9  ;;  %v1558_v37 = vsel %vm811_vm1, %v1526_v21, %v1557_v45  ;;  %v1578_v55 = vperm.slane %v1570_v52, %v5298_v4  ;;  %v1585_v22 = vrot.slane %v1542_v39, 4  ;;  %v5591_v45 = vpop.permute.xlu1 %762 }
 0x199   : > { %v1562_v59 = vperm.slane %v1556_v7, %v5298_v4  ;;  %v1566_v24 = vperm.slane %v1558_v37, %v5298_v4  ;;  %v1568_v61 = vsel %vm811_vm1, %v1567_v50, %v1518_v8  ;;  %v1589_v0 = vrot.slane %v1550_v44, 4 }
 0x19a   : > { %v1574_v32 = vperm.slane %v1568_v61, %v5298_v4  ;;  %v1591_v2 = vrot.slane %v1578_v55, 4  ;;  %v1593_v3 = vrot.slane %v1554_v49, 4  ;;  %v1154_v46 = vperm.slane %v5509_v54, %v5276_v47 }
 0x19b   : > { %v1579_v5 = vrot.slane %v1562_v59, 4  ;;  %v1582_v6 = vsel %vm811_vm1, %v1562_v59, %v1581_v25  ;;  %v1583_v26 = vrot.slane %v1566_v24, 4  ;;  %v1586_v48 = vsel %vm811_vm1, %v1566_v24, %v1585_v22 }
 0x19c   : > { %v1173_v9 = vrot.slane %v5488_v13, 4  ;;  %v1185_v56 = vrot.slane %v5526_v60, 4  ;;  %v847_v8 = vrot.slane %v5557_v58, 4  ;;  %v1587_v10 = vrot.slane %v1574_v32, 4  ;;  %1714 = vst.msk [vmem:[#allocation2 + $0x30] sm:$0xff] %vm1707_vm2, %v1582_v6 }
 0x19d   : > { %v1584_v11 = vsel %vm811_vm1, %v1583_v26, %v1542_v39  ;;  %v1590_v12 = vsel %vm811_vm1, %v1574_v32, %v1589_v0  ;;  %v1592_v54 = vsel %vm811_vm1, %v1591_v2, %v1554_v49  ;;  %1722 = vst.msk [vmem:[#allocation2 + $0x70] sm:$0xff] %vm1707_vm2, %v1586_v48  ;;  %v1158_v16 = vperm.slane %v5514_v40, %v5276_v47 }
 0x19e   : > { %v1588_v19 = vsel %vm811_vm1, %v1587_v10, %v1550_v44  ;;  %v1594_v51 = vsel %vm811_vm1, %v1578_v55, %v1593_v3  ;;  %1718 = vst.msk [vmem:[#allocation2 + $0x50] sm:$0xff] %vm1707_vm2, %v1584_v11  ;;  %v1171_v21 = vrot.slane %v5520_v53, 4  ;;  %v1174_v28 = vsel %vm811_vm1, %v5520_v53, %v1173_v9 }
 0x19f   : > { %v1580_v30 = vsel %vm811_vm1, %v1579_v5, %v1538_v57  ;;  %1726 = vst.msk [vmem:[#allocation2 + $0x90] sm:$0xff] %vm1707_vm2, %v1588_v19  ;;  %v1197_v36 = vrot.slane %v1154_v46, 4  ;;  %v1182_v39 = vperm.slane %v1174_v28, %v5276_v47  ;;  %v1159_v40 = vrot.slane %v5540_v15, 4 }
 0x1a0   : > { %1730 = vst.msk [vmem:[#allocation2 + $0xb0] sm:$0xff] %vm1707_vm2, %v1590_v12  ;;  %v1172_v42 = vsel %vm811_vm1, %v1171_v21, %v5488_v13  ;;  %v1161_v43 = vrot.slane %v733_v41, 4  ;;  %v1183_v44 = vrot.slane %v805_v18, 4  ;;  %v1186_v31 = vsel %vm811_vm1, %v805_v18, %v1185_v56 }
 0x1a1   : > { %1734 = vst.msk [vmem:[#allocation2 + $0xd0] sm:$0xff] %vm1707_vm2, %v1592_v54  ;;  %v1209_v53 = vrot.slane %v1158_v16, 4  ;;  %v1178_v57 = vperm.slane %v1172_v42, %v5276_v47  ;;  %v1160_v49 = vsel %vm811_vm1, %v1159_v40, %v733_v41  ;;  %v1194_v50 = vperm.slane %v1186_v31, %v5276_v47 }
 0x1a2   : > { %1738 = vst.msk [vmem:[#allocation2 + $0xf0] sm:$0xff] %vm1707_vm2, %v1594_v51  ;;  %v1233_v52 = vrot.slane %v1182_v39, 4  ;;  %v1162_v13 = vsel %vm811_vm1, %v5540_v15, %v1161_v43  ;;  %v1166_v25 = vperm.slane %v1160_v49, %v5276_v47  ;;  %v1184_v7 = vsel %vm811_vm1, %v1183_v44, %v5526_v60 }
 0x1a3   : > { %1710 = vst.msk [vmem:[#allocation2 + $0x10] sm:$0xff] %vm1707_vm2, %v1580_v30  ;;  %v1170_v37 = vperm.slane %v1162_v13, %v5276_v47  ;;  %v1190_v55 = vperm.slane %v1184_v7, %v5276_v47  ;;  %v1231_v41 = vrot.slane %v1194_v50, 4  ;;  %v5610_v22 = vsel %vm811_vm1, %v835_v14, %v5591_v45 }
 0x1a4   : > { %v1221_v59 = vrot.slane %v1178_v57, 4  ;;  %v1195_v15 = vrot.slane %v1166_v25, 4  ;;  %v1198_v24 = vsel %vm811_vm1, %v1166_v25, %v1197_v36  ;;  %v1234_v61 = vsel %vm811_vm1, %v1194_v50, %v1233_v52 }
 0x1a5   : > { %v1206_v60 = vperm.slane %v1198_v24, %v5298_v4  ;;  %v1207_v0 = vrot.slane %v1170_v37, 4  ;;  %v1210_v32 = vsel %vm811_vm1, %v1170_v37, %v1209_v53  ;;  %v1219_v2 = vrot.slane %v1190_v55, 4 }
 0x1a6   : > { %v1196_v3 = vsel %vm811_vm1, %v1195_v15, %v1154_v46  ;;  %v1218_v5 = vperm.slane %v1210_v32, %v5298_v4  ;;  %v1222_v6 = vsel %vm811_vm1, %v1190_v55, %v1221_v59  ;;  %v1232_v14 = vsel %vm811_vm1, %v1231_v41, %v1182_v39 }
 0x1a7   : > { %v1202_v26 = vperm.slane %v1196_v3, %v5298_v4  ;;  %v1208_v48 = vsel %vm811_vm1, %v1207_v0, %v1158_v16  ;;  %v1249_v9 = vrot.slane %v1206_v60, 4  ;;  %v1220_v56 = vsel %vm811_vm1, %v1219_v2, %v1178_v57 }
 0x1a8   : > { %v1214_v10 = vperm.slane %v1208_v48, %v5298_v4  ;;  %v1257_v11 = vrot.slane %v1218_v5, 4  ;;  %v1226_v12 = vperm.slane %v1220_v56, %v5298_v4  ;;  %v1230_v46 = vperm.slane %v1222_v6, %v5298_v4 }
 0x1a9   : > { %v1245_v54 = vrot.slane %v1202_v26, 4  ;;  %v1238_v18 = vperm.slane %v1232_v14, %v5298_v4  ;;  %v1242_v19 = vperm.slane %v1234_v61, %v5298_v4  ;;  %v837_v51 = vrot.slane %v5591_v45, 4 }
 0x1aa   : > { %v1253_v21 = vrot.slane %v1214_v10, 4  ;;  %v1243_v28 = vrot.slane %v1226_v12, 4  ;;  %v1247_v16 = vrot.slane %v1230_v46, 4  ;;  %v1250_v30 = vsel %vm811_vm1, %v1230_v46, %v1249_v9 }
 0x1ab   : > { %v1246_v36 = vsel %vm811_vm1, %v1226_v12, %v1245_v54  ;;  %v1251_v39 = vrot.slane %v1238_v18, 4  ;;  %v1255_v40 = vrot.slane %v1242_v19, 4  ;;  %v1258_v42 = vsel %vm811_vm1, %v1242_v19, %v1257_v11  ;;  %v5653_v19 = vpop.permute.xlu2 %2795 }
 0x1ac   : > { %v1244_v43 = vsel %vm811_vm1, %v1243_v28, %v1202_v26  ;;  %v1248_v44 = vsel %vm811_vm1, %v1247_v16, %v1206_v60  ;;  %v1254_v31 = vsel %vm811_vm1, %v1238_v18, %v1253_v21  ;;  %v1607_v53 = vrot.slane %v1250_v30, 4 }
 0x1ad   : > { %v1252_v57 = vsel %vm811_vm1, %v1251_v39, %v1214_v10  ;;  %v1256_v49 = vsel %vm811_vm1, %v1255_v40, %v1218_v5  ;;  %v1595_v50 = vrot.slane %v1248_v44, 4  ;;  %v1597_v52 = vrot.slane %v1244_v43, 4 }
 0x1ae   : > { %v1608_v13 = vsel %vm811_vm1, %v1607_v53, %v1246_v36  ;;  %v1609_v25 = vrot.slane %v1246_v36, 4  ;;  %v1619_v7 = vrot.slane %v1256_v49, 4  ;;  %v1621_v37 = vrot.slane %v1252_v57, 4  ;;  %v775_v36 = vpop.permute.xlu0 %774 }
 0x1af   : > { %v1596_v55 = vsel %vm811_vm1, %v1595_v50, %v1244_v43  ;;  %v1598_v41 = vsel %vm811_vm1, %v1248_v44, %v1597_v52  ;;  %v1614_v59 = vperm.slane %v1608_v13, %v5276_v47  ;;  %v1631_v15 = vrot.slane %v1258_v42, 4 }
 0x1b0   : > { %v1602_v24 = vperm.slane %v1596_v55, %v5276_v47  ;;  %v1606_v61 = vperm.slane %v1598_v41, %v5276_v47  ;;  %v1610_v60 = vsel %vm811_vm1, %v1250_v30, %v1609_v25  ;;  %v1620_v0 = vsel %vm811_vm1, %v1619_v7, %v1252_v57 }
 0x1b1   : > { %v1618_v32 = vperm.slane %v1610_v60, %v5276_v47  ;;  %v1622_v2 = vsel %vm811_vm1, %v1256_v49, %v1621_v37  ;;  %v1626_v3 = vperm.slane %v1620_v0, %v5276_v47  ;;  %v1632_v5 = vsel %vm811_vm1, %v1631_v15, %v1254_v31 }
 0x1b2   : > { %v1630_v6 = vperm.slane %v1622_v2, %v5276_v47  ;;  %v1633_v14 = vrot.slane %v1254_v31, 4  ;;  %v1638_v26 = vperm.slane %v1632_v5, %v5276_v47  ;;  %v1643_v48 = vrot.slane %v1614_v59, 4 }
 0x1b3   : > { %v1645_v9 = vrot.slane %v1602_v24, 4  ;;  %v1655_v56 = vrot.slane %v1618_v32, 4  ;;  %v1657_v10 = vrot.slane %v1606_v61, 4  ;;  %v1669_v11 = vrot.slane %v1626_v3, 4 }
 0x1b4   : > { %v1634_v12 = vsel %vm811_vm1, %v1258_v42, %v1633_v14  ;;  %v1644_v46 = vsel %vm811_vm1, %v1643_v48, %v1602_v24  ;;  %v1667_v54 = vrot.slane %v1638_v26, 4  ;;  %v1681_v18 = vrot.slane %v1630_v6, 4 }
 0x1b5   : > { %v1642_v21 = vperm.slane %v1634_v12, %v5276_v47  ;;  %v1646_v28 = vsel %vm811_vm1, %v1614_v59, %v1645_v9  ;;  %v1650_v16 = vperm.slane %v1644_v46, %v5298_v4  ;;  %v1656_v30 = vsel %vm811_vm1, %v1655_v56, %v1606_v61 }
 0x1b6   : > { %v1654_v39 = vperm.slane %v1646_v28, %v5298_v4  ;;  %v1658_v40 = vsel %vm811_vm1, %v1618_v32, %v1657_v10  ;;  %v1662_v42 = vperm.slane %v1656_v30, %v5298_v4  ;;  %v1668_v43 = vsel %vm811_vm1, %v1667_v54, %v1626_v3  ;;  %v5684_v3 = vpop.permute.xlu1 %2792  ;;  %v5700_v10 = vpop.permute.xlu2 %2798 }
 0x1b7   : > { %v1666_v44 = vperm.slane %v1658_v40, %v5298_v4  ;;  %v1670_v31 = vsel %vm811_vm1, %v1638_v26, %v1669_v11  ;;  %v1674_v53 = vperm.slane %v1668_v43, %v5298_v4  ;;  %v1679_v57 = vrot.slane %v1642_v21, 4  ;;  %v5704_v46 = vpop.permute.xlu0 %2804 }
 0x1b8   : > { %v1678_v49 = vperm.slane %v1670_v31, %v5298_v4  ;;  %v1682_v50 = vsel %vm811_vm1, %v1642_v21, %v1681_v18  ;;  %v1693_v52 = vrot.slane %v1650_v16, 4  ;;  %v1697_v13 = vrot.slane %v1654_v39, 4 }
 0x1b9   : > { %v1680_v25 = vsel %vm811_vm1, %v1679_v57, %v1630_v6  ;;  %v1690_v7 = vperm.slane %v1682_v50, %v5298_v4  ;;  %v1701_v37 = vrot.slane %v1662_v42, 4  ;;  %v838_v55 = vsel %vm811_vm1, %v5244_v34, %v837_v51 }
 0x1ba   : > { %v1686_v41 = vperm.slane %v1680_v25, %v5298_v4  ;;  %v1694_v59 = vsel %vm811_vm1, %v1674_v53, %v1693_v52  ;;  %v1695_v15 = vrot.slane %v1678_v49, 4  ;;  %v1698_v24 = vsel %vm811_vm1, %v1678_v49, %v1697_v13 }
 0x1bb   : > { %v1691_v61 = vrot.slane %v1674_v53, 4  ;;  %v1703_v60 = vrot.slane %v1690_v7, 4  ;;  %v1705_v0 = vrot.slane %v1666_v44, 4  ;;  %1715 = vst.msk [vmem:[#allocation2 + $0x38] sm:$0xff] %vm1707_vm2, %v1694_v59  ;;  %v842_v32 = vperm.slane %v5610_v22, %v5276_v47 }
 0x1bc   : > { %v1696_v45 = vsel %vm811_vm1, %v1695_v15, %v1654_v39  ;;  %v1699_v2 = vrot.slane %v1686_v41, 4  ;;  %v1702_v34 = vsel %vm811_vm1, %v1686_v41, %v1701_v37  ;;  %1723 = vst.msk [vmem:[#allocation2 + $0x78] sm:$0xff] %vm1707_vm2, %v1698_v24  ;;  %v846_v51 = vperm.slane %v838_v55, %v5276_v47 }
 0x1bd   : > { %v5688_v5 = vperm.slane %v5350_v62, %v5298_v4  ;;  %v1704_v6 = vsel %vm811_vm1, %v1703_v60, %v1666_v44  ;;  %1719 = vst.msk [vmem:[#allocation2 + $0x58] sm:$0xff] %vm1707_vm2, %v1696_v45  ;;  %v885_v22 = vrot.slane %v842_v32, 4  ;;  %v848_v14 = vsel %vm811_vm1, %v847_v8, %v775_v36  ;;  %v3041_v60 = vld [vmem:[#allocation2 + $0x30] sm:$0xff] }
 0x1be   : > { %v1700_v26 = vsel %vm811_vm1, %v1699_v2, %v1662_v42  ;;  %v1706_v48 = vsel %vm811_vm1, %v1690_v7, %v1705_v0  ;;  %1731 = vst.msk [vmem:[#allocation2 + $0xb8] sm:$0xff] %vm1707_vm2, %v1702_v34  ;;  %v849_v9 = vrot.slane %v775_v36, 4  ;;  %v854_v56 = vperm.slane %v848_v14, %v5276_v47  ;;  %v3049_v14 = vld [vmem:[#allocation2 + $0x70] sm:$0xff] }
 0x1bf   : > { %v909_v62 = vrot.slane %v5377_v27, 4  ;;  %v1692_v11 = vsel %vm811_vm1, %v1691_v61, %v1650_v16  ;;  %1727 = vst.msk [vmem:[#allocation2 + $0x98] sm:$0xff] %vm1707_vm2, %v1700_v26  ;;  %v897_v12 = vrot.slane %v846_v51, 4  ;;  %v2810_v8 = vrot.slane %v5684_v3, 4 }
 0x1c0   : > { %v921_v54 = vrot.slane %v5448_v20, 4  ;;  %1735 = vst.msk [vmem:[#allocation2 + $0xd8] sm:$0xff] %vm1707_vm2, %v1704_v6  ;;  %v850_v18 = vsel %vm811_vm1, %v5557_v58, %v849_v9  ;;  %v883_v21 = vrot.slane %v854_v56, 4  ;;  %v886_v28 = vsel %vm811_vm1, %v854_v56, %v885_v22 }
 0x1c1   : > { %v917_v30 = vrot.slane %v5688_v5, 4  ;;  %1739 = vst.msk [vmem:[#allocation2 + $0xf8] sm:$0xff] %vm1707_vm2, %v1706_v48  ;;  %v858_v16 = vperm.slane %v850_v18, %v5276_v47  ;;  %v894_v36 = vperm.slane %v886_v28, %v5298_v4  ;;  %v2812_v39 = vsel %vm811_vm1, %v2810_v8, %v5219_v29  ;;  %v5760_v8 = vpop.permute.xlu0 %2807  ;;  %v3040_v18 = vld [vmem:[#allocation2 + $0x28] sm:$0xff] }
 0x1c2   : > { %v2823_v40 = vrot.slane %v5653_v19, 4  ;;  %v2837_v42 = vrot.slane %v5700_v10, 4  ;;  %1711 = vst.msk [vmem:[#allocation2 + $0x18] sm:$0xff] %vm1707_vm2, %v1692_v11  ;;  %v884_v58 = vsel %vm811_vm1, %v883_v21, %v842_v32  ;;  %v2835_v43 = vrot.slane %v5704_v46, 4  ;;  %v3042_v44 = vld [vmem:[#allocation2 + $0x38] sm:$0xff]  ;;  %v3053_v21 = vld [vmem:[#allocation2 + $0x90] sm:$0xff] }
 0x1c3   : > { %v890_v31 = vperm.slane %v884_v58, %v5298_v4  ;;  %v895_v53 = vrot.slane %v858_v16, 4  ;;  %v898_v57 = vsel %vm811_vm1, %v858_v16, %v897_v12  ;;  %v911_v49 = vrot.slane %v894_v36, 4  ;;  %4327 = vmatpush.xpose.msk.msrb.mxu2 %vm1707_vm2, %v3042_v44  ;;  %v3050_v7 = vld [vmem:[#allocation2 + $0x78] sm:$0xff]  ;;  %v3048_v44 = vld [vmem:[#allocation2 + $0x68] sm:$0xff] }
 0x1c4   : > { %v906_v50 = vperm.slane %v898_v57, %v5298_v4  ;;  %v914_v52 = vsel %vm811_vm1, %v894_v36, %v913_v23  ;;  %v5732_v13 = vsel %vm811_vm1, %v5704_v46, %v2837_v42  ;;  %v5735_v25 = vperm.slane %v2812_v39, %v5276_v47  ;;  %4337 = vmatpush.xpose.msk.msrb.mxu0 %vm1707_vm2, %v3050_v7 }
 0x1c5   : > { %v896_v37 = vsel %vm811_vm1, %v895_v53, %v846_v51  ;;  %v907_v55 = vrot.slane %v890_v31, 4  ;;  %v910_v41 = vsel %vm811_vm1, %v890_v31, %v909_v62  ;;  %v912_v59 = vsel %vm811_vm1, %v911_v49, %v5363_v17 }
 0x1c6   : > { %v902_v23 = vperm.slane %v896_v37, %v5298_v4  ;;  %v919_v15 = vrot.slane %v906_v50, 4  ;;  %v922_v24 = vsel %vm811_vm1, %v906_v50, %v921_v54  ;;  %v1259_v61 = vrot.slane %v912_v59, 4  ;;  %v3054_v0 = vld [vmem:[#allocation2 + $0x98] sm:$0xff]  ;;  %v5762_v54 = vpop.permute.xlu1 %2789  ;;  %v3037_v50 = vld [vmem:[#allocation2 + $0x10] sm:$0xff] }
 0x1c7   : > { %v908_v32 = vsel %vm811_vm1, %v907_v55, %v5377_v27  ;;  %v1271_v45 = vrot.slane %v914_v52, 4  ;;  %v1273_v2 = vrot.slane %v910_v41, 4  ;;  %v1295_v34 = vrot.slane %v922_v24, 4  ;;  %4328 = vmatpush.xpose.msk.msrb.mxu2 %vm1707_vm2, %v3041_v60  ;;  %4342 = vmatpush.xpose.msk.msrb.mxu1 %vm1707_vm2, %v3054_v0 }
 0x1c8   : > { %v915_v17 = vrot.slane %v902_v23, 4  ;;  %v918_v51 = vsel %vm811_vm1, %v902_v23, %v917_v30  ;;  %v920_v6 = vsel %vm811_vm1, %v919_v15, %v5448_v20  ;;  %v1260_v22 = vsel %vm811_vm1, %v1259_v61, %v908_v32  ;;  %4338 = vmatpush.xpose.msk.msrb.mxu0 %vm1707_vm2, %v3049_v14 }
 0x1c9   : > { %v1261_v26 = vrot.slane %v908_v32, 4  ;;  %v1266_v48 = vperm.slane %v1260_v22, %v5276_v47  ;;  %v1272_v27 = vsel %vm811_vm1, %v1271_v45, %v910_v41  ;;  %v1274_v9 = vsel %vm811_vm1, %v914_v52, %v1273_v2  ;;  %v3038_v56 = vld [vmem:[#allocation2 + $0x18] sm:$0xff]  ;;  %v3052_v41 = vld [vmem:[#allocation2 + $0x88] sm:$0xff] }
 0x1ca   : > { %v916_v62 = vsel %vm811_vm1, %v915_v17, %v5688_v5  ;;  %v1278_v11 = vperm.slane %v1272_v27, %v5276_v47  ;;  %v1282_v20 = vperm.slane %v1274_v9, %v5276_v47  ;;  %v1283_v12 = vrot.slane %v920_v6, 4  ;;  %4322 = vmatpush.xpose.msk.msra.mxu3 %vm1707_vm2, %v3038_v56 }
 0x1cb   : > { %v1262_v28 = vsel %vm811_vm1, %v912_v59, %v1261_v26  ;;  %v1285_v30 = vrot.slane %v916_v62, 4  ;;  %v1296_v16 = vsel %vm811_vm1, %v1295_v34, %v918_v51  ;;  %v1297_v36 = vrot.slane %v918_v51, 4  ;;  %4329 = vmatpush.xpose.msk.msrb.mxu2 %vm1707_vm2, %v3040_v18  ;;  %4343 = vmatpush.xpose.msk.msrb.mxu1 %vm1707_vm2, %v3053_v21  ;;  %v3036_v51 = vld [vmem:[#allocation2 + $0x8] sm:$0xff]  ;;  %v5797_v18 = vpop.permute.xlu0 %1758 }
 0x1cc   : > { %v1270_v5 = vperm.slane %v1262_v28, %v5276_v47  ;;  %v1284_v39 = vsel %vm811_vm1, %v1283_v12, %v916_v62  ;;  %v1302_v42 = vperm.slane %v1296_v16, %v5276_v47  ;;  %v1307_v58 = vrot.slane %v1278_v11, 4  ;;  %4339 = vmatpush.xpose.msk.msrb.mxu0 %vm1707_vm2, %v3048_v44 }
 0x1cd   : > { %v1286_v31 = vsel %vm811_vm1, %v920_v6, %v1285_v30  ;;  %v1290_v53 = vperm.slane %v1284_v39, %v5276_v47  ;;  %v1298_v57 = vsel %vm811_vm1, %v922_v24, %v1297_v36  ;;  %v1309_v49 = vrot.slane %v1266_v48, 4 }
 0x1ce   : > { %v1294_v52 = vperm.slane %v1286_v31, %v5276_v47  ;;  %v1306_v7 = vperm.slane %v1298_v57, %v5276_v47  ;;  %v1308_v37 = vsel %vm811_vm1, %v1307_v58, %v1266_v48  ;;  %v1319_v55 = vrot.slane %v1282_v20, 4  ;;  %4323 = vmatpush.xpose.msk.msra.mxu3 %vm1707_vm2, %v3037_v50  ;;  %v2802_v21 = vpop.permute.xlu1 %2801 }
 0x1cf   : > { %v1310_v59 = vsel %vm811_vm1, %v1278_v11, %v1309_v49  ;;  %v1314_v23 = vperm.slane %v1308_v37, %v5298_v4  ;;  %v1321_v15 = vrot.slane %v1270_v5, 4  ;;  %v1331_v24 = vrot.slane %v1302_v42, 4  ;;  %4344 = vmatpush.xpose.msk.msrb.mxu1 %vm1707_vm2, %v3052_v41 }
 0x1d0   : > { %v1318_v61 = vperm.slane %v1310_v59, %v5298_v4  ;;  %v1320_v60 = vsel %vm811_vm1, %v1319_v55, %v1270_v5  ;;  %v1333_v0 = vrot.slane %v1290_v53, 4  ;;  %v1343_v32 = vrot.slane %v1306_v7, 4 }
 0x1d1   : > { %v1322_v45 = vsel %vm811_vm1, %v1282_v20, %v1321_v15  ;;  %v1326_v2 = vperm.slane %v1320_v60, %v5298_v4  ;;  %v1332_v34 = vsel %vm811_vm1, %v1331_v24, %v1290_v53  ;;  %v1345_v17 = vrot.slane %v1294_v52, 4 }
 0x1d2   : > { %v1330_v6 = vperm.slane %v1322_v45, %v5298_v4  ;;  %v1334_v22 = vsel %vm811_vm1, %v1302_v42, %v1333_v0  ;;  %v1338_v14 = vperm.slane %v1332_v34, %v5298_v4  ;;  %v1344_v26 = vsel %vm811_vm1, %v1343_v32, %v1294_v52  ;;  %4324 = vmatpush.xpose.msk.msra.mxu3 %vm1707_vm2, %v3036_v51  ;;  %v3058_v0 = vld [vmem:[#allocation2 + $0xb8] sm:$0xff] }
 0x1d3   : > { %v1342_v48 = vperm.slane %v1334_v22, %v5298_v4  ;;  %v1346_v27 = vsel %vm811_vm1, %v1306_v7, %v1345_v17  ;;  %v1350_v9 = vperm.slane %v1344_v26, %v5298_v4  ;;  %v1357_v56 = vrot.slane %v1314_v23, 4  ;;  %v5846_v60 = vpop.permute.xlu0 %1808  ;;  %v3046_v17 = vld [vmem:[#allocation2 + $0x58] sm:$0xff] }
 0x1d4   : > { %v1354_v62 = vperm.slane %v1346_v27, %v5298_v4  ;;  %v1355_v11 = vrot.slane %v1338_v14, 4  ;;  %v1361_v20 = vrot.slane %v1318_v61, 4  ;;  %v1365_v12 = vrot.slane %v1326_v2, 4 }
 0x1d5   : > { %v1358_v28 = vsel %vm811_vm1, %v1338_v14, %v1357_v56  ;;  %v1359_v30 = vrot.slane %v1342_v48, 4  ;;  %v1363_v16 = vrot.slane %v1350_v9, 4  ;;  %v1369_v36 = vrot.slane %v1330_v6, 4  ;;  %v3066_v56 = vld [vmem:[#allocation2 + $0xf8] sm:$0xff] }
 0x1d6   : > { %v1356_v5 = vsel %vm811_vm1, %v1355_v11, %v1314_v23  ;;  %v1362_v39 = vsel %vm811_vm1, %v1342_v48, %v1361_v20  ;;  %v1366_v42 = vsel %vm811_vm1, %v1350_v9, %v1365_v12  ;;  %v1367_v58 = vrot.slane %v1354_v62, 4  ;;  %1712 = vst.msk [vmem:[#allocation2 + $0x20] sm:$0xff] %vm1707_vm2, %v1358_v28 }
 0x1d7   : > { %v1360_v44 = vsel %vm811_vm1, %v1359_v30, %v1318_v61  ;;  %v1364_v31 = vsel %vm811_vm1, %v1363_v16, %v1326_v2  ;;  %v1370_v53 = vsel %vm811_vm1, %v1354_v62, %v1369_v36  ;;  %1708 = vst.msk [vmem:[#allocation2] sm:$0xff] %vm1707_vm2, %v1356_v5  ;;  %v2836_v57 = vsel %vm811_vm1, %v2835_v43, %v5700_v10  ;;  %v1773_v5 = vpop.permute.xlu2 %1772 }
 0x1d8   : > { %v1368_v49 = vsel %vm811_vm1, %v1367_v58, %v1330_v6  ;;  %1716 = vst.msk [vmem:[#allocation2 + $0x40] sm:$0xff] %vm1707_vm2, %v1360_v44  ;;  %v2814_v50 = vsel %vm811_vm1, %v5684_v3, %v2813_v1  ;;  %v2847_v52 = vrot.slane %v5760_v8, 4  ;;  %v2824_v7 = vsel %vm811_vm1, %v2823_v40, %v5762_v54 }
 0x1d9   : > { %1720 = vst.msk [vmem:[#allocation2 + $0x60] sm:$0xff] %vm1707_vm2, %v1362_v39  ;;  %v5826_v10 = vperm.slane %v5732_v13, %v5276_v47  ;;  %v2825_v46 = vrot.slane %v5762_v54, 4  ;;  %v2830_v29 = vperm.slane %v2824_v7, %v5276_v47  ;;  %v2842_v1 = vperm.slane %v2836_v57, %v5276_v47  ;;  %v3045_v39 = vld [vmem:[#allocation2 + $0x50] sm:$0xff] }
 0x1da   : > { %1724 = vst.msk [vmem:[#allocation2 + $0x80] sm:$0xff] %vm1707_vm2, %v1364_v31  ;;  %v2861_v3 = vrot.slane %v5735_v25, 4  ;;  %v2848_v43 = vsel %vm811_vm1, %v2847_v52, %v2802_v21  ;;  %v2849_v37 = vrot.slane %v2802_v21, 4  ;;  %v2822_v40 = vperm.slane %v2814_v50, %v5276_v47  ;;  %v3057_v21 = vld [vmem:[#allocation2 + $0xb0] sm:$0xff] }
 0x1db   : > { %1728 = vst.msk [vmem:[#allocation2 + $0xa0] sm:$0xff] %vm1707_vm2, %v1366_v42  ;;  %v2826_v13 = vsel %vm811_vm1, %v5653_v19, %v2825_v46  ;;  %v2859_v55 = vrot.slane %v2830_v29, 4  ;;  %v2854_v23 = vperm.slane %v2848_v43, %v5276_v47  ;;  %v2885_v24 = vrot.slane %v2842_v1, 4  ;;  %v1761_v19 = vpop.permute.xlu1 %1760  ;;  %v3065_v50 = vld [vmem:[#allocation2 + $0xf0] sm:$0xff] }
 0x1dc   : > { %1732 = vst.msk [vmem:[#allocation2 + $0xc0] sm:$0xff] %vm1707_vm2, %v1368_v49  ;;  %v2834_v54 = vperm.slane %v2826_v13, %v5276_v47  ;;  %v2862_v41 = vsel %vm811_vm1, %v2830_v29, %v2861_v3  ;;  %v2850_v59 = vsel %vm811_vm1, %v5760_v8, %v2849_v37  ;;  %v2897_v61 = vrot.slane %v5826_v10, 4 }
 0x1dd   : > { %1736 = vst.msk [vmem:[#allocation2 + $0xe0] sm:$0xff] %vm1707_vm2, %v1370_v53  ;;  %v3039_v15 = vld [vmem:[#allocation2 + $0x20] sm:$0xff]  ;;  %v2873_v45 = vrot.slane %v2822_v40, 4  ;;  %v2870_v2 = vperm.slane %v2862_v41, %v5298_v4  ;;  %v1940_v34 = vrot.slane %v5797_v18, 4  ;;  %v2858_v8 = vperm.slane %v2850_v59, %v5276_v47 }
 0x1de   : > { %4330 = vmatpush.xpose.msk.msrb.mxu2 %vm1707_vm2, %v3039_v15  ;;  %v3035_v32 = vld [vmem:[#allocation2] sm:$0xff]  ;;  %v2860_v51 = vsel %vm811_vm1, %v2859_v55, %v5735_v25  ;;  %v2871_v6 = vrot.slane %v2834_v54, 4  ;;  %v2883_v22 = vrot.slane %v2854_v23, 4  ;;  %v2886_v14 = vsel %vm811_vm1, %v2854_v23, %v2885_v24  ;;  %v5897_v55 = vpop.permute.xlu0 %1756 }
 0x1df   : > { %4325 = vmatpush.xpose.msk.msra.mxu3 %vm1707_vm2, %v3035_v32  ;;  %v2874_v48 = vsel %vm811_vm1, %v2834_v54, %v2873_v45  ;;  %v2894_v27 = vperm.slane %v2886_v14, %v5298_v4  ;;  %v2895_v9 = vrot.slane %v2858_v8, 4  ;;  %v1942_v11 = vrot.slane %v5246_v35, 4 }
 0x1e0   : > { %v3047_v26 = vld [vmem:[#allocation2 + $0x60] sm:$0xff]  ;;  %v2884_v25 = vsel %vm811_vm1, %v2883_v22, %v2842_v1  ;;  %v2898_v20 = vsel %vm811_vm1, %v2858_v8, %v2897_v61  ;;  %v2052_v12 = vrot.slane %v1761_v19, 4  ;;  %v2866_v28 = vperm.slane %v2860_v51, %v5298_v4  ;;  %v3056_v1 = vld [vmem:[#allocation2 + $0xa8] sm:$0xff] }
 0x1e1   : > { %4340 = vmatpush.xpose.msk.msrb.mxu0 %vm1707_vm2, %v3047_v26  ;;  %v3051_v62 = vld [vmem:[#allocation2 + $0x80] sm:$0xff]  ;;  %v2913_v30 = vrot.slane %v2870_v2, 4  ;;  %v1941_v16 = vsel %vm811_vm1, %v1940_v34, %v5246_v35  ;;  %v2890_v36 = vperm.slane %v2884_v25, %v5298_v4  ;;  %v2872_v42 = vsel %vm811_vm1, %v2871_v6, %v2822_v40  ;;  %v3064_v61 = vld [vmem:[#allocation2 + $0xe8] sm:$0xff] }
 0x1e2   : > { %4347 = vmatpush.xpose.msk.msra.mxu2 %vm1707_vm2, %v3058_v0  ;;  %4345 = vmatpush.xpose.msk.msrb.mxu1 %vm1707_vm2, %v3051_v62  ;;  %v2882_v58 = vperm.slane %v2874_v48, %v5298_v4  ;;  %v2911_v44 = vrot.slane %v2894_v27, 4  ;;  %v2054_v31 = vrot.slane %v5236_v33, 4  ;;  %v2896_v53 = vsel %vm811_vm1, %v2895_v9, %v5826_v10  ;;  %v3043_v6 = vld [vmem:[#allocation2 + $0x40] sm:$0xff] }
 0x1e3   : > { %4332 = vmatpush.xpose.msk.msrb.mxu3 %vm1707_vm2, %v3046_v17  ;;  %v2906_v57 = vperm.slane %v2898_v20, %v5298_v4  ;;  %v5879_v49 = vsel %vm811_vm1, %v2894_v27, %v2913_v30  ;;  %v1943_v52 = vsel %vm811_vm1, %v5797_v18, %v1942_v11  ;;  %v5884_v7 = vperm.slane %v1941_v16, %v5276_v47  ;;  %v3044_v18 = vld [vmem:[#allocation2 + $0x48] sm:$0xff]  ;;  %v1749_v41 = vpop.permute.xlu1 %1748 }
 0x1e4   : > { %v2064_v46 = vrot.slane %v1773_v5, 4  ;;  %v2053_v29 = vsel %vm811_vm1, %v2052_v12, %v5236_v33  ;;  %v2878_v10 = vperm.slane %v2872_v42, %v5298_v4  ;;  %v2909_v3 = vrot.slane %v2866_v28, 4  ;;  %v3063_v25 = vld [vmem:[#allocation2 + $0xe0] sm:$0xff] }
 0x1e5   : > { %4357 = vmatpush.xpose.msk.msra.mxu0 %vm1707_vm2, %v3066_v56  ;;  %v2907_v43 = vrot.slane %v2890_v36, 4  ;;  %v5891_v37 = vsel %vm811_vm1, %v2911_v44, %v2870_v2  ;;  %v2921_v40 = vrot.slane %v2882_v58, 4  ;;  %v2902_v13 = vperm.slane %v2896_v53, %v5298_v4  ;;  %v3055_v2 = vld [vmem:[#allocation2 + $0xa0] sm:$0xff]  ;;  %v1771_v56 = vpop.permute.xlu2 %1770 }
 0x1e6   : > { %4348 = vmatpush.xpose.msk.msra.mxu2 %vm1707_vm2, %v3057_v21  ;;  %v2935_v54 = vrot.slane %v5879_v49, 4  ;;  %v2055_v33 = vsel %vm811_vm1, %v1761_v19, %v2054_v31  ;;  %v5901_v59 = vsel %vm811_vm1, %v2890_v36, %v2909_v3  ;;  %v2919_v23 = vrot.slane %v2906_v57, 4 }
 0x1e7   : > { %4333 = vmatpush.xpose.msk.msrb.mxu3 %vm1707_vm2, %v3045_v39  ;;  %v2059_v15 = vperm.slane %v2053_v29, %v5276_v47  ;;  %v2063_v24 = vperm.slane %v2055_v33, %v5276_v47  ;;  %v5906_v0 = vsel %vm811_vm1, %v2906_v57, %v2921_v40  ;;  %v2923_v32 = vrot.slane %v5891_v37, 4 }
 0x1e8   : > { %v2065_v19 = vsel %vm811_vm1, %v2064_v46, %v1749_v41  ;;  %v2066_v45 = vrot.slane %v1749_v41, 4  ;;  %v2917_v34 = vrot.slane %v2878_v10, 4  ;;  %v5912_v8 = vsel %vm811_vm1, %v2907_v43, %v2866_v28 }
 0x1e9   : > { %4358 = vmatpush.xpose.msk.msra.mxu0 %vm1707_vm2, %v3065_v50  ;;  %v2102_v17 = vrot.slane %v2059_v15, 4  ;;  %v2071_v51 = vperm.slane %v2065_v19, %v5276_v47  ;;  %v2915_v22 = vrot.slane %v2902_v13, 4  ;;  %v2936_v14 = vsel %vm811_vm1, %v2935_v54, %v5901_v59 }
 0x1ea   : > { %4349 = vmatpush.xpose.msk.msra.mxu2 %vm1707_vm2, %v3056_v1  ;;  %v2114_v26 = vrot.slane %v2063_v24, 4  ;;  %v2067_v48 = vsel %vm811_vm1, %v1773_v5, %v2066_v45  ;;  %v5921_v27 = vperm.slane %v1943_v52, %v5276_v47  ;;  %v2959_v9 = vrot.slane %v5906_v0, 4 }
 0x1eb   : > { %4334 = vmatpush.xpose.msk.msrb.mxu3 %vm1707_vm2, %v3044_v18  ;;  %v2075_v62 = vperm.slane %v2067_v48, %v5276_v47  ;;  %v2100_v11 = vrot.slane %v2071_v51, 4  ;;  %v5926_v20 = vsel %vm811_vm1, %v2919_v23, %v2882_v58  ;;  %v2076_v12 = vrot.slane %v5846_v60, 4  ;;  %v1785_v3 = vpop.permute.xlu1 %1784 }
 0x1ec   : > { %v5930_v21 = vsel %vm811_vm1, %v2902_v13, %v2917_v34  ;;  %v2924_v28 = vsel %vm811_vm1, %v2923_v32, %v5912_v8  ;;  %v1952_v30 = vrot.slane %v1771_v56, 4  ;;  %v2103_v36 = vsel %vm811_vm1, %v2071_v51, %v2102_v17 }
 0x1ed   : > { %4359 = vmatpush.xpose.msk.msra.mxu0 %vm1707_vm2, %v3064_v61  ;;  %v2101_v16 = vsel %vm811_vm1, %v2100_v11, %v2059_v15  ;;  %v2942_v5 = vperm.slane %v2936_v14, %v5276_v47  ;;  %v2112_v39 = vrot.slane %v2075_v62, 4  ;;  %v2115_v42 = vsel %vm811_vm1, %v2075_v62, %v2114_v26 }
 0x1ee   : > { %4350 = vmatpush.xpose.msk.msra.mxu2 %vm1707_vm2, %v3055_v2  ;;  %v5940_v58 = vsel %vm811_vm1, %v2915_v22, %v2878_v10  ;;  %v2930_v44 = vperm.slane %v2924_v28, %v5276_v47  ;;  %v1990_v31 = vrot.slane %v5884_v7, 4  ;;  %v2002_v53 = vrot.slane %v5921_v27, 4  ;;  %v1747_v10 = vpop.permute.xlu0 %1746 }
 0x1ef   : > { %4335 = vmatpush.xpose.msk.msrb.mxu3 %vm1707_vm2, %v3043_v6  ;;  %v2947_v57 = vrot.slane %v5926_v20, 4  ;;  %v2960_v50 = vsel %vm811_vm1, %v2959_v9, %v5930_v21  ;;  %v2925_v52 = vrot.slane %v5912_v8, 4  ;;  %v2937_v46 = vrot.slane %v5901_v59, 4  ;;  %v5971_v8 = vpop.permute.xlu2 %1806 }
 0x1f0   : > { %v5951_v29 = vperm.slane %v2101_v16, %v5298_v4  ;;  %v5954_v1 = vperm.slane %v2103_v36, %v5298_v4  ;;  %v5957_v43 = vperm.slane %v2115_v42, %v5298_v4  ;;  %v2966_v40 = vperm.slane %v2960_v50, %v5276_v47  ;;  %v3062_v50 = vld [vmem:[#allocation2 + $0xd8] sm:$0xff] }
 0x1f1   : > { %4360 = vmatpush.xpose.msk.msra.mxu0 %vm1707_vm2, %v3063_v25  ;;  %v2948_v18 = vsel %vm811_vm1, %v2947_v57, %v5940_v58  ;;  %v2971_v13 = vrot.slane %v2942_v5, 4  ;;  %v2113_v54 = vsel %vm811_vm1, %v2112_v39, %v2063_v24  ;;  %v2973_v41 = vrot.slane %v2930_v44, 4 }
 0x1f2   : > { %v2954_v33 = vperm.slane %v2948_v18, %v5276_v47  ;;  %v1953_v59 = vsel %vm811_vm1, %v1952_v30, %v1747_v10  ;;  %v2995_v15 = vrot.slane %v2966_v40, 4  ;;  %v1954_v61 = vrot.slane %v1747_v10, 4 }
 0x1f3   : > { %v2972_v23 = vsel %vm811_vm1, %v2971_v13, %v2930_v44  ;;  %v1959_v32 = vperm.slane %v1953_v59, %v5276_v47  ;;  %v2949_v19 = vrot.slane %v5940_v58, 4  ;;  %v2974_v2 = vsel %vm811_vm1, %v2942_v5, %v2973_v41  ;;  %v1821_v44 = vpop.permute.xlu1 %1820 }
 0x1f4   : > { %v2978_v45 = vperm.slane %v2972_v23, %v5298_v4  ;;  %v2997_v34 = vrot.slane %v2954_v33, 4  ;;  %v2996_v24 = vsel %vm811_vm1, %v2995_v15, %v2954_v33  ;;  %v2982_v17 = vperm.slane %v2974_v2, %v5298_v4 }
 0x1f5   : > { %v1955_v51 = vsel %vm811_vm1, %v1771_v56, %v1954_v61  ;;  %v1988_v6 = vrot.slane %v1959_v32, 4  ;;  %v3002_v22 = vperm.slane %v2996_v24, %v5298_v4  ;;  %v5984_v25 = vsel %vm811_vm1, %v1959_v32, %v1990_v31  ;;  %v3061_v32 = vld [vmem:[#allocation2 + $0xd0] sm:$0xff] }
 0x1f6   : > { %v3021_v14 = vrot.slane %v2978_v45, 4  ;;  %v2998_v26 = vsel %vm811_vm1, %v2966_v40, %v2997_v34  ;;  %v1963_v48 = vperm.slane %v1955_v51, %v5276_v47  ;;  %v3025_v62 = vrot.slane %v2982_v17, 4 }
 0x1f7   : > { %v3006_v9 = vperm.slane %v2998_v26, %v5298_v4  ;;  %v5981_v11 = vsel %vm811_vm1, %v1988_v6, %v5884_v7  ;;  %v2961_v56 = vrot.slane %v5930_v21, 4  ;;  %v3019_v30 = vrot.slane %v3002_v22, 4  ;;  %v6031_v15 = vpop.permute.xlu2 %1768 }
 0x1f8   : > { %v3022_v28 = vsel %vm811_vm1, %v3002_v22, %v3021_v14  ;;  %v2077_v16 = vsel %vm811_vm1, %v2076_v12, %v1785_v3  ;;  %v2000_v5 = vrot.slane %v1963_v48, 4  ;;  %v5992_v39 = vsel %vm811_vm1, %v1963_v48, %v2002_v53  ;;  %v1797_v12 = vpop.permute.xlu0 %1796 }
 0x1f9   : > { %4331 = vmatmul.msk.f32.vlgmr.msrb.gmra.mxu2 %vm1707_vm2, %v3022_v28  ;;  %v3026_v36 = vsel %vm811_vm1, %v3006_v9, %v3025_v62  ;;  %v2078_v7 = vrot.slane %v1785_v3, 4  ;;  %v2938_v42 = vsel %vm811_vm1, %v5879_v49, %v2937_v46  ;;  %v5997_v58 = vperm.slane %v2113_v54, %v5298_v4 }
 0x1fa   : > { %v3020_v21 = vsel %vm811_vm1, %v3019_v30, %v2978_v45  ;;  %4341 = vmatmul.msk.f32.vlgmr.msrb.gmra.mxu0 %vm1707_vm2, %v3026_v36  ;;  %v6004_v31 = vsel %vm811_vm1, %v2000_v5, %v5921_v27  ;;  %v6009_v49 = vperm.slane %v2077_v16, %v5276_v47  ;;  %v2926_v57 = vsel %vm811_vm1, %v5891_v37, %v2925_v52 }
 0x1fb   : > { %4326 = vmatmul.msk.f32.vlgmr.msra.gmra.mxu3 %vm1707_vm2, %v3020_v21  ;;  %v2079_v53 = vsel %vm811_vm1, %v5846_v60, %v2078_v7  ;;  %v2150_v46 = vrot.slane %v5951_v29, 4  ;;  %v2154_v10 = vrot.slane %v5954_v1, 4  ;;  %v2162_v3 = vrot.slane %v5957_v43, 4  ;;  %v6057_v7 = vpop.permute.xlu1 %1782 }
 0x1fc   : > { %v2934_v18 = vperm.slane %v2926_v57, %v5276_v47  ;;  %4352 = vmatpush.xpose.msk.msra.mxu3 %vm1707_vm2, %v3062_v50  ;;  %v6019_v27 = vperm.slane %v2079_v53, %v5276_v47  ;;  %v2946_v60 = vperm.slane %v2938_v42, %v5276_v47  ;;  %v2950_v40 = vsel %vm811_vm1, %v5926_v20, %v2949_v19 }
 0x1fd   : > { %v2962_v37 = vsel %vm811_vm1, %v5906_v0, %v2961_v56  ;;  %v2158_v52 = vrot.slane %v5997_v58, 4  ;;  %v1964_v13 = vrot.slane %v5971_v8, 4  ;;  %v2958_v54 = vperm.slane %v2950_v40, %v5276_v47  ;;  %v3060_v56 = vld [vmem:[#allocation2 + $0xc8] sm:$0xff] }
 0x1fe   : > { %v2970_v33 = vperm.slane %v2962_v37, %v5276_v47  ;;  %v2126_v41 = vrot.slane %v6009_v49, 4  ;;  %v2983_v59 = vrot.slane %v2946_v60, 4  ;;  %v2985_v23 = vrot.slane %v2934_v18, 4 }
 0x1ff   : > { %v3023_v61 = vrot.slane %v3006_v9, 4  ;;  %v3009_v0 = vrot.slane %v2958_v54, 4  ;;  %v2090_v19 = vrot.slane %v1797_v12, 4  ;;  %v2088_v45 = vrot.slane %v1821_v44, 4 }
 0x200   : > { %v3007_v20 = vrot.slane %v2970_v33, 4  ;;  %4353 = vmatpush.xpose.msk.msra.mxu3 %vm1707_vm2, %v3061_v32  ;;  %v2138_v2 = vrot.slane %v6019_v27, 4  ;;  %v2984_v34 = vsel %vm811_vm1, %v2983_v59, %v2934_v18  ;;  %v2986_v51 = vsel %vm811_vm1, %v2946_v60, %v2985_v23  ;;  %v6055_v5 = vpop.permute.xlu0 %1762 }
 0x201   : > { %v3024_v24 = vsel %vm811_vm1, %v3023_v61, %v2982_v17  ;;  %v2990_v6 = vperm.slane %v2984_v34, %v5298_v4  ;;  %v6041_v14 = vperm.slane %v2986_v51, %v5298_v4  ;;  %v3010_v26 = vsel %vm811_vm1, %v2970_v33, %v3009_v0  ;;  %v6090_v0 = vpop.permute.xlu2 %1804 }
 0x202   : > { %v3008_v22 = vsel %vm811_vm1, %v3007_v20, %v2958_v54  ;;  %v6047_v9 = vperm.slane %v3010_v26, %v5298_v4  ;;  %v2089_v17 = vsel %vm811_vm1, %v2088_v45, %v1797_v12  ;;  %v2091_v62 = vsel %vm811_vm1, %v1821_v44, %v2090_v19  ;;  %v3059_v54 = vld [vmem:[#allocation2 + $0xc0] sm:$0xff] }
 0x203   : > { %v3014_v48 = vperm.slane %v3008_v22, %v5298_v4  ;;  %4336 = vmatmul.msk.f32.vlgmr.msrb.gmra.mxu3 %vm1707_vm2, %v3024_v24  ;;  %v3029_v28 = vrot.slane %v2990_v6, 4  ;;  %v3033_v30 = vrot.slane %v6041_v14, 4  ;;  %v2095_v16 = vperm.slane %v2089_v17, %v5276_v47 }
 0x204   : > { %v2099_v36 = vperm.slane %v2091_v62, %v5276_v47  ;;  %4354 = vmatpush.xpose.msk.msra.mxu3 %vm1707_vm2, %v3060_v56  ;;  %v2166_v21 = vrot.slane %v5289_v63, 4  ;;  %v2164_v12 = vrot.slane %v6055_v5, 4  ;;  %v6063_v44 = vsel %vm811_vm1, %v1964_v13, %v6057_v7 }
 0x205   : > { %v3027_v42 = vrot.slane %v3014_v48, 4  ;;  %v3030_v53 = vsel %vm811_vm1, %v3014_v48, %v3029_v28  ;;  %v3034_v57 = vsel %vm811_vm1, %v6047_v9, %v3033_v30  ;;  %v2124_v50 = vrot.slane %v2095_v16, 4 }
 0x206   : > { %v2127_v18 = vsel %vm811_vm1, %v2095_v16, %v2126_v41  ;;  %4351 = vmatmul.msk.f32.vlgmr.msra.gmra.mxu2 %vm1707_vm2, %v3030_v53  ;;  %4361 = vmatmul.msk.f32.vlgmr.msra.gmra.mxu0 %vm1707_vm2, %v3034_v57  ;;  %v2136_v37 = vrot.slane %v2099_v36, 4  ;;  %v2139_v13 = vsel %vm811_vm1, %v2099_v36, %v2138_v2  ;;  %v6081_v41 = vsel %vm811_vm1, %v2164_v12, %v5289_v63 }
 0x207   : > { %v3028_v60 = vsel %vm811_vm1, %v3027_v42, %v2990_v6  ;;  %v2135_v40 = vperm.slane %v2127_v18, %v5298_v4  ;;  %v2125_v33 = vsel %vm811_vm1, %v2124_v50, %v6009_v49  ;;  %v2147_v59 = vperm.slane %v2139_v13, %v5298_v4 }
 0x208   : > { %4346 = vmatmul.msk.f32.vlgmr.msrb.gmra.mxu1 %vm1707_vm2, %v3028_v60  ;;  %4355 = vmatpush.xpose.msk.msra.mxu3 %vm1707_vm2, %v3059_v54  ;;  %v1966_v23 = vrot.slane %v6057_v7, 4  ;;  %v2131_v61 = vperm.slane %v2125_v33, %v5298_v4  ;;  %v2137_v32 = vsel %vm811_vm1, %v2136_v37, %v6019_v27 }
 0x209   : > { %v2152_v20 = vrot.slane %v2135_v40, 4  ;;  %v2155_v49 = vsel %vm811_vm1, %v2135_v40, %v2154_v10  ;;  %v2143_v19 = vperm.slane %v2137_v32, %v5298_v4  ;;  %v2160_v45 = vrot.slane %v2147_v59, 4  ;;  %v6125_v32 = vpop.permute.xlu2 %1774 }
 0x20a   : > { %v2163_v2 = vsel %vm811_vm1, %v2147_v59, %v2162_v3  ;;  %v2512_v34 = vrot.slane %v2155_v49, 4  ;;  %v2148_v24 = vrot.slane %v2131_v61, 4  ;;  %v2151_v27 = vsel %vm811_vm1, %v2131_v61, %v2150_v46 }
 0x20b   : > { %v2153_v51 = vsel %vm811_vm1, %v2152_v20, %v5954_v1  ;;  %v2536_v6 = vrot.slane %v2163_v2, 4  ;;  %v2156_v10 = vrot.slane %v2143_v19, 4  ;;  %v2159_v22 = vsel %vm811_vm1, %v2143_v19, %v2158_v52  ;;  %v6127_v20 = vpop.permute.xlu0 %1810 }
 0x20c   : > { %v2161_v26 = vsel %vm811_vm1, %v2160_v45, %v5957_v43  ;;  %v2500_v48 = vrot.slane %v2153_v51, 4  ;;  %v2149_v3 = vsel %vm811_vm1, %v2148_v24, %v5951_v29  ;;  %v2513_v17 = vsel %vm811_vm1, %v2512_v34, %v2151_v27  ;;  %v1751_v24 = vpop.permute.xlu1 %1750 }
 0x20d   : > { %v2514_v62 = vrot.slane %v2151_v27, 4  ;;  %v2524_v46 = vrot.slane %v2161_v26, 4  ;;  %v2157_v1 = vsel %vm811_vm1, %v2156_v10, %v5997_v58  ;;  %v2502_v28 = vrot.slane %v2149_v3, 4 }
 0x20e   : > { %v2501_v56 = vsel %vm811_vm1, %v2500_v48, %v2149_v3  ;;  %v2519_v30 = vperm.slane %v2513_v17, %v5276_v47  ;;  %v2526_v36 = vrot.slane %v2157_v1, 4  ;;  %v2537_v58 = vsel %vm811_vm1, %v2536_v6, %v2159_v22 }
 0x20f   : > { %v2507_v52 = vperm.slane %v2501_v56, %v5276_v47  ;;  %v2515_v43 = vsel %vm811_vm1, %v2155_v49, %v2514_v62  ;;  %v2525_v16 = vsel %vm811_vm1, %v2524_v46, %v2157_v1  ;;  %v2503_v29 = vsel %vm811_vm1, %v2153_v51, %v2502_v28 }
 0x210   : > { %v2523_v42 = vperm.slane %v2515_v43, %v5276_v47  ;;  %v2531_v12 = vperm.slane %v2525_v16, %v5276_v47  ;;  %v2511_v53 = vperm.slane %v2503_v29, %v5276_v47  ;;  %v2527_v57 = vsel %vm811_vm1, %v2161_v26, %v2526_v36 }
 0x211   : > { %v2538_v50 = vrot.slane %v2159_v22, 4  ;;  %v2543_v18 = vperm.slane %v2537_v58, %v5276_v47  ;;  %v2535_v60 = vperm.slane %v2527_v57, %v5276_v47  ;;  %v2548_v40 = vrot.slane %v2519_v30, 4 }
 0x212   : > { %v2550_v37 = vrot.slane %v2507_v52, 4  ;;  %v2560_v13 = vrot.slane %v2523_v42, 4  ;;  %v2562_v33 = vrot.slane %v2511_v53, 4  ;;  %v2574_v61 = vrot.slane %v2531_v12, 4 }
 0x213   : > { %v2539_v54 = vsel %vm811_vm1, %v2163_v2, %v2538_v50  ;;  %v2572_v59 = vrot.slane %v2543_v18, 4  ;;  %v2549_v19 = vsel %vm811_vm1, %v2548_v40, %v2507_v52  ;;  %v2586_v62 = vrot.slane %v2535_v60, 4 }
 0x214   : > { %v2547_v49 = vperm.slane %v2539_v54, %v5276_v47  ;;  %v2551_v45 = vsel %vm811_vm1, %v2519_v30, %v2550_v37  ;;  %v2561_v34 = vsel %vm811_vm1, %v2560_v13, %v2511_v53  ;;  %v2555_v27 = vperm.slane %v2549_v19, %v5298_v4 }
 0x215   : > { %v2559_v2 = vperm.slane %v2551_v45, %v5298_v4  ;;  %v2563_v51 = vsel %vm811_vm1, %v2523_v42, %v2562_v33  ;;  %v2567_v6 = vperm.slane %v2561_v34, %v5298_v4  ;;  %v2573_v22 = vsel %vm811_vm1, %v2572_v59, %v2531_v12  ;;  %v1787_v59 = vpop.permute.xlu1 %1786 }
 0x216   : > { %v2571_v10 = vperm.slane %v2563_v51, %v5298_v4  ;;  %v2575_v26 = vsel %vm811_vm1, %v2543_v18, %v2574_v61  ;;  %v2584_v48 = vrot.slane %v2547_v49, 4  ;;  %v2579_v3 = vperm.slane %v2573_v22, %v5298_v4 }
 0x217   : > { %v2583_v17 = vperm.slane %v2575_v26, %v5298_v4  ;;  %v2598_v46 = vrot.slane %v2555_v27, 4  ;;  %v2602_v56 = vrot.slane %v2559_v2, 4  ;;  %v2606_v28 = vrot.slane %v2567_v6, 4 }
 0x218   : > { %v2585_v1 = vsel %vm811_vm1, %v2584_v48, %v2535_v60  ;;  %v2610_v30 = vrot.slane %v2571_v10, 4  ;;  %v2587_v52 = vsel %vm811_vm1, %v2547_v49, %v2586_v62  ;;  %v2596_v16 = vrot.slane %v2579_v3, 4 }
 0x219   : > { %v2591_v43 = vperm.slane %v2585_v1, %v5298_v4  ;;  %v2599_v36 = vsel %vm811_vm1, %v2579_v3, %v2598_v46  ;;  %v2595_v29 = vperm.slane %v2587_v52, %v5298_v4  ;;  %v2600_v42 = vrot.slane %v2583_v17, 4 }
 0x21a   : > { %v2603_v12 = vsel %vm811_vm1, %v2583_v17, %v2602_v56  ;;  %2730 = vst.msk [vmem:[#allocation3 + $0x30] sm:$0xff] %vm1707_vm2, %v2599_v36  ;;  %v2167_v58 = vsel %vm811_vm1, %v6055_v5, %v2166_v21  ;;  %v2171_v50 = vperm.slane %v6081_v41, %v5276_v47  ;;  %v6167_v5 = vsel %vm811_vm1, %v5971_v8, %v1966_v23  ;;  %v1823_v21 = vpop.permute.xlu2 %1822  ;;  %v1799_v41 = vpop.permute.xlu0 %1798 }
 0x21b   : > { %v2604_v53 = vrot.slane %v2591_v43, 4  ;;  %v2607_v57 = vsel %vm811_vm1, %v2591_v43, %v2606_v28  ;;  %2738 = vst.msk [vmem:[#allocation3 + $0x70] sm:$0xff] %vm1707_vm2, %v2603_v12  ;;  %v2601_v18 = vsel %vm811_vm1, %v2600_v42, %v2559_v2  ;;  %v2608_v60 = vrot.slane %v2595_v29, 4 }
 0x21c   : > { %2746 = vst.msk [vmem:[#allocation3 + $0xb0] sm:$0xff] %vm1707_vm2, %v2607_v57  ;;  %v2175_v40 = vperm.slane %v2167_v58, %v5276_v47  ;;  %v2611_v37 = vsel %vm811_vm1, %v2595_v29, %v2610_v30  ;;  %v2597_v13 = vsel %vm811_vm1, %v2596_v16, %v2555_v27  ;;  %v3031_v33 = vrot.slane %v6047_v9, 4 }
 0x21d   : > { %v2605_v63 = vsel %vm811_vm1, %v2604_v53, %v2567_v6  ;;  %2734 = vst.msk [vmem:[#allocation3 + $0x50] sm:$0xff] %vm1707_vm2, %v2601_v18  ;;  %v2609_v54 = vsel %vm811_vm1, %v2608_v60, %v2571_v10  ;;  %v2214_v61 = vrot.slane %v2171_v50, 4  ;;  %v2176_v7 = vrot.slane %v6125_v32, 4 }
 0x21e   : > { %2742 = vst.msk [vmem:[#allocation3 + $0x90] sm:$0xff] %vm1707_vm2, %v2605_v63  ;;  %v2188_v49 = vrot.slane %v6127_v20, 4  ;;  %v2178_v8 = vrot.slane %v1751_v24, 4  ;;  %v2226_v23 = vrot.slane %v2175_v40, 4  ;;  %v3032_v19 = vsel %vm811_vm1, %v3031_v33, %v6041_v14 }
 0x21f   : > { %2750 = vst.msk [vmem:[#allocation3 + $0xd0] sm:$0xff] %vm1707_vm2, %v2609_v54  ;;  %v2200_v45 = vrot.slane %v1823_v21, 4  ;;  %v2202_v34 = vrot.slane %v1799_v41, 4  ;;  %4356 = vmatmul.msk.f32.vlgmr.msra.gmra.mxu3 %vm1707_vm2, %v3032_v19  ;;  %v2177_v9 = vsel %vm811_vm1, %v2176_v7, %v1751_v24  ;;  %v2190_v51 = vrot.slane %v1787_v59, 4 }
 0x220   : > { %2754 = vst.msk [vmem:[#allocation3 + $0xf0] sm:$0xff] %vm1707_vm2, %v2611_v37  ;;  %v2179_v27 = vsel %vm811_vm1, %v6125_v32, %v2178_v8  ;;  %v2189_v2 = vsel %vm811_vm1, %v2188_v49, %v1787_v59  ;;  %v2183_v6 = vperm.slane %v2177_v9, %v5276_v47 }
 0x221   : > { %2726 = vst.msk [vmem:[#allocation3 + $0x10] sm:$0xff] %vm1707_vm2, %v2597_v13  ;;  %v2187_v10 = vperm.slane %v2179_v27, %v5276_v47  ;;  %v2201_v14 = vsel %vm811_vm1, %v2200_v45, %v1799_v41  ;;  %v2203_v22 = vsel %vm811_vm1, %v1823_v21, %v2202_v34  ;;  %v2191_v24 = vsel %vm811_vm1, %v6127_v20, %v2190_v51 }
 0x222   : > { %v2207_v26 = vperm.slane %v2201_v14, %v5276_v47  ;;  %v2211_v48 = vperm.slane %v2203_v22, %v5276_v47  ;;  %v2195_v32 = vperm.slane %v2189_v2, %v5276_v47  ;;  %v2212_v3 = vrot.slane %v2183_v6, 4 }
 0x223   : > { %v2215_v17 = vsel %vm811_vm1, %v2183_v6, %v2214_v61  ;;  %v2224_v62 = vrot.slane %v2187_v10, 4  ;;  %v2227_v46 = vsel %vm811_vm1, %v2187_v10, %v2226_v23  ;;  %v2199_v20 = vperm.slane %v2191_v24, %v5276_v47 }
 0x224   : > { %v2223_v1 = vperm.slane %v2215_v17, %v5298_v4  ;;  %v2235_v56 = vperm.slane %v2227_v46, %v5298_v4  ;;  %v2236_v28 = vrot.slane %v2207_v26, 4  ;;  %v2248_v30 = vrot.slane %v2211_v48, 4 }
 0x225   : > { %v2213_v52 = vsel %vm811_vm1, %v2212_v3, %v2171_v50  ;;  %v2225_v43 = vsel %vm811_vm1, %v2224_v62, %v2175_v40  ;;  %v2238_v16 = vrot.slane %v2195_v32, 4  ;;  %v2250_v18 = vrot.slane %v2199_v20, 4 }
 0x226   : > { %v2219_v36 = vperm.slane %v2213_v52, %v5298_v4  ;;  %v2231_v29 = vperm.slane %v2225_v43, %v5298_v4  ;;  %v2266_v42 = vrot.slane %v2223_v1, 4  ;;  %v2274_v12 = vrot.slane %v2235_v56, 4 }
 0x227   : > { %v2237_v58 = vsel %vm811_vm1, %v2236_v28, %v2195_v32  ;;  %v2239_v53 = vsel %vm811_vm1, %v2207_v26, %v2238_v16  ;;  %v2249_v57 = vsel %vm811_vm1, %v2248_v30, %v2199_v20  ;;  %v2251_v37 = vsel %vm811_vm1, %v2211_v48, %v2250_v18 }
 0x228   : > { %v2262_v60 = vrot.slane %v2219_v36, 4  ;;  %v2270_v50 = vrot.slane %v2231_v29, 4  ;;  %v2243_v40 = vperm.slane %v2237_v58, %v5298_v4  ;;  %v2247_v63 = vperm.slane %v2239_v53, %v5298_v4 }
 0x229   : > { %v2255_v21 = vperm.slane %v2249_v57, %v5298_v4  ;;  %v2259_v41 = vperm.slane %v2251_v37, %v5298_v4 }
 0x22a   : > { %v2260_v13 = vrot.slane %v2243_v40, 4  ;;  %v2263_v54 = vsel %vm811_vm1, %v2243_v40, %v2262_v60  ;;  %v2264_v33 = vrot.slane %v2247_v63, 4  ;;  %v2267_v59 = vsel %vm811_vm1, %v2247_v63, %v2266_v42 }
 0x22b   : > { %v2268_v61 = vrot.slane %v2255_v21, 4  ;;  %v2271_v7 = vsel %vm811_vm1, %v2255_v21, %v2270_v50  ;;  %v2626_v49 = vrot.slane %v2263_v54, 4  ;;  %v2272_v19 = vrot.slane %v2259_v41, 4 }
 0x22c   : > { %v2261_v8 = vsel %vm811_vm1, %v2260_v13, %v2219_v36  ;;  %v2265_v23 = vsel %vm811_vm1, %v2264_v33, %v2223_v1  ;;  %v2275_v45 = vsel %vm811_vm1, %v2259_v41, %v2274_v12  ;;  %v2624_v2 = vrot.slane %v2267_v59, 4 }
 0x22d   : > { %v2269_v34 = vsel %vm811_vm1, %v2268_v61, %v2231_v29  ;;  %v2612_v9 = vrot.slane %v2265_v23, 4  ;;  %v2614_v27 = vrot.slane %v2261_v8, 4  ;;  %v2273_v51 = vsel %vm811_vm1, %v2272_v19, %v2235_v56 }
 0x22e   : > { %v2627_v6 = vsel %vm811_vm1, %v2267_v59, %v2626_v49  ;;  %v2638_v10 = vrot.slane %v2269_v34, 4  ;;  %v2648_v14 = vrot.slane %v2275_v45, 4  ;;  %v2625_v48 = vsel %vm811_vm1, %v2624_v2, %v2263_v54 }
 0x22f   : > { %v2613_v22 = vsel %vm811_vm1, %v2612_v9, %v2261_v8  ;;  %v2615_v26 = vsel %vm811_vm1, %v2265_v23, %v2614_v27  ;;  %v2635_v24 = vperm.slane %v2627_v6, %v5276_v47  ;;  %v2631_v17 = vperm.slane %v2625_v48, %v5276_v47 }
 0x230   : > { %v2619_v32 = vperm.slane %v2613_v22, %v5276_v47  ;;  %v2623_v3 = vperm.slane %v2615_v26, %v5276_v47  ;;  %v2636_v62 = vrot.slane %v2273_v51, 4  ;;  %v2639_v46 = vsel %vm811_vm1, %v2273_v51, %v2638_v10 }
 0x231   : > { %v2649_v1 = vsel %vm811_vm1, %v2648_v14, %v2271_v7  ;;  %v2650_v56 = vrot.slane %v2271_v7, 4  ;;  %v2672_v28 = vrot.slane %v2635_v24, 4  ;;  %v2647_v52 = vperm.slane %v2639_v46, %v5276_v47  ;;  %v3073_v46 = vld [vmem:[#allocation3 + $0x30] sm:$0xff] }
 0x232   : > { %v2637_v30 = vsel %vm811_vm1, %v2636_v62, %v2269_v34  ;;  %v2655_v43 = vperm.slane %v2649_v1, %v5276_v47  ;;  %v2660_v20 = vrot.slane %v2631_v17, 4  ;;  %v2662_v29 = vrot.slane %v2619_v32, 4 }
 0x233   : > { %v2643_v16 = vperm.slane %v2637_v30, %v5276_v47  ;;  %v2651_v36 = vsel %vm811_vm1, %v2275_v45, %v2650_v56  ;;  %v2673_v42 = vsel %vm811_vm1, %v2672_v28, %v2623_v3  ;;  %v2674_v53 = vrot.slane %v2623_v3, 4  ;;  %v3069_v56 = vld [vmem:[#allocation3 + $0x10] sm:$0xff] }
 0x234   : > { %v2659_v12 = vperm.slane %v2651_v36, %v5276_v47  ;;  %v2661_v58 = vsel %vm811_vm1, %v2660_v20, %v2619_v32  ;;  %v2679_v57 = vperm.slane %v2673_v42, %v5298_v4  ;;  %v2663_v18 = vsel %vm811_vm1, %v2631_v17, %v2662_v29  ;;  %v3085_v30 = vld [vmem:[#allocation3 + $0x90] sm:$0xff] }
 0x235   : > { %v2667_v60 = vperm.slane %v2661_v58, %v5298_v4  ;;  %v2684_v50 = vrot.slane %v2655_v43, 4  ;;  %v2686_v40 = vrot.slane %v2643_v16, 4  ;;  %v2671_v63 = vperm.slane %v2663_v18, %v5298_v4 }
 0x236   : > { %v2675_v37 = vsel %vm811_vm1, %v2635_v24, %v2674_v53  ;;  %v2696_v21 = vrot.slane %v2659_v12, 4  ;;  %v2698_v41 = vrot.slane %v2647_v52, 4  ;;  %v2718_v34 = vrot.slane %v2679_v57, 4 }
 0x237   : > { %v2683_v13 = vperm.slane %v2675_v37, %v5298_v4  ;;  %v2685_v54 = vsel %vm811_vm1, %v2684_v50, %v2643_v16  ;;  %v2687_v33 = vsel %vm811_vm1, %v2655_v43, %v2686_v40  ;;  %v2710_v59 = vrot.slane %v2667_v60, 4 }
 0x238   : > { %v2691_v61 = vperm.slane %v2685_v54, %v5298_v4  ;;  %v2695_v7 = vperm.slane %v2687_v33, %v5298_v4  ;;  %v2697_v49 = vsel %vm811_vm1, %v2696_v21, %v2647_v52  ;;  %v2699_v8 = vsel %vm811_vm1, %v2659_v12, %v2698_v41  ;;  %v3089_v52 = vld [vmem:[#allocation3 + $0xb0] sm:$0xff] }
 0x239   : > { %v2703_v23 = vperm.slane %v2697_v49, %v5298_v4  ;;  %v2707_v19 = vperm.slane %v2699_v8, %v5298_v4  ;;  %v2714_v45 = vrot.slane %v2671_v63, 4  ;;  %v2722_v14 = vrot.slane %v2683_v13, 4 }
 0x23a   : > { %v2708_v9 = vrot.slane %v2691_v61, 4  ;;  %v2711_v27 = vsel %vm811_vm1, %v2691_v61, %v2710_v59  ;;  %v2712_v2 = vrot.slane %v2695_v7, 4  ;;  %v3099_v43 = vlaneseq }
 0x23b   : > { %v2715_v51 = vsel %vm811_vm1, %v2695_v7, %v2714_v45  ;;  %v2716_v6 = vrot.slane %v2703_v23, 4  ;;  %v2720_v10 = vrot.slane %v2707_v19, 4  ;;  %2731 = vst.msk [vmem:[#allocation3 + $0x38] sm:$0xff] %vm1707_vm2, %v2711_v27  ;;  %v2719_v24 = vsel %vm811_vm1, %v2703_v23, %v2718_v34  ;;  %v6287_v45 = vpop.permute.xlu1 %1818  ;;  %v1745_v34 = vpop.permute.xlu0 %1744 }
 0x23c   : > { %v2709_v22 = vsel %vm811_vm1, %v2708_v9, %v2667_v60  ;;  %v2713_v26 = vsel %vm811_vm1, %v2712_v2, %v2671_v63  ;;  %2739 = vst.msk [vmem:[#allocation3 + $0x78] sm:$0xff] %vm1707_vm2, %v2715_v51  ;;  %v2723_v3 = vsel %vm811_vm1, %v2707_v19, %v2722_v14  ;;  %v3100_v20 = vand.u32 127, %v3099_v43  ;;  %v6289_v51 = vpop.permute.xlu2 %1780 }
 0x23d   : > { %v2717_v48 = vsel %vm811_vm1, %v2716_v6, %v2679_v57  ;;  %2727 = vst.msk [vmem:[#allocation3 + $0x18] sm:$0xff] %vm1707_vm2, %v2709_v22  ;;  %v2721_v32 = vsel %vm811_vm1, %v2720_v10, %v2683_v13  ;;  %v4883_v16 = vmov -1e+30  }
 0x23e   : > { %2735 = vst.msk [vmem:[#allocation3 + $0x58] sm:$0xff] %vm1707_vm2, %v2713_v26  ;;  %vm3101_vm3 = vcmp.lt.s32.totalorder %v3100_v20, 21 }
 0x23f   : > { %2743 = vst.msk [vmem:[#allocation3 + $0x98] sm:$0xff] %vm1707_vm2, %v2717_v48  ;;  %v3102_v36 = vsel %vm3101_vm3, 0.0, %v4883_v16  ;;  %v1828_v16 = vrot.slane %v5897_v55, 4 }
 0x240   : > { %2747 = vst.msk [vmem:[#allocation3 + $0xb8] sm:$0xff] %vm1707_vm2, %v2719_v24 }
 0x241   : > { %2751 = vst.msk [vmem:[#allocation3 + $0xd8] sm:$0xff] %vm1707_vm2, %v2721_v32 }
 0x242   : > { %2755 = vst.msk [vmem:[#allocation3 + $0xf8] sm:$0xff] %vm1707_vm2, %v2723_v3  ;;  %v3074_v17 = vld [vmem:[#allocation3 + $0x38] sm:$0xff] }
 0x243   : > { %3614 = vmatpush.msrb.mxu2 %v3074_v17 }
 0x244   : > { %v3070_v62 = vld [vmem:[#allocation3 + $0x18] sm:$0xff] }
 0x245   : > { %3591 = vmatpush.msra.mxu1 %v3070_v62  ;;  %3615 = vmatpush.msrb.mxu2 %v3073_v46 }
 0x246   : > { %v3086_v1 = vld [vmem:[#allocation3 + $0x98] sm:$0xff] }
 0x247   : > { %v3090_v28 = vld [vmem:[#allocation3 + $0xb8] sm:$0xff]  ;;  %3683 = vmatpush.msrb.mxu3 %v3086_v1  ;;  %3592 = vmatpush.msra.mxu1 %v3069_v56 }
 0x248   : > { %3706 = vmatpush.msrb.mxu0 %v3090_v28 }
 0x249   : > { %3684 = vmatpush.msrb.mxu3 %v3085_v30 }
 0x24a   : > { %3707 = vmatpush.msrb.mxu0 %v3089_v52 }
 0x277   : > { %v3241_v29 = vpop.f32.mrf.mxu0 }
 0x278   : > { %v3242_v42 = vadd.f32 %v3241_v29, %v3102_v36  ;;  %v1842_v29 = vrot.slane %v1745_v34, 4 }
 0x27a   : > { %v3393_v12 = vsel %vm643_vm0, %v3242_v42, -inf }
 0x27b   : > { %3394 = vmax.xlane.f32.xlu1 %v3393_v12  ;;  %v1830_v12 = vrot.slane %v5260_v38, 4 }
 0x27c   : > { %v3171_v37 = vpop.f32.mrf.mxu2 }
 0x27d   : > { %v3172_v41 = vadd.f32 %v3171_v37, %v3102_v36 }
 0x27e   : > { %v3136_v58 = vpop.f32.mrf.mxu3 }
 0x27f   : > { %v3137_v53 = vadd.f32 %v3136_v58, %v3102_v36  ;;  %v3387_v13 = vsel %vm643_vm0, %v3172_v41, -inf }
 0x281   : > { %v3384_v57 = vsel %vm643_vm0, %v3137_v53, -inf }
 0x282   : > { %3385 = vmax.xlane.f32.xlu0 %v3384_v57  ;;  %v1829_v57 = vsel %vm811_vm1, %v1828_v16, %v5260_v38 }
 0x283   : > { %v3381_v18 = vpop.f32.mrf.mxu0  ;;  %v1835_v37 = vperm.slane %v1829_v57, %v5276_v47 }
 0x284   : > { %v3382_v50 = vadd.f32 %v3381_v18, %v3102_v36 }
 0x285   : > { %v3276_v60 = vpop.f32.mrf.mxu1 }
 0x286   : > { %v3277_v40 = vadd.f32 %v3276_v60, %v3102_v36  ;;  %v3405_v21 = vsel %vm643_vm0, %v3382_v50, -inf  ;;  %v3206_v54 = vpop.f32.mrf.mxu3 }
 0x287   : > { %v3207_v33 = vadd.f32 %v3206_v54, %v3102_v36 }
 0x288   : > { %v3396_v63 = vsel %vm643_vm0, %v3277_v40, -inf }
 0x289   : > { %3397 = vmax.xlane.f32.xlu2 %v3396_v63  ;;  %v3390_v59 = vsel %vm643_vm0, %v3207_v33, -inf  ;;  %v3311_v61 = vpop.f32.mrf.mxu2  ;;  %v1831_v63 = vsel %vm811_vm1, %v5897_v55, %v1830_v12 }
 0x28a   : > { %3406 = vmax.xlane.f32.xlu0 %v3405_v21  ;;  %v6273_v7 = vadd.f32 %v3311_v61, %v3102_v36 }
 0x28c   : > { %v3399_v49 = vsel %vm643_vm0, %v6273_v7, -inf }
 0x291   : > { %3388 = vmax.xlane.f32.xlu2 %v3387_v13  ;;  %v1839_v13 = vperm.slane %v1831_v63, %v5276_v47 }
 0x299   : > { %3391 = vmax.xlane.f32.xlu2 %v3390_v59  ;;  %v1878_v59 = vrot.slane %v1835_v37, 4 }
 0x29e   : > { %1816 = vrot.lane.b32.xlu0 %v5260_v38, %s4880_s2 }
 0x2a1   : > { %3400 = vmax.xlane.f32.xlu2 %v3399_v49 }
 0x2a2   : > { %v3346_v8 = vpop.f32.mrf.mxu3 }
 0x2a3   : > { %v6279_v23 = vadd.f32 %v3346_v8, %v3102_v36  ;;  %v1840_v36 = vrot.slane %v6031_v15, 4 }
 0x2a5   : > { %v3402_v19 = vsel %vm643_vm0, %v6279_v23, -inf  ;;  %v1841_v18 = vsel %vm811_vm1, %v1840_v36, %v1745_v34 }
 0x2a6   : > { %3403 = vmax.xlane.f32.xlu1 %v3402_v19  ;;  %v1847_v21 = vperm.slane %v1841_v18, %v5276_v47 }
 0x2a8   : > { %v1876_v61 = vrot.slane %v1847_v21, 4 }
 0x2b9   : > { %1792 = vrot.lane.b32.xlu2 %v5260_v38, %s4879_s25  ;;  %v1852_v38 = vrot.slane %v6090_v0, 4 }
 0x2bb   : > { %v1853_v19 = vsel %vm811_vm1, %v1852_v38, %v6289_v51 }
 0x2bf   : > { %1794 = vrot.lane.b32.xlu1 %v5246_v35, %s4879_s25  ;;  %s6767_s25 = sld [smem:[#allocation34_spill]] }
 0x2ee   : > { %v3395_v9 = vpop.xlane.xlu1 %3394 }
 0x2ef   : > { %v3411_v27 = vsub.f32 %v3242_v42, %v3395_v9  ;;  %v1890_v9 = vrot.slane %v1839_v13, 4 }
 0x2f1   : > { %v3422_v2 = vmul.f32 1.442695, %v3411_v27  ;;  %v1879_v27 = vsel %vm811_vm1, %v1847_v21, %v1878_v59 }
 0x2f3   : > { %4523 = vpow2.f32 %v3422_v2 }
 0x2f5   : > { %v3386_v6 = vpop.xlane.xlu0 %3385 }
 0x2f6   : > { %v3408_v10 = vsub.f32 %v3137_v53, %v3386_v6 }
 0x2f8   : > { %v3416_v14 = vmul.f32 1.442695, %v3408_v10  ;;  %v1877_v10 = vsel %vm811_vm1, %v1876_v61, %v1835_v37 }
 0x2f9   : > { %v6291_v22 = vpop.eup %4523 }
 0x2fa   : > { %4525 = vpow2.f32 %v3416_v14  ;;  %v3441_v26 = vsel %vm643_vm0, %v6291_v22, 0.0 }
 0x2fb   : > { %3442 = vadd.xlane.f32.xlu2 %v3441_v26  ;;  %v1859_v26 = vperm.slane %v1853_v19, %v5276_v47 }
 0x2fc   : > { %v3398_v35 = vpop.xlane.xlu2 %3397 }
 0x2fd   : > { %v3412_v48 = vsub.f32 %v3277_v40, %v3398_v35  ;;  %v3407_v24 = vpop.xlane.xlu0 %3406 }
 0x2fe   : > { %v3415_v32 = vsub.f32 %v3382_v50, %v3407_v24  ;;  %v1843_v50 = vsel %vm811_vm1, %v6031_v15, %v1842_v29  ;;  %v1854_v15 = vrot.slane %v6289_v51, 4  ;;  %v1887_v51 = vperm.slane %v1879_v27, %v5298_v4 }
 0x2ff   : > { %v3424_v3 = vmul.f32 1.442695, %v3412_v48 }
 0x300   : > { %v6295_v17 = vpop.eup %4525  ;;  %v3430_v62 = vmul.f32 1.442695, %v3415_v32  ;;  %v1855_v2 = vsel %vm811_vm1, %v6090_v0, %v1854_v15  ;;  %v6345_v0 = vperm.slane %v5984_v25, %v5298_v4  ;;  %v1930_v36 = vrot.slane %v1887_v51, 4 }
 0x301   : > { %4527 = vpow2.f32 %v3424_v3  ;;  %v3432_v46 = vsel %vm643_vm0, %v6295_v17, 0.0  ;;  %v1863_v48 = vperm.slane %v1855_v2, %v5276_v47 }
 0x302   : > { %4529 = vpow2.f32 %v3430_v62  ;;  %3433 = vadd.xlane.f32.xlu0 %v3432_v46  ;;  %v1883_v62 = vperm.slane %v1877_v10, %v5298_v4 }
 0x303   : > { %v1914_v29 = vrot.slane %v1863_v48, 4 }
 0x304   : > { %v3389_v1 = vpop.xlane.xlu2 %3388  ;;  %v1926_v18 = vrot.slane %v1883_v62, 4 }
 0x305   : > { %v3409_v56 = vsub.f32 %v3172_v41, %v3389_v1  ;;  %v1851_v41 = vperm.slane %v1843_v50, %v5276_v47 }
 0x307   : > { %v6299_v28 = vpop.eup %4527  ;;  %v3418_v30 = vmul.f32 1.442695, %v3409_v56  ;;  %v1888_v8 = vrot.slane %v1851_v41, 4  ;;  %v1891_v14 = vsel %vm811_vm1, %v1851_v41, %v1890_v9 }
 0x308   : > { %v6301_v52 = vpop.eup %4529  ;;  %v3444_v43 = vsel %vm643_vm0, %v6299_v28, 0.0  ;;  %v1899_v46 = vperm.slane %v1891_v14, %v5298_v4 }
 0x309   : > { %4531 = vpow2.f32 %v3418_v30  ;;  %v3453_v20 = vsel %vm643_vm0, %v6301_v52, 0.0  ;;  %v1889_v35 = vsel %vm811_vm1, %v1888_v8, %v1839_v13  ;;  %v6353_v30 = vperm.slane %v6063_v44, %v5276_v47 }
 0x30a   : > { %3445 = vadd.xlane.f32.xlu0 %v3444_v43  ;;  %3454 = vadd.xlane.f32.xlu2 %v3453_v20  ;;  %v1895_v43 = vperm.slane %v1889_v35, %v5298_v4  ;;  %v1902_v20 = vrot.slane %v1859_v26, 4 }
 0x30c   : > { %v3392_v42 = vpop.xlane.xlu2 %3391  ;;  %v1934_v63 = vrot.slane %v1895_v43, 4 }
 0x30d   : > { %v3410_v58 = vsub.f32 %v3207_v33, %v3392_v42 }
 0x30f   : > { %v6310_v53 = vpop.eup %4531  ;;  %v3420_v60 = vmul.f32 1.442695, %v3410_v58 }
 0x310   : > { %v3435_v40 = vsel %vm643_vm0, %v6310_v53, 0.0  ;;  %v1817_v55 = vpop.permute.xlu0 %1816 }
 0x311   : > { %4533 = vpow2.f32 %v3420_v60  ;;  %3436 = vadd.xlane.f32.xlu1 %v3435_v40  ;;  %v1938_v60 = vrot.slane %v1899_v46, 4 }
 0x314   : > { %v3401_v54 = vpop.xlane.xlu2 %3400 }
 0x315   : > { %v3413_v33 = vsub.f32 %v6273_v7, %v3401_v54  ;;  %v1864_v7 = vrot.slane %v1817_v55, 4  ;;  %v1976_v54 = vrot.slane %v6287_v45, 4 }
 0x317   : > { %v6328_v49 = vpop.eup %4533  ;;  %v3426_v34 = vmul.f32 1.442695, %v3413_v33 }
 0x318   : > { %v3438_v6 = vsel %vm643_vm0, %v6328_v49, 0.0 }
 0x319   : > { %4535 = vpow2.f32 %v3426_v34  ;;  %3439 = vadd.xlane.f32.xlu1 %v3438_v6  ;;  %v3404_v24 = vpop.xlane.xlu1 %3403 }
 0x31a   : > { %v3414_v32 = vsub.f32 %v6279_v23, %v3404_v24  ;;  %v6361_v23 = vperm.slane %v6167_v5, %v5276_v47 }
 0x31c   : > { %v1793_v3 = vpop.permute.xlu2 %1792  ;;  %v3428_v12 = vmul.f32 1.442695, %v3414_v32 }
 0x31d   : > { %v1865_v1 = vsel %vm811_vm1, %v1864_v7, %v1793_v3  ;;  %v1866_v56 = vrot.slane %v1793_v3, 4 }
 0x31e   : > { %v1871_v25 = vperm.slane %v1865_v1, %v5276_v47  ;;  %4537 = vpow2.f32 %v3428_v12 }
 0x31f   : > { %v6357_v16 = vpop.eup %4535  ;;  %v1867_v42 = vsel %vm811_vm1, %v1817_v55, %v1866_v56 }
 0x320   : > { %v1875_v58 = vperm.slane %v1867_v42, %v5276_v47  ;;  %v1900_v44 = vrot.slane %v1871_v25, 4  ;;  %v1903_v57 = vsel %vm811_vm1, %v1871_v25, %v1902_v20  ;;  %v3447_v40 = vsel %vm643_vm0, %v6357_v16, 0.0 }
 0x321   : > { %v1911_v50 = vperm.slane %v1903_v57, %v5298_v4  ;;  %3448 = vadd.xlane.f32.xlu0 %v3447_v40 }
 0x322   : > { %v1901_v5 = vsel %vm811_vm1, %v1900_v44, %v1859_v26  ;;  %v1912_v37 = vrot.slane %v1875_v58, 4  ;;  %v1915_v21 = vsel %vm811_vm1, %v1875_v58, %v1914_v29 }
 0x323   : > { %v1907_v38 = vperm.slane %v1901_v5, %v5298_v4  ;;  %v1923_v41 = vperm.slane %v1915_v21, %v5298_v4  ;;  %v1928_v13 = vrot.slane %v1911_v50, 4  ;;  %v1931_v15 = vsel %vm811_vm1, %v1911_v50, %v1930_v36 }
 0x324   : > { %v1913_v33 = vsel %vm811_vm1, %v1912_v37, %v1863_v48  ;;  %v2288_v59 = vrot.slane %v1931_v15, 4  ;;  %v6389_v56 = vpop.eup %4537 }
 0x325   : > { %v1919_v61 = vperm.slane %v1913_v33, %v5298_v4  ;;  %v1924_v55 = vrot.slane %v1907_v38, 4  ;;  %v1927_v8 = vsel %vm811_vm1, %v1907_v38, %v1926_v18  ;;  %v1929_v19 = vsel %vm811_vm1, %v1928_v13, %v1887_v51 }
 0x326   : > { %v1936_v34 = vrot.slane %v1923_v41, 4  ;;  %v1939_v9 = vsel %vm811_vm1, %v1923_v41, %v1938_v60  ;;  %v2276_v27 = vrot.slane %v1929_v19, 4  ;;  %v2289_v2 = vsel %vm811_vm1, %v2288_v59, %v1927_v8 }
 0x327   : > { %v1925_v6 = vsel %vm811_vm1, %v1924_v55, %v1883_v62  ;;  %v1932_v7 = vrot.slane %v1919_v61, 4  ;;  %v1935_v10 = vsel %vm811_vm1, %v1919_v61, %v1934_v63  ;;  %v2290_v14 = vrot.slane %v1927_v8, 4 }
 0x328   : > { %v1937_v26 = vsel %vm811_vm1, %v1936_v34, %v1899_v46  ;;  %v2277_v35 = vsel %vm811_vm1, %v2276_v27, %v1925_v6  ;;  %v2278_v48 = vrot.slane %v1925_v6, 4  ;;  %v2295_v24 = vperm.slane %v2289_v2, %v5276_v47 }
 0x329   : > { %v1933_v51 = vsel %vm811_vm1, %v1932_v7, %v1895_v43  ;;  %v2283_v32 = vperm.slane %v2277_v35, %v5276_v47  ;;  %v2291_v3 = vsel %vm811_vm1, %v1931_v15, %v2290_v14  ;;  %v2300_v1 = vrot.slane %v1937_v26, 4 }
 0x32a   : > { %v2279_v62 = vsel %vm811_vm1, %v1929_v19, %v2278_v48  ;;  %v2299_v20 = vperm.slane %v2291_v3, %v5276_v47  ;;  %v2302_v25 = vrot.slane %v1933_v51, 4  ;;  %v2312_v46 = vrot.slane %v1939_v9, 4 }
 0x32b   : > { %v2287_v36 = vperm.slane %v2279_v62, %v5276_v47  ;;  %v2301_v29 = vsel %vm811_vm1, %v2300_v1, %v1933_v51  ;;  %v2314_v42 = vrot.slane %v1935_v10, 4  ;;  %v2324_v12 = vrot.slane %v2295_v24, 4 }
 0x32c   : > { %v2303_v43 = vsel %vm811_vm1, %v1937_v26, %v2302_v25  ;;  %v2307_v58 = vperm.slane %v2301_v29, %v5276_v47  ;;  %v2313_v44 = vsel %vm811_vm1, %v2312_v46, %v1935_v10  ;;  %v2326_v57 = vrot.slane %v2283_v32, 4 }
 0x32d   : > { %v2311_v18 = vperm.slane %v2303_v43, %v5276_v47  ;;  %v2315_v60 = vsel %vm811_vm1, %v1939_v9, %v2314_v42  ;;  %v2319_v50 = vperm.slane %v2313_v44, %v5276_v47  ;;  %v2325_v40 = vsel %vm811_vm1, %v2324_v12, %v2283_v32 }
 0x32e   : > { %v2323_v63 = vperm.slane %v2315_v60, %v5276_v47  ;;  %v2327_v5 = vsel %vm811_vm1, %v2295_v24, %v2326_v57  ;;  %v2331_v37 = vperm.slane %v2325_v40, %v5298_v4  ;;  %v2336_v21 = vrot.slane %v2299_v20, 4 }
 0x32f   : > { %v2335_v38 = vperm.slane %v2327_v5, %v5298_v4  ;;  %v2338_v41 = vrot.slane %v2287_v36, 4  ;;  %v2348_v13 = vrot.slane %v2319_v50, 4  ;;  %v2350_v15 = vrot.slane %v2307_v58, 4 }
 0x330   : > { %v2337_v33 = vsel %vm811_vm1, %v2336_v21, %v2287_v36  ;;  %v2360_v59 = vrot.slane %v2323_v63, 4  ;;  %v2362_v61 = vrot.slane %v2311_v18, 4  ;;  %v2374_v55 = vrot.slane %v2331_v37, 4 }
 0x331   : > { %v2339_v8 = vsel %vm811_vm1, %v2299_v20, %v2338_v41  ;;  %v2343_v19 = vperm.slane %v2337_v33, %v5298_v4  ;;  %v2349_v34 = vsel %vm811_vm1, %v2348_v13, %v2307_v58  ;;  %v2351_v9 = vsel %vm811_vm1, %v2319_v50, %v2350_v15  ;;  %v1795_v3 = vpop.permute.xlu1 %1794 }
 0x332   : > { %v2347_v27 = vperm.slane %v2339_v8, %v5298_v4  ;;  %v2355_v2 = vperm.slane %v2349_v34, %v5298_v4  ;;  %v2359_v6 = vperm.slane %v2351_v9, %v5298_v4  ;;  %v2361_v7 = vsel %vm811_vm1, %v2360_v59, %v2311_v18 }
 0x333   : > { %v2363_v10 = vsel %vm811_vm1, %v2323_v63, %v2362_v61  ;;  %v2367_v14 = vperm.slane %v2361_v7, %v5298_v4  ;;  %v2378_v26 = vrot.slane %v2335_v38, 4  ;;  %v2382_v35 = vrot.slane %v2343_v19, 4 }
 0x334   : > { %v2371_v48 = vperm.slane %v2363_v10, %v5298_v4  ;;  %v2372_v24 = vrot.slane %v2355_v2, 4  ;;  %v2375_v51 = vsel %vm811_vm1, %v2355_v2, %v2374_v55  ;;  %v2376_v32 = vrot.slane %v2359_v6, 4 }
 0x335   : > { %v2379_v1 = vsel %vm811_vm1, %v2359_v6, %v2378_v26  ;;  %v2380_v62 = vrot.slane %v2367_v14, 4  ;;  %v2383_v20 = vsel %vm811_vm1, %v2367_v14, %v2382_v35  ;;  %v2386_v25 = vrot.slane %v2347_v27, 4  ;;  %2728 = vst.msk [vmem:[#allocation3 + $0x20] sm:$0xff] %vm1707_vm2, %v2375_v51 }
 0x336   : > { %v2373_v46 = vsel %vm811_vm1, %v2372_v24, %v2331_v37  ;;  %v2377_v36 = vsel %vm811_vm1, %v2376_v32, %v2335_v38  ;;  %v2384_v29 = vrot.slane %v2371_v48, 4  ;;  %2736 = vst.msk [vmem:[#allocation3 + $0x60] sm:$0xff] %vm1707_vm2, %v2379_v1  ;;  %v3450_v42 = vsel %vm643_vm0, %v6389_v56, 0.0 }
 0x337   : > { %v2381_v12 = vsel %vm811_vm1, %v2380_v62, %v2343_v19  ;;  %v2387_v43 = vsel %vm811_vm1, %v2371_v48, %v2386_v25  ;;  %2724 = vst.msk [vmem:[#allocation3] sm:$0xff] %vm1707_vm2, %v2373_v46  ;;  %3451 = vadd.xlane.f32.xlu1 %v3450_v42  ;;  %v1977_v58 = vsel %vm811_vm1, %v1976_v54, %v1795_v3  ;;  %v1978_v44 = vrot.slane %v1795_v3, 4 }
 0x338   : > { %v1995_v57 = vperm.slane %v5981_v11, %v5298_v4  ;;  %v2014_v18 = vrot.slane %v6353_v30, 4  ;;  %v2385_v60 = vsel %vm811_vm1, %v2384_v29, %v2347_v27  ;;  %2732 = vst.msk [vmem:[#allocation3 + $0x40] sm:$0xff] %vm1707_vm2, %v2377_v36  ;;  %v1983_v50 = vperm.slane %v1977_v58, %v5276_v47 }
 0x339   : > { %v2007_v40 = vperm.slane %v6004_v31, %v5298_v4  ;;  %v2011_v63 = vperm.slane %v5992_v39, %v5298_v4  ;;  %2740 = vst.msk [vmem:[#allocation3 + $0x80] sm:$0xff] %vm1707_vm2, %v2381_v12  ;;  %v1979_v54 = vsel %vm811_vm1, %v6287_v45, %v1978_v44  ;;  %v2026_v11 = vrot.slane %v6361_v23, 4 }
 0x33a   : > { %2744 = vst.msk [vmem:[#allocation3 + $0xa0] sm:$0xff] %vm1707_vm2, %v2383_v20  ;;  %v1987_v5 = vperm.slane %v1979_v54, %v5276_v47  ;;  %v2012_v37 = vrot.slane %v1983_v50, 4  ;;  %v2015_v21 = vsel %vm811_vm1, %v1983_v50, %v2014_v18  ;;  %v2042_v38 = vrot.slane %v6345_v0, 4 }
 0x33b   : > { %2748 = vst.msk [vmem:[#allocation3 + $0xc0] sm:$0xff] %vm1707_vm2, %v2385_v60  ;;  %v2023_v39 = vperm.slane %v2015_v21, %v5298_v4  ;;  %v2038_v31 = vrot.slane %v1995_v57, 4  ;;  %v2046_v55 = vrot.slane %v2007_v40, 4  ;;  %v2050_v8 = vrot.slane %v2011_v63, 4 }
 0x33c   : > { %2752 = vst.msk [vmem:[#allocation3 + $0xe0] sm:$0xff] %vm1707_vm2, %v2387_v43  ;;  %v2013_v45 = vsel %vm811_vm1, %v2012_v37, %v6353_v30  ;;  %v2024_v41 = vrot.slane %v1987_v5, 4  ;;  %v2027_v13 = vsel %vm811_vm1, %v1987_v5, %v2026_v11 }
 0x33d   : > { %v2019_v15 = vperm.slane %v2013_v45, %v5298_v4  ;;  %v2035_v33 = vperm.slane %v2027_v13, %v5298_v4  ;;  %v2040_v59 = vrot.slane %v2023_v39, 4  ;;  %v2043_v61 = vsel %vm811_vm1, %v2023_v39, %v2042_v38 }
 0x33e   : > { %v2025_v19 = vsel %vm811_vm1, %v2024_v41, %v6361_v23  ;;  %v2400_v34 = vrot.slane %v2043_v61, 4 }
 0x33f   : > { %v2031_v9 = vperm.slane %v2025_v19, %v5298_v4  ;;  %v2036_v27 = vrot.slane %v2019_v15, 4  ;;  %v2039_v30 = vsel %vm811_vm1, %v2019_v15, %v2038_v31  ;;  %v2041_v2 = vsel %vm811_vm1, %v2040_v59, %v6345_v0 }
 0x340   : > { %v2048_v6 = vrot.slane %v2035_v33, 4  ;;  %v2051_v7 = vsel %vm811_vm1, %v2035_v33, %v2050_v8  ;;  %v2388_v10 = vrot.slane %v2041_v2, 4  ;;  %v2401_v14 = vsel %vm811_vm1, %v2400_v34, %v2039_v30 }
 0x341   : > { %v2037_v26 = vsel %vm811_vm1, %v2036_v27, %v1995_v57  ;;  %v2044_v35 = vrot.slane %v2031_v9, 4  ;;  %v2047_v23 = vsel %vm811_vm1, %v2031_v9, %v2046_v55  ;;  %v2402_v48 = vrot.slane %v2039_v30, 4 }
 0x342   : > { %v2049_v24 = vsel %vm811_vm1, %v2048_v6, %v2011_v63  ;;  %v2389_v51 = vsel %vm811_vm1, %v2388_v10, %v2037_v26  ;;  %v2390_v32 = vrot.slane %v2037_v26, 4  ;;  %v2407_v3 = vperm.slane %v2401_v14, %v5276_v47 }
 0x343   : > { %v2045_v0 = vsel %vm811_vm1, %v2044_v35, %v2007_v40  ;;  %v2395_v1 = vperm.slane %v2389_v51, %v5276_v47  ;;  %v2403_v62 = vsel %vm811_vm1, %v2043_v61, %v2402_v48  ;;  %v2412_v20 = vrot.slane %v2049_v24, 4 }
 0x344   : > { %v2391_v25 = vsel %vm811_vm1, %v2041_v2, %v2390_v32  ;;  %v2411_v46 = vperm.slane %v2403_v62, %v5276_v47  ;;  %v2414_v36 = vrot.slane %v2045_v0, 4  ;;  %v2424_v29 = vrot.slane %v2051_v7, 4 }
 0x345   : > { %v2399_v42 = vperm.slane %v2391_v25, %v5276_v47  ;;  %v2413_v12 = vsel %vm811_vm1, %v2412_v20, %v2045_v0  ;;  %v2426_v43 = vrot.slane %v2047_v23, 4  ;;  %v2436_v58 = vrot.slane %v2407_v3, 4 }
 0x346   : > { %v2415_v44 = vsel %vm811_vm1, %v2049_v24, %v2414_v36  ;;  %v2419_v57 = vperm.slane %v2413_v12, %v5276_v47  ;;  %v2425_v18 = vsel %vm811_vm1, %v2424_v29, %v2047_v23  ;;  %v2438_v60 = vrot.slane %v2395_v1, 4  ;;  %v3071_v36 = vld [vmem:[#allocation3 + $0x20] sm:$0xff]  ;;  %v3082_v29 = vld [vmem:[#allocation3 + $0x78] sm:$0xff] }
 0x347   : > { %v2423_v50 = vperm.slane %v2415_v44, %v5276_v47  ;;  %v2427_v40 = vsel %vm811_vm1, %v2051_v7, %v2426_v43  ;;  %v2431_v63 = vperm.slane %v2425_v18, %v5276_v47  ;;  %v2437_v54 = vsel %vm811_vm1, %v2436_v58, %v2395_v1  ;;  %v3078_v58 = vld [vmem:[#allocation3 + $0x58] sm:$0xff]  ;;  %v3081_v44 = vld [vmem:[#allocation3 + $0x70] sm:$0xff]  ;;  %v3087_v18 = vld [vmem:[#allocation3 + $0xa0] sm:$0xff] }
 0x348   : > { %v2435_v11 = vperm.slane %v2427_v40, %v5276_v47  ;;  %v2439_v5 = vsel %vm811_vm1, %v2407_v3, %v2438_v60  ;;  %v2443_v37 = vperm.slane %v2437_v54, %v5298_v4  ;;  %v2448_v21 = vrot.slane %v2411_v46, 4  ;;  %v3077_v60 = vld [vmem:[#allocation3 + $0x50] sm:$0xff]  ;;  %v3075_v54 = vld [vmem:[#allocation3 + $0x40] sm:$0xff] }
 0x349   : > { %v2447_v38 = vperm.slane %v2439_v5, %v5298_v4  ;;  %v2450_v39 = vrot.slane %v2399_v42, 4  ;;  %v2460_v31 = vrot.slane %v2431_v63, 4  ;;  %v2462_v45 = vrot.slane %v2419_v57, 4 }
 0x34a   : > { %v2449_v41 = vsel %vm811_vm1, %v2448_v21, %v2399_v42  ;;  %v2472_v13 = vrot.slane %v2435_v11, 4  ;;  %v2474_v15 = vrot.slane %v2423_v50, 4  ;;  %v2486_v33 = vrot.slane %v2443_v37, 4  ;;  %v3067_v42 = vld [vmem:[#allocation3] sm:$0xff] }
 0x34b   : > { %v2451_v59 = vsel %vm811_vm1, %v2411_v46, %v2450_v39  ;;  %v2455_v61 = vperm.slane %v2449_v41, %v5298_v4  ;;  %v2461_v55 = vsel %vm811_vm1, %v2460_v31, %v2419_v57  ;;  %v2463_v8 = vsel %vm811_vm1, %v2431_v63, %v2462_v45  ;;  %v3083_v57 = vld [vmem:[#allocation3 + $0x80] sm:$0xff] }
 0x34c   : > { %v2459_v19 = vperm.slane %v2451_v59, %v5298_v4  ;;  %v2467_v34 = vperm.slane %v2461_v55, %v5298_v4  ;;  %v2471_v9 = vperm.slane %v2463_v8, %v5298_v4  ;;  %v2473_v27 = vsel %vm811_vm1, %v2472_v13, %v2423_v50  ;;  %v3079_v63 = vld [vmem:[#allocation3 + $0x60] sm:$0xff] }
 0x34d   : > { %v2475_v30 = vsel %vm811_vm1, %v2435_v11, %v2474_v15  ;;  %v2479_v2 = vperm.slane %v2473_v27, %v5298_v4  ;;  %v2490_v6 = vrot.slane %v2447_v38, 4  ;;  %v2494_v7 = vrot.slane %v2455_v61, 4 }
 0x34e   : > { %v2483_v10 = vperm.slane %v2475_v30, %v5298_v4  ;;  %v2484_v14 = vrot.slane %v2467_v34, 4  ;;  %v2487_v26 = vsel %vm811_vm1, %v2467_v34, %v2486_v33  ;;  %v2488_v35 = vrot.slane %v2471_v9, 4 }
 0x34f   : > { %v2491_v23 = vsel %vm811_vm1, %v2471_v9, %v2490_v6  ;;  %v2492_v48 = vrot.slane %v2479_v2, 4  ;;  %v2495_v24 = vsel %vm811_vm1, %v2479_v2, %v2494_v7  ;;  %v2498_v51 = vrot.slane %v2459_v19, 4  ;;  %2729 = vst.msk [vmem:[#allocation3 + $0x28] sm:$0xff] %vm1707_vm2, %v2487_v26 }
 0x350   : > { %v2485_v32 = vsel %vm811_vm1, %v2484_v14, %v2443_v37  ;;  %v2489_v3 = vsel %vm811_vm1, %v2488_v35, %v2447_v38  ;;  %v2496_v0 = vrot.slane %v2483_v10, 4  ;;  %2737 = vst.msk [vmem:[#allocation3 + $0x68] sm:$0xff] %vm1707_vm2, %v2491_v23  ;;  %v3094_v14 = vld [vmem:[#allocation3 + $0xd8] sm:$0xff] }
 0x351   : > { %v2493_v1 = vsel %vm811_vm1, %v2492_v48, %v2455_v61  ;;  %v2499_v62 = vsel %vm811_vm1, %v2483_v10, %v2498_v51  ;;  %2725 = vst.msk [vmem:[#allocation3 + $0x8] sm:$0xff] %vm1707_vm2, %v2485_v32 }
 0x352   : > { %v2497_v20 = vsel %vm811_vm1, %v2496_v0, %v2459_v19  ;;  %2733 = vst.msk [vmem:[#allocation3 + $0x48] sm:$0xff] %vm1707_vm2, %v2489_v3 }
 0x353   : > { %2741 = vst.msk [vmem:[#allocation3 + $0x88] sm:$0xff] %vm1707_vm2, %v2493_v1 }
 0x354   : > { %2745 = vst.msk [vmem:[#allocation3 + $0xa8] sm:$0xff] %vm1707_vm2, %v2495_v24  ;;  %v3093_v24 = vld [vmem:[#allocation3 + $0xd0] sm:$0xff] }
 0x355   : > { %2749 = vst.msk [vmem:[#allocation3 + $0xc8] sm:$0xff] %vm1707_vm2, %v2497_v20 }
 0x356   : > { %2753 = vst.msk [vmem:[#allocation3 + $0xe8] sm:$0xff] %vm1707_vm2, %v2499_v62  ;;  %v3072_v25 = vld [vmem:[#allocation3 + $0x28] sm:$0xff] }
 0x357   : > { %3616 = vmatpush.msrb.mxu2 %v3072_v25  ;;  %v3080_v50 = vld [vmem:[#allocation3 + $0x68] sm:$0xff] }
 0x358   : > { %v3068_v46 = vld [vmem:[#allocation3 + $0x8] sm:$0xff] }
 0x359   : > { %3593 = vmatpush.msra.mxu1 %v3068_v46  ;;  %3617 = vmatpush.msrb.mxu2 %v3071_v36  ;;  %v3076_v40 = vld [vmem:[#allocation3 + $0x48] sm:$0xff] }
 0x35a   : > { %v3084_v12 = vld [vmem:[#allocation3 + $0x88] sm:$0xff] }
 0x35b   : > { %3660 = vmatpush.msra.mxu2 %v3082_v29  ;;  %v3088_v43 = vld [vmem:[#allocation3 + $0xa8] sm:$0xff]  ;;  %3594 = vmatpush.msra.mxu1 %v3067_v42  ;;  %v3091_v29 = vld [vmem:[#allocation3 + $0xc0] sm:$0xff] }
 0x35c   : > { %3685 = vmatpush.msrb.mxu3 %v3084_v12  ;;  %3708 = vmatpush.msrb.mxu0 %v3088_v43  ;;  %v3092_v1 = vld [vmem:[#allocation3 + $0xc8] sm:$0xff] }
 0x35d   : > { %3637 = vmatpush.msrb.mxu1 %v3078_v58  ;;  %3661 = vmatpush.msra.mxu2 %v3081_v44 }
 0x35e   : > { %3686 = vmatpush.msrb.mxu3 %v3083_v57  ;;  %3709 = vmatpush.msrb.mxu0 %v3087_v18 }
 0x35f   : > { %3638 = vmatpush.msrb.mxu1 %v3077_v60  ;;  %3662 = vmatpush.msra.mxu2 %v3080_v50 }
 0x361   : > { %3639 = vmatpush.msrb.mxu1 %v3076_v40  ;;  %3663 = vmatpush.msra.mxu2 %v3079_v63 }
 0x363   : > { %3640 = vmatpush.msrb.mxu1 %v3075_v54 }
 0x36e   : > { %v6519_v37 = vpop.xlane.xlu2 %3442 }
 0x36f   : > { %v3510_v54 = vand.u32 2147483647, %v6519_v37 }
 0x375   : > { %v3434_v11 = vpop.xlane.xlu0 %3433 }
 0x376   : > { %4539 = vrcp.f32 %v3434_v11  ;;  %v3467_v31 = vand.u32 2147483648, %v3434_v11  ;;  %v3465_v41 = vand.u32 2147483647, %v3434_v11  ;;  %vm3461_vm5 = vweird.f32 %v3434_v11 }
 0x378   : > { %v3468_v15 = vor.u32 1.1754944e-38, %v3467_v31  ;;  %vm3466_vm7 = vcmp.eq.f32.partialorder %v3465_v41, 8.507059e+37 }
 0x37c   : > { %v4540_v5 = vpop.eup %4539 }
 0x37d   : > { %v3457_v21 = vmul.f32 %v4540_v5, %v3434_v11  ;;  %v3446_v38 = vpop.xlane.xlu0 %3445  ;;  %vm3462_vm4 = vweird.f32 %v4540_v5  ;;  %v6522_v55 = vpop.xlane.xlu2 %3454 }
 0x37e   : > { %4541 = vrcp.f32 %v3446_v38  ;;  %vm3463_vm6 = vmor %vm3461_vm5, %vm3462_vm4  ;;  %v3527_v2 = vand.u32 2147483648, %v3446_v38  ;;  %v3525_v10 = vand.u32 2147483647, %v3446_v38  ;;  %vm3521_vm9 = vweird.f32 %v3446_v38 }
 0x37f   : > { %v3458_v39 = vsub.f32 1.0, %v3457_v21  ;;  %4543 = vrcp.f32 %v6519_v37  ;;  %vm3506_vm4 = vweird.f32 %v6519_v37 }
 0x380   : > { %v3528_v32 = vor.u32 1.1754944e-38, %v3527_v2  ;;  %vm3526_vm11 = vcmp.eq.f32.partialorder %v3525_v10, 8.507059e+37  ;;  %v3570_v2 = vand.u32 2147483647, %v6522_v55 }
 0x381   : > { %v3459_v45 = vmul.f32 %v4540_v5, %v3458_v39 }
 0x383   : > { %v3460_v13 = vadd.f32 %v4540_v5, %v3459_v45 }
 0x384   : > { %v3437_v33 = vpop.xlane.xlu1 %3436  ;;  %v4542_v59 = vpop.eup %4541 }
 0x385   : > { %v3464_v61 = vsel %vm3463_vm6, %v4540_v5, %v3460_v13  ;;  %4545 = vrcp.f32 %v3437_v33  ;;  %v6524_v8 = vpop.eup %4543  ;;  %v3517_v34 = vmul.f32 %v4542_v59, %v3446_v38  ;;  %vm3522_vm8 = vweird.f32 %v4542_v59 }
 0x386   : > { %v3469_v19 = vsel %vm3466_vm7, %v3468_v15, %v3464_v61  ;;  %4547 = vrcp.f32 %v6522_v55  ;;  %v3502_v9 = vmul.f32 %v6524_v8, %v6519_v37  ;;  %vm3523_vm10 = vmor %vm3521_vm9, %vm3522_vm8  ;;  %v3482_v3 = vand.u32 2147483648, %v3437_v33  ;;  %v3097_v15 = vld [vmem:[#allocation3 + $0xf0] sm:$0xff] }
 0x387   : > { %v3518_v27 = vsub.f32 1.0, %v3517_v34  ;;  %v3470_v30 = vmul.f32 %v6295_v17, %v3469_v19  ;;  %v3480_v20 = vand.u32 2147483647, %v3437_v33  ;;  %vm3476_vm13 = vweird.f32 %v3437_v33 }
 0x388   : > { %v3503_v23 = vsub.f32 1.0, %v3502_v9  ;;  %v3483_v58 = vor.u32 1.1754944e-38, %v3482_v3  ;;  %vm3507_vm3 = vweird.f32 %v6524_v8  ;;  %vm3511_vm8 = vcmp.eq.f32.partialorder %v3510_v54, 8.507059e+37  ;;  %v3096_v9 = vld [vmem:[#allocation3 + $0xe8] sm:$0xff] }
 0x389   : > { %v3519_v7 = vmul.f32 %v4542_v59, %v3518_v27  ;;  %4362 = vmatmul.msk.f32.vlgmr.msra.gmra.mxu1 %vm643_vm0, %v3470_v30  ;;  %vm3481_vm15 = vcmp.eq.f32.partialorder %v3480_v20, 8.507059e+37  ;;  %vm6549_vm5 = vmor %vm3506_vm4, %vm3507_vm3  ;;  %v3572_v27 = vand.u32 2147483648, %v6522_v55 }
 0x38a   : > { %3729 = vmatpush.msra.mxu1 %v3094_v14  ;;  %v3504_v46 = vmul.f32 %v6524_v8, %v3503_v23 }
 0x38b   : > { %v4546_v6 = vpop.eup %4545  ;;  %v3520_v48 = vadd.f32 %v4542_v59, %v3519_v7  ;;  %v3095_v7 = vld [vmem:[#allocation3 + $0xe0] sm:$0xff] }
 0x38c   : > { %v3472_v26 = vmul.f32 %v4546_v6, %v3437_v33  ;;  %v6531_v35 = vpop.xlane.xlu1 %3439  ;;  %v6534_v51 = vpop.eup %4547  ;;  %3730 = vmatpush.msra.mxu1 %v3093_v24  ;;  %vm3477_vm12 = vweird.f32 %v4546_v6  ;;  %v3505_v18 = vadd.f32 %v6524_v8, %v3504_v46 }
 0x38d   : > { %4549 = vrcp.f32 %v6531_v35  ;;  %v3524_v0 = vsel %vm3523_vm10, %v4542_v59, %v3520_v48  ;;  %v3562_v36 = vmul.f32 %v6534_v51, %v6522_v55  ;;  %vm3478_vm14 = vmor %vm3476_vm13, %vm3477_vm12  ;;  %v3497_v11 = vand.u32 2147483648, %v6531_v35 }
 0x38e   : > { %v3473_v17 = vsub.f32 1.0, %v3472_v26  ;;  %v3529_v25 = vsel %vm3526_vm11, %v3528_v32, %v3524_v0  ;;  %3731 = vmatpush.msra.mxu1 %v3092_v1  ;;  %v3495_v39 = vand.u32 2147483647, %v6531_v35  ;;  %v3509_v31 = vsel %vm6549_vm5, %v6524_v8, %v3505_v18 }
 0x38f   : > { %v3530_v42 = vmul.f32 %v6299_v28, %v3529_v25  ;;  %v3563_v50 = vsub.f32 1.0, %v3562_v36  ;;  %v3512_v28 = vand.u32 2147483648, %v6519_v37  ;;  %v3098_v37 = vld [vmem:[#allocation3 + $0xf8] sm:$0xff]  ;;  %vm3491_vm7 = vweird.f32 %v6531_v35 }
 0x390   : > { %v3474_v62 = vmul.f32 %v4546_v6, %v3473_v17  ;;  %3732 = vmatpush.msra.mxu1 %v3091_v29  ;;  %vm3496_vm10 = vcmp.eq.f32.partialorder %v3495_v39, 8.507059e+37  ;;  %vm3567_vm11 = vweird.f32 %v6534_v51  ;;  %vm3566_vm12 = vweird.f32 %v6522_v55 }
 0x391   : > { %4366 = vmatmul.msk.f32.vlgmr.msrb.gmra.mxu3 %vm643_vm0, %v3530_v42  ;;  %v3564_v45 = vmul.f32 %v6534_v51, %v3563_v50  ;;  %v3513_v41 = vor.u32 1.1754944e-38, %v3512_v28  ;;  %vm3568_vm13 = vmor %vm3566_vm12, %vm3567_vm11  ;;  %vm4017_vm11 = vcmask 130048   ;;  %vm4019_vm12 = vcmask 162816  }
 0x392   : > { %v3475_v12 = vadd.f32 %v4546_v6, %v3474_v62 }
 0x393   : > { %v4550_v43 = vpop.eup %4549  ;;  %v3514_v59 = vsel %vm3511_vm8, %v3513_v41, %v3509_v31  ;;  %v3565_v8 = vadd.f32 %v6534_v51, %v3564_v45 }
 0x394   : > { %v3479_v44 = vsel %vm3478_vm14, %v4546_v6, %v3475_v12  ;;  %v3487_v57 = vmul.f32 %v4550_v43, %v6531_v35  ;;  %v3449_v40 = vpop.xlane.xlu0 %3448  ;;  %vm3492_vm6 = vweird.f32 %v4550_v43  ;;  %v3515_v10 = vmul.f32 %v6291_v22, %v3514_v59 }
 0x395   : > { %v3484_v60 = vsel %vm3481_vm15, %v3483_v58, %v3479_v44  ;;  %4551 = vrcp.f32 %v3449_v40  ;;  %vm3493_vm9 = vmor %vm3491_vm7, %vm3492_vm6  ;;  %v3542_v14 = vand.u32 2147483648, %v3449_v40  ;;  %v3569_v26 = vsel %vm3568_vm13, %v6534_v51, %v3565_v8 }
 0x396   : > { %v3488_v63 = vsub.f32 1.0, %v3487_v57  ;;  %v3485_v5 = vmul.f32 %v6310_v53, %v3484_v60  ;;  %v3498_v53 = vor.u32 1.1754944e-38, %v3497_v11  ;;  %v3540_v23 = vand.u32 2147483647, %v3449_v40 }
 0x397   : > { %vm3571_vm15 = vcmp.eq.f32.partialorder %v3570_v2, 8.507059e+37  ;;  %vm3536_vm3 = vweird.f32 %v3449_v40  ;;  %v3543_v24 = vor.u32 1.1754944e-38, %v3542_v14  ;;  %vm4021_vm13 = vcmask 195584  }
 0x398   : > { %v3489_v38 = vmul.f32 %v4550_v43, %v3488_v63  ;;  %4363 = vmatmul.msk.f32.vlgmr.msrb.gmra.mxu2 %vm643_vm0, %v3485_v5  ;;  %vm3541_vm5 = vcmp.eq.f32.partialorder %v3540_v23, 8.507059e+37 }
 0x399   : > { %3752 = vmatpush.msrb.mxu2 %v3098_v37 }
 0x39a   : > { %v3490_v13 = vadd.f32 %v4550_v43, %v3489_v38 }
 0x39b   : > { %v4552_v33 = vpop.eup %4551  ;;  %3753 = vmatpush.msrb.mxu2 %v3097_v15 }
 0x39c   : > { %v3494_v61 = vsel %vm3493_vm9, %v4550_v43, %v3490_v13  ;;  %v3532_v34 = vmul.f32 %v4552_v33, %v3449_v40  ;;  %vm3537_vm14 = vweird.f32 %v4552_v33 }
 0x39d   : > { %v3499_v19 = vsel %vm3496_vm10, %v3498_v53, %v3494_v61  ;;  %3754 = vmatpush.msrb.mxu2 %v3096_v9  ;;  %vm3538_vm4 = vmor %vm3536_vm3, %vm3537_vm14  ;;  %vm4013_vm10 = vcmask 64512   ;;  %vm4023_vm14 = vcmask 228352  }
 0x39e   : > { %v3500_v30 = vmul.f32 %v6328_v49, %v3499_v19  ;;  %v3533_v6 = vsub.f32 1.0, %v3532_v34  ;;  %v3573_v49 = vor.u32 1.1754944e-38, %v3572_v27 }
 0x39f   : > { %3755 = vmatpush.msrb.mxu2 %v3095_v7 }
 0x3a0   : > { %4364 = vmatmul.msk.f32.vlgmr.msrb.gmra.mxu1 %vm643_vm0, %v3500_v30  ;;  %v3534_v35 = vmul.f32 %v4552_v33, %v3533_v6  ;;  %4365 = vmatmul.msk.f32.vlgmr.msra.gmra.mxu2 %vm643_vm0, %v3515_v10  ;;  %v3574_v55 = vsel %vm3571_vm15, %v3573_v49, %v3569_v26 }
 0x3a1   : > { %v3575_v3 = vmul.f32 %v6301_v52, %v3574_v55 }
 0x3a2   : > { %v3535_v48 = vadd.f32 %v4552_v33, %v3534_v35 }
 0x3a4   : > { %v3539_v22 = vsel %vm3538_vm4, %v4552_v33, %v3535_v48 }
 0x3a5   : > { %v3544_v17 = vsel %vm3541_vm5, %v3543_v24, %v3539_v22 }
 0x3a6   : > { %v3545_v32 = vmul.f32 %v6357_v16, %v3544_v17 }
 0x3a8   : > { %4367 = vmatmul.msk.f32.vlgmr.msrb.gmra.mxu0 %vm643_vm0, %v3545_v32  ;;  %4369 = vmatmul.msk.f32.vlgmr.msrb.gmra.mxu2 %vm643_vm0, %v3575_v3 }
 0x3aa   : > { %v3452_v51 = vpop.xlane.xlu1 %3451 }
 0x3ab   : > { %4553 = vrcp.f32 %v3452_v51  ;;  %v3557_v20 = vand.u32 2147483648, %v3452_v51  ;;  %v3555_v46 = vand.u32 2147483647, %v3452_v51  ;;  %vm3551_vm7 = vweird.f32 %v3452_v51 }
 0x3ad   : > { %v3558_v29 = vor.u32 1.1754944e-38, %v3557_v20  ;;  %vm3556_vm9 = vcmp.eq.f32.partialorder %v3555_v46, 8.507059e+37 }
 0x3b1   : > { %v4554_v0 = vpop.eup %4553 }
 0x3b2   : > { %v3547_v1 = vmul.f32 %v4554_v0, %v3452_v51  ;;  %vm3552_vm6 = vweird.f32 %v4554_v0 }
 0x3b3   : > { %vm3553_vm8 = vmor %vm3551_vm7, %vm3552_vm6 }
 0x3b4   : > { %v3548_v62 = vsub.f32 1.0, %v3547_v1 }
 0x3b6   : > { %v3549_v25 = vmul.f32 %v4554_v0, %v3548_v62 }
 0x3b8   : > { %v3550_v36 = vadd.f32 %v4554_v0, %v3549_v25 }
 0x3ba   : > { %v3554_v16 = vsel %vm3553_vm8, %v4554_v0, %v3550_v36 }
 0x3bb   : > { %v3559_v52 = vsel %vm3556_vm9, %v3558_v29, %v3554_v16 }
 0x3bc   : > { %v3560_v42 = vmul.f32 %v6389_v56, %v3559_v52 }
 0x3be   : > { %4368 = vmatmul.msk.f32.vlgmr.msra.gmra.mxu1 %vm643_vm0, %v3560_v42 }
 0x406   : > { %v3596_v43 = vpop.f32.mrf.mxu1 }
 0x407   : > { %v3762_v63 = vrot.slane %v3596_v43, 4 }
 0x414   : > { %v3688_v53 = vpop.f32.mrf.mxu3 }
 0x415   : > { %v3786_v34 = vrot.slane %v3688_v53, 4 }
 0x41b   : > { %v3619_v12 = vpop.f32.mrf.mxu2 }
 0x41c   : > { %v3774_v57 = vrot.slane %v3619_v12, 4 }
 0x41d   : > { %v3642_v44 = vpop.f32.mrf.mxu1 }
 0x41e   : > { %v3760_v60 = vrot.slane %v3642_v44, 4  ;;  %v3763_v5 = vsel %vm811_vm1, %v3642_v44, %v3762_v63 }
 0x41f   : > { %v3771_v37 = vperm.slane %v3763_v5, %v5276_v47 }
 0x420   : > { %v3761_v56 = vsel %vm811_vm1, %v3760_v60, %v3596_v43 }
 0x421   : > { %v3767_v45 = vperm.slane %v3761_v56, %v5276_v47  ;;  %v3822_v61 = vrot.slane %v3771_v37, 4 }
 0x423   : > { %v3665_v58 = vpop.f32.mrf.mxu2  ;;  %v3810_v59 = vrot.slane %v3767_v45, 4 }
 0x424   : > { %v3772_v18 = vrot.slane %v3665_v58, 4  ;;  %v3775_v50 = vsel %vm811_vm1, %v3665_v58, %v3774_v57 }
 0x425   : > { %v3711_v40 = vpop.f32.mrf.mxu0  ;;  %v3783_v11 = vperm.slane %v3775_v50, %v5276_v47 }
 0x426   : > { %v3773_v54 = vsel %vm811_vm1, %v3772_v18, %v3619_v12  ;;  %v3798_v21 = vrot.slane %v3711_v40, 4 }
 0x427   : > { %v3779_v39 = vperm.slane %v3773_v54, %v5276_v47  ;;  %v3820_v41 = vrot.slane %v3783_v11, 4  ;;  %v3823_v27 = vsel %vm811_vm1, %v3783_v11, %v3822_v61 }
 0x428   : > { %v3831_v49 = vperm.slane %v3823_v27, %v5298_v4 }
 0x429   : > { %v3808_v33 = vrot.slane %v3779_v39, 4  ;;  %v3821_v8 = vsel %vm811_vm1, %v3820_v41, %v3771_v37  ;;  %v3811_v9 = vsel %vm811_vm1, %v3779_v39, %v3810_v59 }
 0x42a   : > { %v3827_v7 = vperm.slane %v3821_v8, %v5298_v4  ;;  %v3819_v23 = vperm.slane %v3811_v9, %v5298_v4  ;;  %v3870_v16 = vrot.slane %v3831_v49, 4 }
 0x42b   : > { %v3757_v28 = vpop.f32.mrf.mxu2  ;;  %v3809_v6 = vsel %vm811_vm1, %v3808_v33, %v3767_v45 }
 0x42c   : > { %v3796_v38 = vrot.slane %v3757_v28, 4  ;;  %v3799_v31 = vsel %vm811_vm1, %v3757_v28, %v3798_v21  ;;  %v3815_v55 = vperm.slane %v3809_v6, %v5298_v4  ;;  %v3866_v32 = vrot.slane %v3827_v7, 4 }
 0x42d   : > { %v3807_v15 = vperm.slane %v3799_v31, %v5276_v47  ;;  %v3862_v29 = vrot.slane %v3819_v23, 4 }
 0x42e   : > { %v3797_v13 = vsel %vm811_vm1, %v3796_v38, %v3711_v40  ;;  %v3858_v36 = vrot.slane %v3815_v55, 4 }
 0x42f   : > { %v3803_v19 = vperm.slane %v3797_v13, %v5276_v47  ;;  %v3844_v2 = vrot.slane %v3807_v15, 4 }
 0x431   : > { %v3832_v35 = vrot.slane %v3803_v19, 4 }
 0x43b   : > { %v3734_v30 = vpop.f32.mrf.mxu1 }
 0x43c   : > { %v3784_v10 = vrot.slane %v3734_v30, 4  ;;  %v3787_v14 = vsel %vm811_vm1, %v3734_v30, %v3786_v34 }
 0x43d   : > { %v3795_v26 = vperm.slane %v3787_v14, %v5276_v47 }
 0x43e   : > { %v3785_v48 = vsel %vm811_vm1, %v3784_v10, %v3688_v53 }
 0x43f   : > { %v3791_v24 = vperm.slane %v3785_v48, %v5276_v47  ;;  %v3846_v22 = vrot.slane %v3795_v26, 4  ;;  %v3845_v17 = vsel %vm811_vm1, %v3844_v2, %v3795_v26 }
 0x440   : > { %v3851_v3 = vperm.slane %v3845_v17, %v5298_v4 }
 0x441   : > { %v3834_v51 = vrot.slane %v3791_v24, 4  ;;  %v3833_v0 = vsel %vm811_vm1, %v3832_v35, %v3791_v24  ;;  %v3847_v1 = vsel %vm811_vm1, %v3807_v15, %v3846_v22 }
 0x442   : > { %v3839_v62 = vperm.slane %v3833_v0, %v5298_v4  ;;  %v3855_v20 = vperm.slane %v3847_v1, %v5298_v4  ;;  %v3864_v25 = vrot.slane %v3851_v3, 4  ;;  %v3867_v46 = vsel %vm811_vm1, %v3851_v3, %v3866_v32 }
 0x443   : > { %v3835_v52 = vsel %vm811_vm1, %v3803_v19, %v3834_v51  ;;  %v3910_v18 = vrot.slane %v3867_v46, 4 }
 0x444   : > { %v3843_v42 = vperm.slane %v3835_v52, %v5298_v4  ;;  %v3856_v12 = vrot.slane %v3839_v62, 4  ;;  %v3865_v43 = vsel %vm811_vm1, %v3864_v25, %v3827_v7  ;;  %v3868_v58 = vrot.slane %v3855_v20, 4 }
 0x445   : > { %v3871_v44 = vsel %vm811_vm1, %v3855_v20, %v3870_v16  ;;  %v3898_v57 = vrot.slane %v3865_v43, 4  ;;  %v3859_v60 = vsel %vm811_vm1, %v3839_v62, %v3858_v36 }
 0x446   : > { %v3860_v50 = vrot.slane %v3843_v42, 4  ;;  %v3863_v40 = vsel %vm811_vm1, %v3843_v42, %v3862_v29  ;;  %v3869_v28 = vsel %vm811_vm1, %v3868_v58, %v3831_v49  ;;  %v3908_v63 = vrot.slane %v3871_v44, 4 }
 0x447   : > { %v3884_v54 = vrot.slane %v3863_v40, 4  ;;  %v3896_v11 = vrot.slane %v3869_v28, 4  ;;  %v3857_v56 = vsel %vm811_vm1, %v3856_v12, %v3815_v55  ;;  %v3886_v5 = vrot.slane %v3859_v60, 4 }
 0x448   : > { %v3861_v21 = vsel %vm811_vm1, %v3860_v50, %v3819_v23  ;;  %v3874_v38 = vrot.slane %v3857_v56, 4  ;;  %v3909_v39 = vsel %vm811_vm1, %v3908_v63, %v3867_v46  ;;  %v3899_v31 = vsel %vm811_vm1, %v3869_v28, %v3898_v57 }
 0x449   : > { %v3872_v45 = vrot.slane %v3861_v21, 4  ;;  %v3885_v37 = vsel %vm811_vm1, %v3884_v54, %v3859_v60  ;;  %v3897_v41 = vsel %vm811_vm1, %v3896_v11, %v3865_v43  ;;  %v3915_v13 = vperm.slane %v3909_v39, %v5276_v47  ;;  %v4027_v54 = vld [vmem:[#allocation13 + $0x10] sm:$0xff]  ;;  %v4026_v11 = vld [vmem:[#allocation13 + $0x8] sm:$0xff] }
 0x44a   : > { %v3891_v53 = vperm.slane %v3885_v37, %v5276_v47  ;;  %v3903_v15 = vperm.slane %v3897_v41, %v5276_v47  ;;  %v3875_v33 = vsel %vm811_vm1, %v3861_v21, %v3874_v38  ;;  %v3887_v59 = vsel %vm811_vm1, %v3863_v40, %v3886_v5  ;;  %v4059_v5 = vld [vmem:[#allocation15 + $0x18] sm:$0xff]  ;;  %v4058_v21 = vld [vmem:[#allocation15 + $0x10] sm:$0xff] }
 0x44b   : > { %v3873_v61 = vsel %vm811_vm1, %v3872_v45, %v3857_v56  ;;  %v3944_v8 = vrot.slane %v3915_v13, 4  ;;  %v3883_v19 = vperm.slane %v3875_v33, %v5276_v47  ;;  %v3895_v34 = vperm.slane %v3887_v59, %v5276_v47  ;;  %v4025_v56 = vld [vmem:[#allocation13] sm:$0xff]  ;;  %4079 = vmatpush.msra.mxu0 %v4059_v5 }
 0x44c   : > { %v3879_v9 = vperm.slane %v3873_v61, %v5276_v47  ;;  %v3946_v27 = vrot.slane %v3903_v15, 4  ;;  %v3920_v30 = vrot.slane %v3891_v53, 4  ;;  %v3907_v2 = vperm.slane %v3899_v31, %v5276_v47 }
 0x44d   : > { %v3945_v6 = vsel %vm811_vm1, %v3944_v8, %v3903_v15  ;;  %v3911_v7 = vsel %vm811_vm1, %v3871_v44, %v3910_v18  ;;  %v3932_v10 = vrot.slane %v3895_v34, 4  ;;  %v3934_v17 = vrot.slane %v3883_v19, 4  ;;  %4080 = vmatpush.msra.mxu0 %v4058_v21 }
 0x44e   : > { %v3922_v14 = vrot.slane %v3879_v9, 4  ;;  %v3947_v26 = vsel %vm811_vm1, %v3915_v13, %v3946_v27  ;;  %v3921_v35 = vsel %vm811_vm1, %v3920_v30, %v3879_v9  ;;  %v3951_v23 = vperm.slane %v3945_v6, %v5298_v4  ;;  %v4056_v9 = vld [vmem:[#allocation15] sm:$0xff]  ;;  %v4521_v27 = vld [vmem:[%s6721_s9] ss:$0 sm:$0xff] }
 0x44f   : > { %v3955_v49 = vperm.slane %v3947_v26, %v5298_v4  ;;  %v3927_v48 = vperm.slane %v3921_v35, %v5298_v4  ;;  %v3919_v55 = vperm.slane %v3911_v7, %v5276_v47  ;;  %v3958_v32 = vrot.slane %v3907_v2, 4  ;;  %v4089_v6 = vld [vmem:[%s6766_s20] sm:$0x3] }
 0x450   : > { %v3923_v24 = vsel %vm811_vm1, %v3891_v53, %v3922_v14  ;;  %v3968_v22 = vrot.slane %v3951_v23, 4  ;;  %v3933_v62 = vsel %vm811_vm1, %v3932_v10, %v3883_v19  ;;  %v3935_v29 = vsel %vm811_vm1, %v3895_v34, %v3934_v17  ;;  %v4057_v34 = vld [vmem:[#allocation15 + $0x8] sm:$0xff]  ;;  %v4522_v10 = vld [vmem:[%s6767_s25] ss:$0 sm:$0xff] }
 0x451   : > { %v3931_v3 = vperm.slane %v3923_v24, %v5298_v4  ;;  %v3972_v51 = vrot.slane %v3955_v49, 4  ;;  %v3970_v0 = vrot.slane %v3927_v48, 4  ;;  %v3959_v1 = vsel %vm811_vm1, %v3919_v55, %v3958_v32  ;;  %4081 = vmatpush.msra.mxu0 %v4057_v34 }
 0x452   : > { %v3956_v20 = vrot.slane %v3919_v55, 4  ;;  %v3967_v47 = vperm.slane %v3959_v1, %v5298_v4  ;;  %v3969_v52 = vsel %vm811_vm1, %v3968_v22, %v3927_v48  ;;  %v3939_v12 = vperm.slane %v3933_v62, %v5298_v4 }
 0x453   : > { %v3973_v25 = vsel %vm811_vm1, %v3972_v51, %v3931_v3  ;;  %v3971_v46 = vsel %vm811_vm1, %v3951_v23, %v3970_v0  ;;  %v3974_v36 = vrot.slane %v3931_v3, 4  ;;  %v3943_v58 = vperm.slane %v3935_v29, %v5298_v4  ;;  %4082 = vmatpush.msra.mxu0 %v4056_v9  ;;  %v4088_v23 = vld [vmem:[%s6768_s13] sm:$0x3] }
 0x454   : > { %3989 = vrot.lane.b32.xlu1 %v3973_v25, %s4884_s8  ;;  %3985 = vrot.lane.b32.xlu2 %v3971_v46, %s4885_s22  ;;  %v3957_v16 = vsel %vm811_vm1, %v3956_v20, %v3907_v2  ;;  %v3980_v44 = vrot.slane %v3967_v47, 4  ;;  %v3978_v18 = vrot.slane %v3939_v12, 4  ;;  %v4891_v7 = vmov 0  }
 0x455   : > { %v3975_v42 = vsel %vm811_vm1, %v3955_v49, %v3974_v36  ;;  %v3963_v43 = vperm.slane %v3957_v16, %v5298_v4  ;;  %v3982_v28 = vrot.slane %v3943_v58, 4  ;;  %v4028_v4 = vld [vmem:[#allocation13 + $0x18] sm:$0xff]  ;;  %4517 = vset.pattern.permute.xlu0 %v4891_v7 }
 0x456   : > { %3993 = vrot.lane.b32.xlu0 %v3975_v42, %s4886_s29  ;;  %v3981_v60 = vsel %vm811_vm1, %v3980_v44, %v3943_v58  ;;  %4048 = vmatpush.msra.mxu3 %v4028_v4  ;;  %s6769_s29 = sld [smem:[#allocation37_spill]] }
 0x457   : > { %v3976_v57 = vrot.slane %v3963_v43, 4  ;;  %v3979_v40 = vsel %vm811_vm1, %v3963_v43, %v3978_v18  ;;  %v3983_v63 = vsel %vm811_vm1, %v3967_v47, %v3982_v28 }
 0x458   : > { %4049 = vmatpush.msra.mxu3 %v4027_v54 }
 0x459   : > { %v3977_v50 = vsel %vm811_vm1, %v3976_v57, %v3939_v12  ;;  %vm4015_vm1 = vcmask 97280  }
 0x45a   : > { %4050 = vmatpush.msra.mxu3 %v4026_v11 }
 0x45c   : > { %4005 = vrot.lane.b32.xlu1 %v3981_v60, %s4887_s10  ;;  %3997 = vrot.lane.b32.xlu2 %v3977_v50, %s4888_s15  ;;  %s6770_s10 = smov %s6769_s29  ;;  %s4135_s15 = scalar_lea.hbm %s6769_s29, %s4375_s28 }
 0x45d   : > { %4051 = vmatpush.msra.mxu3 %v4025_v56  ;;  %s4139_s26 = sshll.u32 %s4135_s15, 4  ;;  %s4787_s11 = scalar_lea.hbm %s6770_s10, 4  ;;  %s4140_s26 = int_to_ptr.hbm [resolvable:$true] %s4139_s26 }
 0x45e   : > { %4001 = vrot.lane.b32.xlu0 %v3979_v40, %s4889_s23  ;;  %s4781_s14 = sshra.s32 %s4140_s26, 4  ;;  %s4782_s14 = int_to_ptr.hbm [resolvable:$true] %s4781_s14 }
 0x45f   : > { %s4783_s20 = scalar_lea.hbm %s4782_s14, 2  ;;  %p4788_p10 = scmp.lt.s32.totalorder %s4782_s14, %s6770_s10 }
 0x460   : > { %p4784_p1 = scmp.ne.s32.totalorder %s4782_s14, %s4783_s20  ;;  %p4789_p11 = scmp.lt.s32.totalorder %s4787_s11, %s4783_s20 }
 0x462   : > { %p4785_p3 = pnand %p4784_p1, %p5079_p4  ;;  %p4790_p12 = por %p4789_p11, %p4788_p10 }
 0x464   : > { %4009 = vrot.lane.b32.xlu2 %v3983_v63, %s4890_s3  ;;  %s625_s3 = scalar_lea.vmem [#allocation16], %s4312_s27  ;;  %p4786_p9 = pneg %p4785_p3 }
 0x465   : > { %s4137_s19 = sshll.u32 %s625_s3, 4  ;;  %s4138_s19 = int_to_ptr.vmem [resolvable:$true] %s4137_s19 }
 0x466   : > { %4092 = vperm.xlu0 %4517, %v4089_v6   ;;  %p4791_p13 = pnand %p4790_p12, %p4786_p9 }
 0x4ae   : > { %v3986_v38 = vpop.permute.xlu2 %3985 }
 0x4af   : > { %v4012_v37 = vsel %vm1707_vm2, %v3969_v52, %v3986_v38  ;;  %vm4121_vm2 = vcmask 58368  }
 0x4b6   : > { %v3998_v31 = vpop.permute.xlu2 %3997 }
 0x4be   : > { %v4010_v61 = vpop.permute.xlu2 %4009 }
 0x4c6   : > { %v3990_v39 = vpop.permute.xlu1 %3989 }
 0x4c7   : > { %v4014_v41 = vsel %vm4013_vm10, %v4012_v37, %v3990_v39 }
 0x4c8   : > { %v3994_v45 = vpop.permute.xlu0 %3993 }
 0x4c9   : > { %v4016_v13 = vsel %vm4015_vm1, %v4014_v41, %v3994_v45 }
 0x4ca   : > { %v4018_v15 = vsel %vm4017_vm11, %v4016_v13, %v3998_v31 }
 0x4ce   : > { %v4006_v33 = vpop.permute.xlu1 %4005 }
 0x4d0   : > { %v4002_v53 = vpop.permute.xlu0 %4001 }
 0x4d1   : > { %v4020_v59 = vsel %vm4019_vm12, %v4018_v15, %v4002_v53 }
 0x4d2   : > { %v4022_v8 = vsel %vm4021_vm13, %v4020_v59, %v4006_v33 }
 0x4d3   : > { %v4024_v19 = vsel %vm4023_vm14, %v4022_v8, %v4010_v61 }
 0x4d4   : > { %4370 = vmatmul.msk.f32.vlgmr.msra.gmra.mxu3 %vm643_vm0, %v4024_v19 }
 0x4d8   : > { %v4093_v49 = vpop.permute.xlu0 %4092 }
 0x557   : > { %v4053_v30 = vpop.f32.mrf.mxu3 }
 0x558   : > { %v4054_v2 = vadd.f32 %v4521_v27, %v4053_v30 }
 0x55a   : > { %4371 = vmatmul.msk.f32.vlgmr.msra.gmra.mxu0 %vm643_vm0, %v4054_v2 }
 0x5d7   : > { %v4084_v14 = vpop.f32.mrf.mxu0 }
 0x5d8   : > { %v4085_v26 = vadd.f32 %v4522_v10, %v4084_v14 }
 0x5da   : > { %4555 = vtanh.f32 %v4085_v26 }
 0x5e0   : > { %v4556_v35 = vpop.eup %4555 }
 0x5e1   : > { %4372 = vmatpush.xpose.msk.msrb.mxu1 %vm643_vm0, %v4556_v35 }
 0x5e4   : > { %4373 = vmatmul.msk.f32.vlgmr.msrb.gmra.mxu1 %vm643_vm0, %v4088_v23 }
 0x661   : > { %v4118_v48 = vpop.f32.mrf.mxu1 }
 0x662   : > { %v4119_v55 = vadd.f32 %v4118_v48, %v4093_v49 }
 0x664   : > { %4122 = vst.msk [vmem:[%s625_s3] sm:$0x3] %vm4121_vm2, %v4119_v55 }
 0x665   : > { %4794 = shalt.err (!%p4791_p13)
}
 0x666   : > { %4403 = dma.vmem_to_hbm [thread:$0]  (%p5079_p4), %s4138_s19, 32, %s4140_s26, %s4124_s12  }
 0x667 PF: > { %s6772_s4 = sld [smem:[#allocation23_spill]]  ;;  %p4429_p0 = pnand %p4298_p6, %p5087_p7 }
 0x669   : > { %p4430_p2 = pneg %p4429_p0 }
 0x66d   : > { %s4151_s13 = sand.u32 1, %s6772_s4  }
 0x66e   : > { %s4152_s27 = scalar_lea.sflag [#allocation6], %s4151_s13 }
 0x66f   : > { %4840 = dma.done.wait (%p4430_p2), %s4152_s27, 32  }
 0x670   : > { %4842 = vsyncadd (%p4430_p2), %s4152_s27, 4294967264  ;;  %s35_s18 = sadd.s32 1, %s4865_s18   ;;  %s6774_s28 = sld [smem:[#allocation24_spill]] }
 0x671   : > { %p32_p5 = scmp.ge.s32.totalorder %s35_s18, 4   ;;  %s6775_s15 = sld [smem:[#allocation27_spill]] }
 0x672   : > { %s6776_s8 = sld [smem:[#allocation25_spill]]  ;;  %s6777_s29 = smov %s4849_s30 }
 0x673   : > { %s6779_s16 = smov %s4861_s17 }
 0x674   :  { %34 = sbr.rel (!%p32_p5) target bundleno = 20 (0x14), region = 158 }
 0x676   : > { %s6778_s30 = smov %s6774_s28 }
 0x678   : > { %s6780_s17 = smov %s6776_s8 }
 0x679   :  { %4158 = vsyncpa [#allocation5], 1 }
 0x67a   :  { %4160 = vsyncpa [#allocation5 + $0x1], 1 }
 0x67b   :  { %4161 = vsyncpa [#allocation8], 1 }
 0x67c   :  { %4163 = vsyncpa [#allocation8 + $0x1], 1 }
 0x67d   :  { %4164 = vsyncpa [#allocation11], 1 }
 0x67e   :  { %4165 = vsyncpa [#allocation14], 1 }
 0x67f   :  { %4166 = vsyncpa [#allocation6], 1 }
 0x680   :  { %4168 = vsyncpa [#allocation6 + $0x1], 1 }

// kernel: tpu_custom_call.1
= control target key start
LH: loop header
LB: loop body
LE: loop exit
PB: predicated region body
PF: predicated region fallthrough
CT: control target
= control target key end

     0   :  { %s6712_s0 = inlined_call_operand.hbm [shape: f32[2,8,32], index: 0, kind: input, shape index: {}]   ;;  %s6713_s1 = inlined_call_operand.hbm [shape: f32[2,32,32], index: 1, kind: input, shape index: {}]   ;;  %s6714_s2 = inlined_call_operand.hbm [shape: f32[32,32], index: 2, kind: input, shape index: {}]   ;;  %s6715_s3 = inlined_call_operand.hbm [shape: f32[32,32], index: 3, kind: input, shape index: {}]   ;;  %s6716_s4 = inlined_call_operand.hbm [shape: f32[32,32], index: 4, kind: input, shape index: {}]   ;;  %s6717_s5 = inlined_call_operand.vmem [shape: f32[1,32], index: 5, kind: input, shape index: {}]   ;;  %s6718_s6 = inlined_call_operand.vmem [shape: f32[1,32], index: 6, kind: input, shape index: {}]   ;;  %s6719_s7 = inlined_call_operand.vmem [shape: f32[1,32], index: 7, kind: input, shape index: {}]   ;;  %s6720_s8 = inlined_call_operand.hbm [shape: f32[32,32], index: 8, kind: input, shape index: {}]   ;;  %s6721_s9 = inlined_call_operand.vmem [shape: f32[1,32], index: 9, kind: input, shape index: {}]   ;;  %s6722_s10 = inlined_call_operand.hbm [shape: f32[32,32], index: 10, kind: input, shape index: {}]   ;;  %s6723_s11 = inlined_call_operand.vmem [shape: f32[1,32], index: 11, kind: input, shape index: {}]   ;;  %s6724_s12 = inlined_call_operand.vmem [shape: f32[2,32], index: 12, kind: input, shape index: {}]   ;;  %s6725_s13 = inlined_call_operand.vmem [shape: f32[2,1], index: 13, kind: input, shape index: {}]   ;;  %s6726_s14 = inlined_call_operand.hbm [shape: f32[2,2,8], index: 14, kind: output, shape index: {}]  }
   0x1   :  { %6736 = sst [smem:[#allocation29_spill]] %s6714_s2 }
   0x2   :  { %6737 = sst [smem:[#allocation30_spill]] %s6715_s3 }
   0x3   :  { %6738 = sst [smem:[#allocation31_spill]] %s6716_s4 }
   0x4   :  { %6739 = sst [smem:[#allocation32_spill]] %s6720_s8 }
   0x5   :  { %6740 = sst [smem:[#allocation33_spill]] %s6722_s10 }
   0x6   :  { %6741 = sst [smem:[#allocation34_spill]] %s6723_s11 }
   0x7   :  { %6742 = sst [smem:[#allocation35_spill]] %s6724_s12 }
   0x8   :  { %6743 = sst [smem:[#allocation36_spill]] %s6725_s13 }
   0x9   :  { %6744 = sst [smem:[#allocation37_spill]] %s6726_s14 }
   0xa   :  { %19 = vsyncpa [#allocation5], 0 }
   0xb   :  { %21 = vsyncpa [#allocation5 + $0x1], 0 }
   0xc   :  { %22 = vsyncpa [#allocation8], 0 }
   0xd   :  { %24 = vsyncpa [#allocation8 + $0x1], 0 }
   0xe   :  { %25 = vsyncpa [#allocation11], 0 }
   0xf   :  { %26 = vsyncpa [#allocation14], 0 }
  0x10   :  { %27 = vsyncpa [#allocation6], 0 }
  0x11   :  { %29 = vsyncpa [#allocation6 + $0x1], 0  ;;  %s4967_s29 = smov 0   ;;  %s4969_s30 = smov 0  }
  0x12   :  { %s4971_s15 = smov 0   ;;  %s4973_s16 = smov 0  }
  0x13   :  { %s4975_s17 = smov 0   ;;  %s4977_s18 = smov 0  }
  0x14 LB: > { %6745 = sst [smem:[#allocation23_spill]] %s4845_s29  ;;  %s4998_s19 = sadd.s32 4294967295, %s4865_s18   ;;  %s4865_s18 = sphi %s4977_s18, %s35_s18   ;;  %s4861_s17 = sphi %s4975_s17, %s6780_s17   ;;  %s4857_s16 = sphi %s4973_s16, %s6779_s16   ;;  %s4853_s15 = sphi %s4971_s15, %s6775_s15   ;;  %s4849_s30 = sphi %s4969_s30, %s6778_s30   ;;  %s4845_s29 = sphi %s4967_s29, %s6777_s29  }
  0x15   : > { %6746 = sst [smem:[#allocation24_spill]] %s4853_s15  ;;  %p4292_p0 = scmp.ge.s32.totalorder %s4865_s18, 1 }
  0x16   : > { %p70_p1 = scmp.eq.s32.totalorder %s4998_s19, 0  ;;  %p386_p2 = scmp.lt.s32.totalorder %s4865_s18, 3 }
  0x17   : > { %s6747_s2 = sld [smem:[#allocation29_spill]]  ;;  %s4867_s24 = smov [#allocation9]  }
  0x18   : > { %p5006_p3 = pnand %p4292_p0, %p386_p2  ;;  %s399_s25 = sshll.u32 %s4867_s24, 4  ;;  %s400_s25 = int_to_ptr.vmem [resolvable:$true] %s399_s25 }
  0x19   : > { %p4298_p6 = scmp.ge.s32.totalorder %s4865_s18, 2  ;;  %s6750_s3 = sld [smem:[#allocation30_spill]] }
  0x1a   : > { %p4405_p4 = pneg %p5006_p3  ;;  %s6728_s21 = smov 128  }
  0x1b   : > { %s4870_s24 = smov [#allocation10]   ;;  %s6751_s8 = sld [smem:[#allocation32_spill]] }
  0x1c   : > { %p5014_p5 = pnand %p4405_p4, %p70_p1  ;;  %s413_s14 = sshll.u32 %s4870_s24, 4  ;;  %s414_s14 = int_to_ptr.vmem [resolvable:$true] %s413_s14 }
  0x1d   : > { %s397_s22 = sshll.u32 %s6747_s2, 4  ;;  %s6729_s2 = smov 8   ;;  %s398_s22 = int_to_ptr.hbm [resolvable:$true] %s397_s22 }
  0x1e   : > { %4408 = dma.hbm_to_vmem [thread:$0]  (!%p5014_p5), %s398_s22, 512, %s400_s25, [#allocation8], %s6728_s21, %s6728_s21, %s6729_s2  }
  0x1f   : > { %s411_s20 = sshll.u32 %s6750_s3, 4  ;;  %s6752_s4 = sld [smem:[#allocation31_spill]]  ;;  %s412_s20 = int_to_ptr.hbm [resolvable:$true] %s411_s20 }
  0x20   : > { %4411 = dma.hbm_to_vmem [thread:$0]  (!%p5014_p5), %s412_s20, 512, %s414_s14, [#allocation11], %s6728_s21, %s6728_s21, %s6729_s2  }
  0x21   : > { %s448_s13 = sshll.u32 %s6751_s8, 4  ;;  %s4871_s22 = smov [#allocation13]   ;;  %s449_s13 = int_to_ptr.hbm [resolvable:$true] %s448_s13 }
  0x22   : > { %s450_s25 = sshll.u32 %s4871_s22, 4  ;;  %s4872_s11 = smov [#allocation12]   ;;  %s451_s25 = int_to_ptr.vmem [resolvable:$true] %s450_s25 }
  0x23   : > { %4417 = dma.hbm_to_vmem [thread:$0]  (!%p5014_p5), %s449_s13, 512, %s451_s25, [#allocation14], %s6728_s21, %s6728_s21, %s6729_s2  }
  0x24   : > { %s427_s12 = sshll.u32 %s4872_s11, 4  ;;  %s6753_s10 = sld [smem:[#allocation33_spill]]  ;;  %s428_s12 = int_to_ptr.vmem [resolvable:$true] %s427_s12 }
  0x25   : > { %s425_s3 = sshll.u32 %s6752_s4, 4  ;;  %s4873_s13 = smov [#allocation15]   ;;  %s426_s3 = int_to_ptr.hbm [resolvable:$true] %s425_s3 }
  0x26   : > { %4414 = dma.hbm_to_vmem [thread:$0]  (!%p5014_p5), %s426_s3, 512, %s428_s12, [#allocation11], %s6728_s21, %s6728_s21, %s6729_s2  }
  0x27   : > { %s467_s27 = sshll.u32 %s4873_s13, 4  ;;  %s4291_s28 = sadd.s32 4294967294, %s4865_s18   ;;  %s468_s27 = int_to_ptr.vmem [resolvable:$true] %s467_s27 }
  0x28   : > { %s47_s22 = sadd.s32 1, %s4861_s17  ;;  %s56_s25 = sadd.s32 1, %s4853_s15 }
  0x29   : > { %p49_p7 = scmp.ge.s32.totalorder %s47_s22, 2  ;;  %p63_p8 = scmp.ne.s32.totalorder %s4853_s15, %s4849_s30 }
  0x2a   : > { %s465_s24 = sshll.u32 %s6753_s10, 4  ;;  %p64_p9 = scmp.eq.s32.totalorder %s4865_s18, 0  ;;  %s466_s24 = int_to_ptr.hbm [resolvable:$true] %s465_s24 }
  0x2b   : > { %4420 = dma.hbm_to_vmem [thread:$0]  (!%p5014_p5), %s466_s24, 512, %s468_s27, [#allocation14], %s6728_s21, %s6728_s21, %s6729_s2  }
  0x2c   : > { %p69_p10 = scmp.ne.s32.totalorder %s4849_s30, %s4845_s29  ;;  %s6782_s22 = smov (%p49_p7, %s47_s22), 0 }
  0x2d   : > { %6754 = sst [smem:[#allocation25_spill]] %s6782_s22  ;;  %p5066_p11 = por %p64_p9, %p63_p8 }
  0x2e   : > { %p5072_p12 = por %p70_p1, %p69_p10  ;;  %s51_s11 = ssub.s32 %s4861_s17, %s6782_s22 }
  0x2f   : > { %p373_p13 = scmp.eq.s32.totalorder %s4998_s19, 1  ;;  %p54_p0 = scmp.eq.s32.totalorder %s51_s11, 0 }
  0x30   : > { %p379_p2 = scmp.eq.s32.totalorder %s4291_s28, 1  ;;  %p4437_p5 = scmp.lt.s32.totalorder %s4865_s18, 2 }
  0x31   : > { %p5079_p4 = por %p373_p13, %p63_p8  ;;  %s490_s24 = sand.u32 1, %s4853_s15  }
  0x32   : > { %s5085_s14 = scalar_select %p54_p0, %s4853_s15, %s56_s25  }
  0x33   : > { %s6757_s12 = scalar_select %p5079_p4, 1, 0 }
  0x34   : > { %6759 = sst [smem:[#allocation27_spill]] %s5085_s14  ;;  %p5087_p7 = por %p379_p2, %p69_p10 }
  0x35   : > { %6758 = sst [smem:[#allocation26_spill]] %s6757_s12  ;;  %s4299_s13 = sshll.u32 %s490_s24, 3 }
  0x36   : > { %s6760_s20 = scalar_select %p5087_p7, 1, 0 }
  0x37   : > { %s4300_s27 = sshll.u32 %s4861_s17, 3  ;;  %s494_s11 = scalar_lea.vmem [#allocation4], %s4299_s13 }
  0x38   : > { %6761 = sst [smem:[#allocation28_spill]] %s6760_s20  ;;  %s499_s28 = scalar_lea.hbm %s6712_s0, %s4300_s27 }
  0x39   : > { %s503_s4 = sshll.u32 %s494_s11, 4  ;;  %s501_s8 = sshll.u32 %s499_s28, 4  ;;  %s504_s4 = int_to_ptr.vmem [resolvable:$true] %s503_s4  ;;  %s502_s8 = int_to_ptr.hbm [resolvable:$true] %s501_s8 }
  0x3a   : > { %p4422_p8 = pnand %p4437_p5, %p5066_p11  ;;  %s4301_s25 = sshll.u32 %s490_s24, 5 }
  0x3b   : > { %s4378_s10 = sshll.u32 %s4861_s17, 5  ;;  %s491_s22 = scalar_lea.sflag [#allocation5], %s490_s24 }
  0x3c   : > { %4424 = dma.hbm_to_vmem [thread:$0]  (!%p4422_p8), %s502_s8, 128, %s504_s4, %s491_s22  }
  0x3d   : > { %s514_s14 = scalar_lea.vmem [#allocation7], %s4301_s25  ;;  %s510_s20 = sand.u32 1, %s4865_s18  }
  0x3e   : > { %s522_s15 = sshll.u32 %s514_s14, 4  ;;  %s519_s2 = scalar_lea.hbm %s6713_s1, %s4378_s10  ;;  %s523_s15 = int_to_ptr.vmem [resolvable:$true] %s522_s15 }
  0x3f   : > { %s520_s21 = sshll.u32 %s519_s2, 4  ;;  %s511_s13 = scalar_lea.sflag [#allocation8], %s510_s20  ;;  %s521_s21 = int_to_ptr.hbm [resolvable:$true] %s520_s21 }
  0x40   : > { %s6762_s27 = smov 8   ;;  %s6763_s28 = smov 128  }
  0x41   : > { %4427 = dma.hbm_to_vmem [thread:$0]  (!%p4422_p8), %s521_s21, 512, %s523_s15, %s511_s13, %s6763_s28, %s6763_s28, %s6762_s27  }
  0x42   : > { %534 = sbr.rel (%p5006_p3) target bundleno = 1639 (0x667), region = 76  ;;  %s5109_s4 = sand.u32 (!%p5006_p3), 1, %s4849_s30  }
  0x43   : > { %s4305_s8 = sshll.u32 (!%p5006_p3), %s5109_s4, 3  ;;  %s537_s22 = scalar_lea.sflag (!%p5006_p3), [#allocation5], %s5109_s4 }
  0x44   : > { %s5113_s29 = scalar_lea.vmem (!%p5006_p3), [#allocation4], %s4305_s8 }
  0x47   : > { %4820 = dma.done.wait (%p5072_p12), %s537_s22, 128  }
  0x48   : > { %4822 = vsyncadd (%p5072_p12), %s537_s22, 4294967168  ;;  %s546_s10 = sand.u32 1, %s4998_s19   ;;  %s4306_s15 = sshll.u32 %s5109_s4, 5 }
  0x49   : > { %s547_s23 = scalar_lea.sflag [#allocation8], %s546_s10  ;;  %s5121_s3 = scalar_lea.vmem [#allocation7], %s4306_s15 }
  0x4a   : > { %4824 = dma.done.wait (%p5072_p12), %s547_s23, 512  }
  0x4b   : > { %4826 = vsyncadd (%p5072_p12), %s547_s23, 4294966784 }
  0x4c   : > { %4828 = dma.done.wait (%p70_p1), [#allocation8], 512  }
  0x4d   : > { %4830 = vsyncadd (%p70_p1), [#allocation8], 4294966784 }
  0x4e   : > { %4832 = dma.done.wait (%p70_p1), [#allocation11], 1024  }
  0x4f   : > { %4834 = vsyncadd (%p70_p1), [#allocation11], 4294966272 }
  0x50   : > { %4836 = dma.done.wait (%p70_p1), [#allocation14], 1024  }
  0x51   : > { %4838 = vsyncadd (%p70_p1), [#allocation14], 4294966272  ;;  %v638_v0 = vld [vmem:[#allocation10 + $0x18] sm:$0xff]  ;;  %v637_v1 = vld [vmem:[#allocation10 + $0x10] sm:$0xff]  ;;  %vm643_vm0 = vcmask 261120   ;;  %s4874_s12 = smov 104  }
  0x52   : > { %668 = vmatpush.msra.mxu0 %v638_v0  ;;  %v636_v2 = vld [vmem:[#allocation10 + $0x8] sm:$0xff]  ;;  %v2759_v3 = vld [vmem:[#allocation9 + $0x18] sm:$0xff]  ;;  %v2758_v4 = vld [vmem:[#allocation9 + $0x10] sm:$0xff]  ;;  %s4875_s14 = smov 120   ;;  %s4876_s20 = smov 116   ;;  %vm811_vm1 = vcmask 1047556  }
  0x53   : > { %2780 = vmatpush.msra.mxu2 %v2759_v3  ;;  %v635_v5 = vld [vmem:[#allocation10] sm:$0xff]  ;;  %v2757_v6 = vld [vmem:[#allocation9 + $0x8] sm:$0xff]  ;;  %v688_v7 = vld [vmem:[#allocation12 + $0x18] sm:$0xff]  ;;  %s4877_s24 = smov 112   ;;  %s4878_s11 = smov 124   ;;  %vm1707_vm2 = vcmask 31744  }
  0x54   : > { %669 = vmatpush.msra.mxu0 %v637_v1  ;;  %v631_v8 = vld [vmem:[%s5121_s3] sm:$0xff]  ;;  %v687_v9 = vld [vmem:[#allocation12 + $0x10] sm:$0xff]  ;;  %705 = vmatpush.msra.mxu1 %v688_v7  ;;  %v686_v12 = vld [vmem:[#allocation12 + $0x8] sm:$0xff]  ;;  %s4879_s25 = smov 108   ;;  %s4880_s2 = smov 100  }
  0x55   : > { %2781 = vmatpush.msra.mxu2 %v2758_v4  ;;  %v2756_v10 = vld [vmem:[#allocation9] sm:$0xff]  ;;  %v626_v11 = vld [vmem:[%s5113_s29] sm:$0xff]  ;;  %v632_v14 = vld [vmem:[%s5121_s3 + $0x8] sm:$0xff]  ;;  %v4881_v42 = vmov 1983009808   ;;  %s4884_s8 = smov 8  }
  0x56   : > { %670 = vmatpush.msra.mxu0 %v636_v2  ;;  %706 = vmatpush.msra.mxu1 %v687_v9  ;;  %v685_v13 = vld [vmem:[#allocation12] sm:$0xff]  ;;  %v633_v15 = vld [vmem:[%s5121_s3 + $0x10] sm:$0xff]  ;;  %v634_v16 = vld [vmem:[%s5121_s3 + $0x18] sm:$0xff]  ;;  %v816_v43 = vunpack.c.l.s4 %v4881_v42  ;;  %v4882_v58 = vmov 1934713408   ;;  %s4885_s22 = smov 4  }
  0x57   : > { %2782 = vmatpush.msra.mxu2 %v2757_v6  ;;  %v4518_v17 = vld [vmem:[%s6718_s6] ss:$0 sm:$0xff]  ;;  %v864_v59 = vunpack.c.l.s4 %v4882_v58  ;;  %s4886_s29 = smov 12   ;;  %s4887_s10 = smov 24  }
  0x58   : > { %671 = vmatpush.msra.mxu0 %v635_v5  ;;  %707 = vmatpush.msra.mxu1 %v686_v12  ;;  %v4519_v27 = vld [vmem:[%s6717_s5] ss:$0 sm:$0xff]  ;;  %v5276_v47 = vunpack.c.0.s8 %v816_v43  ;;  %s4888_s15 = smov 16   ;;  %s4889_s23 = smov 20  }
  0x59   : > { %4313 = vmatmul.msk.f32.vlgmr.msra.gmra.mxu0 %vm643_vm0, %v631_v8  ;;  %2783 = vmatpush.msra.mxu2 %v2756_v10  ;;  %v4520_v32 = vld [vmem:[%s6719_s7] ss:$0 sm:$0xff]  ;;  %v5298_v4 = vunpack.c.0.s8 %v864_v59  ;;  %s4890_s3 = smov 28   ;;  %s6768_s13 = sld [smem:[#allocation35_spill]] }
  0x5a   : > { %4321 = vmatmul.msk.f32.vlgmr.msra.gmra.mxu2 %vm643_vm0, %v626_v11  ;;  %708 = vmatpush.msra.mxu1 %v685_v13  ;;  %s4312_s27 = sshll.u32 %s5109_s4, 1  ;;  %s4375_s28 = sshll.u32 %s4857_s16, 1 }
  0x5b   : > { %4317 = vmatmul.msk.f32.vlgmr.msra.gmra.mxu1 %vm643_vm0, %v631_v8 }
  0x61   : > { %4314 = vmatmul.msk.f32.gmra.mxu0 %vm643_vm0, %v632_v14 }
  0x63   : > { %4318 = vmatmul.msk.f32.gmra.mxu1 %vm643_vm0, %v632_v14 }
  0x69   : > { %4315 = vmatmul.msk.f32.gmra.mxu0 %vm643_vm0, %v633_v15 }
  0x6b   : > { %4319 = vmatmul.msk.f32.gmra.mxu1 %vm643_vm0, %v633_v15 }
  0x71   : > { %4316 = vmatmul.msk.f32.gmra.mxu0 %vm643_vm0, %v634_v16 }
  0x73   : > { %4320 = vmatmul.msk.f32.gmra.mxu1 %vm643_vm0, %v634_v16 }
  0xd6   : > { %v673_v18 = vpop.f32.mrf.mxu0 }
  0xd7   : > { %v5156_v19 = vadd.f32 %v4518_v17, %v673_v18 }
  0xd8   : > { %v710_v26 = vpop.f32.mrf.mxu1 }
  0xd9   : > { %786 = vrot.lane.b32.xlu2 %v5156_v19, %s4874_s12  ;;  %738 = vrot.lane.b32.xlu0 %v5156_v19, %s4875_s14  ;;  %v5260_v38 = vadd.f32 %v4520_v32, %v710_v26  ;;  %v813_v1 = vrot.slane %v5156_v19, 4 }
  0xdd   : > { %v2785_v28 = vpop.f32.mrf.mxu2 }
  0xde   : > { %v676_v20 = vpop.f32.mrf.mxu0  ;;  %v5219_v29 = vadd.f32 %v4519_v27, %v2785_v28 }
  0xdf   : > { %v5162_v21 = vadd.f32 %v4518_v17, %v676_v20 }
  0xe0   : > { %v713_v30 = vpop.f32.mrf.mxu1 }
  0xe1   : > { %788 = vrot.lane.b32.xlu1 %v5162_v21, %s4874_s12  ;;  %740 = vrot.lane.b32.xlu2 %v5162_v21, %s4875_s14  ;;  %v5246_v35 = vadd.f32 %v4520_v32, %v713_v30  ;;  %v925_v48 = vrot.slane %v5162_v21, 4 }
  0xe2   : > { %750 = vrot.lane.b32.xlu0 %v5156_v19, %s4876_s20 }
  0xe6   : > { %v679_v22 = vpop.f32.mrf.mxu0 }
  0xe7   : > { %v5176_v23 = vadd.f32 %v4518_v17, %v679_v22 }
  0xe8   : > { %v716_v31 = vpop.f32.mrf.mxu1 }
  0xe9   : > { %764 = vrot.lane.b32.xlu1 %v5162_v21, %s4877_s24  ;;  %752 = vrot.lane.b32.xlu2 %v5162_v21, %s4876_s20  ;;  %v5236_v33 = vadd.f32 %v4520_v32, %v716_v31  ;;  %v1037_v3 = vrot.slane %v5176_v23, 4 }
  0xea   : > { %726 = vrot.lane.b32.xlu0 %v5156_v19, %s4878_s11 }
  0xee   : > { %v682_v24 = vpop.f32.mrf.mxu0 }
  0xef   : > { %v5196_v25 = vadd.f32 %v4518_v17, %v682_v24 }
  0xf0   : > { %v719_v55 = vpop.f32.mrf.mxu1 }
  0xf1   : > { %776 = vrot.lane.b32.xlu1 %v5162_v21, %s4879_s25  ;;  %728 = vrot.lane.b32.xlu2 %v5162_v21, %s4878_s11  ;;  %v5289_v63 = vadd.f32 %v4520_v32, %v719_v55  ;;  %v1149_v7 = vrot.slane %v5196_v25, 4 }
  0xf2   : > { %790 = vrot.lane.b32.xlu0 %v5176_v23, %s4874_s12 }
  0xf9   : > { %754 = vrot.lane.b32.xlu1 %v5176_v23, %s4876_s20  ;;  %800 = vrot.lane.b32.xlu2 %v5162_v21, %s4880_s2 }
  0xfa   : > { %766 = vrot.lane.b32.xlu0 %v5176_v23, %s4877_s24 }
 0x101   : > { %730 = vrot.lane.b32.xlu1 %v5176_v23, %s4878_s11  ;;  %742 = vrot.lane.b32.xlu2 %v5176_v23, %s4875_s14 }
 0x102   : > { %778 = vrot.lane.b32.xlu0 %v5176_v23, %s4879_s25 }
 0x109   : > { %802 = vrot.lane.b32.xlu1 %v5176_v23, %s4880_s2  ;;  %768 = vrot.lane.b32.xlu2 %v5196_v25, %s4877_s24 }
 0x10a   : > { %744 = vrot.lane.b32.xlu0 %v5196_v25, %s4875_s14 }
 0x111   : > { %792 = vrot.lane.b32.xlu1 %v5196_v25, %s4874_s12  ;;  %780 = vrot.lane.b32.xlu2 %v5196_v25, %s4879_s25 }
 0x112   : > { %756 = vrot.lane.b32.xlu0 %v5196_v25, %s4876_s20 }
 0x119   : > { %732 = vrot.lane.b32.xlu1 %v5196_v25, %s4878_s11  ;;  %798 = vrot.lane.b32.xlu2 %v5156_v19, %s4880_s2 }
 0x11a   : > { %804 = vrot.lane.b32.xlu0 %v5196_v25, %s4880_s2 }
 0x121   : > { %762 = vrot.lane.b32.xlu1 %v5156_v19, %s4877_s24  ;;  %2795 = vrot.lane.b32.xlu2 %v5219_v29, %s4876_s20 }
 0x122   : > { %774 = vrot.lane.b32.xlu0 %v5156_v19, %s4879_s25 }
 0x129   : > { %2792 = vrot.lane.b32.xlu1 %v5219_v29, %s4875_s14  ;;  %2798 = vrot.lane.b32.xlu2 %v5219_v29, %s4877_s24 }
 0x12a   : > { %2804 = vrot.lane.b32.xlu0 %v5219_v29, %s4874_s12 }
 0x131   : > { %2789 = vrot.lane.b32.xlu1 %v5219_v29, %s4878_s11  ;;  %1772 = vrot.lane.b32.xlu2 %v5236_v33, %s4876_s20 }
 0x132   : > { %2807 = vrot.lane.b32.xlu0 %v5219_v29, %s4880_s2 }
 0x133   : > { %v5244_v34 = vpop.permute.xlu2 %786 }
 0x134   : > { %v835_v14 = vrot.slane %v5244_v34, 4 }
 0x139   : > { %2801 = vrot.lane.b32.xlu1 %v5219_v29, %s4879_s25  ;;  %1770 = vrot.lane.b32.xlu2 %v5246_v35, %s4876_s20 }
 0x13a   : > { %1758 = vrot.lane.b32.xlu0 %v5246_v35, %s4875_s14 }
 0x13b   : > { %v741_v36 = vpop.permute.xlu2 %740 }
 0x13c   : > { %v923_v41 = vrot.slane %v741_v36, 4  ;;  %v926_v56 = vsel %vm811_vm1, %v741_v36, %v925_v48 }
 0x13d   : > { %v934_v0 = vperm.slane %v926_v56, %v5276_v47 }
 0x13e   : > { %v924_v45 = vsel %vm811_vm1, %v923_v41, %v5162_v21 }
 0x13f   : > { %v930_v57 = vperm.slane %v924_v45, %v5276_v47  ;;  %v985_v15 = vrot.slane %v934_v0, 4 }
 0x141   : > { %1760 = vrot.lane.b32.xlu1 %v5236_v33, %s4875_s14  ;;  %1806 = vrot.lane.b32.xlu2 %v5246_v35, %s4874_s12  ;;  %v973_v2 = vrot.slane %v930_v57, 4 }
 0x142   : > { %1808 = vrot.lane.b32.xlu0 %v5236_v33, %s4874_s12 }
 0x143   : > { %v753_v37 = vpop.permute.xlu2 %752 }
 0x144   : > { %v935_v46 = vrot.slane %v753_v37, 4 }
 0x149   : > { %1748 = vrot.lane.b32.xlu1 %v5236_v33, %s4878_s11  ;;  %1768 = vrot.lane.b32.xlu2 %v5260_v38, %s4876_s20 }
 0x14a   : > { %1756 = vrot.lane.b32.xlu0 %v5260_v38, %s4875_s14 }
 0x14b   : > { %v729_v39 = vpop.permute.xlu2 %728  ;;  %v739_v40 = vpop.permute.xlu0 %738 }
 0x14c   : > { %v937_v44 = vrot.slane %v729_v39, 4  ;;  %v810_v49 = vrot.slane %v739_v40, 4  ;;  %v936_v52 = vsel %vm811_vm1, %v935_v46, %v729_v39  ;;  %v814_v5 = vsel %vm811_vm1, %v739_v40, %v813_v1 }
 0x14d   : > { %v942_v60 = vperm.slane %v936_v52, %v5276_v47  ;;  %v2813_v1 = vrot.slane %v5219_v29, 4 }
 0x14e   : > { %v938_v53 = vsel %vm811_vm1, %v753_v37, %v937_v44  ;;  %v812_v62 = vsel %vm811_vm1, %v810_v49, %v5156_v19  ;;  %v822_v19 = vperm.slane %v814_v5, %v5276_v47 }
 0x14f   : > { %v946_v61 = vperm.slane %v938_v53, %v5276_v47  ;;  %v818_v6 = vperm.slane %v812_v62, %v5276_v47  ;;  %v971_v8 = vrot.slane %v942_v60, 4  ;;  %v974_v9 = vsel %vm811_vm1, %v942_v60, %v973_v2 }
 0x150   : > { %v5310_v24 = vperm.slane %v974_v9, %v5298_v4  ;;  %v873_v42 = vrot.slane %v822_v19, 4 }
 0x151   : > { %1784 = vrot.lane.b32.xlu1 %v5236_v33, %s4877_s24  ;;  %1804 = vrot.lane.b32.xlu2 %v5260_v38, %s4874_s12  ;;  %v983_v10 = vrot.slane %v946_v61, 4  ;;  %v861_v26 = vrot.slane %v818_v6, 4  ;;  %v972_v30 = vsel %vm811_vm1, %v971_v8, %v930_v57  ;;  %v986_v32 = vsel %vm811_vm1, %v946_v61, %v985_v15 }
 0x152   : > { %1746 = vrot.lane.b32.xlu0 %v5246_v35, %s4878_s11  ;;  %v978_v46 = vperm.slane %v972_v30, %v5298_v4  ;;  %v994_v48 = vperm.slane %v986_v32, %v5298_v4 }
 0x153   : > { %v789_v50 = vpop.permute.xlu1 %788  ;;  %v5279_v51 = vpop.permute.xlu2 %800  ;;  %v984_v31 = vsel %vm811_vm1, %v983_v10, %v934_v0 }
 0x154   : > { %v751_v54 = vpop.permute.xlu0 %750  ;;  %v947_v16 = vrot.slane %v789_v50, 4  ;;  %v959_v49 = vrot.slane %v5279_v51, 4  ;;  %v1021_v2 = vrot.slane %v978_v46, 4  ;;  %v1033_v5 = vrot.slane %v994_v48, 4 }
 0x155   : > { %v823_v11 = vrot.slane %v751_v54, 4 }
 0x159   : > { %1820 = vrot.lane.b32.xlu1 %v5236_v33, %s4880_s2  ;;  %1774 = vrot.lane.b32.xlu2 %v5289_v63, %s4876_s20  ;;  %s6766_s20 = sld [smem:[#allocation36_spill]] }
 0x15a   : > { %1796 = vrot.lane.b32.xlu0 %v5236_v33, %s4879_s25 }
 0x15b   : > { %v765_v12 = vpop.permute.xlu1 %764  ;;  %v743_v13 = vpop.permute.xlu2 %742 }
 0x15c   : > { %v949_v17 = vrot.slane %v765_v12, 4  ;;  %v727_v18 = vpop.permute.xlu0 %726  ;;  %v1035_v20 = vrot.slane %v743_v13, 4  ;;  %v948_v27 = vsel %vm811_vm1, %v947_v16, %v765_v12  ;;  %v1038_v36 = vsel %vm811_vm1, %v743_v13, %v1037_v3 }
 0x15d   : > { %v824_v21 = vsel %vm811_vm1, %v823_v11, %v727_v18  ;;  %v825_v22 = vrot.slane %v727_v18, 4  ;;  %v954_v43 = vperm.slane %v948_v27, %v5276_v47  ;;  %v5344_v57 = vperm.slane %v1038_v36, %v5276_v47 }
 0x15e   : > { %v830_v28 = vperm.slane %v824_v21, %v5276_v47  ;;  %v950_v37 = vsel %vm811_vm1, %v789_v50, %v949_v17  ;;  %v1036_v44 = vsel %vm811_vm1, %v1035_v20, %v5176_v23  ;;  %v990_v23 = vperm.slane %v984_v31, %v5298_v4 }
 0x15f   : > { %v826_v39 = vsel %vm811_vm1, %v751_v54, %v825_v22  ;;  %v958_v52 = vperm.slane %v950_v37, %v5276_v47  ;;  %v5341_v56 = vperm.slane %v1036_v44, %v5276_v47  ;;  %v997_v61 = vrot.slane %v954_v43, 4 }
 0x160   : > { %v859_v40 = vrot.slane %v830_v28, 4  ;;  %v862_v41 = vsel %vm811_vm1, %v830_v28, %v861_v26  ;;  %v834_v45 = vperm.slane %v826_v39, %v5276_v47  ;;  %v1025_v3 = vrot.slane %v5310_v24, 4 }
 0x161   : > { %1782 = vrot.lane.b32.xlu1 %v5246_v35, %s4877_s24  ;;  %1822 = vrot.lane.b32.xlu2 %v5289_v63, %s4880_s2  ;;  %v1009_v8 = vrot.slane %v958_v52, 4  ;;  %v1029_v12 = vrot.slane %v990_v23, 4  ;;  %v1085_v13 = vrot.slane %v5341_v56, 4  ;;  %v1097_v15 = vrot.slane %v5344_v57, 4 }
 0x162   : > { %v860_v50 = vsel %vm811_vm1, %v859_v40, %v818_v6  ;;  %1762 = vrot.lane.b32.xlu0 %v5289_v63, %s4875_s14  ;;  %v871_v53 = vrot.slane %v834_v45, 4  ;;  %v5338_v54 = vsel %vm811_vm1, %v834_v45, %v873_v42  ;;  %v5363_v17 = vperm.slane %v862_v41, %v5298_v4 }
 0x163   : > { %v777_v55 = vpop.permute.xlu1 %776  ;;  %v5377_v27 = vperm.slane %v860_v50, %v5298_v4 }
 0x164   : > { %v960_v58 = vsel %vm811_vm1, %v959_v49, %v777_v55  ;;  %v961_v59 = vrot.slane %v777_v55, 4  ;;  %v5347_v60 = vpop.permute.xlu0 %790  ;;  %v5350_v62 = vsel %vm811_vm1, %v871_v53, %v822_v19 }
 0x165   : > { %v966_v0 = vperm.slane %v960_v58, %v5276_v47  ;;  %v1059_v31 = vrot.slane %v5347_v60, 4 }
 0x166   : > { %v962_v6 = vsel %vm811_vm1, %v5279_v51, %v961_v59 }
 0x167   : > { %v970_v9 = vperm.slane %v962_v6, %v5276_v47  ;;  %v995_v10 = vrot.slane %v966_v0, 4  ;;  %v998_v11 = vsel %vm811_vm1, %v966_v0, %v997_v61 }
 0x168   : > { %v1006_v16 = vperm.slane %v998_v11, %v5298_v4 }
 0x169   : > { %v996_v18 = vsel %vm811_vm1, %v995_v10, %v954_v43  ;;  %v1007_v19 = vrot.slane %v970_v9, 4  ;;  %v1010_v51 = vsel %vm811_vm1, %v970_v9, %v1009_v8  ;;  %1750 = vrot.lane.b32.xlu1 %v5289_v63, %s4878_s11  ;;  %1780 = vrot.lane.b32.xlu2 %v5260_v38, %s4877_s24 }
 0x16a   : > { %v1002_v20 = vperm.slane %v996_v18, %v5298_v4  ;;  %v1018_v21 = vperm.slane %v1010_v51, %v5298_v4  ;;  %v1023_v22 = vrot.slane %v1006_v16, 4  ;;  %v1026_v26 = vsel %vm811_vm1, %v1006_v16, %v1025_v3  ;;  %1810 = vrot.lane.b32.xlu0 %v5289_v63, %s4874_s12  ;;  %s4124_s12 = scalar_lea.sflag [#allocation6], %s5109_s4 }
 0x16b   : > { %v1008_v28 = vsel %vm811_vm1, %v1007_v19, %v958_v52  ;;  %v1383_v30 = vrot.slane %v1026_v26, 4  ;;  %v5381_v32 = vpop.permute.xlu1 %754 }
 0x16c   : > { %v1014_v36 = vperm.slane %v1008_v28, %v5298_v4  ;;  %v1019_v37 = vrot.slane %v1002_v20, 4  ;;  %v1022_v39 = vsel %vm811_vm1, %v1002_v20, %v1021_v2  ;;  %v1024_v40 = vsel %vm811_vm1, %v1023_v22, %v5310_v24  ;;  %v5387_v41 = vpop.permute.xlu0 %766 }
 0x16d   : > { %v1031_v42 = vrot.slane %v1018_v21, 4  ;;  %v1034_v43 = vsel %vm811_vm1, %v1018_v21, %v1033_v5  ;;  %v1371_v44 = vrot.slane %v1024_v40, 4  ;;  %v1384_v45 = vsel %vm811_vm1, %v1383_v30, %v1022_v39 }
 0x16e   : > { %v1020_v49 = vsel %vm811_vm1, %v1019_v37, %v978_v46  ;;  %v1027_v50 = vrot.slane %v1014_v36, 4  ;;  %v1030_v52 = vsel %vm811_vm1, %v1014_v36, %v1029_v12  ;;  %v1385_v53 = vrot.slane %v1022_v39, 4 }
 0x16f   : > { %v1032_v55 = vsel %vm811_vm1, %v1031_v42, %v994_v48  ;;  %v1372_v58 = vsel %vm811_vm1, %v1371_v44, %v1020_v49  ;;  %v1373_v59 = vrot.slane %v1020_v49, 4  ;;  %v1390_v24 = vperm.slane %v1384_v45, %v5276_v47 }
 0x170   : > { %v1028_v61 = vsel %vm811_vm1, %v1027_v50, %v990_v23  ;;  %v1378_v0 = vperm.slane %v1372_v58, %v5276_v47  ;;  %v1386_v2 = vsel %vm811_vm1, %v1026_v26, %v1385_v53  ;;  %v1395_v3 = vrot.slane %v1032_v55, 4 }
 0x171   : > { %v1374_v46 = vsel %vm811_vm1, %v1024_v40, %v1373_v59  ;;  %v1394_v5 = vperm.slane %v1386_v2, %v5276_v47  ;;  %v1397_v6 = vrot.slane %v1028_v61, 4  ;;  %v1407_v8 = vrot.slane %v1034_v43, 4  ;;  %1786 = vrot.lane.b32.xlu1 %v5289_v63, %s4877_s24 }
 0x172   : > { %v1382_v48 = vperm.slane %v1374_v46, %v5276_v47  ;;  %v1396_v9 = vsel %vm811_vm1, %v1395_v3, %v1028_v61  ;;  %v1409_v23 = vrot.slane %v1030_v52, 4  ;;  %v1419_v10 = vrot.slane %v1390_v24, 4  ;;  %1798 = vrot.lane.b32.xlu0 %v5289_v63, %s4879_s25 }
 0x173   : > { %v1398_v11 = vsel %vm811_vm1, %v1032_v55, %v1397_v6  ;;  %v1402_v12 = vperm.slane %v1396_v9, %v5276_v47  ;;  %v1408_v16 = vsel %vm811_vm1, %v1407_v8, %v1030_v52  ;;  %v1421_v18 = vrot.slane %v1378_v0, 4  ;;  %v5414_v22 = vpop.permute.xlu1 %730 }
 0x174   : > { %v1406_v19 = vperm.slane %v1398_v11, %v5276_v47  ;;  %v1410_v51 = vsel %vm811_vm1, %v1034_v43, %v1409_v23  ;;  %v1414_v20 = vperm.slane %v1408_v16, %v5276_v47  ;;  %v1420_v21 = vsel %vm811_vm1, %v1419_v10, %v1378_v0  ;;  %v5416_v26 = vpop.permute.xlu0 %778 }
 0x175   : > { %v1418_v28 = vperm.slane %v1410_v51, %v5276_v47  ;;  %v1422_v30 = vsel %vm811_vm1, %v1390_v24, %v1421_v18  ;;  %v1426_v36 = vperm.slane %v1420_v21, %v5298_v4  ;;  %v1431_v37 = vrot.slane %v1394_v5, 4 }
 0x176   : > { %v1430_v39 = vperm.slane %v1422_v30, %v5298_v4  ;;  %v1433_v40 = vrot.slane %v1382_v48, 4  ;;  %v1443_v42 = vrot.slane %v1414_v20, 4  ;;  %v1445_v43 = vrot.slane %v1402_v12, 4 }
 0x177   : > { %v1432_v44 = vsel %vm811_vm1, %v1431_v37, %v1382_v48  ;;  %v1455_v45 = vrot.slane %v1418_v28, 4  ;;  %v1457_v49 = vrot.slane %v1406_v19, 4  ;;  %v1469_v50 = vrot.slane %v1426_v36, 4 }
 0x178   : > { %v1434_v52 = vsel %vm811_vm1, %v1394_v5, %v1433_v40  ;;  %v1438_v53 = vperm.slane %v1432_v44, %v5298_v4  ;;  %v1444_v55 = vsel %vm811_vm1, %v1443_v42, %v1402_v12  ;;  %v1446_v58 = vsel %vm811_vm1, %v1414_v20, %v1445_v43 }
 0x179   : > { %v1442_v59 = vperm.slane %v1434_v52, %v5298_v4  ;;  %v1450_v24 = vperm.slane %v1444_v55, %v5298_v4  ;;  %v1454_v61 = vperm.slane %v1446_v58, %v5298_v4  ;;  %v1456_v0 = vsel %vm811_vm1, %v1455_v45, %v1406_v19  ;;  %1818 = vrot.lane.b32.xlu1 %v5246_v35, %s4880_s2 }
 0x17a   : > { %v1458_v2 = vsel %vm811_vm1, %v1418_v28, %v1457_v49  ;;  %v1462_v3 = vperm.slane %v1456_v0, %v5298_v4  ;;  %v1473_v46 = vrot.slane %v1430_v39, 4  ;;  %v1477_v5 = vrot.slane %v1438_v53, 4  ;;  %1744 = vrot.lane.b32.xlu0 %v5260_v38, %s4878_s11 }
 0x17b   : > { %v1466_v6 = vperm.slane %v1458_v2, %v5298_v4  ;;  %v1467_v8 = vrot.slane %v1450_v24, 4  ;;  %v1470_v48 = vsel %vm811_vm1, %v1450_v24, %v1469_v50  ;;  %v1471_v9 = vrot.slane %v1454_v61, 4 }
 0x17c   : > { %v913_v23 = vrot.slane %v5363_v17, 4  ;;  %v1474_v10 = vsel %vm811_vm1, %v1454_v61, %v1473_v46  ;;  %v1475_v11 = vrot.slane %v1462_v3, 4  ;;  %v1481_v12 = vrot.slane %v1442_v59, 4  ;;  %1713 = vst.msk [vmem:[#allocation2 + $0x28] sm:$0xff] %vm1707_vm2, %v1470_v48  ;;  %v745_v37 = vpop.permute.xlu0 %744 }
 0x17d   : > { %v1468_v16 = vsel %vm811_vm1, %v1467_v8, %v1426_v36  ;;  %v1472_v18 = vsel %vm811_vm1, %v1471_v9, %v1430_v39  ;;  %v1479_v19 = vrot.slane %v1466_v6, 4  ;;  %1721 = vst.msk [vmem:[#allocation2 + $0x68] sm:$0xff] %vm1707_vm2, %v1474_v10  ;;  %v1047_v51 = vrot.slane %v5381_v32, 4  ;;  %v803_v36 = vpop.permute.xlu1 %802 }
 0x17e   : > { %v5448_v20 = vperm.slane %v5338_v54, %v5298_v4  ;;  %v1476_v21 = vsel %vm811_vm1, %v1475_v11, %v1438_v53  ;;  %v1478_v28 = vsel %vm811_vm1, %v1462_v3, %v1477_v5  ;;  %1709 = vst.msk [vmem:[#allocation2 + $0x8] sm:$0xff] %vm1707_vm2, %v1468_v16  ;;  %v1060_v30 = vsel %vm811_vm1, %v1059_v31, %v5387_v41 }
 0x17f   : > { %v1480_v39 = vsel %vm811_vm1, %v1479_v19, %v1442_v59  ;;  %1717 = vst.msk [vmem:[#allocation2 + $0x48] sm:$0xff] %vm1707_vm2, %v1472_v18  ;;  %v1061_v54 = vrot.slane %v5387_v41, 4  ;;  %v1066_v40 = vperm.slane %v1060_v30, %v5276_v47  ;;  %v1048_v42 = vsel %vm811_vm1, %v1047_v51, %v5414_v22 }
 0x180   : > { %v1482_v43 = vsel %vm811_vm1, %v1466_v6, %v1481_v12  ;;  %1725 = vst.msk [vmem:[#allocation2 + $0x88] sm:$0xff] %vm1707_vm2, %v1476_v21  ;;  %v1049_v44 = vrot.slane %v5414_v22, 4  ;;  %v1054_v31 = vperm.slane %v1048_v42, %v5276_v47  ;;  %v1073_v45 = vrot.slane %v5416_v26, 4 }
 0x181   : > { %1729 = vst.msk [vmem:[#allocation2 + $0xa8] sm:$0xff] %vm1707_vm2, %v1478_v28  ;;  %v1062_v41 = vsel %vm811_vm1, %v5347_v60, %v1061_v54  ;;  %v1109_v49 = vrot.slane %v1066_v40, 4  ;;  %v1071_v50 = vrot.slane %v803_v36, 4  ;;  %v1147_v52 = vrot.slane %v745_v37, 4 }
 0x182   : > { %1733 = vst.msk [vmem:[#allocation2 + $0xc8] sm:$0xff] %vm1707_vm2, %v1480_v39  ;;  %v1070_v53 = vperm.slane %v1062_v41, %v5276_v47  ;;  %v1050_v55 = vsel %vm811_vm1, %v5381_v32, %v1049_v44  ;;  %v1083_v22 = vrot.slane %v1054_v31, 4  ;;  %v1086_v58 = vsel %vm811_vm1, %v1054_v31, %v1085_v13  ;;  %v5488_v13 = vpop.permute.xlu2 %768 }
 0x183   : > { %1737 = vst.msk [vmem:[#allocation2 + $0xe8] sm:$0xff] %vm1707_vm2, %v1482_v43  ;;  %v1058_v59 = vperm.slane %v1050_v55, %v5276_v47  ;;  %v1094_v60 = vperm.slane %v1086_v58, %v5298_v4  ;;  %v1072_v24 = vsel %vm811_vm1, %v1071_v50, %v5416_v26  ;;  %v1074_v61 = vsel %vm811_vm1, %v803_v36, %v1073_v45 }
 0x184   : > { %v1121_v0 = vrot.slane %v1070_v53, 4  ;;  %v1084_v32 = vsel %vm811_vm1, %v1083_v22, %v5341_v56  ;;  %v1078_v2 = vperm.slane %v1072_v24, %v5276_v47  ;;  %v1082_v3 = vperm.slane %v1074_v61, %v5276_v47 }
 0x185   : > { %v1090_v46 = vperm.slane %v1084_v32, %v5298_v4  ;;  %v1095_v5 = vrot.slane %v1058_v59, 4  ;;  %v1098_v6 = vsel %vm811_vm1, %v1058_v59, %v1097_v15  ;;  %v1137_v26 = vrot.slane %v1094_v60, 4 }
 0x186   : > { %v1106_v8 = vperm.slane %v1098_v6, %v5298_v4  ;;  %v1107_v48 = vrot.slane %v1078_v2, 4  ;;  %v1110_v9 = vsel %vm811_vm1, %v1078_v2, %v1109_v49  ;;  %v1119_v56 = vrot.slane %v1082_v3, 4 }
 0x187   : > { %v1096_v10 = vsel %vm811_vm1, %v1095_v5, %v5344_v57  ;;  %v1133_v11 = vrot.slane %v1090_v46, 4  ;;  %v1118_v12 = vperm.slane %v1110_v9, %v5298_v4  ;;  %v1122_v16 = vsel %vm811_vm1, %v1082_v3, %v1121_v0 }
 0x188   : > { %v1102_v18 = vperm.slane %v1096_v10, %v5298_v4  ;;  %v1145_v19 = vrot.slane %v1106_v8, 4  ;;  %v1108_v15 = vsel %vm811_vm1, %v1107_v48, %v1066_v40  ;;  %v1120_v51 = vsel %vm811_vm1, %v1119_v56, %v1070_v53  ;;  %v5520_v53 = vpop.permute.xlu1 %792 }
 0x189   : > { %v1114_v21 = vperm.slane %v1108_v15, %v5298_v4  ;;  %v1126_v28 = vperm.slane %v1120_v51, %v5298_v4  ;;  %v1130_v30 = vperm.slane %v1122_v16, %v5298_v4  ;;  %v1135_v36 = vrot.slane %v1118_v12, 4  ;;  %v5540_v15 = vpop.permute.xlu0 %756 }
 0x18a   : > { %v1141_v57 = vrot.slane %v1102_v18, 4  ;;  %v1138_v39 = vsel %vm811_vm1, %v1118_v12, %v1137_v26  ;;  %v5509_v54 = vsel %vm811_vm1, %v1147_v52, %v5196_v25  ;;  %v5514_v40 = vsel %vm811_vm1, %v745_v37, %v1149_v7 }
 0x18b   : > { %v1131_v42 = vrot.slane %v1114_v21, 4  ;;  %v1134_v43 = vsel %vm811_vm1, %v1114_v21, %v1133_v11  ;;  %v1136_v44 = vsel %vm811_vm1, %v1135_v36, %v1094_v60  ;;  %v1139_v31 = vrot.slane %v1126_v28, 4  ;;  %v5526_v60 = vpop.permute.xlu2 %780 }
 0x18c   : > { %v1142_v45 = vsel %vm811_vm1, %v1126_v28, %v1141_v57  ;;  %v1143_v41 = vrot.slane %v1130_v30, 4  ;;  %v1146_v49 = vsel %vm811_vm1, %v1130_v30, %v1145_v19  ;;  %v1483_v50 = vrot.slane %v1136_v44, 4 }
 0x18d   : > { %v1132_v52 = vsel %vm811_vm1, %v1131_v42, %v1090_v46  ;;  %v1140_v25 = vsel %vm811_vm1, %v1139_v31, %v1102_v18  ;;  %v1495_v7 = vrot.slane %v1138_v39, 4  ;;  %v1497_v37 = vrot.slane %v1134_v43, 4 }
 0x18e   : > { %v1144_v55 = vsel %vm811_vm1, %v1143_v41, %v1106_v8  ;;  %v1484_v22 = vsel %vm811_vm1, %v1483_v50, %v1132_v52  ;;  %v1485_v58 = vrot.slane %v1132_v52, 4  ;;  %v1509_v59 = vrot.slane %v1140_v25, 4 }
 0x18f   : > { %v1490_v24 = vperm.slane %v1484_v22, %v5276_v47  ;;  %v1496_v61 = vsel %vm811_vm1, %v1495_v7, %v1134_v43  ;;  %v1498_v0 = vsel %vm811_vm1, %v1138_v39, %v1497_v37  ;;  %v1507_v32 = vrot.slane %v1144_v55, 4 }
 0x190   : > { %v1486_v2 = vsel %vm811_vm1, %v1136_v44, %v1485_v58  ;;  %v1502_v3 = vperm.slane %v1496_v61, %v5276_v47  ;;  %v1506_v46 = vperm.slane %v1498_v0, %v5276_v47  ;;  %v1510_v5 = vsel %vm811_vm1, %v1144_v55, %v1509_v59  ;;  %v733_v41 = vpop.permute.xlu1 %732 }
 0x191   : > { %v1494_v6 = vperm.slane %v1486_v2, %v5276_v47  ;;  %v1508_v26 = vsel %vm811_vm1, %v1507_v32, %v1140_v25  ;;  %v1518_v8 = vperm.slane %v1510_v5, %v5276_v47  ;;  %v1519_v48 = vrot.slane %v1146_v49, 4 }
 0x192   : > { %v1514_v9 = vperm.slane %v1508_v26, %v5276_v47  ;;  %v1521_v56 = vrot.slane %v1142_v45, 4  ;;  %v1531_v10 = vrot.slane %v1502_v3, 4  ;;  %v1533_v11 = vrot.slane %v1490_v24, 4 }
 0x193   : > { %v1520_v12 = vsel %vm811_vm1, %v1519_v48, %v1142_v45  ;;  %v1543_v16 = vrot.slane %v1506_v46, 4  ;;  %v1545_v18 = vrot.slane %v1494_v6, 4  ;;  %v1569_v19 = vrot.slane %v1518_v8, 4  ;;  %v5557_v58 = vpop.permute.xlu2 %798 }
 0x194   : > { %v1522_v51 = vsel %vm811_vm1, %v1146_v49, %v1521_v56  ;;  %v1526_v21 = vperm.slane %v1520_v12, %v5276_v47  ;;  %v1532_v28 = vsel %vm811_vm1, %v1531_v10, %v1490_v24  ;;  %v1534_v30 = vsel %vm811_vm1, %v1502_v3, %v1533_v11 }
 0x195   : > { %v1530_v36 = vperm.slane %v1522_v51, %v5276_v47  ;;  %v1538_v57 = vperm.slane %v1532_v28, %v5298_v4  ;;  %v1542_v39 = vperm.slane %v1534_v30, %v5298_v4  ;;  %v1544_v42 = vsel %vm811_vm1, %v1543_v16, %v1494_v6 }
 0x196   : > { %v1546_v43 = vsel %vm811_vm1, %v1506_v46, %v1545_v18  ;;  %v1550_v44 = vperm.slane %v1544_v42, %v5298_v4  ;;  %v1555_v31 = vrot.slane %v1526_v21, 4  ;;  %v1557_v45 = vrot.slane %v1514_v9, 4  ;;  %v805_v18 = vpop.permute.xlu0 %804 }
 0x197   : > { %v1554_v49 = vperm.slane %v1546_v43, %v5298_v4  ;;  %v1567_v50 = vrot.slane %v1530_v36, 4  ;;  %v1570_v52 = vsel %vm811_vm1, %v1530_v36, %v1569_v19  ;;  %v1581_v25 = vrot.slane %v1538_v57, 4 }
 0x198   : > { %v1556_v7 = vsel %vm811_vm1, %v1555_v31, %v1514_v9  ;;  %v1558_v37 = vsel %vm811_vm1, %v1526_v21, %v1557_v45  ;;  %v1578_v55 = vperm.slane %v1570_v52, %v5298_v4  ;;  %v1585_v22 = vrot.slane %v1542_v39, 4  ;;  %v5591_v45 = vpop.permute.xlu1 %762 }
 0x199   : > { %v1562_v59 = vperm.slane %v1556_v7, %v5298_v4  ;;  %v1566_v24 = vperm.slane %v1558_v37, %v5298_v4  ;;  %v1568_v61 = vsel %vm811_vm1, %v1567_v50, %v1518_v8  ;;  %v1589_v0 = vrot.slane %v1550_v44, 4 }
 0x19a   : > { %v1574_v32 = vperm.slane %v1568_v61, %v5298_v4  ;;  %v1591_v2 = vrot.slane %v1578_v55, 4  ;;  %v1593_v3 = vrot.slane %v1554_v49, 4  ;;  %v1154_v46 = vperm.slane %v5509_v54, %v5276_v47 }
 0x19b   : > { %v1579_v5 = vrot.slane %v1562_v59, 4  ;;  %v1582_v6 = vsel %vm811_vm1, %v1562_v59, %v1581_v25  ;;  %v1583_v26 = vrot.slane %v1566_v24, 4  ;;  %v1586_v48 = vsel %vm811_vm1, %v1566_v24, %v1585_v22 }
 0x19c   : > { %v1173_v9 = vrot.slane %v5488_v13, 4  ;;  %v1185_v56 = vrot.slane %v5526_v60, 4  ;;  %v847_v8 = vrot.slane %v5557_v58, 4  ;;  %v1587_v10 = vrot.slane %v1574_v32, 4  ;;  %1714 = vst.msk [vmem:[#allocation2 + $0x30] sm:$0xff] %vm1707_vm2, %v1582_v6 }
 0x19d   : > { %v1584_v11 = vsel %vm811_vm1, %v1583_v26, %v1542_v39  ;;  %v1590_v12 = vsel %vm811_vm1, %v1574_v32, %v1589_v0  ;;  %v1592_v54 = vsel %vm811_vm1, %v1591_v2, %v1554_v49  ;;  %1722 = vst.msk [vmem:[#allocation2 + $0x70] sm:$0xff] %vm1707_vm2, %v1586_v48  ;;  %v1158_v16 = vperm.slane %v5514_v40, %v5276_v47 }
 0x19e   : > { %v1588_v19 = vsel %vm811_vm1, %v1587_v10, %v1550_v44  ;;  %v1594_v51 = vsel %vm811_vm1, %v1578_v55, %v1593_v3  ;;  %1718 = vst.msk [vmem:[#allocation2 + $0x50] sm:$0xff] %vm1707_vm2, %v1584_v11  ;;  %v1171_v21 = vrot.slane %v5520_v53, 4  ;;  %v1174_v28 = vsel %vm811_vm1, %v5520_v53, %v1173_v9 }
 0x19f   : > { %v1580_v30 = vsel %vm811_vm1, %v1579_v5, %v1538_v57  ;;  %1726 = vst.msk [vmem:[#allocation2 + $0x90] sm:$0xff] %vm1707_vm2, %v1588_v19  ;;  %v1197_v36 = vrot.slane %v1154_v46, 4  ;;  %v1182_v39 = vperm.slane %v1174_v28, %v5276_v47  ;;  %v1159_v40 = vrot.slane %v5540_v15, 4 }
 0x1a0   : > { %1730 = vst.msk [vmem:[#allocation2 + $0xb0] sm:$0xff] %vm1707_vm2, %v1590_v12  ;;  %v1172_v42 = vsel %vm811_vm1, %v1171_v21, %v5488_v13  ;;  %v1161_v43 = vrot.slane %v733_v41, 4  ;;  %v1183_v44 = vrot.slane %v805_v18, 4  ;;  %v1186_v31 = vsel %vm811_vm1, %v805_v18, %v1185_v56 }
 0x1a1   : > { %1734 = vst.msk [vmem:[#allocation2 + $0xd0] sm:$0xff] %vm1707_vm2, %v1592_v54  ;;  %v1209_v53 = vrot.slane %v1158_v16, 4  ;;  %v1178_v57 = vperm.slane %v1172_v42, %v5276_v47  ;;  %v1160_v49 = vsel %vm811_vm1, %v1159_v40, %v733_v41  ;;  %v1194_v50 = vperm.slane %v1186_v31, %v5276_v47 }
 0x1a2   : > { %1738 = vst.msk [vmem:[#allocation2 + $0xf0] sm:$0xff] %vm1707_vm2, %v1594_v51  ;;  %v1233_v52 = vrot.slane %v1182_v39, 4  ;;  %v1162_v13 = vsel %vm811_vm1, %v5540_v15, %v1161_v43  ;;  %v1166_v25 = vperm.slane %v1160_v49, %v5276_v47  ;;  %v1184_v7 = vsel %vm811_vm1, %v1183_v44, %v5526_v60 }
 0x1a3   : > { %1710 = vst.msk [vmem:[#allocation2 + $0x10] sm:$0xff] %vm1707_vm2, %v1580_v30  ;;  %v1170_v37 = vperm.slane %v1162_v13, %v5276_v47  ;;  %v1190_v55 = vperm.slane %v1184_v7, %v5276_v47  ;;  %v1231_v41 = vrot.slane %v1194_v50, 4  ;;  %v5610_v22 = vsel %vm811_vm1, %v835_v14, %v5591_v45 }
 0x1a4   : > { %v1221_v59 = vrot.slane %v1178_v57, 4  ;;  %v1195_v15 = vrot.slane %v1166_v25, 4  ;;  %v1198_v24 = vsel %vm811_vm1, %v1166_v25, %v1197_v36  ;;  %v1234_v61 = vsel %vm811_vm1, %v1194_v50, %v1233_v52 }
 0x1a5   : > { %v1206_v60 = vperm.slane %v1198_v24, %v5298_v4  ;;  %v1207_v0 = vrot.slane %v1170_v37, 4  ;;  %v1210_v32 = vsel %vm811_vm1, %v1170_v37, %v1209_v53  ;;  %v1219_v2 = vrot.slane %v1190_v55, 4 }
 0x1a6   : > { %v1196_v3 = vsel %vm811_vm1, %v1195_v15, %v1154_v46  ;;  %v1218_v5 = vperm.slane %v1210_v32, %v5298_v4  ;;  %v1222_v6 = vsel %vm811_vm1, %v1190_v55, %v1221_v59  ;;  %v1232_v14 = vsel %vm811_vm1, %v1231_v41, %v1182_v39 }
 0x1a7   : > { %v1202_v26 = vperm.slane %v1196_v3, %v5298_v4  ;;  %v1208_v48 = vsel %vm811_vm1, %v1207_v0, %v1158_v16  ;;  %v1249_v9 = vrot.slane %v1206_v60, 4  ;;  %v1220_v56 = vsel %vm811_vm1, %v1219_v2, %v1178_v57 }
 0x1a8   : > { %v1214_v10 = vperm.slane %v1208_v48, %v5298_v4  ;;  %v1257_v11 = vrot.slane %v1218_v5, 4  ;;  %v1226_v12 = vperm.slane %v1220_v56, %v5298_v4  ;;  %v1230_v46 = vperm.slane %v1222_v6, %v5298_v4 }
 0x1a9   : > { %v1245_v54 = vrot.slane %v1202_v26, 4  ;;  %v1238_v18 = vperm.slane %v1232_v14, %v5298_v4  ;;  %v1242_v19 = vperm.slane %v1234_v61, %v5298_v4  ;;  %v837_v51 = vrot.slane %v5591_v45, 4 }
 0x1aa   : > { %v1253_v21 = vrot.slane %v1214_v10, 4  ;;  %v1243_v28 = vrot.slane %v1226_v12, 4  ;;  %v1247_v16 = vrot.slane %v1230_v46, 4  ;;  %v1250_v30 = vsel %vm811_vm1, %v1230_v46, %v1249_v9 }
 0x1ab   : > { %v1246_v36 = vsel %vm811_vm1, %v1226_v12, %v1245_v54  ;;  %v1251_v39 = vrot.slane %v1238_v18, 4  ;;  %v1255_v40 = vrot.slane %v1242_v19, 4  ;;  %v1258_v42 = vsel %vm811_vm1, %v1242_v19, %v1257_v11  ;;  %v5653_v19 = vpop.permute.xlu2 %2795 }
 0x1ac   : > { %v1244_v43 = vsel %vm811_vm1, %v1243_v28, %v1202_v26  ;;  %v1248_v44 = vsel %vm811_vm1, %v1247_v16, %v1206_v60  ;;  %v1254_v31 = vsel %vm811_vm1, %v1238_v18, %v1253_v21  ;;  %v1607_v53 = vrot.slane %v1250_v30, 4 }
 0x1ad   : > { %v1252_v57 = vsel %vm811_vm1, %v1251_v39, %v1214_v10  ;;  %v1256_v49 = vsel %vm811_vm1, %v1255_v40, %v1218_v5  ;;  %v1595_v50 = vrot.slane %v1248_v44, 4  ;;  %v1597_v52 = vrot.slane %v1244_v43, 4 }
 0x1ae   : > { %v1608_v13 = vsel %vm811_vm1, %v1607_v53, %v1246_v36  ;;  %v1609_v25 = vrot.slane %v1246_v36, 4  ;;  %v1619_v7 = vrot.slane %v1256_v49, 4  ;;  %v1621_v37 = vrot.slane %v1252_v57, 4  ;;  %v775_v36 = vpop.permute.xlu0 %774 }
 0x1af   : > { %v1596_v55 = vsel %vm811_vm1, %v1595_v50, %v1244_v43  ;;  %v1598_v41 = vsel %vm811_vm1, %v1248_v44, %v1597_v52  ;;  %v1614_v59 = vperm.slane %v1608_v13, %v5276_v47  ;;  %v1631_v15 = vrot.slane %v1258_v42, 4 }
 0x1b0   : > { %v1602_v24 = vperm.slane %v1596_v55, %v5276_v47  ;;  %v1606_v61 = vperm.slane %v1598_v41, %v5276_v47  ;;  %v1610_v60 = vsel %vm811_vm1, %v1250_v30, %v1609_v25  ;;  %v1620_v0 = vsel %vm811_vm1, %v1619_v7, %v1252_v57 }
 0x1b1   : > { %v1618_v32 = vperm.slane %v1610_v60, %v5276_v47  ;;  %v1622_v2 = vsel %vm811_vm1, %v1256_v49, %v1621_v37  ;;  %v1626_v3 = vperm.slane %v1620_v0, %v5276_v47  ;;  %v1632_v5 = vsel %vm811_vm1, %v1631_v15, %v1254_v31 }
 0x1b2   : > { %v1630_v6 = vperm.slane %v1622_v2, %v5276_v47  ;;  %v1633_v14 = vrot.slane %v1254_v31, 4  ;;  %v1638_v26 = vperm.slane %v1632_v5, %v5276_v47  ;;  %v1643_v48 = vrot.slane %v1614_v59, 4 }
 0x1b3   : > { %v1645_v9 = vrot.slane %v1602_v24, 4  ;;  %v1655_v56 = vrot.slane %v1618_v32, 4  ;;  %v1657_v10 = vrot.slane %v1606_v61, 4  ;;  %v1669_v11 = vrot.slane %v1626_v3, 4 }
 0x1b4   : > { %v1634_v12 = vsel %vm811_vm1, %v1258_v42, %v1633_v14  ;;  %v1644_v46 = vsel %vm811_vm1, %v1643_v48, %v1602_v24  ;;  %v1667_v54 = vrot.slane %v1638_v26, 4  ;;  %v1681_v18 = vrot.slane %v1630_v6, 4 }
 0x1b5   : > { %v1642_v21 = vperm.slane %v1634_v12, %v5276_v47  ;;  %v1646_v28 = vsel %vm811_vm1, %v1614_v59, %v1645_v9  ;;  %v1650_v16 = vperm.slane %v1644_v46, %v5298_v4  ;;  %v1656_v30 = vsel %vm811_vm1, %v1655_v56, %v1606_v61 }
 0x1b6   : > { %v1654_v39 = vperm.slane %v1646_v28, %v5298_v4  ;;  %v1658_v40 = vsel %vm811_vm1, %v1618_v32, %v1657_v10  ;;  %v1662_v42 = vperm.slane %v1656_v30, %v5298_v4  ;;  %v1668_v43 = vsel %vm811_vm1, %v1667_v54, %v1626_v3  ;;  %v5684_v3 = vpop.permute.xlu1 %2792  ;;  %v5700_v10 = vpop.permute.xlu2 %2798 }
 0x1b7   : > { %v1666_v44 = vperm.slane %v1658_v40, %v5298_v4  ;;  %v1670_v31 = vsel %vm811_vm1, %v1638_v26, %v1669_v11  ;;  %v1674_v53 = vperm.slane %v1668_v43, %v5298_v4  ;;  %v1679_v57 = vrot.slane %v1642_v21, 4  ;;  %v5704_v46 = vpop.permute.xlu0 %2804 }
 0x1b8   : > { %v1678_v49 = vperm.slane %v1670_v31, %v5298_v4  ;;  %v1682_v50 = vsel %vm811_vm1, %v1642_v21, %v1681_v18  ;;  %v1693_v52 = vrot.slane %v1650_v16, 4  ;;  %v1697_v13 = vrot.slane %v1654_v39, 4 }
 0x1b9   : > { %v1680_v25 = vsel %vm811_vm1, %v1679_v57, %v1630_v6  ;;  %v1690_v7 = vperm.slane %v1682_v50, %v5298_v4  ;;  %v1701_v37 = vrot.slane %v1662_v42, 4  ;;  %v838_v55 = vsel %vm811_vm1, %v5244_v34, %v837_v51 }
 0x1ba   : > { %v1686_v41 = vperm.slane %v1680_v25, %v5298_v4  ;;  %v1694_v59 = vsel %vm811_vm1, %v1674_v53, %v1693_v52  ;;  %v1695_v15 = vrot.slane %v1678_v49, 4  ;;  %v1698_v24 = vsel %vm811_vm1, %v1678_v49, %v1697_v13 }
 0x1bb   : > { %v1691_v61 = vrot.slane %v1674_v53, 4  ;;  %v1703_v60 = vrot.slane %v1690_v7, 4  ;;  %v1705_v0 = vrot.slane %v1666_v44, 4  ;;  %1715 = vst.msk [vmem:[#allocation2 + $0x38] sm:$0xff] %vm1707_vm2, %v1694_v59  ;;  %v842_v32 = vperm.slane %v5610_v22, %v5276_v47 }
 0x1bc   : > { %v1696_v45 = vsel %vm811_vm1, %v1695_v15, %v1654_v39  ;;  %v1699_v2 = vrot.slane %v1686_v41, 4  ;;  %v1702_v34 = vsel %vm811_vm1, %v1686_v41, %v1701_v37  ;;  %1723 = vst.msk [vmem:[#allocation2 + $0x78] sm:$0xff] %vm1707_vm2, %v1698_v24  ;;  %v846_v51 = vperm.slane %v838_v55, %v5276_v47 }
 0x1bd   : > { %v5688_v5 = vperm.slane %v5350_v62, %v5298_v4  ;;  %v1704_v6 = vsel %vm811_vm1, %v1703_v60, %v1666_v44  ;;  %1719 = vst.msk [vmem:[#allocation2 + $0x58] sm:$0xff] %vm1707_vm2, %v1696_v45  ;;  %v885_v22 = vrot.slane %v842_v32, 4  ;;  %v848_v14 = vsel %vm811_vm1, %v847_v8, %v775_v36  ;;  %v3041_v60 = vld [vmem:[#allocation2 + $0x30] sm:$0xff] }
 0x1be   : > { %v1700_v26 = vsel %vm811_vm1, %v1699_v2, %v1662_v42  ;;  %v1706_v48 = vsel %vm811_vm1, %v1690_v7, %v1705_v0  ;;  %1731 = vst.msk [vmem:[#allocation2 + $0xb8] sm:$0xff] %vm1707_vm2, %v1702_v34  ;;  %v849_v9 = vrot.slane %v775_v36, 4  ;;  %v854_v56 = vperm.slane %v848_v14, %v5276_v47  ;;  %v3049_v14 = vld [vmem:[#allocation2 + $0x70] sm:$0xff] }
 0x1bf   : > { %v909_v62 = vrot.slane %v5377_v27, 4  ;;  %v1692_v11 = vsel %vm811_vm1, %v1691_v61, %v1650_v16  ;;  %1727 = vst.msk [vmem:[#allocation2 + $0x98] sm:$0xff] %vm1707_vm2, %v1700_v26  ;;  %v897_v12 = vrot.slane %v846_v51, 4  ;;  %v2810_v8 = vrot.slane %v5684_v3, 4 }
 0x1c0   : > { %v921_v54 = vrot.slane %v5448_v20, 4  ;;  %1735 = vst.msk [vmem:[#allocation2 + $0xd8] sm:$0xff] %vm1707_vm2, %v1704_v6  ;;  %v850_v18 = vsel %vm811_vm1, %v5557_v58, %v849_v9  ;;  %v883_v21 = vrot.slane %v854_v56, 4  ;;  %v886_v28 = vsel %vm811_vm1, %v854_v56, %v885_v22 }
 0x1c1   : > { %v917_v30 = vrot.slane %v5688_v5, 4  ;;  %1739 = vst.msk [vmem:[#allocation2 + $0xf8] sm:$0xff] %vm1707_vm2, %v1706_v48  ;;  %v858_v16 = vperm.slane %v850_v18, %v5276_v47  ;;  %v894_v36 = vperm.slane %v886_v28, %v5298_v4  ;;  %v2812_v39 = vsel %vm811_vm1, %v2810_v8, %v5219_v29  ;;  %v5760_v8 = vpop.permute.xlu0 %2807  ;;  %v3040_v18 = vld [vmem:[#allocation2 + $0x28] sm:$0xff] }
 0x1c2   : > { %v2823_v40 = vrot.slane %v5653_v19, 4  ;;  %v2837_v42 = vrot.slane %v5700_v10, 4  ;;  %1711 = vst.msk [vmem:[#allocation2 + $0x18] sm:$0xff] %vm1707_vm2, %v1692_v11  ;;  %v884_v58 = vsel %vm811_vm1, %v883_v21, %v842_v32  ;;  %v2835_v43 = vrot.slane %v5704_v46, 4  ;;  %v3042_v44 = vld [vmem:[#allocation2 + $0x38] sm:$0xff]  ;;  %v3053_v21 = vld [vmem:[#allocation2 + $0x90] sm:$0xff] }
 0x1c3   : > { %v890_v31 = vperm.slane %v884_v58, %v5298_v4  ;;  %v895_v53 = vrot.slane %v858_v16, 4  ;;  %v898_v57 = vsel %vm811_vm1, %v858_v16, %v897_v12  ;;  %v911_v49 = vrot.slane %v894_v36, 4  ;;  %4327 = vmatpush.xpose.msk.msrb.mxu2 %vm1707_vm2, %v3042_v44  ;;  %v3050_v7 = vld [vmem:[#allocation2 + $0x78] sm:$0xff]  ;;  %v3048_v44 = vld [vmem:[#allocation2 + $0x68] sm:$0xff] }
 0x1c4   : > { %v906_v50 = vperm.slane %v898_v57, %v5298_v4  ;;  %v914_v52 = vsel %vm811_vm1, %v894_v36, %v913_v23  ;;  %v5732_v13 = vsel %vm811_vm1, %v5704_v46, %v2837_v42  ;;  %v5735_v25 = vperm.slane %v2812_v39, %v5276_v47  ;;  %4337 = vmatpush.xpose.msk.msrb.mxu0 %vm1707_vm2, %v3050_v7 }
 0x1c5   : > { %v896_v37 = vsel %vm811_vm1, %v895_v53, %v846_v51  ;;  %v907_v55 = vrot.slane %v890_v31, 4  ;;  %v910_v41 = vsel %vm811_vm1, %v890_v31, %v909_v62  ;;  %v912_v59 = vsel %vm811_vm1, %v911_v49, %v5363_v17 }
 0x1c6   : > { %v902_v23 = vperm.slane %v896_v37, %v5298_v4  ;;  %v919_v15 = vrot.slane %v906_v50, 4  ;;  %v922_v24 = vsel %vm811_vm1, %v906_v50, %v921_v54  ;;  %v1259_v61 = vrot.slane %v912_v59, 4  ;;  %v3054_v0 = vld [vmem:[#allocation2 + $0x98] sm:$0xff]  ;;  %v5762_v54 = vpop.permute.xlu1 %2789  ;;  %v3037_v50 = vld [vmem:[#allocation2 + $0x10] sm:$0xff] }
 0x1c7   : > { %v908_v32 = vsel %vm811_vm1, %v907_v55, %v5377_v27  ;;  %v1271_v45 = vrot.slane %v914_v52, 4  ;;  %v1273_v2 = vrot.slane %v910_v41, 4  ;;  %v1295_v34 = vrot.slane %v922_v24, 4  ;;  %4328 = vmatpush.xpose.msk.msrb.mxu2 %vm1707_vm2, %v3041_v60  ;;  %4342 = vmatpush.xpose.msk.msrb.mxu1 %vm1707_vm2, %v3054_v0 }
 0x1c8   : > { %v915_v17 = vrot.slane %v902_v23, 4  ;;  %v918_v51 = vsel %vm811_vm1, %v902_v23, %v917_v30  ;;  %v920_v6 = vsel %vm811_vm1, %v919_v15, %v5448_v20  ;;  %v1260_v22 = vsel %vm811_vm1, %v1259_v61, %v908_v32  ;;  %4338 = vmatpush.xpose.msk.msrb.mxu0 %vm1707_vm2, %v3049_v14 }
 0x1c9   : > { %v1261_v26 = vrot.slane %v908_v32, 4  ;;  %v1266_v48 = vperm.slane %v1260_v22, %v5276_v47  ;;  %v1272_v27 = vsel %vm811_vm1, %v1271_v45, %v910_v41  ;;  %v1274_v9 = vsel %vm811_vm1, %v914_v52, %v1273_v2  ;;  %v3038_v56 = vld [vmem:[#allocation2 + $0x18] sm:$0xff]  ;;  %v3052_v41 = vld [vmem:[#allocation2 + $0x88] sm:$0xff] }
 0x1ca   : > { %v916_v62 = vsel %vm811_vm1, %v915_v17, %v5688_v5  ;;  %v1278_v11 = vperm.slane %v1272_v27, %v5276_v47  ;;  %v1282_v20 = vperm.slane %v1274_v9, %v5276_v47  ;;  %v1283_v12 = vrot.slane %v920_v6, 4  ;;  %4322 = vmatpush.xpose.msk.msra.mxu3 %vm1707_vm2, %v3038_v56 }
 0x1cb   : > { %v1262_v28 = vsel %vm811_vm1, %v912_v59, %v1261_v26  ;;  %v1285_v30 = vrot.slane %v916_v62, 4  ;;  %v1296_v16 = vsel %vm811_vm1, %v1295_v34, %v918_v51  ;;  %v1297_v36 = vrot.slane %v918_v51, 4  ;;  %4329 = vmatpush.xpose.msk.msrb.mxu2 %vm1707_vm2, %v3040_v18  ;;  %4343 = vmatpush.xpose.msk.msrb.mxu1 %vm1707_vm2, %v3053_v21  ;;  %v3036_v51 = vld [vmem:[#allocation2 + $0x8] sm:$0xff]  ;;  %v5797_v18 = vpop.permute.xlu0 %1758 }
 0x1cc   : > { %v1270_v5 = vperm.slane %v1262_v28, %v5276_v47  ;;  %v1284_v39 = vsel %vm811_vm1, %v1283_v12, %v916_v62  ;;  %v1302_v42 = vperm.slane %v1296_v16, %v5276_v47  ;;  %v1307_v58 = vrot.slane %v1278_v11, 4  ;;  %4339 = vmatpush.xpose.msk.msrb.mxu0 %vm1707_vm2, %v3048_v44 }
 0x1cd   : > { %v1286_v31 = vsel %vm811_vm1, %v920_v6, %v1285_v30  ;;  %v1290_v53 = vperm.slane %v1284_v39, %v5276_v47  ;;  %v1298_v57 = vsel %vm811_vm1, %v922_v24, %v1297_v36  ;;  %v1309_v49 = vrot.slane %v1266_v48, 4 }
 0x1ce   : > { %v1294_v52 = vperm.slane %v1286_v31, %v5276_v47  ;;  %v1306_v7 = vperm.slane %v1298_v57, %v5276_v47  ;;  %v1308_v37 = vsel %vm811_vm1, %v1307_v58, %v1266_v48  ;;  %v1319_v55 = vrot.slane %v1282_v20, 4  ;;  %4323 = vmatpush.xpose.msk.msra.mxu3 %vm1707_vm2, %v3037_v50  ;;  %v2802_v21 = vpop.permute.xlu1 %2801 }
 0x1cf   : > { %v1310_v59 = vsel %vm811_vm1, %v1278_v11, %v1309_v49  ;;  %v1314_v23 = vperm.slane %v1308_v37, %v5298_v4  ;;  %v1321_v15 = vrot.slane %v1270_v5, 4  ;;  %v1331_v24 = vrot.slane %v1302_v42, 4  ;;  %4344 = vmatpush.xpose.msk.msrb.mxu1 %vm1707_vm2, %v3052_v41 }
 0x1d0   : > { %v1318_v61 = vperm.slane %v1310_v59, %v5298_v4  ;;  %v1320_v60 = vsel %vm811_vm1, %v1319_v55, %v1270_v5  ;;  %v1333_v0 = vrot.slane %v1290_v53, 4  ;;  %v1343_v32 = vrot.slane %v1306_v7, 4 }
 0x1d1   : > { %v1322_v45 = vsel %vm811_vm1, %v1282_v20, %v1321_v15  ;;  %v1326_v2 = vperm.slane %v1320_v60, %v5298_v4  ;;  %v1332_v34 = vsel %vm811_vm1, %v1331_v24, %v1290_v53  ;;  %v1345_v17 = vrot.slane %v1294_v52, 4 }
 0x1d2   : > { %v1330_v6 = vperm.slane %v1322_v45, %v5298_v4  ;;  %v1334_v22 = vsel %vm811_vm1, %v1302_v42, %v1333_v0  ;;  %v1338_v14 = vperm.slane %v1332_v34, %v5298_v4  ;;  %v1344_v26 = vsel %vm811_vm1, %v1343_v32, %v1294_v52  ;;  %4324 = vmatpush.xpose.msk.msra.mxu3 %vm1707_vm2, %v3036_v51  ;;  %v3058_v0 = vld [vmem:[#allocation2 + $0xb8] sm:$0xff] }
 0x1d3   : > { %v1342_v48 = vperm.slane %v1334_v22, %v5298_v4  ;;  %v1346_v27 = vsel %vm811_vm1, %v1306_v7, %v1345_v17  ;;  %v1350_v9 = vperm.slane %v1344_v26, %v5298_v4  ;;  %v1357_v56 = vrot.slane %v1314_v23, 4  ;;  %v5846_v60 = vpop.permute.xlu0 %1808  ;;  %v3046_v17 = vld [vmem:[#allocation2 + $0x58] sm:$0xff] }
 0x1d4   : > { %v1354_v62 = vperm.slane %v1346_v27, %v5298_v4  ;;  %v1355_v11 = vrot.slane %v1338_v14, 4  ;;  %v1361_v20 = vrot.slane %v1318_v61, 4  ;;  %v1365_v12 = vrot.slane %v1326_v2, 4 }
 0x1d5   : > { %v1358_v28 = vsel %vm811_vm1, %v1338_v14, %v1357_v56  ;;  %v1359_v30 = vrot.slane %v1342_v48, 4  ;;  %v1363_v16 = vrot.slane %v1350_v9, 4  ;;  %v1369_v36 = vrot.slane %v1330_v6, 4  ;;  %v3066_v56 = vld [vmem:[#allocation2 + $0xf8] sm:$0xff] }
 0x1d6   : > { %v1356_v5 = vsel %vm811_vm1, %v1355_v11, %v1314_v23  ;;  %v1362_v39 = vsel %vm811_vm1, %v1342_v48, %v1361_v20  ;;  %v1366_v42 = vsel %vm811_vm1, %v1350_v9, %v1365_v12  ;;  %v1367_v58 = vrot.slane %v1354_v62, 4  ;;  %1712 = vst.msk [vmem:[#allocation2 + $0x20] sm:$0xff] %vm1707_vm2, %v1358_v28 }
 0x1d7   : > { %v1360_v44 = vsel %vm811_vm1, %v1359_v30, %v1318_v61  ;;  %v1364_v31 = vsel %vm811_vm1, %v1363_v16, %v1326_v2  ;;  %v1370_v53 = vsel %vm811_vm1, %v1354_v62, %v1369_v36  ;;  %1708 = vst.msk [vmem:[#allocation2] sm:$0xff] %vm1707_vm2, %v1356_v5  ;;  %v2836_v57 = vsel %vm811_vm1, %v2835_v43, %v5700_v10  ;;  %v1773_v5 = vpop.permute.xlu2 %1772 }
 0x1d8   : > { %v1368_v49 = vsel %vm811_vm1, %v1367_v58, %v1330_v6  ;;  %1716 = vst.msk [vmem:[#allocation2 + $0x40] sm:$0xff] %vm1707_vm2, %v1360_v44  ;;  %v2814_v50 = vsel %vm811_vm1, %v5684_v3, %v2813_v1  ;;  %v2847_v52 = vrot.slane %v5760_v8, 4  ;;  %v2824_v7 = vsel %vm811_vm1, %v2823_v40, %v5762_v54 }
 0x1d9   : > { %1720 = vst.msk [vmem:[#allocation2 + $0x60] sm:$0xff] %vm1707_vm2, %v1362_v39  ;;  %v5826_v10 = vperm.slane %v5732_v13, %v5276_v47  ;;  %v2825_v46 = vrot.slane %v5762_v54, 4  ;;  %v2830_v29 = vperm.slane %v2824_v7, %v5276_v47  ;;  %v2842_v1 = vperm.slane %v2836_v57, %v5276_v47  ;;  %v3045_v39 = vld [vmem:[#allocation2 + $0x50] sm:$0xff] }
 0x1da   : > { %1724 = vst.msk [vmem:[#allocation2 + $0x80] sm:$0xff] %vm1707_vm2, %v1364_v31  ;;  %v2861_v3 = vrot.slane %v5735_v25, 4  ;;  %v2848_v43 = vsel %vm811_vm1, %v2847_v52, %v2802_v21  ;;  %v2849_v37 = vrot.slane %v2802_v21, 4  ;;  %v2822_v40 = vperm.slane %v2814_v50, %v5276_v47  ;;  %v3057_v21 = vld [vmem:[#allocation2 + $0xb0] sm:$0xff] }
 0x1db   : > { %1728 = vst.msk [vmem:[#allocation2 + $0xa0] sm:$0xff] %vm1707_vm2, %v1366_v42  ;;  %v2826_v13 = vsel %vm811_vm1, %v5653_v19, %v2825_v46  ;;  %v2859_v55 = vrot.slane %v2830_v29, 4  ;;  %v2854_v23 = vperm.slane %v2848_v43, %v5276_v47  ;;  %v2885_v24 = vrot.slane %v2842_v1, 4  ;;  %v1761_v19 = vpop.permute.xlu1 %1760  ;;  %v3065_v50 = vld [vmem:[#allocation2 + $0xf0] sm:$0xff] }
 0x1dc   : > { %1732 = vst.msk [vmem:[#allocation2 + $0xc0] sm:$0xff] %vm1707_vm2, %v1368_v49  ;;  %v2834_v54 = vperm.slane %v2826_v13, %v5276_v47  ;;  %v2862_v41 = vsel %vm811_vm1, %v2830_v29, %v2861_v3  ;;  %v2850_v59 = vsel %vm811_vm1, %v5760_v8, %v2849_v37  ;;  %v2897_v61 = vrot.slane %v5826_v10, 4 }
 0x1dd   : > { %1736 = vst.msk [vmem:[#allocation2 + $0xe0] sm:$0xff] %vm1707_vm2, %v1370_v53  ;;  %v3039_v15 = vld [vmem:[#allocation2 + $0x20] sm:$0xff]  ;;  %v2873_v45 = vrot.slane %v2822_v40, 4  ;;  %v2870_v2 = vperm.slane %v2862_v41, %v5298_v4  ;;  %v1940_v34 = vrot.slane %v5797_v18, 4  ;;  %v2858_v8 = vperm.slane %v2850_v59, %v5276_v47 }
 0x1de   : > { %4330 = vmatpush.xpose.msk.msrb.mxu2 %vm1707_vm2, %v3039_v15  ;;  %v3035_v32 = vld [vmem:[#allocation2] sm:$0xff]  ;;  %v2860_v51 = vsel %vm811_vm1, %v2859_v55, %v5735_v25  ;;  %v2871_v6 = vrot.slane %v2834_v54, 4  ;;  %v2883_v22 = vrot.slane %v2854_v23, 4  ;;  %v2886_v14 = vsel %vm811_vm1, %v2854_v23, %v2885_v24  ;;  %v5897_v55 = vpop.permute.xlu0 %1756 }
 0x1df   : > { %4325 = vmatpush.xpose.msk.msra.mxu3 %vm1707_vm2, %v3035_v32  ;;  %v2874_v48 = vsel %vm811_vm1, %v2834_v54, %v2873_v45  ;;  %v2894_v27 = vperm.slane %v2886_v14, %v5298_v4  ;;  %v2895_v9 = vrot.slane %v2858_v8, 4  ;;  %v1942_v11 = vrot.slane %v5246_v35, 4 }
 0x1e0   : > { %v3047_v26 = vld [vmem:[#allocation2 + $0x60] sm:$0xff]  ;;  %v2884_v25 = vsel %vm811_vm1, %v2883_v22, %v2842_v1  ;;  %v2898_v20 = vsel %vm811_vm1, %v2858_v8, %v2897_v61  ;;  %v2052_v12 = vrot.slane %v1761_v19, 4  ;;  %v2866_v28 = vperm.slane %v2860_v51, %v5298_v4  ;;  %v3056_v1 = vld [vmem:[#allocation2 + $0xa8] sm:$0xff] }
 0x1e1   : > { %4340 = vmatpush.xpose.msk.msrb.mxu0 %vm1707_vm2, %v3047_v26  ;;  %v3051_v62 = vld [vmem:[#allocation2 + $0x80] sm:$0xff]  ;;  %v2913_v30 = vrot.slane %v2870_v2, 4  ;;  %v1941_v16 = vsel %vm811_vm1, %v1940_v34, %v5246_v35  ;;  %v2890_v36 = vperm.slane %v2884_v25, %v5298_v4  ;;  %v2872_v42 = vsel %vm811_vm1, %v2871_v6, %v2822_v40  ;;  %v3064_v61 = vld [vmem:[#allocation2 + $0xe8] sm:$0xff] }
 0x1e2   : > { %4347 = vmatpush.xpose.msk.msra.mxu2 %vm1707_vm2, %v3058_v0  ;;  %4345 = vmatpush.xpose.msk.msrb.mxu1 %vm1707_vm2, %v3051_v62  ;;  %v2882_v58 = vperm.slane %v2874_v48, %v5298_v4  ;;  %v2911_v44 = vrot.slane %v2894_v27, 4  ;;  %v2054_v31 = vrot.slane %v5236_v33, 4  ;;  %v2896_v53 = vsel %vm811_vm1, %v2895_v9, %v5826_v10  ;;  %v3043_v6 = vld [vmem:[#allocation2 + $0x40] sm:$0xff] }
 0x1e3   : > { %4332 = vmatpush.xpose.msk.msrb.mxu3 %vm1707_vm2, %v3046_v17  ;;  %v2906_v57 = vperm.slane %v2898_v20, %v5298_v4  ;;  %v5879_v49 = vsel %vm811_vm1, %v2894_v27, %v2913_v30  ;;  %v1943_v52 = vsel %vm811_vm1, %v5797_v18, %v1942_v11  ;;  %v5884_v7 = vperm.slane %v1941_v16, %v5276_v47  ;;  %v3044_v18 = vld [vmem:[#allocation2 + $0x48] sm:$0xff]  ;;  %v1749_v41 = vpop.permute.xlu1 %1748 }
 0x1e4   : > { %v2064_v46 = vrot.slane %v1773_v5, 4  ;;  %v2053_v29 = vsel %vm811_vm1, %v2052_v12, %v5236_v33  ;;  %v2878_v10 = vperm.slane %v2872_v42, %v5298_v4  ;;  %v2909_v3 = vrot.slane %v2866_v28, 4  ;;  %v3063_v25 = vld [vmem:[#allocation2 + $0xe0] sm:$0xff] }
 0x1e5   : > { %4357 = vmatpush.xpose.msk.msra.mxu0 %vm1707_vm2, %v3066_v56  ;;  %v2907_v43 = vrot.slane %v2890_v36, 4  ;;  %v5891_v37 = vsel %vm811_vm1, %v2911_v44, %v2870_v2  ;;  %v2921_v40 = vrot.slane %v2882_v58, 4  ;;  %v2902_v13 = vperm.slane %v2896_v53, %v5298_v4  ;;  %v3055_v2 = vld [vmem:[#allocation2 + $0xa0] sm:$0xff]  ;;  %v1771_v56 = vpop.permute.xlu2 %1770 }
 0x1e6   : > { %4348 = vmatpush.xpose.msk.msra.mxu2 %vm1707_vm2, %v3057_v21  ;;  %v2935_v54 = vrot.slane %v5879_v49, 4  ;;  %v2055_v33 = vsel %vm811_vm1, %v1761_v19, %v2054_v31  ;;  %v5901_v59 = vsel %vm811_vm1, %v2890_v36, %v2909_v3  ;;  %v2919_v23 = vrot.slane %v2906_v57, 4 }
 0x1e7   : > { %4333 = vmatpush.xpose.msk.msrb.mxu3 %vm1707_vm2, %v3045_v39  ;;  %v2059_v15 = vperm.slane %v2053_v29, %v5276_v47  ;;  %v2063_v24 = vperm.slane %v2055_v33, %v5276_v47  ;;  %v5906_v0 = vsel %vm811_vm1, %v2906_v57, %v2921_v40  ;;  %v2923_v32 = vrot.slane %v5891_v37, 4 }
 0x1e8   : > { %v2065_v19 = vsel %vm811_vm1, %v2064_v46, %v1749_v41  ;;  %v2066_v45 = vrot.slane %v1749_v41, 4  ;;  %v2917_v34 = vrot.slane %v2878_v10, 4  ;;  %v5912_v8 = vsel %vm811_vm1, %v2907_v43, %v2866_v28 }
 0x1e9   : > { %4358 = vmatpush.xpose.msk.msra.mxu0 %vm1707_vm2, %v3065_v50  ;;  %v2102_v17 = vrot.slane %v2059_v15, 4  ;;  %v2071_v51 = vperm.slane %v2065_v19, %v5276_v47  ;;  %v2915_v22 = vrot.slane %v2902_v13, 4  ;;  %v2936_v14 = vsel %vm811_vm1, %v2935_v54, %v5901_v59 }
 0x1ea   : > { %4349 = vmatpush.xpose.msk.msra.mxu2 %vm1707_vm2, %v3056_v1  ;;  %v2114_v26 = vrot.slane %v2063_v24, 4  ;;  %v2067_v48 = vsel %vm811_vm1, %v1773_v5, %v2066_v45  ;;  %v5921_v27 = vperm.slane %v1943_v52, %v5276_v47  ;;  %v2959_v9 = vrot.slane %v5906_v0, 4 }
 0x1eb   : > { %4334 = vmatpush.xpose.msk.msrb.mxu3 %vm1707_vm2, %v3044_v18  ;;  %v2075_v62 = vperm.slane %v2067_v48, %v5276_v47  ;;  %v2100_v11 = vrot.slane %v2071_v51, 4  ;;  %v5926_v20 = vsel %vm811_vm1, %v2919_v23, %v2882_v58  ;;  %v2076_v12 = vrot.slane %v5846_v60, 4  ;;  %v1785_v3 = vpop.permute.xlu1 %1784 }
 0x1ec   : > { %v5930_v21 = vsel %vm811_vm1, %v2902_v13, %v2917_v34  ;;  %v2924_v28 = vsel %vm811_vm1, %v2923_v32, %v5912_v8  ;;  %v1952_v30 = vrot.slane %v1771_v56, 4  ;;  %v2103_v36 = vsel %vm811_vm1, %v2071_v51, %v2102_v17 }
 0x1ed   : > { %4359 = vmatpush.xpose.msk.msra.mxu0 %vm1707_vm2, %v3064_v61  ;;  %v2101_v16 = vsel %vm811_vm1, %v2100_v11, %v2059_v15  ;;  %v2942_v5 = vperm.slane %v2936_v14, %v5276_v47  ;;  %v2112_v39 = vrot.slane %v2075_v62, 4  ;;  %v2115_v42 = vsel %vm811_vm1, %v2075_v62, %v2114_v26 }
 0x1ee   : > { %4350 = vmatpush.xpose.msk.msra.mxu2 %vm1707_vm2, %v3055_v2  ;;  %v5940_v58 = vsel %vm811_vm1, %v2915_v22, %v2878_v10  ;;  %v2930_v44 = vperm.slane %v2924_v28, %v5276_v47  ;;  %v1990_v31 = vrot.slane %v5884_v7, 4  ;;  %v2002_v53 = vrot.slane %v5921_v27, 4  ;;  %v1747_v10 = vpop.permute.xlu0 %1746 }
 0x1ef   : > { %4335 = vmatpush.xpose.msk.msrb.mxu3 %vm1707_vm2, %v3043_v6  ;;  %v2947_v57 = vrot.slane %v5926_v20, 4  ;;  %v2960_v50 = vsel %vm811_vm1, %v2959_v9, %v5930_v21  ;;  %v2925_v52 = vrot.slane %v5912_v8, 4  ;;  %v2937_v46 = vrot.slane %v5901_v59, 4  ;;  %v5971_v8 = vpop.permute.xlu2 %1806 }
 0x1f0   : > { %v5951_v29 = vperm.slane %v2101_v16, %v5298_v4  ;;  %v5954_v1 = vperm.slane %v2103_v36, %v5298_v4  ;;  %v5957_v43 = vperm.slane %v2115_v42, %v5298_v4  ;;  %v2966_v40 = vperm.slane %v2960_v50, %v5276_v47  ;;  %v3062_v50 = vld [vmem:[#allocation2 + $0xd8] sm:$0xff] }
 0x1f1   : > { %4360 = vmatpush.xpose.msk.msra.mxu0 %vm1707_vm2, %v3063_v25  ;;  %v2948_v18 = vsel %vm811_vm1, %v2947_v57, %v5940_v58  ;;  %v2971_v13 = vrot.slane %v2942_v5, 4  ;;  %v2113_v54 = vsel %vm811_vm1, %v2112_v39, %v2063_v24  ;;  %v2973_v41 = vrot.slane %v2930_v44, 4 }
 0x1f2   : > { %v2954_v33 = vperm.slane %v2948_v18, %v5276_v47  ;;  %v1953_v59 = vsel %vm811_vm1, %v1952_v30, %v1747_v10  ;;  %v2995_v15 = vrot.slane %v2966_v40, 4  ;;  %v1954_v61 = vrot.slane %v1747_v10, 4 }
 0x1f3   : > { %v2972_v23 = vsel %vm811_vm1, %v2971_v13, %v2930_v44  ;;  %v1959_v32 = vperm.slane %v1953_v59, %v5276_v47  ;;  %v2949_v19 = vrot.slane %v5940_v58, 4  ;;  %v2974_v2 = vsel %vm811_vm1, %v2942_v5, %v2973_v41  ;;  %v1821_v44 = vpop.permute.xlu1 %1820 }
 0x1f4   : > { %v2978_v45 = vperm.slane %v2972_v23, %v5298_v4  ;;  %v2997_v34 = vrot.slane %v2954_v33, 4  ;;  %v2996_v24 = vsel %vm811_vm1, %v2995_v15, %v2954_v33  ;;  %v2982_v17 = vperm.slane %v2974_v2, %v5298_v4 }
 0x1f5   : > { %v1955_v51 = vsel %vm811_vm1, %v1771_v56, %v1954_v61  ;;  %v1988_v6 = vrot.slane %v1959_v32, 4  ;;  %v3002_v22 = vperm.slane %v2996_v24, %v5298_v4  ;;  %v5984_v25 = vsel %vm811_vm1, %v1959_v32, %v1990_v31  ;;  %v3061_v32 = vld [vmem:[#allocation2 + $0xd0] sm:$0xff] }
 0x1f6   : > { %v3021_v14 = vrot.slane %v2978_v45, 4  ;;  %v2998_v26 = vsel %vm811_vm1, %v2966_v40, %v2997_v34  ;;  %v1963_v48 = vperm.slane %v1955_v51, %v5276_v47  ;;  %v3025_v62 = vrot.slane %v2982_v17, 4 }
 0x1f7   : > { %v3006_v9 = vperm.slane %v2998_v26, %v5298_v4  ;;  %v5981_v11 = vsel %vm811_vm1, %v1988_v6, %v5884_v7  ;;  %v2961_v56 = vrot.slane %v5930_v21, 4  ;;  %v3019_v30 = vrot.slane %v3002_v22, 4  ;;  %v6031_v15 = vpop.permute.xlu2 %1768 }
 0x1f8   : > { %v3022_v28 = vsel %vm811_vm1, %v3002_v22, %v3021_v14  ;;  %v2077_v16 = vsel %vm811_vm1, %v2076_v12, %v1785_v3  ;;  %v2000_v5 = vrot.slane %v1963_v48, 4  ;;  %v5992_v39 = vsel %vm811_vm1, %v1963_v48, %v2002_v53  ;;  %v1797_v12 = vpop.permute.xlu0 %1796 }
 0x1f9   : > { %4331 = vmatmul.msk.f32.vlgmr.msrb.gmra.mxu2 %vm1707_vm2, %v3022_v28  ;;  %v3026_v36 = vsel %vm811_vm1, %v3006_v9, %v3025_v62  ;;  %v2078_v7 = vrot.slane %v1785_v3, 4  ;;  %v2938_v42 = vsel %vm811_vm1, %v5879_v49, %v2937_v46  ;;  %v5997_v58 = vperm.slane %v2113_v54, %v5298_v4 }
 0x1fa   : > { %v3020_v21 = vsel %vm811_vm1, %v3019_v30, %v2978_v45  ;;  %4341 = vmatmul.msk.f32.vlgmr.msrb.gmra.mxu0 %vm1707_vm2, %v3026_v36  ;;  %v6004_v31 = vsel %vm811_vm1, %v2000_v5, %v5921_v27  ;;  %v6009_v49 = vperm.slane %v2077_v16, %v5276_v47  ;;  %v2926_v57 = vsel %vm811_vm1, %v5891_v37, %v2925_v52 }
 0x1fb   : > { %4326 = vmatmul.msk.f32.vlgmr.msra.gmra.mxu3 %vm1707_vm2, %v3020_v21  ;;  %v2079_v53 = vsel %vm811_vm1, %v5846_v60, %v2078_v7  ;;  %v2150_v46 = vrot.slane %v5951_v29, 4  ;;  %v2154_v10 = vrot.slane %v5954_v1, 4  ;;  %v2162_v3 = vrot.slane %v5957_v43, 4  ;;  %v6057_v7 = vpop.permute.xlu1 %1782 }
 0x1fc   : > { %v2934_v18 = vperm.slane %v2926_v57, %v5276_v47  ;;  %4352 = vmatpush.xpose.msk.msra.mxu3 %vm1707_vm2, %v3062_v50  ;;  %v6019_v27 = vperm.slane %v2079_v53, %v5276_v47  ;;  %v2946_v60 = vperm.slane %v2938_v42, %v5276_v47  ;;  %v2950_v40 = vsel %vm811_vm1, %v5926_v20, %v2949_v19 }
 0x1fd   : > { %v2962_v37 = vsel %vm811_vm1, %v5906_v0, %v2961_v56  ;;  %v2158_v52 = vrot.slane %v5997_v58, 4  ;;  %v1964_v13 = vrot.slane %v5971_v8, 4  ;;  %v2958_v54 = vperm.slane %v2950_v40, %v5276_v47  ;;  %v3060_v56 = vld [vmem:[#allocation2 + $0xc8] sm:$0xff] }
 0x1fe   : > { %v2970_v33 = vperm.slane %v2962_v37, %v5276_v47  ;;  %v2126_v41 = vrot.slane %v6009_v49, 4  ;;  %v2983_v59 = vrot.slane %v2946_v60, 4  ;;  %v2985_v23 = vrot.slane %v2934_v18, 4 }
 0x1ff   : > { %v3023_v61 = vrot.slane %v3006_v9, 4  ;;  %v3009_v0 = vrot.slane %v2958_v54, 4  ;;  %v2090_v19 = vrot.slane %v1797_v12, 4  ;;  %v2088_v45 = vrot.slane %v1821_v44, 4 }
 0x200   : > { %v3007_v20 = vrot.slane %v2970_v33, 4  ;;  %4353 = vmatpush.xpose.msk.msra.mxu3 %vm1707_vm2, %v3061_v32  ;;  %v2138_v2 = vrot.slane %v6019_v27, 4  ;;  %v2984_v34 = vsel %vm811_vm1, %v2983_v59, %v2934_v18  ;;  %v2986_v51 = vsel %vm811_vm1, %v2946_v60, %v2985_v23  ;;  %v6055_v5 = vpop.permute.xlu0 %1762 }
 0x201   : > { %v3024_v24 = vsel %vm811_vm1, %v3023_v61, %v2982_v17  ;;  %v2990_v6 = vperm.slane %v2984_v34, %v5298_v4  ;;  %v6041_v14 = vperm.slane %v2986_v51, %v5298_v4  ;;  %v3010_v26 = vsel %vm811_vm1, %v2970_v33, %v3009_v0  ;;  %v6090_v0 = vpop.permute.xlu2 %1804 }
 0x202   : > { %v3008_v22 = vsel %vm811_vm1, %v3007_v20, %v2958_v54  ;;  %v6047_v9 = vperm.slane %v3010_v26, %v5298_v4  ;;  %v2089_v17 = vsel %vm811_vm1, %v2088_v45, %v1797_v12  ;;  %v2091_v62 = vsel %vm811_vm1, %v1821_v44, %v2090_v19  ;;  %v3059_v54 = vld [vmem:[#allocation2 + $0xc0] sm:$0xff] }
 0x203   : > { %v3014_v48 = vperm.slane %v3008_v22, %v5298_v4  ;;  %4336 = vmatmul.msk.f32.vlgmr.msrb.gmra.mxu3 %vm1707_vm2, %v3024_v24  ;;  %v3029_v28 = vrot.slane %v2990_v6, 4  ;;  %v3033_v30 = vrot.slane %v6041_v14, 4  ;;  %v2095_v16 = vperm.slane %v2089_v17, %v5276_v47 }
 0x204   : > { %v2099_v36 = vperm.slane %v2091_v62, %v5276_v47  ;;  %4354 = vmatpush.xpose.msk.msra.mxu3 %vm1707_vm2, %v3060_v56  ;;  %v2166_v21 = vrot.slane %v5289_v63, 4  ;;  %v2164_v12 = vrot.slane %v6055_v5, 4  ;;  %v6063_v44 = vsel %vm811_vm1, %v1964_v13, %v6057_v7 }
 0x205   : > { %v3027_v42 = vrot.slane %v3014_v48, 4  ;;  %v3030_v53 = vsel %vm811_vm1, %v3014_v48, %v3029_v28  ;;  %v3034_v57 = vsel %vm811_vm1, %v6047_v9, %v3033_v30  ;;  %v2124_v50 = vrot.slane %v2095_v16, 4 }
 0x206   : > { %v2127_v18 = vsel %vm811_vm1, %v2095_v16, %v2126_v41  ;;  %4351 = vmatmul.msk.f32.vlgmr.msra.gmra.mxu2 %vm1707_vm2, %v3030_v53  ;;  %4361 = vmatmul.msk.f32.vlgmr.msra.gmra.mxu0 %vm1707_vm2, %v3034_v57  ;;  %v2136_v37 = vrot.slane %v2099_v36, 4  ;;  %v2139_v13 = vsel %vm811_vm1, %v2099_v36, %v2138_v2  ;;  %v6081_v41 = vsel %vm811_vm1, %v2164_v12, %v5289_v63 }
 0x207   : > { %v3028_v60 = vsel %vm811_vm1, %v3027_v42, %v2990_v6  ;;  %v2135_v40 = vperm.slane %v2127_v18, %v5298_v4  ;;  %v2125_v33 = vsel %vm811_vm1, %v2124_v50, %v6009_v49  ;;  %v2147_v59 = vperm.slane %v2139_v13, %v5298_v4 }
 0x208   : > { %4346 = vmatmul.msk.f32.vlgmr.msrb.gmra.mxu1 %vm1707_vm2, %v3028_v60  ;;  %4355 = vmatpush.xpose.msk.msra.mxu3 %vm1707_vm2, %v3059_v54  ;;  %v1966_v23 = vrot.slane %v6057_v7, 4  ;;  %v2131_v61 = vperm.slane %v2125_v33, %v5298_v4  ;;  %v2137_v32 = vsel %vm811_vm1, %v2136_v37, %v6019_v27 }
 0x209   : > { %v2152_v20 = vrot.slane %v2135_v40, 4  ;;  %v2155_v49 = vsel %vm811_vm1, %v2135_v40, %v2154_v10  ;;  %v2143_v19 = vperm.slane %v2137_v32, %v5298_v4  ;;  %v2160_v45 = vrot.slane %v2147_v59, 4  ;;  %v6125_v32 = vpop.permute.xlu2 %1774 }
 0x20a   : > { %v2163_v2 = vsel %vm811_vm1, %v2147_v59, %v2162_v3  ;;  %v2512_v34 = vrot.slane %v2155_v49, 4  ;;  %v2148_v24 = vrot.slane %v2131_v61, 4  ;;  %v2151_v27 = vsel %vm811_vm1, %v2131_v61, %v2150_v46 }
 0x20b   : > { %v2153_v51 = vsel %vm811_vm1, %v2152_v20, %v5954_v1  ;;  %v2536_v6 = vrot.slane %v2163_v2, 4  ;;  %v2156_v10 = vrot.slane %v2143_v19, 4  ;;  %v2159_v22 = vsel %vm811_vm1, %v2143_v19, %v2158_v52  ;;  %v6127_v20 = vpop.permute.xlu0 %1810 }
 0x20c   : > { %v2161_v26 = vsel %vm811_vm1, %v2160_v45, %v5957_v43  ;;  %v2500_v48 = vrot.slane %v2153_v51, 4  ;;  %v2149_v3 = vsel %vm811_vm1, %v2148_v24, %v5951_v29  ;;  %v2513_v17 = vsel %vm811_vm1, %v2512_v34, %v2151_v27  ;;  %v1751_v24 = vpop.permute.xlu1 %1750 }
 0x20d   : > { %v2514_v62 = vrot.slane %v2151_v27, 4  ;;  %v2524_v46 = vrot.slane %v2161_v26, 4  ;;  %v2157_v1 = vsel %vm811_vm1, %v2156_v10, %v5997_v58  ;;  %v2502_v28 = vrot.slane %v2149_v3, 4 }
 0x20e   : > { %v2501_v56 = vsel %vm811_vm1, %v2500_v48, %v2149_v3  ;;  %v2519_v30 = vperm.slane %v2513_v17, %v5276_v47  ;;  %v2526_v36 = vrot.slane %v2157_v1, 4  ;;  %v2537_v58 = vsel %vm811_vm1, %v2536_v6, %v2159_v22 }
 0x20f   : > { %v2507_v52 = vperm.slane %v2501_v56, %v5276_v47  ;;  %v2515_v43 = vsel %vm811_vm1, %v2155_v49, %v2514_v62  ;;  %v2525_v16 = vsel %vm811_vm1, %v2524_v46, %v2157_v1  ;;  %v2503_v29 = vsel %vm811_vm1, %v2153_v51, %v2502_v28 }
 0x210   : > { %v2523_v42 = vperm.slane %v2515_v43, %v5276_v47  ;;  %v2531_v12 = vperm.slane %v2525_v16, %v5276_v47  ;;  %v2511_v53 = vperm.slane %v2503_v29, %v5276_v47  ;;  %v2527_v57 = vsel %vm811_vm1, %v2161_v26, %v2526_v36 }
 0x211   : > { %v2538_v50 = vrot.slane %v2159_v22, 4  ;;  %v2543_v18 = vperm.slane %v2537_v58, %v5276_v47  ;;  %v2535_v60 = vperm.slane %v2527_v57, %v5276_v47  ;;  %v2548_v40 = vrot.slane %v2519_v30, 4 }
 0x212   : > { %v2550_v37 = vrot.slane %v2507_v52, 4  ;;  %v2560_v13 = vrot.slane %v2523_v42, 4  ;;  %v2562_v33 = vrot.slane %v2511_v53, 4  ;;  %v2574_v61 = vrot.slane %v2531_v12, 4 }
 0x213   : > { %v2539_v54 = vsel %vm811_vm1, %v2163_v2, %v2538_v50  ;;  %v2572_v59 = vrot.slane %v2543_v18, 4  ;;  %v2549_v19 = vsel %vm811_vm1, %v2548_v40, %v2507_v52  ;;  %v2586_v62 = vrot.slane %v2535_v60, 4 }
 0x214   : > { %v2547_v49 = vperm.slane %v2539_v54, %v5276_v47  ;;  %v2551_v45 = vsel %vm811_vm1, %v2519_v30, %v2550_v37  ;;  %v2561_v34 = vsel %vm811_vm1, %v2560_v13, %v2511_v53  ;;  %v2555_v27 = vperm.slane %v2549_v19, %v5298_v4 }
 0x215   : > { %v2559_v2 = vperm.slane %v2551_v45, %v5298_v4  ;;  %v2563_v51 = vsel %vm811_vm1, %v2523_v42, %v2562_v33  ;;  %v2567_v6 = vperm.slane %v2561_v34, %v5298_v4  ;;  %v2573_v22 = vsel %vm811_vm1, %v2572_v59, %v2531_v12  ;;  %v1787_v59 = vpop.permute.xlu1 %1786 }
 0x216   : > { %v2571_v10 = vperm.slane %v2563_v51, %v5298_v4  ;;  %v2575_v26 = vsel %vm811_vm1, %v2543_v18, %v2574_v61  ;;  %v2584_v48 = vrot.slane %v2547_v49, 4  ;;  %v2579_v3 = vperm.slane %v2573_v22, %v5298_v4 }
 0x217   : > { %v2583_v17 = vperm.slane %v2575_v26, %v5298_v4  ;;  %v2598_v46 = vrot.slane %v2555_v27, 4  ;;  %v2602_v56 = vrot.slane %v2559_v2, 4  ;;  %v2606_v28 = vrot.slane %v2567_v6, 4 }
 0x218   : > { %v2585_v1 = vsel %vm811_vm1, %v2584_v48, %v2535_v60  ;;  %v2610_v30 = vrot.slane %v2571_v10, 4  ;;  %v2587_v52 = vsel %vm811_vm1, %v2547_v49, %v2586_v62  ;;  %v2596_v16 = vrot.slane %v2579_v3, 4 }
 0x219   : > { %v2591_v43 = vperm.slane %v2585_v1, %v5298_v4  ;;  %v2599_v36 = vsel %vm811_vm1, %v2579_v3, %v2598_v46  ;;  %v2595_v29 = vperm.slane %v2587_v52, %v5298_v4  ;;  %v2600_v42 = vrot.slane %v2583_v17, 4 }
 0x21a   : > { %v2603_v12 = vsel %vm811_vm1, %v2583_v17, %v2602_v56  ;;  %2730 = vst.msk [vmem:[#allocation3 + $0x30] sm:$0xff] %vm1707_vm2, %v2599_v36  ;;  %v2167_v58 = vsel %vm811_vm1, %v6055_v5, %v2166_v21  ;;  %v2171_v50 = vperm.slane %v6081_v41, %v5276_v47  ;;  %v6167_v5 = vsel %vm811_vm1, %v5971_v8, %v1966_v23  ;;  %v1823_v21 = vpop.permute.xlu2 %1822  ;;  %v1799_v41 = vpop.permute.xlu0 %1798 }
 0x21b   : > { %v2604_v53 = vrot.slane %v2591_v43, 4  ;;  %v2607_v57 = vsel %vm811_vm1, %v2591_v43, %v2606_v28  ;;  %2738 = vst.msk [vmem:[#allocation3 + $0x70] sm:$0xff] %vm1707_vm2, %v2603_v12  ;;  %v2601_v18 = vsel %vm811_vm1, %v2600_v42, %v2559_v2  ;;  %v2608_v60 = vrot.slane %v2595_v29, 4 }
 0x21c   : > { %2746 = vst.msk [vmem:[#allocation3 + $0xb0] sm:$0xff] %vm1707_vm2, %v2607_v57  ;;  %v2175_v40 = vperm.slane %v2167_v58, %v5276_v47  ;;  %v2611_v37 = vsel %vm811_vm1, %v2595_v29, %v2610_v30  ;;  %v2597_v13 = vsel %vm811_vm1, %v2596_v16, %v2555_v27  ;;  %v3031_v33 = vrot.slane %v6047_v9, 4 }
 0x21d   : > { %v2605_v63 = vsel %vm811_vm1, %v2604_v53, %v2567_v6  ;;  %2734 = vst.msk [vmem:[#allocation3 + $0x50] sm:$0xff] %vm1707_vm2, %v2601_v18  ;;  %v2609_v54 = vsel %vm811_vm1, %v2608_v60, %v2571_v10  ;;  %v2214_v61 = vrot.slane %v2171_v50, 4  ;;  %v2176_v7 = vrot.slane %v6125_v32, 4 }
 0x21e   : > { %2742 = vst.msk [vmem:[#allocation3 + $0x90] sm:$0xff] %vm1707_vm2, %v2605_v63  ;;  %v2188_v49 = vrot.slane %v6127_v20, 4  ;;  %v2178_v8 = vrot.slane %v1751_v24, 4  ;;  %v2226_v23 = vrot.slane %v2175_v40, 4  ;;  %v3032_v19 = vsel %vm811_vm1, %v3031_v33, %v6041_v14 }
 0x21f   : > { %2750 = vst.msk [vmem:[#allocation3 + $0xd0] sm:$0xff] %vm1707_vm2, %v2609_v54  ;;  %v2200_v45 = vrot.slane %v1823_v21, 4  ;;  %v2202_v34 = vrot.slane %v1799_v41, 4  ;;  %4356 = vmatmul.msk.f32.vlgmr.msra.gmra.mxu3 %vm1707_vm2, %v3032_v19  ;;  %v2177_v9 = vsel %vm811_vm1, %v2176_v7, %v1751_v24  ;;  %v2190_v51 = vrot.slane %v1787_v59, 4 }
 0x220   : > { %2754 = vst.msk [vmem:[#allocation3 + $0xf0] sm:$0xff] %vm1707_vm2, %v2611_v37  ;;  %v2179_v27 = vsel %vm811_vm1, %v6125_v32, %v2178_v8  ;;  %v2189_v2 = vsel %vm811_vm1, %v2188_v49, %v1787_v59  ;;  %v2183_v6 = vperm.slane %v2177_v9, %v5276_v47 }
 0x221   : > { %2726 = vst.msk [vmem:[#allocation3 + $0x10] sm:$0xff] %vm1707_vm2, %v2597_v13  ;;  %v2187_v10 = vperm.slane %v2179_v27, %v5276_v47  ;;  %v2201_v14 = vsel %vm811_vm1, %v2200_v45, %v1799_v41  ;;  %v2203_v22 = vsel %vm811_vm1, %v1823_v21, %v2202_v34  ;;  %v2191_v24 = vsel %vm811_vm1, %v6127_v20, %v2190_v51 }
 0x222   : > { %v2207_v26 = vperm.slane %v2201_v14, %v5276_v47  ;;  %v2211_v48 = vperm.slane %v2203_v22, %v5276_v47  ;;  %v2195_v32 = vperm.slane %v2189_v2, %v5276_v47  ;;  %v2212_v3 = vrot.slane %v2183_v6, 4 }
 0x223   : > { %v2215_v17 = vsel %vm811_vm1, %v2183_v6, %v2214_v61  ;;  %v2224_v62 = vrot.slane %v2187_v10, 4  ;;  %v2227_v46 = vsel %vm811_vm1, %v2187_v10, %v2226_v23  ;;  %v2199_v20 = vperm.slane %v2191_v24, %v5276_v47 }
 0x224   : > { %v2223_v1 = vperm.slane %v2215_v17, %v5298_v4  ;;  %v2235_v56 = vperm.slane %v2227_v46, %v5298_v4  ;;  %v2236_v28 = vrot.slane %v2207_v26, 4  ;;  %v2248_v30 = vrot.slane %v2211_v48, 4 }
 0x225   : > { %v2213_v52 = vsel %vm811_vm1, %v2212_v3, %v2171_v50  ;;  %v2225_v43 = vsel %vm811_vm1, %v2224_v62, %v2175_v40  ;;  %v2238_v16 = vrot.slane %v2195_v32, 4  ;;  %v2250_v18 = vrot.slane %v2199_v20, 4 }
 0x226   : > { %v2219_v36 = vperm.slane %v2213_v52, %v5298_v4  ;;  %v2231_v29 = vperm.slane %v2225_v43, %v5298_v4  ;;  %v2266_v42 = vrot.slane %v2223_v1, 4  ;;  %v2274_v12 = vrot.slane %v2235_v56, 4 }
 0x227   : > { %v2237_v58 = vsel %vm811_vm1, %v2236_v28, %v2195_v32  ;;  %v2239_v53 = vsel %vm811_vm1, %v2207_v26, %v2238_v16  ;;  %v2249_v57 = vsel %vm811_vm1, %v2248_v30, %v2199_v20  ;;  %v2251_v37 = vsel %vm811_vm1, %v2211_v48, %v2250_v18 }
 0x228   : > { %v2262_v60 = vrot.slane %v2219_v36, 4  ;;  %v2270_v50 = vrot.slane %v2231_v29, 4  ;;  %v2243_v40 = vperm.slane %v2237_v58, %v5298_v4  ;;  %v2247_v63 = vperm.slane %v2239_v53, %v5298_v4 }
 0x229   : > { %v2255_v21 = vperm.slane %v2249_v57, %v5298_v4  ;;  %v2259_v41 = vperm.slane %v2251_v37, %v5298_v4 }
 0x22a   : > { %v2260_v13 = vrot.slane %v2243_v40, 4  ;;  %v2263_v54 = vsel %vm811_vm1, %v2243_v40, %v2262_v60  ;;  %v2264_v33 = vrot.slane %v2247_v63, 4  ;;  %v2267_v59 = vsel %vm811_vm1, %v2247_v63, %v2266_v42 }
 0x22b   : > { %v2268_v61 = vrot.slane %v2255_v21, 4  ;;  %v2271_v7 = vsel %vm811_vm1, %v2255_v21, %v2270_v50  ;;  %v2626_v49 = vrot.slane %v2263_v54, 4  ;;  %v2272_v19 = vrot.slane %v2259_v41, 4 }
 0x22c   : > { %v2261_v8 = vsel %vm811_vm1, %v2260_v13, %v2219_v36  ;;  %v2265_v23 = vsel %vm811_vm1, %v2264_v33, %v2223_v1  ;;  %v2275_v45 = vsel %vm811_vm1, %v2259_v41, %v2274_v12  ;;  %v2624_v2 = vrot.slane %v2267_v59, 4 }
 0x22d   : > { %v2269_v34 = vsel %vm811_vm1, %v2268_v61, %v2231_v29  ;;  %v2612_v9 = vrot.slane %v2265_v23, 4  ;;  %v2614_v27 = vrot.slane %v2261_v8, 4  ;;  %v2273_v51 = vsel %vm811_vm1, %v2272_v19, %v2235_v56 }
 0x22e   : > { %v2627_v6 = vsel %vm811_vm1, %v2267_v59, %v2626_v49  ;;  %v2638_v10 = vrot.slane %v2269_v34, 4  ;;  %v2648_v14 = vrot.slane %v2275_v45, 4  ;;  %v2625_v48 = vsel %vm811_vm1, %v2624_v2, %v2263_v54 }
 0x22f   : > { %v2613_v22 = vsel %vm811_vm1, %v2612_v9, %v2261_v8  ;;  %v2615_v26 = vsel %vm811_vm1, %v2265_v23, %v2614_v27  ;;  %v2635_v24 = vperm.slane %v2627_v6, %v5276_v47  ;;  %v2631_v17 = vperm.slane %v2625_v48, %v5276_v47 }
 0x230   : > { %v2619_v32 = vperm.slane %v2613_v22, %v5276_v47  ;;  %v2623_v3 = vperm.slane %v2615_v26, %v5276_v47  ;;  %v2636_v62 = vrot.slane %v2273_v51, 4  ;;  %v2639_v46 = vsel %vm811_vm1, %v2273_v51, %v2638_v10 }
 0x231   : > { %v2649_v1 = vsel %vm811_vm1, %v2648_v14, %v2271_v7  ;;  %v2650_v56 = vrot.slane %v2271_v7, 4  ;;  %v2672_v28 = vrot.slane %v2635_v24, 4  ;;  %v2647_v52 = vperm.slane %v2639_v46, %v5276_v47  ;;  %v3073_v46 = vld [vmem:[#allocation3 + $0x30] sm:$0xff] }
 0x232   : > { %v2637_v30 = vsel %vm811_vm1, %v2636_v62, %v2269_v34  ;;  %v2655_v43 = vperm.slane %v2649_v1, %v5276_v47  ;;  %v2660_v20 = vrot.slane %v2631_v17, 4  ;;  %v2662_v29 = vrot.slane %v2619_v32, 4 }
 0x233   : > { %v2643_v16 = vperm.slane %v2637_v30, %v5276_v47  ;;  %v2651_v36 = vsel %vm811_vm1, %v2275_v45, %v2650_v56  ;;  %v2673_v42 = vsel %vm811_vm1, %v2672_v28, %v2623_v3  ;;  %v2674_v53 = vrot.slane %v2623_v3, 4  ;;  %v3069_v56 = vld [vmem:[#allocation3 + $0x10] sm:$0xff] }
 0x234   : > { %v2659_v12 = vperm.slane %v2651_v36, %v5276_v47  ;;  %v2661_v58 = vsel %vm811_vm1, %v2660_v20, %v2619_v32  ;;  %v2679_v57 = vperm.slane %v2673_v42, %v5298_v4  ;;  %v2663_v18 = vsel %vm811_vm1, %v2631_v17, %v2662_v29  ;;  %v3085_v30 = vld [vmem:[#allocation3 + $0x90] sm:$0xff] }
 0x235   : > { %v2667_v60 = vperm.slane %v2661_v58, %v5298_v4  ;;  %v2684_v50 = vrot.slane %v2655_v43, 4  ;;  %v2686_v40 = vrot.slane %v2643_v16, 4  ;;  %v2671_v63 = vperm.slane %v2663_v18, %v5298_v4 }
 0x236   : > { %v2675_v37 = vsel %vm811_vm1, %v2635_v24, %v2674_v53  ;;  %v2696_v21 = vrot.slane %v2659_v12, 4  ;;  %v2698_v41 = vrot.slane %v2647_v52, 4  ;;  %v2718_v34 = vrot.slane %v2679_v57, 4 }
 0x237   : > { %v2683_v13 = vperm.slane %v2675_v37, %v5298_v4  ;;  %v2685_v54 = vsel %vm811_vm1, %v2684_v50, %v2643_v16  ;;  %v2687_v33 = vsel %vm811_vm1, %v2655_v43, %v2686_v40  ;;  %v2710_v59 = vrot.slane %v2667_v60, 4 }
 0x238   : > { %v2691_v61 = vperm.slane %v2685_v54, %v5298_v4  ;;  %v2695_v7 = vperm.slane %v2687_v33, %v5298_v4  ;;  %v2697_v49 = vsel %vm811_vm1, %v2696_v21, %v2647_v52  ;;  %v2699_v8 = vsel %vm811_vm1, %v2659_v12, %v2698_v41  ;;  %v3089_v52 = vld [vmem:[#allocation3 + $0xb0] sm:$0xff] }
 0x239   : > { %v2703_v23 = vperm.slane %v2697_v49, %v5298_v4  ;;  %v2707_v19 = vperm.slane %v2699_v8, %v5298_v4  ;;  %v2714_v45 = vrot.slane %v2671_v63, 4  ;;  %v2722_v14 = vrot.slane %v2683_v13, 4 }
 0x23a   : > { %v2708_v9 = vrot.slane %v2691_v61, 4  ;;  %v2711_v27 = vsel %vm811_vm1, %v2691_v61, %v2710_v59  ;;  %v2712_v2 = vrot.slane %v2695_v7, 4  ;;  %v3099_v43 = vlaneseq }
 0x23b   : > { %v2715_v51 = vsel %vm811_vm1, %v2695_v7, %v2714_v45  ;;  %v2716_v6 = vrot.slane %v2703_v23, 4  ;;  %v2720_v10 = vrot.slane %v2707_v19, 4  ;;  %2731 = vst.msk [vmem:[#allocation3 + $0x38] sm:$0xff] %vm1707_vm2, %v2711_v27  ;;  %v2719_v24 = vsel %vm811_vm1, %v2703_v23, %v2718_v34  ;;  %v6287_v45 = vpop.permute.xlu1 %1818  ;;  %v1745_v34 = vpop.permute.xlu0 %1744 }
 0x23c   : > { %v2709_v22 = vsel %vm811_vm1, %v2708_v9, %v2667_v60  ;;  %v2713_v26 = vsel %vm811_vm1, %v2712_v2, %v2671_v63  ;;  %2739 = vst.msk [vmem:[#allocation3 + $0x78] sm:$0xff] %vm1707_vm2, %v2715_v51  ;;  %v2723_v3 = vsel %vm811_vm1, %v2707_v19, %v2722_v14  ;;  %v3100_v20 = vand.u32 127, %v3099_v43  ;;  %v6289_v51 = vpop.permute.xlu2 %1780 }
 0x23d   : > { %v2717_v48 = vsel %vm811_vm1, %v2716_v6, %v2679_v57  ;;  %2727 = vst.msk [vmem:[#allocation3 + $0x18] sm:$0xff] %vm1707_vm2, %v2709_v22  ;;  %v2721_v32 = vsel %vm811_vm1, %v2720_v10, %v2683_v13  ;;  %v4883_v16 = vmov -1e+30  }
 0x23e   : > { %2735 = vst.msk [vmem:[#allocation3 + $0x58] sm:$0xff] %vm1707_vm2, %v2713_v26  ;;  %vm3101_vm3 = vcmp.lt.s32.totalorder %v3100_v20, 21 }
 0x23f   : > { %2743 = vst.msk [vmem:[#allocation3 + $0x98] sm:$0xff] %vm1707_vm2, %v2717_v48  ;;  %v3102_v36 = vsel %vm3101_vm3, 0.0, %v4883_v16  ;;  %v1828_v16 = vrot.slane %v5897_v55, 4 }
 0x240   : > { %2747 = vst.msk [vmem:[#allocation3 + $0xb8] sm:$0xff] %vm1707_vm2, %v2719_v24 }
 0x241   : > { %2751 = vst.msk [vmem:[#allocation3 + $0xd8] sm:$0xff] %vm1707_vm2, %v2721_v32 }
 0x242   : > { %2755 = vst.msk [vmem:[#allocation3 + $0xf8] sm:$0xff] %vm1707_vm2, %v2723_v3  ;;  %v3074_v17 = vld [vmem:[#allocation3 + $0x38] sm:$0xff] }
 0x243   : > { %3614 = vmatpush.msrb.mxu2 %v3074_v17 }
 0x244   : > { %v3070_v62 = vld [vmem:[#allocation3 + $0x18] sm:$0xff] }
 0x245   : > { %3591 = vmatpush.msra.mxu1 %v3070_v62  ;;  %3615 = vmatpush.msrb.mxu2 %v3073_v46 }
 0x246   : > { %v3086_v1 = vld [vmem:[#allocation3 + $0x98] sm:$0xff] }
 0x247   : > { %v3090_v28 = vld [vmem:[#allocation3 + $0xb8] sm:$0xff]  ;;  %3683 = vmatpush.msrb.mxu3 %v3086_v1  ;;  %3592 = vmatpush.msra.mxu1 %v3069_v56 }
 0x248   : > { %3706 = vmatpush.msrb.mxu0 %v3090_v28 }
 0x249   : > { %3684 = vmatpush.msrb.mxu3 %v3085_v30 }
 0x24a   : > { %3707 = vmatpush.msrb.mxu0 %v3089_v52 }
 0x277   : > { %v3241_v29 = vpop.f32.mrf.mxu0 }
 0x278   : > { %v3242_v42 = vadd.f32 %v3241_v29, %v3102_v36  ;;  %v1842_v29 = vrot.slane %v1745_v34, 4 }
 0x27a   : > { %v3393_v12 = vsel %vm643_vm0, %v3242_v42, -inf }
 0x27b   : > { %3394 = vmax.xlane.f32.xlu1 %v3393_v12  ;;  %v1830_v12 = vrot.slane %v5260_v38, 4 }
 0x27c   : > { %v3171_v37 = vpop.f32.mrf.mxu2 }
 0x27d   : > { %v3172_v41 = vadd.f32 %v3171_v37, %v3102_v36 }
 0x27e   : > { %v3136_v58 = vpop.f32.mrf.mxu3 }
 0x27f   : > { %v3137_v53 = vadd.f32 %v3136_v58, %v3102_v36  ;;  %v3387_v13 = vsel %vm643_vm0, %v3172_v41, -inf }
 0x281   : > { %v3384_v57 = vsel %vm643_vm0, %v3137_v53, -inf }
 0x282   : > { %3385 = vmax.xlane.f32.xlu0 %v3384_v57  ;;  %v1829_v57 = vsel %vm811_vm1, %v1828_v16, %v5260_v38 }
 0x283   : > { %v3381_v18 = vpop.f32.mrf.mxu0  ;;  %v1835_v37 = vperm.slane %v1829_v57, %v5276_v47 }
 0x284   : > { %v3382_v50 = vadd.f32 %v3381_v18, %v3102_v36 }
 0x285   : > { %v3276_v60 = vpop.f32.mrf.mxu1 }
 0x286   : > { %v3277_v40 = vadd.f32 %v3276_v60, %v3102_v36  ;;  %v3405_v21 = vsel %vm643_vm0, %v3382_v50, -inf  ;;  %v3206_v54 = vpop.f32.mrf.mxu3 }
 0x287   : > { %v3207_v33 = vadd.f32 %v3206_v54, %v3102_v36 }
 0x288   : > { %v3396_v63 = vsel %vm643_vm0, %v3277_v40, -inf }
 0x289   : > { %3397 = vmax.xlane.f32.xlu2 %v3396_v63  ;;  %v3390_v59 = vsel %vm643_vm0, %v3207_v33, -inf  ;;  %v3311_v61 = vpop.f32.mrf.mxu2  ;;  %v1831_v63 = vsel %vm811_vm1, %v5897_v55, %v1830_v12 }
 0x28a   : > { %3406 = vmax.xlane.f32.xlu0 %v3405_v21  ;;  %v6273_v7 = vadd.f32 %v3311_v61, %v3102_v36 }
 0x28c   : > { %v3399_v49 = vsel %vm643_vm0, %v6273_v7, -inf }
 0x291   : > { %3388 = vmax.xlane.f32.xlu2 %v3387_v13  ;;  %v1839_v13 = vperm.slane %v1831_v63, %v5276_v47 }
 0x299   : > { %3391 = vmax.xlane.f32.xlu2 %v3390_v59  ;;  %v1878_v59 = vrot.slane %v1835_v37, 4 }
 0x29e   : > { %1816 = vrot.lane.b32.xlu0 %v5260_v38, %s4880_s2 }
 0x2a1   : > { %3400 = vmax.xlane.f32.xlu2 %v3399_v49 }
 0x2a2   : > { %v3346_v8 = vpop.f32.mrf.mxu3 }
 0x2a3   : > { %v6279_v23 = vadd.f32 %v3346_v8, %v3102_v36  ;;  %v1840_v36 = vrot.slane %v6031_v15, 4 }
 0x2a5   : > { %v3402_v19 = vsel %vm643_vm0, %v6279_v23, -inf  ;;  %v1841_v18 = vsel %vm811_vm1, %v1840_v36, %v1745_v34 }
 0x2a6   : > { %3403 = vmax.xlane.f32.xlu1 %v3402_v19  ;;  %v1847_v21 = vperm.slane %v1841_v18, %v5276_v47 }
 0x2a8   : > { %v1876_v61 = vrot.slane %v1847_v21, 4 }
 0x2b9   : > { %1792 = vrot.lane.b32.xlu2 %v5260_v38, %s4879_s25  ;;  %v1852_v38 = vrot.slane %v6090_v0, 4 }
 0x2bb   : > { %v1853_v19 = vsel %vm811_vm1, %v1852_v38, %v6289_v51 }
 0x2bf   : > { %1794 = vrot.lane.b32.xlu1 %v5246_v35, %s4879_s25  ;;  %s6767_s25 = sld [smem:[#allocation34_spill]] }
 0x2ee   : > { %v3395_v9 = vpop.xlane.xlu1 %3394 }
 0x2ef   : > { %v3411_v27 = vsub.f32 %v3242_v42, %v3395_v9  ;;  %v1890_v9 = vrot.slane %v1839_v13, 4 }
 0x2f1   : > { %v3422_v2 = vmul.f32 1.442695, %v3411_v27  ;;  %v1879_v27 = vsel %vm811_vm1, %v1847_v21, %v1878_v59 }
 0x2f3   : > { %4523 = vpow2.f32 %v3422_v2 }
 0x2f5   : > { %v3386_v6 = vpop.xlane.xlu0 %3385 }
 0x2f6   : > { %v3408_v10 = vsub.f32 %v3137_v53, %v3386_v6 }
 0x2f8   : > { %v3416_v14 = vmul.f32 1.442695, %v3408_v10  ;;  %v1877_v10 = vsel %vm811_vm1, %v1876_v61, %v1835_v37 }
 0x2f9   : > { %v6291_v22 = vpop.eup %4523 }
 0x2fa   : > { %4525 = vpow2.f32 %v3416_v14  ;;  %v3441_v26 = vsel %vm643_vm0, %v6291_v22, 0.0 }
 0x2fb   : > { %3442 = vadd.xlane.f32.xlu2 %v3441_v26  ;;  %v1859_v26 = vperm.slane %v1853_v19, %v5276_v47 }
 0x2fc   : > { %v3398_v35 = vpop.xlane.xlu2 %3397 }
 0x2fd   : > { %v3412_v48 = vsub.f32 %v3277_v40, %v3398_v35  ;;  %v3407_v24 = vpop.xlane.xlu0 %3406 }
 0x2fe   : > { %v3415_v32 = vsub.f32 %v3382_v50, %v3407_v24  ;;  %v1843_v50 = vsel %vm811_vm1, %v6031_v15, %v1842_v29  ;;  %v1854_v15 = vrot.slane %v6289_v51, 4  ;;  %v1887_v51 = vperm.slane %v1879_v27, %v5298_v4 }
 0x2ff   : > { %v3424_v3 = vmul.f32 1.442695, %v3412_v48 }
 0x300   : > { %v6295_v17 = vpop.eup %4525  ;;  %v3430_v62 = vmul.f32 1.442695, %v3415_v32  ;;  %v1855_v2 = vsel %vm811_vm1, %v6090_v0, %v1854_v15  ;;  %v6345_v0 = vperm.slane %v5984_v25, %v5298_v4  ;;  %v1930_v36 = vrot.slane %v1887_v51, 4 }
 0x301   : > { %4527 = vpow2.f32 %v3424_v3  ;;  %v3432_v46 = vsel %vm643_vm0, %v6295_v17, 0.0  ;;  %v1863_v48 = vperm.slane %v1855_v2, %v5276_v47 }
 0x302   : > { %4529 = vpow2.f32 %v3430_v62  ;;  %3433 = vadd.xlane.f32.xlu0 %v3432_v46  ;;  %v1883_v62 = vperm.slane %v1877_v10, %v5298_v4 }
 0x303   : > { %v1914_v29 = vrot.slane %v1863_v48, 4 }
 0x304   : > { %v3389_v1 = vpop.xlane.xlu2 %3388  ;;  %v1926_v18 = vrot.slane %v1883_v62, 4 }
 0x305   : > { %v3409_v56 = vsub.f32 %v3172_v41, %v3389_v1  ;;  %v1851_v41 = vperm.slane %v1843_v50, %v5276_v47 }
 0x307   : > { %v6299_v28 = vpop.eup %4527  ;;  %v3418_v30 = vmul.f32 1.442695, %v3409_v56  ;;  %v1888_v8 = vrot.slane %v1851_v41, 4  ;;  %v1891_v14 = vsel %vm811_vm1, %v1851_v41, %v1890_v9 }
 0x308   : > { %v6301_v52 = vpop.eup %4529  ;;  %v3444_v43 = vsel %vm643_vm0, %v6299_v28, 0.0  ;;  %v1899_v46 = vperm.slane %v1891_v14, %v5298_v4 }
 0x309   : > { %4531 = vpow2.f32 %v3418_v30  ;;  %v3453_v20 = vsel %vm643_vm0, %v6301_v52, 0.0  ;;  %v1889_v35 = vsel %vm811_vm1, %v1888_v8, %v1839_v13  ;;  %v6353_v30 = vperm.slane %v6063_v44, %v5276_v47 }
 0x30a   : > { %3445 = vadd.xlane.f32.xlu0 %v3444_v43  ;;  %3454 = vadd.xlane.f32.xlu2 %v3453_v20  ;;  %v1895_v43 = vperm.slane %v1889_v35, %v5298_v4  ;;  %v1902_v20 = vrot.slane %v1859_v26, 4 }
 0x30c   : > { %v3392_v42 = vpop.xlane.xlu2 %3391  ;;  %v1934_v63 = vrot.slane %v1895_v43, 4 }
 0x30d   : > { %v3410_v58 = vsub.f32 %v3207_v33, %v3392_v42 }
 0x30f   : > { %v6310_v53 = vpop.eup %4531  ;;  %v3420_v60 = vmul.f32 1.442695, %v3410_v58 }
 0x310   : > { %v3435_v40 = vsel %vm643_vm0, %v6310_v53, 0.0  ;;  %v1817_v55 = vpop.permute.xlu0 %1816 }
 0x311   : > { %4533 = vpow2.f32 %v3420_v60  ;;  %3436 = vadd.xlane.f32.xlu1 %v3435_v40  ;;  %v1938_v60 = vrot.slane %v1899_v46, 4 }
 0x314   : > { %v3401_v54 = vpop.xlane.xlu2 %3400 }
 0x315   : > { %v3413_v33 = vsub.f32 %v6273_v7, %v3401_v54  ;;  %v1864_v7 = vrot.slane %v1817_v55, 4  ;;  %v1976_v54 = vrot.slane %v6287_v45, 4 }
 0x317   : > { %v6328_v49 = vpop.eup %4533  ;;  %v3426_v34 = vmul.f32 1.442695, %v3413_v33 }
 0x318   : > { %v3438_v6 = vsel %vm643_vm0, %v6328_v49, 0.0 }
 0x319   : > { %4535 = vpow2.f32 %v3426_v34  ;;  %3439 = vadd.xlane.f32.xlu1 %v3438_v6  ;;  %v3404_v24 = vpop.xlane.xlu1 %3403 }
 0x31a   : > { %v3414_v32 = vsub.f32 %v6279_v23, %v3404_v24  ;;  %v6361_v23 = vperm.slane %v6167_v5, %v5276_v47 }
 0x31c   : > { %v1793_v3 = vpop.permute.xlu2 %1792  ;;  %v3428_v12 = vmul.f32 1.442695, %v3414_v32 }
 0x31d   : > { %v1865_v1 = vsel %vm811_vm1, %v1864_v7, %v1793_v3  ;;  %v1866_v56 = vrot.slane %v1793_v3, 4 }
 0x31e   : > { %v1871_v25 = vperm.slane %v1865_v1, %v5276_v47  ;;  %4537 = vpow2.f32 %v3428_v12 }
 0x31f   : > { %v6357_v16 = vpop.eup %4535  ;;  %v1867_v42 = vsel %vm811_vm1, %v1817_v55, %v1866_v56 }
 0x320   : > { %v1875_v58 = vperm.slane %v1867_v42, %v5276_v47  ;;  %v1900_v44 = vrot.slane %v1871_v25, 4  ;;  %v1903_v57 = vsel %vm811_vm1, %v1871_v25, %v1902_v20  ;;  %v3447_v40 = vsel %vm643_vm0, %v6357_v16, 0.0 }
 0x321   : > { %v1911_v50 = vperm.slane %v1903_v57, %v5298_v4  ;;  %3448 = vadd.xlane.f32.xlu0 %v3447_v40 }
 0x322   : > { %v1901_v5 = vsel %vm811_vm1, %v1900_v44, %v1859_v26  ;;  %v1912_v37 = vrot.slane %v1875_v58, 4  ;;  %v1915_v21 = vsel %vm811_vm1, %v1875_v58, %v1914_v29 }
 0x323   : > { %v1907_v38 = vperm.slane %v1901_v5, %v5298_v4  ;;  %v1923_v41 = vperm.slane %v1915_v21, %v5298_v4  ;;  %v1928_v13 = vrot.slane %v1911_v50, 4  ;;  %v1931_v15 = vsel %vm811_vm1, %v1911_v50, %v1930_v36 }
 0x324   : > { %v1913_v33 = vsel %vm811_vm1, %v1912_v37, %v1863_v48  ;;  %v2288_v59 = vrot.slane %v1931_v15, 4  ;;  %v6389_v56 = vpop.eup %4537 }
 0x325   : > { %v1919_v61 = vperm.slane %v1913_v33, %v5298_v4  ;;  %v1924_v55 = vrot.slane %v1907_v38, 4  ;;  %v1927_v8 = vsel %vm811_vm1, %v1907_v38, %v1926_v18  ;;  %v1929_v19 = vsel %vm811_vm1, %v1928_v13, %v1887_v51 }
 0x326   : > { %v1936_v34 = vrot.slane %v1923_v41, 4  ;;  %v1939_v9 = vsel %vm811_vm1, %v1923_v41, %v1938_v60  ;;  %v2276_v27 = vrot.slane %v1929_v19, 4  ;;  %v2289_v2 = vsel %vm811_vm1, %v2288_v59, %v1927_v8 }
 0x327   : > { %v1925_v6 = vsel %vm811_vm1, %v1924_v55, %v1883_v62  ;;  %v1932_v7 = vrot.slane %v1919_v61, 4  ;;  %v1935_v10 = vsel %vm811_vm1, %v1919_v61, %v1934_v63  ;;  %v2290_v14 = vrot.slane %v1927_v8, 4 }
 0x328   : > { %v1937_v26 = vsel %vm811_vm1, %v1936_v34, %v1899_v46  ;;  %v2277_v35 = vsel %vm811_vm1, %v2276_v27, %v1925_v6  ;;  %v2278_v48 = vrot.slane %v1925_v6, 4  ;;  %v2295_v24 = vperm.slane %v2289_v2, %v5276_v47 }
 0x329   : > { %v1933_v51 = vsel %vm811_vm1, %v1932_v7, %v1895_v43  ;;  %v2283_v32 = vperm.slane %v2277_v35, %v5276_v47  ;;  %v2291_v3 = vsel %vm811_vm1, %v1931_v15, %v2290_v14  ;;  %v2300_v1 = vrot.slane %v1937_v26, 4 }
 0x32a   : > { %v2279_v62 = vsel %vm811_vm1, %v1929_v19, %v2278_v48  ;;  %v2299_v20 = vperm.slane %v2291_v3, %v5276_v47  ;;  %v2302_v25 = vrot.slane %v1933_v51, 4  ;;  %v2312_v46 = vrot.slane %v1939_v9, 4 }
 0x32b   : > { %v2287_v36 = vperm.slane %v2279_v62, %v5276_v47  ;;  %v2301_v29 = vsel %vm811_vm1, %v2300_v1, %v1933_v51  ;;  %v2314_v42 = vrot.slane %v1935_v10, 4  ;;  %v2324_v12 = vrot.slane %v2295_v24, 4 }
 0x32c   : > { %v2303_v43 = vsel %vm811_vm1, %v1937_v26, %v2302_v25  ;;  %v2307_v58 = vperm.slane %v2301_v29, %v5276_v47  ;;  %v2313_v44 = vsel %vm811_vm1, %v2312_v46, %v1935_v10  ;;  %v2326_v57 = vrot.slane %v2283_v32, 4 }
 0x32d   : > { %v2311_v18 = vperm.slane %v2303_v43, %v5276_v47  ;;  %v2315_v60 = vsel %vm811_vm1, %v1939_v9, %v2314_v42  ;;  %v2319_v50 = vperm.slane %v2313_v44, %v5276_v47  ;;  %v2325_v40 = vsel %vm811_vm1, %v2324_v12, %v2283_v32 }
 0x32e   : > { %v2323_v63 = vperm.slane %v2315_v60, %v5276_v47  ;;  %v2327_v5 = vsel %vm811_vm1, %v2295_v24, %v2326_v57  ;;  %v2331_v37 = vperm.slane %v2325_v40, %v5298_v4  ;;  %v2336_v21 = vrot.slane %v2299_v20, 4 }
 0x32f   : > { %v2335_v38 = vperm.slane %v2327_v5, %v5298_v4  ;;  %v2338_v41 = vrot.slane %v2287_v36, 4  ;;  %v2348_v13 = vrot.slane %v2319_v50, 4  ;;  %v2350_v15 = vrot.slane %v2307_v58, 4 }
 0x330   : > { %v2337_v33 = vsel %vm811_vm1, %v2336_v21, %v2287_v36  ;;  %v2360_v59 = vrot.slane %v2323_v63, 4  ;;  %v2362_v61 = vrot.slane %v2311_v18, 4  ;;  %v2374_v55 = vrot.slane %v2331_v37, 4 }
 0x331   : > { %v2339_v8 = vsel %vm811_vm1, %v2299_v20, %v2338_v41  ;;  %v2343_v19 = vperm.slane %v2337_v33, %v5298_v4  ;;  %v2349_v34 = vsel %vm811_vm1, %v2348_v13, %v2307_v58  ;;  %v2351_v9 = vsel %vm811_vm1, %v2319_v50, %v2350_v15  ;;  %v1795_v3 = vpop.permute.xlu1 %1794 }
 0x332   : > { %v2347_v27 = vperm.slane %v2339_v8, %v5298_v4  ;;  %v2355_v2 = vperm.slane %v2349_v34, %v5298_v4  ;;  %v2359_v6 = vperm.slane %v2351_v9, %v5298_v4  ;;  %v2361_v7 = vsel %vm811_vm1, %v2360_v59, %v2311_v18 }
 0x333   : > { %v2363_v10 = vsel %vm811_vm1, %v2323_v63, %v2362_v61  ;;  %v2367_v14 = vperm.slane %v2361_v7, %v5298_v4  ;;  %v2378_v26 = vrot.slane %v2335_v38, 4  ;;  %v2382_v35 = vrot.slane %v2343_v19, 4 }
 0x334   : > { %v2371_v48 = vperm.slane %v2363_v10, %v5298_v4  ;;  %v2372_v24 = vrot.slane %v2355_v2, 4  ;;  %v2375_v51 = vsel %vm811_vm1, %v2355_v2, %v2374_v55  ;;  %v2376_v32 = vrot.slane %v2359_v6, 4 }
 0x335   : > { %v2379_v1 = vsel %vm811_vm1, %v2359_v6, %v2378_v26  ;;  %v2380_v62 = vrot.slane %v2367_v14, 4  ;;  %v2383_v20 = vsel %vm811_vm1, %v2367_v14, %v2382_v35  ;;  %v2386_v25 = vrot.slane %v2347_v27, 4  ;;  %2728 = vst.msk [vmem:[#allocation3 + $0x20] sm:$0xff] %vm1707_vm2, %v2375_v51 }
 0x336   : > { %v2373_v46 = vsel %vm811_vm1, %v2372_v24, %v2331_v37  ;;  %v2377_v36 = vsel %vm811_vm1, %v2376_v32, %v2335_v38  ;;  %v2384_v29 = vrot.slane %v2371_v48, 4  ;;  %2736 = vst.msk [vmem:[#allocation3 + $0x60] sm:$0xff] %vm1707_vm2, %v2379_v1  ;;  %v3450_v42 = vsel %vm643_vm0, %v6389_v56, 0.0 }
 0x337   : > { %v2381_v12 = vsel %vm811_vm1, %v2380_v62, %v2343_v19  ;;  %v2387_v43 = vsel %vm811_vm1, %v2371_v48, %v2386_v25  ;;  %2724 = vst.msk [vmem:[#allocation3] sm:$0xff] %vm1707_vm2, %v2373_v46  ;;  %3451 = vadd.xlane.f32.xlu1 %v3450_v42  ;;  %v1977_v58 = vsel %vm811_vm1, %v1976_v54, %v1795_v3  ;;  %v1978_v44 = vrot.slane %v1795_v3, 4 }
 0x338   : > { %v1995_v57 = vperm.slane %v5981_v11, %v5298_v4  ;;  %v2014_v18 = vrot.slane %v6353_v30, 4  ;;  %v2385_v60 = vsel %vm811_vm1, %v2384_v29, %v2347_v27  ;;  %2732 = vst.msk [vmem:[#allocation3 + $0x40] sm:$0xff] %vm1707_vm2, %v2377_v36  ;;  %v1983_v50 = vperm.slane %v1977_v58, %v5276_v47 }
 0x339   : > { %v2007_v40 = vperm.slane %v6004_v31, %v5298_v4  ;;  %v2011_v63 = vperm.slane %v5992_v39, %v5298_v4  ;;  %2740 = vst.msk [vmem:[#allocation3 + $0x80] sm:$0xff] %vm1707_vm2, %v2381_v12  ;;  %v1979_v54 = vsel %vm811_vm1, %v6287_v45, %v1978_v44  ;;  %v2026_v11 = vrot.slane %v6361_v23, 4 }
 0x33a   : > { %2744 = vst.msk [vmem:[#allocation3 + $0xa0] sm:$0xff] %vm1707_vm2, %v2383_v20  ;;  %v1987_v5 = vperm.slane %v1979_v54, %v5276_v47  ;;  %v2012_v37 = vrot.slane %v1983_v50, 4  ;;  %v2015_v21 = vsel %vm811_vm1, %v1983_v50, %v2014_v18  ;;  %v2042_v38 = vrot.slane %v6345_v0, 4 }
 0x33b   : > { %2748 = vst.msk [vmem:[#allocation3 + $0xc0] sm:$0xff] %vm1707_vm2, %v2385_v60  ;;  %v2023_v39 = vperm.slane %v2015_v21, %v5298_v4  ;;  %v2038_v31 = vrot.slane %v1995_v57, 4  ;;  %v2046_v55 = vrot.slane %v2007_v40, 4  ;;  %v2050_v8 = vrot.slane %v2011_v63, 4 }
 0x33c   : > { %2752 = vst.msk [vmem:[#allocation3 + $0xe0] sm:$0xff] %vm1707_vm2, %v2387_v43  ;;  %v2013_v45 = vsel %vm811_vm1, %v2012_v37, %v6353_v30  ;;  %v2024_v41 = vrot.slane %v1987_v5, 4  ;;  %v2027_v13 = vsel %vm811_vm1, %v1987_v5, %v2026_v11 }
 0x33d   : > { %v2019_v15 = vperm.slane %v2013_v45, %v5298_v4  ;;  %v2035_v33 = vperm.slane %v2027_v13, %v5298_v4  ;;  %v2040_v59 = vrot.slane %v2023_v39, 4  ;;  %v2043_v61 = vsel %vm811_vm1, %v2023_v39, %v2042_v38 }
 0x33e   : > { %v2025_v19 = vsel %vm811_vm1, %v2024_v41, %v6361_v23  ;;  %v2400_v34 = vrot.slane %v2043_v61, 4 }
 0x33f   : > { %v2031_v9 = vperm.slane %v2025_v19, %v5298_v4  ;;  %v2036_v27 = vrot.slane %v2019_v15, 4  ;;  %v2039_v30 = vsel %vm811_vm1, %v2019_v15, %v2038_v31  ;;  %v2041_v2 = vsel %vm811_vm1, %v2040_v59, %v6345_v0 }
 0x340   : > { %v2048_v6 = vrot.slane %v2035_v33, 4  ;;  %v2051_v7 = vsel %vm811_vm1, %v2035_v33, %v2050_v8  ;;  %v2388_v10 = vrot.slane %v2041_v2, 4  ;;  %v2401_v14 = vsel %vm811_vm1, %v2400_v34, %v2039_v30 }
 0x341   : > { %v2037_v26 = vsel %vm811_vm1, %v2036_v27, %v1995_v57  ;;  %v2044_v35 = vrot.slane %v2031_v9, 4  ;;  %v2047_v23 = vsel %vm811_vm1, %v2031_v9, %v2046_v55  ;;  %v2402_v48 = vrot.slane %v2039_v30, 4 }
 0x342   : > { %v2049_v24 = vsel %vm811_vm1, %v2048_v6, %v2011_v63  ;;  %v2389_v51 = vsel %vm811_vm1, %v2388_v10, %v2037_v26  ;;  %v2390_v32 = vrot.slane %v2037_v26, 4  ;;  %v2407_v3 = vperm.slane %v2401_v14, %v5276_v47 }
 0x343   : > { %v2045_v0 = vsel %vm811_vm1, %v2044_v35, %v2007_v40  ;;  %v2395_v1 = vperm.slane %v2389_v51, %v5276_v47  ;;  %v2403_v62 = vsel %vm811_vm1, %v2043_v61, %v2402_v48  ;;  %v2412_v20 = vrot.slane %v2049_v24, 4 }
 0x344   : > { %v2391_v25 = vsel %vm811_vm1, %v2041_v2, %v2390_v32  ;;  %v2411_v46 = vperm.slane %v2403_v62, %v5276_v47  ;;  %v2414_v36 = vrot.slane %v2045_v0, 4  ;;  %v2424_v29 = vrot.slane %v2051_v7, 4 }
 0x345   : > { %v2399_v42 = vperm.slane %v2391_v25, %v5276_v47  ;;  %v2413_v12 = vsel %vm811_vm1, %v2412_v20, %v2045_v0  ;;  %v2426_v43 = vrot.slane %v2047_v23, 4  ;;  %v2436_v58 = vrot.slane %v2407_v3, 4 }
 0x346   : > { %v2415_v44 = vsel %vm811_vm1, %v2049_v24, %v2414_v36  ;;  %v2419_v57 = vperm.slane %v2413_v12, %v5276_v47  ;;  %v2425_v18 = vsel %vm811_vm1, %v2424_v29, %v2047_v23  ;;  %v2438_v60 = vrot.slane %v2395_v1, 4  ;;  %v3071_v36 = vld [vmem:[#allocation3 + $0x20] sm:$0xff]  ;;  %v3082_v29 = vld [vmem:[#allocation3 + $0x78] sm:$0xff] }
 0x347   : > { %v2423_v50 = vperm.slane %v2415_v44, %v5276_v47  ;;  %v2427_v40 = vsel %vm811_vm1, %v2051_v7, %v2426_v43  ;;  %v2431_v63 = vperm.slane %v2425_v18, %v5276_v47  ;;  %v2437_v54 = vsel %vm811_vm1, %v2436_v58, %v2395_v1  ;;  %v3078_v58 = vld [vmem:[#allocation3 + $0x58] sm:$0xff]  ;;  %v3081_v44 = vld [vmem:[#allocation3 + $0x70] sm:$0xff]  ;;  %v3087_v18 = vld [vmem:[#allocation3 + $0xa0] sm:$0xff] }
 0x348   : > { %v2435_v11 = vperm.slane %v2427_v40, %v5276_v47  ;;  %v2439_v5 = vsel %vm811_vm1, %v2407_v3, %v2438_v60  ;;  %v2443_v37 = vperm.slane %v2437_v54, %v5298_v4  ;;  %v2448_v21 = vrot.slane %v2411_v46, 4  ;;  %v3077_v60 = vld [vmem:[#allocation3 + $0x50] sm:$0xff]  ;;  %v3075_v54 = vld [vmem:[#allocation3 + $0x40] sm:$0xff] }
 0x349   : > { %v2447_v38 = vperm.slane %v2439_v5, %v5298_v4  ;;  %v2450_v39 = vrot.slane %v2399_v42, 4  ;;  %v2460_v31 = vrot.slane %v2431_v63, 4  ;;  %v2462_v45 = vrot.slane %v2419_v57, 4 }
 0x34a   : > { %v2449_v41 = vsel %vm811_vm1, %v2448_v21, %v2399_v42  ;;  %v2472_v13 = vrot.slane %v2435_v11, 4  ;;  %v2474_v15 = vrot.slane %v2423_v50, 4  ;;  %v2486_v33 = vrot.slane %v2443_v37, 4  ;;  %v3067_v42 = vld [vmem:[#allocation3] sm:$0xff] }
 0x34b   : > { %v2451_v59 = vsel %vm811_vm1, %v2411_v46, %v2450_v39  ;;  %v2455_v61 = vperm.slane %v2449_v41, %v5298_v4  ;;  %v2461_v55 = vsel %vm811_vm1, %v2460_v31, %v2419_v57  ;;  %v2463_v8 = vsel %vm811_vm1, %v2431_v63, %v2462_v45  ;;  %v3083_v57 = vld [vmem:[#allocation3 + $0x80] sm:$0xff] }
 0x34c   : > { %v2459_v19 = vperm.slane %v2451_v59, %v5298_v4  ;;  %v2467_v34 = vperm.slane %v2461_v55, %v5298_v4  ;;  %v2471_v9 = vperm.slane %v2463_v8, %v5298_v4  ;;  %v2473_v27 = vsel %vm811_vm1, %v2472_v13, %v2423_v50  ;;  %v3079_v63 = vld [vmem:[#allocation3 + $0x60] sm:$0xff] }
 0x34d   : > { %v2475_v30 = vsel %vm811_vm1, %v2435_v11, %v2474_v15  ;;  %v2479_v2 = vperm.slane %v2473_v27, %v5298_v4  ;;  %v2490_v6 = vrot.slane %v2447_v38, 4  ;;  %v2494_v7 = vrot.slane %v2455_v61, 4 }
 0x34e   : > { %v2483_v10 = vperm.slane %v2475_v30, %v5298_v4  ;;  %v2484_v14 = vrot.slane %v2467_v34, 4  ;;  %v2487_v26 = vsel %vm811_vm1, %v2467_v34, %v2486_v33  ;;  %v2488_v35 = vrot.slane %v2471_v9, 4 }
 0x34f   : > { %v2491_v23 = vsel %vm811_vm1, %v2471_v9, %v2490_v6  ;;  %v2492_v48 = vrot.slane %v2479_v2, 4  ;;  %v2495_v24 = vsel %vm811_vm1, %v2479_v2, %v2494_v7  ;;  %v2498_v51 = vrot.slane %v2459_v19, 4  ;;  %2729 = vst.msk [vmem:[#allocation3 + $0x28] sm:$0xff] %vm1707_vm2, %v2487_v26 }
 0x350   : > { %v2485_v32 = vsel %vm811_vm1, %v2484_v14, %v2443_v37  ;;  %v2489_v3 = vsel %vm811_vm1, %v2488_v35, %v2447_v38  ;;  %v2496_v0 = vrot.slane %v2483_v10, 4  ;;  %2737 = vst.msk [vmem:[#allocation3 + $0x68] sm:$0xff] %vm1707_vm2, %v2491_v23  ;;  %v3094_v14 = vld [vmem:[#allocation3 + $0xd8] sm:$0xff] }
 0x351   : > { %v2493_v1 = vsel %vm811_vm1, %v2492_v48, %v2455_v61  ;;  %v2499_v62 = vsel %vm811_vm1, %v2483_v10, %v2498_v51  ;;  %2725 = vst.msk [vmem:[#allocation3 + $0x8] sm:$0xff] %vm1707_vm2, %v2485_v32 }
 0x352   : > { %v2497_v20 = vsel %vm811_vm1, %v2496_v0, %v2459_v19  ;;  %2733 = vst.msk [vmem:[#allocation3 + $0x48] sm:$0xff] %vm1707_vm2, %v2489_v3 }
 0x353   : > { %2741 = vst.msk [vmem:[#allocation3 + $0x88] sm:$0xff] %vm1707_vm2, %v2493_v1 }
 0x354   : > { %2745 = vst.msk [vmem:[#allocation3 + $0xa8] sm:$0xff] %vm1707_vm2, %v2495_v24  ;;  %v3093_v24 = vld [vmem:[#allocation3 + $0xd0] sm:$0xff] }
 0x355   : > { %2749 = vst.msk [vmem:[#allocation3 + $0xc8] sm:$0xff] %vm1707_vm2, %v2497_v20 }
 0x356   : > { %2753 = vst.msk [vmem:[#allocation3 + $0xe8] sm:$0xff] %vm1707_vm2, %v2499_v62  ;;  %v3072_v25 = vld [vmem:[#allocation3 + $0x28] sm:$0xff] }
 0x357   : > { %3616 = vmatpush.msrb.mxu2 %v3072_v25  ;;  %v3080_v50 = vld [vmem:[#allocation3 + $0x68] sm:$0xff] }
 0x358   : > { %v3068_v46 = vld [vmem:[#allocation3 + $0x8] sm:$0xff] }
 0x359   : > { %3593 = vmatpush.msra.mxu1 %v3068_v46  ;;  %3617 = vmatpush.msrb.mxu2 %v3071_v36  ;;  %v3076_v40 = vld [vmem:[#allocation3 + $0x48] sm:$0xff] }
 0x35a   : > { %v3084_v12 = vld [vmem:[#allocation3 + $0x88] sm:$0xff] }
 0x35b   : > { %3660 = vmatpush.msra.mxu2 %v3082_v29  ;;  %v3088_v43 = vld [vmem:[#allocation3 + $0xa8] sm:$0xff]  ;;  %3594 = vmatpush.msra.mxu1 %v3067_v42  ;;  %v3091_v29 = vld [vmem:[#allocation3 + $0xc0] sm:$0xff] }
 0x35c   : > { %3685 = vmatpush.msrb.mxu3 %v3084_v12  ;;  %3708 = vmatpush.msrb.mxu0 %v3088_v43  ;;  %v3092_v1 = vld [vmem:[#allocation3 + $0xc8] sm:$0xff] }
 0x35d   : > { %3637 = vmatpush.msrb.mxu1 %v3078_v58  ;;  %3661 = vmatpush.msra.mxu2 %v3081_v44 }
 0x35e   : > { %3686 = vmatpush.msrb.mxu3 %v3083_v57  ;;  %3709 = vmatpush.msrb.mxu0 %v3087_v18 }
 0x35f   : > { %3638 = vmatpush.msrb.mxu1 %v3077_v60  ;;  %3662 = vmatpush.msra.mxu2 %v3080_v50 }
 0x361   : > { %3639 = vmatpush.msrb.mxu1 %v3076_v40  ;;  %3663 = vmatpush.msra.mxu2 %v3079_v63 }
 0x363   : > { %3640 = vmatpush.msrb.mxu1 %v3075_v54 }
 0x36e   : > { %v6519_v37 = vpop.xlane.xlu2 %3442 }
 0x36f   : > { %v3510_v54 = vand.u32 2147483647, %v6519_v37 }
 0x375   : > { %v3434_v11 = vpop.xlane.xlu0 %3433 }
 0x376   : > { %4539 = vrcp.f32 %v3434_v11  ;;  %v3467_v31 = vand.u32 2147483648, %v3434_v11  ;;  %v3465_v41 = vand.u32 2147483647, %v3434_v11  ;;  %vm3461_vm5 = vweird.f32 %v3434_v11 }
 0x378   : > { %v3468_v15 = vor.u32 1.1754944e-38, %v3467_v31  ;;  %vm3466_vm7 = vcmp.eq.f32.partialorder %v3465_v41, 8.507059e+37 }
 0x37c   : > { %v4540_v5 = vpop.eup %4539 }
 0x37d   : > { %v3457_v21 = vmul.f32 %v4540_v5, %v3434_v11  ;;  %v3446_v38 = vpop.xlane.xlu0 %3445  ;;  %vm3462_vm4 = vweird.f32 %v4540_v5  ;;  %v6522_v55 = vpop.xlane.xlu2 %3454 }
 0x37e   : > { %4541 = vrcp.f32 %v3446_v38  ;;  %vm3463_vm6 = vmor %vm3461_vm5, %vm3462_vm4  ;;  %v3527_v2 = vand.u32 2147483648, %v3446_v38  ;;  %v3525_v10 = vand.u32 2147483647, %v3446_v38  ;;  %vm3521_vm9 = vweird.f32 %v3446_v38 }
 0x37f   : > { %v3458_v39 = vsub.f32 1.0, %v3457_v21  ;;  %4543 = vrcp.f32 %v6519_v37  ;;  %vm3506_vm4 = vweird.f32 %v6519_v37 }
 0x380   : > { %v3528_v32 = vor.u32 1.1754944e-38, %v3527_v2  ;;  %vm3526_vm11 = vcmp.eq.f32.partialorder %v3525_v10, 8.507059e+37  ;;  %v3570_v2 = vand.u32 2147483647, %v6522_v55 }
 0x381   : > { %v3459_v45 = vmul.f32 %v4540_v5, %v3458_v39 }
 0x383   : > { %v3460_v13 = vadd.f32 %v4540_v5, %v3459_v45 }
 0x384   : > { %v3437_v33 = vpop.xlane.xlu1 %3436  ;;  %v4542_v59 = vpop.eup %4541 }
 0x385   : > { %v3464_v61 = vsel %vm3463_vm6, %v4540_v5, %v3460_v13  ;;  %4545 = vrcp.f32 %v3437_v33  ;;  %v6524_v8 = vpop.eup %4543  ;;  %v3517_v34 = vmul.f32 %v4542_v59, %v3446_v38  ;;  %vm3522_vm8 = vweird.f32 %v4542_v59 }
 0x386   : > { %v3469_v19 = vsel %vm3466_vm7, %v3468_v15, %v3464_v61  ;;  %4547 = vrcp.f32 %v6522_v55  ;;  %v3502_v9 = vmul.f32 %v6524_v8, %v6519_v37  ;;  %vm3523_vm10 = vmor %vm3521_vm9, %vm3522_vm8  ;;  %v3482_v3 = vand.u32 2147483648, %v3437_v33  ;;  %v3097_v15 = vld [vmem:[#allocation3 + $0xf0] sm:$0xff] }
 0x387   : > { %v3518_v27 = vsub.f32 1.0, %v3517_v34  ;;  %v3470_v30 = vmul.f32 %v6295_v17, %v3469_v19  ;;  %v3480_v20 = vand.u32 2147483647, %v3437_v33  ;;  %vm3476_vm13 = vweird.f32 %v3437_v33 }
 0x388   : > { %v3503_v23 = vsub.f32 1.0, %v3502_v9  ;;  %v3483_v58 = vor.u32 1.1754944e-38, %v3482_v3  ;;  %vm3507_vm3 = vweird.f32 %v6524_v8  ;;  %vm3511_vm8 = vcmp.eq.f32.partialorder %v3510_v54, 8.507059e+37  ;;  %v3096_v9 = vld [vmem:[#allocation3 + $0xe8] sm:$0xff] }
 0x389   : > { %v3519_v7 = vmul.f32 %v4542_v59, %v3518_v27  ;;  %4362 = vmatmul.msk.f32.vlgmr.msra.gmra.mxu1 %vm643_vm0, %v3470_v30  ;;  %vm3481_vm15 = vcmp.eq.f32.partialorder %v3480_v20, 8.507059e+37  ;;  %vm6549_vm5 = vmor %vm3506_vm4, %vm3507_vm3  ;;  %v3572_v27 = vand.u32 2147483648, %v6522_v55 }
 0x38a   : > { %3729 = vmatpush.msra.mxu1 %v3094_v14  ;;  %v3504_v46 = vmul.f32 %v6524_v8, %v3503_v23 }
 0x38b   : > { %v4546_v6 = vpop.eup %4545  ;;  %v3520_v48 = vadd.f32 %v4542_v59, %v3519_v7  ;;  %v3095_v7 = vld [vmem:[#allocation3 + $0xe0] sm:$0xff] }
 0x38c   : > { %v3472_v26 = vmul.f32 %v4546_v6, %v3437_v33  ;;  %v6531_v35 = vpop.xlane.xlu1 %3439  ;;  %v6534_v51 = vpop.eup %4547  ;;  %3730 = vmatpush.msra.mxu1 %v3093_v24  ;;  %vm3477_vm12 = vweird.f32 %v4546_v6  ;;  %v3505_v18 = vadd.f32 %v6524_v8, %v3504_v46 }
 0x38d   : > { %4549 = vrcp.f32 %v6531_v35  ;;  %v3524_v0 = vsel %vm3523_vm10, %v4542_v59, %v3520_v48  ;;  %v3562_v36 = vmul.f32 %v6534_v51, %v6522_v55  ;;  %vm3478_vm14 = vmor %vm3476_vm13, %vm3477_vm12  ;;  %v3497_v11 = vand.u32 2147483648, %v6531_v35 }
 0x38e   : > { %v3473_v17 = vsub.f32 1.0, %v3472_v26  ;;  %v3529_v25 = vsel %vm3526_vm11, %v3528_v32, %v3524_v0  ;;  %3731 = vmatpush.msra.mxu1 %v3092_v1  ;;  %v3495_v39 = vand.u32 2147483647, %v6531_v35  ;;  %v3509_v31 = vsel %vm6549_vm5, %v6524_v8, %v3505_v18 }
 0x38f   : > { %v3530_v42 = vmul.f32 %v6299_v28, %v3529_v25  ;;  %v3563_v50 = vsub.f32 1.0, %v3562_v36  ;;  %v3512_v28 = vand.u32 2147483648, %v6519_v37  ;;  %v3098_v37 = vld [vmem:[#allocation3 + $0xf8] sm:$0xff]  ;;  %vm3491_vm7 = vweird.f32 %v6531_v35 }
 0x390   : > { %v3474_v62 = vmul.f32 %v4546_v6, %v3473_v17  ;;  %3732 = vmatpush.msra.mxu1 %v3091_v29  ;;  %vm3496_vm10 = vcmp.eq.f32.partialorder %v3495_v39, 8.507059e+37  ;;  %vm3567_vm11 = vweird.f32 %v6534_v51  ;;  %vm3566_vm12 = vweird.f32 %v6522_v55 }
 0x391   : > { %4366 = vmatmul.msk.f32.vlgmr.msrb.gmra.mxu3 %vm643_vm0, %v3530_v42  ;;  %v3564_v45 = vmul.f32 %v6534_v51, %v3563_v50  ;;  %v3513_v41 = vor.u32 1.1754944e-38, %v3512_v28  ;;  %vm3568_vm13 = vmor %vm3566_vm12, %vm3567_vm11  ;;  %vm4017_vm11 = vcmask 130048   ;;  %vm4019_vm12 = vcmask 162816  }
 0x392   : > { %v3475_v12 = vadd.f32 %v4546_v6, %v3474_v62 }
 0x393   : > { %v4550_v43 = vpop.eup %4549  ;;  %v3514_v59 = vsel %vm3511_vm8, %v3513_v41, %v3509_v31  ;;  %v3565_v8 = vadd.f32 %v6534_v51, %v3564_v45 }
 0x394   : > { %v3479_v44 = vsel %vm3478_vm14, %v4546_v6, %v3475_v12  ;;  %v3487_v57 = vmul.f32 %v4550_v43, %v6531_v35  ;;  %v3449_v40 = vpop.xlane.xlu0 %3448  ;;  %vm3492_vm6 = vweird.f32 %v4550_v43  ;;  %v3515_v10 = vmul.f32 %v6291_v22, %v3514_v59 }
 0x395   : > { %v3484_v60 = vsel %vm3481_vm15, %v3483_v58, %v3479_v44  ;;  %4551 = vrcp.f32 %v3449_v40  ;;  %vm3493_vm9 = vmor %vm3491_vm7, %vm3492_vm6  ;;  %v3542_v14 = vand.u32 2147483648, %v3449_v40  ;;  %v3569_v26 = vsel %vm3568_vm13, %v6534_v51, %v3565_v8 }
 0x396   : > { %v3488_v63 = vsub.f32 1.0, %v3487_v57  ;;  %v3485_v5 = vmul.f32 %v6310_v53, %v3484_v60  ;;  %v3498_v53 = vor.u32 1.1754944e-38, %v3497_v11  ;;  %v3540_v23 = vand.u32 2147483647, %v3449_v40 }
 0x397   : > { %vm3571_vm15 = vcmp.eq.f32.partialorder %v3570_v2, 8.507059e+37  ;;  %vm3536_vm3 = vweird.f32 %v3449_v40  ;;  %v3543_v24 = vor.u32 1.1754944e-38, %v3542_v14  ;;  %vm4021_vm13 = vcmask 195584  }
 0x398   : > { %v3489_v38 = vmul.f32 %v4550_v43, %v3488_v63  ;;  %4363 = vmatmul.msk.f32.vlgmr.msrb.gmra.mxu2 %vm643_vm0, %v3485_v5  ;;  %vm3541_vm5 = vcmp.eq.f32.partialorder %v3540_v23, 8.507059e+37 }
 0x399   : > { %3752 = vmatpush.msrb.mxu2 %v3098_v37 }
 0x39a   : > { %v3490_v13 = vadd.f32 %v4550_v43, %v3489_v38 }
 0x39b   : > { %v4552_v33 = vpop.eup %4551  ;;  %3753 = vmatpush.msrb.mxu2 %v3097_v15 }
 0x39c   : > { %v3494_v61 = vsel %vm3493_vm9, %v4550_v43, %v3490_v13  ;;  %v3532_v34 = vmul.f32 %v4552_v33, %v3449_v40  ;;  %vm3537_vm14 = vweird.f32 %v4552_v33 }
 0x39d   : > { %v3499_v19 = vsel %vm3496_vm10, %v3498_v53, %v3494_v61  ;;  %3754 = vmatpush.msrb.mxu2 %v3096_v9  ;;  %vm3538_vm4 = vmor %vm3536_vm3, %vm3537_vm14  ;;  %vm4013_vm10 = vcmask 64512   ;;  %vm4023_vm14 = vcmask 228352  }
 0x39e   : > { %v3500_v30 = vmul.f32 %v6328_v49, %v3499_v19  ;;  %v3533_v6 = vsub.f32 1.0, %v3532_v34  ;;  %v3573_v49 = vor.u32 1.1754944e-38, %v3572_v27 }
 0x39f   : > { %3755 = vmatpush.msrb.mxu2 %v3095_v7 }
 0x3a0   : > { %4364 = vmatmul.msk.f32.vlgmr.msrb.gmra.mxu1 %vm643_vm0, %v3500_v30  ;;  %v3534_v35 = vmul.f32 %v4552_v33, %v3533_v6  ;;  %4365 = vmatmul.msk.f32.vlgmr.msra.gmra.mxu2 %vm643_vm0, %v3515_v10  ;;  %v3574_v55 = vsel %vm3571_vm15, %v3573_v49, %v3569_v26 }
 0x3a1   : > { %v3575_v3 = vmul.f32 %v6301_v52, %v3574_v55 }
 0x3a2   : > { %v3535_v48 = vadd.f32 %v4552_v33, %v3534_v35 }
 0x3a4   : > { %v3539_v22 = vsel %vm3538_vm4, %v4552_v33, %v3535_v48 }
 0x3a5   : > { %v3544_v17 = vsel %vm3541_vm5, %v3543_v24, %v3539_v22 }
 0x3a6   : > { %v3545_v32 = vmul.f32 %v6357_v16, %v3544_v17 }
 0x3a8   : > { %4367 = vmatmul.msk.f32.vlgmr.msrb.gmra.mxu0 %vm643_vm0, %v3545_v32  ;;  %4369 = vmatmul.msk.f32.vlgmr.msrb.gmra.mxu2 %vm643_vm0, %v3575_v3 }
 0x3aa   : > { %v3452_v51 = vpop.xlane.xlu1 %3451 }
 0x3ab   : > { %4553 = vrcp.f32 %v3452_v51  ;;  %v3557_v20 = vand.u32 2147483648, %v3452_v51  ;;  %v3555_v46 = vand.u32 2147483647, %v3452_v51  ;;  %vm3551_vm7 = vweird.f32 %v3452_v51 }
 0x3ad   : > { %v3558_v29 = vor.u32 1.1754944e-38, %v3557_v20  ;;  %vm3556_vm9 = vcmp.eq.f32.partialorder %v3555_v46, 8.507059e+37 }
 0x3b1   : > { %v4554_v0 = vpop.eup %4553 }
 0x3b2   : > { %v3547_v1 = vmul.f32 %v4554_v0, %v3452_v51  ;;  %vm3552_vm6 = vweird.f32 %v4554_v0 }
 0x3b3   : > { %vm3553_vm8 = vmor %vm3551_vm7, %vm3552_vm6 }
 0x3b4   : > { %v3548_v62 = vsub.f32 1.0, %v3547_v1 }
 0x3b6   : > { %v3549_v25 = vmul.f32 %v4554_v0, %v3548_v62 }
 0x3b8   : > { %v3550_v36 = vadd.f32 %v4554_v0, %v3549_v25 }
 0x3ba   : > { %v3554_v16 = vsel %vm3553_vm8, %v4554_v0, %v3550_v36 }
 0x3bb   : > { %v3559_v52 = vsel %vm3556_vm9, %v3558_v29, %v3554_v16 }
 0x3bc   : > { %v3560_v42 = vmul.f32 %v6389_v56, %v3559_v52 }
 0x3be   : > { %4368 = vmatmul.msk.f32.vlgmr.msra.gmra.mxu1 %vm643_vm0, %v3560_v42 }
 0x406   : > { %v3596_v43 = vpop.f32.mrf.mxu1 }
 0x407   : > { %v3762_v63 = vrot.slane %v3596_v43, 4 }
 0x414   : > { %v3688_v53 = vpop.f32.mrf.mxu3 }
 0x415   : > { %v3786_v34 = vrot.slane %v3688_v53, 4 }
 0x41b   : > { %v3619_v12 = vpop.f32.mrf.mxu2 }
 0x41c   : > { %v3774_v57 = vrot.slane %v3619_v12, 4 }
 0x41d   : > { %v3642_v44 = vpop.f32.mrf.mxu1 }
 0x41e   : > { %v3760_v60 = vrot.slane %v3642_v44, 4  ;;  %v3763_v5 = vsel %vm811_vm1, %v3642_v44, %v3762_v63 }
 0x41f   : > { %v3771_v37 = vperm.slane %v3763_v5, %v5276_v47 }
 0x420   : > { %v3761_v56 = vsel %vm811_vm1, %v3760_v60, %v3596_v43 }
 0x421   : > { %v3767_v45 = vperm.slane %v3761_v56, %v5276_v47  ;;  %v3822_v61 = vrot.slane %v3771_v37, 4 }
 0x423   : > { %v3665_v58 = vpop.f32.mrf.mxu2  ;;  %v3810_v59 = vrot.slane %v3767_v45, 4 }
 0x424   : > { %v3772_v18 = vrot.slane %v3665_v58, 4  ;;  %v3775_v50 = vsel %vm811_vm1, %v3665_v58, %v3774_v57 }
 0x425   : > { %v3711_v40 = vpop.f32.mrf.mxu0  ;;  %v3783_v11 = vperm.slane %v3775_v50, %v5276_v47 }
 0x426   : > { %v3773_v54 = vsel %vm811_vm1, %v3772_v18, %v3619_v12  ;;  %v3798_v21 = vrot.slane %v3711_v40, 4 }
 0x427   : > { %v3779_v39 = vperm.slane %v3773_v54, %v5276_v47  ;;  %v3820_v41 = vrot.slane %v3783_v11, 4  ;;  %v3823_v27 = vsel %vm811_vm1, %v3783_v11, %v3822_v61 }
 0x428   : > { %v3831_v49 = vperm.slane %v3823_v27, %v5298_v4 }
 0x429   : > { %v3808_v33 = vrot.slane %v3779_v39, 4  ;;  %v3821_v8 = vsel %vm811_vm1, %v3820_v41, %v3771_v37  ;;  %v3811_v9 = vsel %vm811_vm1, %v3779_v39, %v3810_v59 }
 0x42a   : > { %v3827_v7 = vperm.slane %v3821_v8, %v5298_v4  ;;  %v3819_v23 = vperm.slane %v3811_v9, %v5298_v4  ;;  %v3870_v16 = vrot.slane %v3831_v49, 4 }
 0x42b   : > { %v3757_v28 = vpop.f32.mrf.mxu2  ;;  %v3809_v6 = vsel %vm811_vm1, %v3808_v33, %v3767_v45 }
 0x42c   : > { %v3796_v38 = vrot.slane %v3757_v28, 4  ;;  %v3799_v31 = vsel %vm811_vm1, %v3757_v28, %v3798_v21  ;;  %v3815_v55 = vperm.slane %v3809_v6, %v5298_v4  ;;  %v3866_v32 = vrot.slane %v3827_v7, 4 }
 0x42d   : > { %v3807_v15 = vperm.slane %v3799_v31, %v5276_v47  ;;  %v3862_v29 = vrot.slane %v3819_v23, 4 }
 0x42e   : > { %v3797_v13 = vsel %vm811_vm1, %v3796_v38, %v3711_v40  ;;  %v3858_v36 = vrot.slane %v3815_v55, 4 }
 0x42f   : > { %v3803_v19 = vperm.slane %v3797_v13, %v5276_v47  ;;  %v3844_v2 = vrot.slane %v3807_v15, 4 }
 0x431   : > { %v3832_v35 = vrot.slane %v3803_v19, 4 }
 0x43b   : > { %v3734_v30 = vpop.f32.mrf.mxu1 }
 0x43c   : > { %v3784_v10 = vrot.slane %v3734_v30, 4  ;;  %v3787_v14 = vsel %vm811_vm1, %v3734_v30, %v3786_v34 }
 0x43d   : > { %v3795_v26 = vperm.slane %v3787_v14, %v5276_v47 }
 0x43e   : > { %v3785_v48 = vsel %vm811_vm1, %v3784_v10, %v3688_v53 }
 0x43f   : > { %v3791_v24 = vperm.slane %v3785_v48, %v5276_v47  ;;  %v3846_v22 = vrot.slane %v3795_v26, 4  ;;  %v3845_v17 = vsel %vm811_vm1, %v3844_v2, %v3795_v26 }
 0x440   : > { %v3851_v3 = vperm.slane %v3845_v17, %v5298_v4 }
 0x441   : > { %v3834_v51 = vrot.slane %v3791_v24, 4  ;;  %v3833_v0 = vsel %vm811_vm1, %v3832_v35, %v3791_v24  ;;  %v3847_v1 = vsel %vm811_vm1, %v3807_v15, %v3846_v22 }
 0x442   : > { %v3839_v62 = vperm.slane %v3833_v0, %v5298_v4  ;;  %v3855_v20 = vperm.slane %v3847_v1, %v5298_v4  ;;  %v3864_v25 = vrot.slane %v3851_v3, 4  ;;  %v3867_v46 = vsel %vm811_vm1, %v3851_v3, %v3866_v32 }
 0x443   : > { %v3835_v52 = vsel %vm811_vm1, %v3803_v19, %v3834_v51  ;;  %v3910_v18 = vrot.slane %v3867_v46, 4 }
 0x444   : > { %v3843_v42 = vperm.slane %v3835_v52, %v5298_v4  ;;  %v3856_v12 = vrot.slane %v3839_v62, 4  ;;  %v3865_v43 = vsel %vm811_vm1, %v3864_v25, %v3827_v7  ;;  %v3868_v58 = vrot.slane %v3855_v20, 4 }
 0x445   : > { %v3871_v44 = vsel %vm811_vm1, %v3855_v20, %v3870_v16  ;;  %v3898_v57 = vrot.slane %v3865_v43, 4  ;;  %v3859_v60 = vsel %vm811_vm1, %v3839_v62, %v3858_v36 }
 0x446   : > { %v3860_v50 = vrot.slane %v3843_v42, 4  ;;  %v3863_v40 = vsel %vm811_vm1, %v3843_v42, %v3862_v29  ;;  %v3869_v28 = vsel %vm811_vm1, %v3868_v58, %v3831_v49  ;;  %v3908_v63 = vrot.slane %v3871_v44, 4 }
 0x447   : > { %v3884_v54 = vrot.slane %v3863_v40, 4  ;;  %v3896_v11 = vrot.slane %v3869_v28, 4  ;;  %v3857_v56 = vsel %vm811_vm1, %v3856_v12, %v3815_v55  ;;  %v3886_v5 = vrot.slane %v3859_v60, 4 }
 0x448   : > { %v3861_v21 = vsel %vm811_vm1, %v3860_v50, %v3819_v23  ;;  %v3874_v38 = vrot.slane %v3857_v56, 4  ;;  %v3909_v39 = vsel %vm811_vm1, %v3908_v63, %v3867_v46  ;;  %v3899_v31 = vsel %vm811_vm1, %v3869_v28, %v3898_v57 }
 0x449   : > { %v3872_v45 = vrot.slane %v3861_v21, 4  ;;  %v3885_v37 = vsel %vm811_vm1, %v3884_v54, %v3859_v60  ;;  %v3897_v41 = vsel %vm811_vm1, %v3896_v11, %v3865_v43  ;;  %v3915_v13 = vperm.slane %v3909_v39, %v5276_v47  ;;  %v4027_v54 = vld [vmem:[#allocation13 + $0x10] sm:$0xff]  ;;  %v4026_v11 = vld [vmem:[#allocation13 + $0x8] sm:$0xff] }
 0x44a   : > { %v3891_v53 = vperm.slane %v3885_v37, %v5276_v47  ;;  %v3903_v15 = vperm.slane %v3897_v41, %v5276_v47  ;;  %v3875_v33 = vsel %vm811_vm1, %v3861_v21, %v3874_v38  ;;  %v3887_v59 = vsel %vm811_vm1, %v3863_v40, %v3886_v5  ;;  %v4059_v5 = vld [vmem:[#allocation15 + $0x18] sm:$0xff]  ;;  %v4058_v21 = vld [vmem:[#allocation15 + $0x10] sm:$0xff] }
 0x44b   : > { %v3873_v61 = vsel %vm811_vm1, %v3872_v45, %v3857_v56  ;;  %v3944_v8 = vrot.slane %v3915_v13, 4  ;;  %v3883_v19 = vperm.slane %v3875_v33, %v5276_v47  ;;  %v3895_v34 = vperm.slane %v3887_v59, %v5276_v47  ;;  %v4025_v56 = vld [vmem:[#allocation13] sm:$0xff]  ;;  %4079 = vmatpush.msra.mxu0 %v4059_v5 }
 0x44c   : > { %v3879_v9 = vperm.slane %v3873_v61, %v5276_v47  ;;  %v3946_v27 = vrot.slane %v3903_v15, 4  ;;  %v3920_v30 = vrot.slane %v3891_v53, 4  ;;  %v3907_v2 = vperm.slane %v3899_v31, %v5276_v47 }
 0x44d   : > { %v3945_v6 = vsel %vm811_vm1, %v3944_v8, %v3903_v15  ;;  %v3911_v7 = vsel %vm811_vm1, %v3871_v44, %v3910_v18  ;;  %v3932_v10 = vrot.slane %v3895_v34, 4  ;;  %v3934_v17 = vrot.slane %v3883_v19, 4  ;;  %4080 = vmatpush.msra.mxu0 %v4058_v21 }
 0x44e   : > { %v3922_v14 = vrot.slane %v3879_v9, 4  ;;  %v3947_v26 = vsel %vm811_vm1, %v3915_v13, %v3946_v27  ;;  %v3921_v35 = vsel %vm811_vm1, %v3920_v30, %v3879_v9  ;;  %v3951_v23 = vperm.slane %v3945_v6, %v5298_v4  ;;  %v4056_v9 = vld [vmem:[#allocation15] sm:$0xff]  ;;  %v4521_v27 = vld [vmem:[%s6721_s9] ss:$0 sm:$0xff] }
 0x44f   : > { %v3955_v49 = vperm.slane %v3947_v26, %v5298_v4  ;;  %v3927_v48 = vperm.slane %v3921_v35, %v5298_v4  ;;  %v3919_v55 = vperm.slane %v3911_v7, %v5276_v47  ;;  %v3958_v32 = vrot.slane %v3907_v2, 4  ;;  %v4089_v6 = vld [vmem:[%s6766_s20] sm:$0x3] }
 0x450   : > { %v3923_v24 = vsel %vm811_vm1, %v3891_v53, %v3922_v14  ;;  %v3968_v22 = vrot.slane %v3951_v23, 4  ;;  %v3933_v62 = vsel %vm811_vm1, %v3932_v10, %v3883_v19  ;;  %v3935_v29 = vsel %vm811_vm1, %v3895_v34, %v3934_v17  ;;  %v4057_v34 = vld [vmem:[#allocation15 + $0x8] sm:$0xff]  ;;  %v4522_v10 = vld [vmem:[%s6767_s25] ss:$0 sm:$0xff] }
 0x451   : > { %v3931_v3 = vperm.slane %v3923_v24, %v5298_v4  ;;  %v3972_v51 = vrot.slane %v3955_v49, 4  ;;  %v3970_v0 = vrot.slane %v3927_v48, 4  ;;  %v3959_v1 = vsel %vm811_vm1, %v3919_v55, %v3958_v32  ;;  %4081 = vmatpush.msra.mxu0 %v4057_v34 }
 0x452   : > { %v3956_v20 = vrot.slane %v3919_v55, 4  ;;  %v3967_v47 = vperm.slane %v3959_v1, %v5298_v4  ;;  %v3969_v52 = vsel %vm811_vm1, %v3968_v22, %v3927_v48  ;;  %v3939_v12 = vperm.slane %v3933_v62, %v5298_v4 }
 0x453   : > { %v3973_v25 = vsel %vm811_vm1, %v3972_v51, %v3931_v3  ;;  %v3971_v46 = vsel %vm811_vm1, %v3951_v23, %v3970_v0  ;;  %v3974_v36 = vrot.slane %v3931_v3, 4  ;;  %v3943_v58 = vperm.slane %v3935_v29, %v5298_v4  ;;  %4082 = vmatpush.msra.mxu0 %v4056_v9  ;;  %v4088_v23 = vld [vmem:[%s6768_s13] sm:$0x3] }
 0x454   : > { %3989 = vrot.lane.b32.xlu1 %v3973_v25, %s4884_s8  ;;  %3985 = vrot.lane.b32.xlu2 %v3971_v46, %s4885_s22  ;;  %v3957_v16 = vsel %vm811_vm1, %v3956_v20, %v3907_v2  ;;  %v3980_v44 = vrot.slane %v3967_v47, 4  ;;  %v3978_v18 = vrot.slane %v3939_v12, 4  ;;  %v4891_v7 = vmov 0  }
 0x455   : > { %v3975_v42 = vsel %vm811_vm1, %v3955_v49, %v3974_v36  ;;  %v3963_v43 = vperm.slane %v3957_v16, %v5298_v4  ;;  %v3982_v28 = vrot.slane %v3943_v58, 4  ;;  %v4028_v4 = vld [vmem:[#allocation13 + $0x18] sm:$0xff]  ;;  %4517 = vset.pattern.permute.xlu0 %v4891_v7 }
 0x456   : > { %3993 = vrot.lane.b32.xlu0 %v3975_v42, %s4886_s29  ;;  %v3981_v60 = vsel %vm811_vm1, %v3980_v44, %v3943_v58  ;;  %4048 = vmatpush.msra.mxu3 %v4028_v4  ;;  %s6769_s29 = sld [smem:[#allocation37_spill]] }
 0x457   : > { %v3976_v57 = vrot.slane %v3963_v43, 4  ;;  %v3979_v40 = vsel %vm811_vm1, %v3963_v43, %v3978_v18  ;;  %v3983_v63 = vsel %vm811_vm1, %v3967_v47, %v3982_v28 }
 0x458   : > { %4049 = vmatpush.msra.mxu3 %v4027_v54 }
 0x459   : > { %v3977_v50 = vsel %vm811_vm1, %v3976_v57, %v3939_v12  ;;  %vm4015_vm1 = vcmask 97280  }
 0x45a   : > { %4050 = vmatpush.msra.mxu3 %v4026_v11 }
 0x45c   : > { %4005 = vrot.lane.b32.xlu1 %v3981_v60, %s4887_s10  ;;  %3997 = vrot.lane.b32.xlu2 %v3977_v50, %s4888_s15  ;;  %s6770_s10 = smov %s6769_s29  ;;  %s4135_s15 = scalar_lea.hbm %s6769_s29, %s4375_s28 }
 0x45d   : > { %4051 = vmatpush.msra.mxu3 %v4025_v56  ;;  %s4139_s26 = sshll.u32 %s4135_s15, 4  ;;  %s4787_s11 = scalar_lea.hbm %s6770_s10, 4  ;;  %s4140_s26 = int_to_ptr.hbm [resolvable:$true] %s4139_s26 }
 0x45e   : > { %4001 = vrot.lane.b32.xlu0 %v3979_v40, %s4889_s23  ;;  %s4781_s14 = sshra.s32 %s4140_s26, 4  ;;  %s4782_s14 = int_to_ptr.hbm [resolvable:$true] %s4781_s14 }
 0x45f   : > { %s4783_s20 = scalar_lea.hbm %s4782_s14, 2  ;;  %p4788_p10 = scmp.lt.s32.totalorder %s4782_s14, %s6770_s10 }
 0x460   : > { %p4784_p1 = scmp.ne.s32.totalorder %s4782_s14, %s4783_s20  ;;  %p4789_p11 = scmp.lt.s32.totalorder %s4787_s11, %s4783_s20 }
 0x462   : > { %p4785_p3 = pnand %p4784_p1, %p5079_p4  ;;  %p4790_p12 = por %p4789_p11, %p4788_p10 }
 0x464   : > { %4009 = vrot.lane.b32.xlu2 %v3983_v63, %s4890_s3  ;;  %s625_s3 = scalar_lea.vmem [#allocation16], %s4312_s27  ;;  %p4786_p9 = pneg %p4785_p3 }
 0x465   : > { %s4137_s19 = sshll.u32 %s625_s3, 4  ;;  %s4138_s19 = int_to_ptr.vmem [resolvable:$true] %s4137_s19 }
 0x466   : > { %4092 = vperm.xlu0 %4517, %v4089_v6   ;;  %p4791_p13 = pnand %p4790_p12, %p4786_p9 }
 0x4ae   : > { %v3986_v38 = vpop.permute.xlu2 %3985 }
 0x4af   : > { %v4012_v37 = vsel %vm1707_vm2, %v3969_v52, %v3986_v38  ;;  %vm4121_vm2 = vcmask 58368  }
 0x4b6   : > { %v3998_v31 = vpop.permute.xlu2 %3997 }
 0x4be   : > { %v4010_v61 = vpop.permute.xlu2 %4009 }
 0x4c6   : > { %v3990_v39 = vpop.permute.xlu1 %3989 }
 0x4c7   : > { %v4014_v41 = vsel %vm4013_vm10, %v4012_v37, %v3990_v39 }
 0x4c8   : > { %v3994_v45 = vpop.permute.xlu0 %3993 }
 0x4c9   : > { %v4016_v13 = vsel %vm4015_vm1, %v4014_v41, %v3994_v45 }
 0x4ca   : > { %v4018_v15 = vsel %vm4017_vm11, %v4016_v13, %v3998_v31 }
 0x4ce   : > { %v4006_v33 = vpop.permute.xlu1 %4005 }
 0x4d0   : > { %v4002_v53 = vpop.permute.xlu0 %4001 }
 0x4d1   : > { %v4020_v59 = vsel %vm4019_vm12, %v4018_v15, %v4002_v53 }
 0x4d2   : > { %v4022_v8 = vsel %vm4021_vm13, %v4020_v59, %v4006_v33 }
 0x4d3   : > { %v4024_v19 = vsel %vm4023_vm14, %v4022_v8, %v4010_v61 }
 0x4d4   : > { %4370 = vmatmul.msk.f32.vlgmr.msra.gmra.mxu3 %vm643_vm0, %v4024_v19 }
 0x4d8   : > { %v4093_v49 = vpop.permute.xlu0 %4092 }
 0x557   : > { %v4053_v30 = vpop.f32.mrf.mxu3 }
 0x558   : > { %v4054_v2 = vadd.f32 %v4521_v27, %v4053_v30 }
 0x55a   : > { %4371 = vmatmul.msk.f32.vlgmr.msra.gmra.mxu0 %vm643_vm0, %v4054_v2 }
 0x5d7   : > { %v4084_v14 = vpop.f32.mrf.mxu0 }
 0x5d8   : > { %v4085_v26 = vadd.f32 %v4522_v10, %v4084_v14 }
 0x5da   : > { %4555 = vtanh.f32 %v4085_v26 }
 0x5e0   : > { %v4556_v35 = vpop.eup %4555 }
 0x5e1   : > { %4372 = vmatpush.xpose.msk.msrb.mxu1 %vm643_vm0, %v4556_v35 }
 0x5e4   : > { %4373 = vmatmul.msk.f32.vlgmr.msrb.gmra.mxu1 %vm643_vm0, %v4088_v23 }
 0x661   : > { %v4118_v48 = vpop.f32.mrf.mxu1 }
 0x662   : > { %v4119_v55 = vadd.f32 %v4118_v48, %v4093_v49 }
 0x664   : > { %4122 = vst.msk [vmem:[%s625_s3] sm:$0x3] %vm4121_vm2, %v4119_v55 }
 0x665   : > { %4794 = shalt.err (!%p4791_p13)
}
 0x666   : > { %4403 = dma.vmem_to_hbm [thread:$0]  (%p5079_p4), %s4138_s19, 32, %s4140_s26, %s4124_s12  }
 0x667 PF: > { %s6772_s4 = sld [smem:[#allocation23_spill]]  ;;  %p4429_p0 = pnand %p4298_p6, %p5087_p7 }
 0x669   : > { %p4430_p2 = pneg %p4429_p0 }
 0x66d   : > { %s4151_s13 = sand.u32 1, %s6772_s4  }
 0x66e   : > { %s4152_s27 = scalar_lea.sflag [#allocation6], %s4151_s13 }
 0x66f   : > { %4840 = dma.done.wait (%p4430_p2), %s4152_s27, 32  }
 0x670   : > { %4842 = vsyncadd (%p4430_p2), %s4152_s27, 4294967264  ;;  %s35_s18 = sadd.s32 1, %s4865_s18   ;;  %s6774_s28 = sld [smem:[#allocation24_spill]] }
 0x671   : > { %p32_p5 = scmp.ge.s32.totalorder %s35_s18, 4   ;;  %s6775_s15 = sld [smem:[#allocation27_spill]] }
 0x672   : > { %s6776_s8 = sld [smem:[#allocation25_spill]]  ;;  %s6777_s29 = smov %s4849_s30 }
 0x673   : > { %s6779_s16 = smov %s4861_s17 }
 0x674   :  { %34 = sbr.rel (!%p32_p5) target bundleno = 20 (0x14), region = 158 }
 0x676   : > { %s6778_s30 = smov %s6774_s28 }
 0x678   : > { %s6780_s17 = smov %s6776_s8 }
 0x679   :  { %4158 = vsyncpa [#allocation5], 1 }
 0x67a   :  { %4160 = vsyncpa [#allocation5 + $0x1], 1 }
 0x67b   :  { %4161 = vsyncpa [#allocation8], 1 }
 0x67c   :  { %4163 = vsyncpa [#allocation8 + $0x1], 1 }
 0x67d   :  { %4164 = vsyncpa [#allocation11], 1 }
 0x67e   :  { %4165 = vsyncpa [#allocation14], 1 }
 0x67f   :  { %4166 = vsyncpa [#allocation6], 1 }
 0x680   :  { %4168 = vsyncpa [#allocation6 + $0x1], 1 }

</bundles_post_ra>
